<compile_context>
chip_gen: v5e
topology: v5e:2x2
jax: 0.10.0
libtpu: 0.0.40
codegen_flags: <defaults>
</compile_context>

<pallas_src>
import jax
import jax.numpy as jnp
from jax.experimental import pallas as pl
from jax.experimental.pallas import tpu as pltpu

EPS_GEN = 1e-7       # GENConv message eps (msg.relu() + eps)
EPS_LN = 1e-5        # torch / PyG LayerNorm eps
EPS_NORM = 1e-12     # torch F.normalize eps
EXP_FLOOR = 1e-30    # keeps num/den from BOTH underflowing to exact zero

ROW_TILE_CAP = 512                       # destination / prep row tile
SRC_TILE_CAP = 2048                      # aggregation K-tile over source nodes
RESIDENT_EM_BYTES = 8 * 1024 * 1024      # keep [e*m,e] VMEM-resident below this (v7x-safe)
GEN_CONV_VMEM_LIMIT = 32 * 1024 * 1024   # explicit scoped-VMEM budget for gen_conv


def _round_up(x, m):
    return ((x + m - 1) // m) * m


def _pad_rows(x, n_pad):
    n = x.shape[0]
    return x if n_pad == n else jnp.pad(x, ((0, n_pad - n), (0, 0)))


def _pick_tn(n, cap=ROW_TILE_CAP):
    return min(cap, _round_up(n, 128))


def _pick_tk(n_pad, cap=SRC_TILE_CAP):
    if n_pad <= cap:
        return n_pad
    for cand in (2048, 1024, 512, 256, 128):
        if cand <= cap and n_pad % cand == 0:
            return cand
    return 128


# ----------------------------------------------------------------------------
# Kernel 1: node encoder Linear fused with the layer-0 softmax-logit per-tile
#           column max:  y = x @ W + b ; c_i = max_over_tile( t*(relu(y)+eps) )
#           (cross-tile max is a tiny plain-JAX reduce -> axis stays parallel)
# ----------------------------------------------------------------------------
def _enc_linear_smax_kernel(t_ref, x_ref, w_ref, b_ref, y_ref, c_ref):
    y = jnp.dot(x_ref[...], w_ref[...], preferred_element_type=jnp.float32) + b_ref[...]
    y_ref[...] = y
    s = t_ref[0, 0] * (jnp.maximum(y, 0.0) + EPS_GEN)
    c_ref[...] = jnp.max(s, axis=0, keepdims=True)[None]   # (1,1,H)


def encoder_linear_smax(x, w, b, t, *, tn):
    n_pad, fin = x.shape
    h = w.shape[1]
    n_tiles = n_pad // tn
    return pl.pallas_call(
        _enc_linear_smax_kernel,
        out_shape=(jax.ShapeDtypeStruct((n_pad, h), jnp.float32),
                   jax.ShapeDtypeStruct((n_tiles, 1, h), jnp.float32)),
        grid=(n_tiles,),
        in_specs=[
            pl.BlockSpec(memory_space=pltpu.MemorySpace.SMEM),   # t
            pl.BlockSpec((tn, fin), lambda i: (i, 0)),
            pl.BlockSpec((fin, h), lambda i: (0, 0)),
            pl.BlockSpec((1, h), lambda i: (0, 0)),
        ],
        out_specs=(pl.BlockSpec((tn, h), lambda i: (i, 0)),
                   pl.BlockSpec((1, 1, h), lambda i: (i, 0, 0))),
        compiler_params=pltpu.CompilerParams(dimension_semantics=("parallel",)),
    )(t, x, w, b.reshape(1, h))


# ----------------------------------------------------------------------------
# Kernel 2: per-layer prep — h = relu(LayerNorm(x)) fused with the per-tile
#           softmax-logit column max  c_i = max_over_tile( t * (h + eps) )
# ----------------------------------------------------------------------------
def _ln_relu_smax_kernel(t_ref, x_ref, g_ref, b_ref, h_ref, c_ref):
    x = x_ref[...]
    mu = jnp.mean(x, axis=-1, keepdims=True)
    var = jnp.mean((x - mu) ** 2, axis=-1, keepdims=True)
    y = (x - mu) * jax.lax.rsqrt(var + EPS_LN) * g_ref[...] + b_ref[...]
    hblk = jnp.maximum(y, 0.0)
    h_ref[...] = hblk
    s = t_ref[0, 0] * (hblk + EPS_GEN)
    c_ref[...] = jnp.max(s, axis=0, keepdims=True)[None]   # (1,1,H)


def ln_relu_smax(x, gamma, beta, t, *, tn):
    n_pad, hd = x.shape
    n_tiles = n_pad // tn
    return pl.pallas_call(
        _ln_relu_smax_kernel,
        out_shape=(jax.ShapeDtypeStruct((n_pad, hd), jnp.float32),
                   jax.ShapeDtypeStruct((n_tiles, 1, hd), jnp.float32)),
        grid=(n_tiles,),
        in_specs=[
            pl.BlockSpec(memory_space=pltpu.MemorySpace.SMEM),   # t
            pl.BlockSpec((tn, hd), lambda i: (i, 0)),
            pl.BlockSpec((1, hd), lambda i: (0, 0)),
            pl.BlockSpec((1, hd), lambda i: (0, 0)),
        ],
        out_specs=(pl.BlockSpec((tn, hd), lambda i: (i, 0)),
                   pl.BlockSpec((1, 1, hd), lambda i: (i, 0, 0))),
        compiler_params=pltpu.CompilerParams(dimension_semantics=("parallel",)),
    )(t, x, gamma.reshape(1, hd), beta.reshape(1, hd))


# ----------------------------------------------------------------------------
# Kernel 3: per-source message prep, written ONCE per layer:
#           m = relu(h)+eps ; e = exp(t*m - c) ; out = concat([e*m, e]) in bf16
#   NOTE: c is a single global per-channel max; it cancels exactly in the
#   softmax ratio, but if all of a destination's logits sit ~80+ below the
#   global max both num/den hit EXP_FLOOR and degrade to a uniform mean.
# ----------------------------------------------------------------------------
def _msg_kernel(t_ref, h_ref, c_ref, o_ref):
    hd = h_ref.shape[-1]
    m = jnp.maximum(h_ref[...], 0.0) + EPS_GEN
    e = jnp.maximum(jnp.exp(t_ref[0, 0] * m - c_ref[...]), EXP_FLOOR)
    o_ref[:, :hd] = (e * m).astype(jnp.bfloat16)
    o_ref[:, hd:] = e.astype(jnp.bfloat16)


def msg(h, c, t, *, tn):
    n_pad, hd = h.shape
    return pl.pallas_call(
        _msg_kernel,
        out_shape=jax.ShapeDtypeStruct((n_pad, 2 * hd), jnp.bfloat16),
        grid=(n_pad // tn,),
        in_specs=[
            pl.BlockSpec(memory_space=pltpu.MemorySpace.SMEM),   # t
            pl.BlockSpec((tn, hd), lambda i: (i, 0)),
            pl.BlockSpec((1, hd), lambda i: (0, 0)),
        ],
        out_specs=pl.BlockSpec((tn, 2 * hd), lambda i: (i, 0)),
        compiler_params=pltpu.CompilerParams(dimension_semantics=("parallel",)),
    )(t, h, c)


# ----------------------------------------------------------------------------
# Kernel 4: GENConv aggregation + epilogue, K-tiled over source nodes.
#           Single bf16 MXU matmul  A_tile @ [e*m, e]  accumulated in f32;
#           adjacency streamed as int8 and cast in-kernel; [e*m,e] either
#           streamed per K-step or VMEM-resident (constant block index).
#           At the last K step: softmax divide, MessageNorm, root residual,
#           MLP (Linear -> LayerNorm -> ReLU -> Linear, bf16 weights),
#           'res+' skip.
# ----------------------------------------------------------------------------
def _make_gen_agg_kernel(resident_em, tk):
    def kernel(sc_ref, em_ref, adj_ref, h_ref, res_ref,
               w1_ref, b1_ref, g1_ref, be1_ref, w2_ref, b2_ref,
               o_ref, acc_ref):
        k = pl.program_id(1)

        @pl.when(k == 0)
        def _():
            acc_ref[...] = jnp.zeros_like(acc_ref)

        if resident_em:
            start = pl.multiple_of(k * tk, tk)
            em_blk = em_ref[pl.ds(start, tk), :]
        else:
            em_blk = em_ref[...]
        # int8 adjacency -> bf16 for the MXU (two-step cast, cheap VPU work)
        adj_blk = adj_ref[...].astype(jnp.float32).astype(jnp.bfloat16)
        acc_ref[...] += jnp.dot(adj_blk, em_blk,
                                preferred_element_type=jnp.float32)

        @pl.when(k == pl.num_programs(1) - 1)
        def _():
            hd = h_ref.shape[-1]
            acc = acc_ref[...]
            num, den = acc[:, :hd], acc[:, hd:]
            pos = den > 0.0
            # exact divide: epilogue runs once per row tile, accuracy matters
            agg = jnp.where(pos, num / jnp.where(pos, den, 1.0), 0.0)

            hb = h_ref[...]
            # MessageNorm: F.normalize(agg, p=2) * ||x_dst||_2 * scale + root
            inv_l2 = jax.lax.rsqrt(
                jnp.maximum(jnp.sum(agg * agg, axis=-1, keepdims=True),
                            EPS_NORM * EPS_NORM))
            x_l2 = jnp.sqrt(jnp.sum(hb * hb, axis=-1, keepdims=True))
            out = agg * inv_l2 * x_l2 * sc_ref[0, 0] + hb

            # MLP: Linear(H,2H) -> LayerNorm(2H) -> ReLU -> Linear(2H,H)
            z = jnp.dot(out.astype(jnp.bfloat16), w1_ref[...],
                        preferred_element_type=jnp.float32) + b1_ref[...]
            mu = jnp.mean(z, axis=-1, keepdims=True)
            var = jnp.mean((z - mu) ** 2, axis=-1, keepdims=True)
            z = (z - mu) * jax.lax.rsqrt(var + EPS_LN) * g1_ref[...] + be1_ref[...]
            z = jnp.maximum(z, 0.0)
            y = jnp.dot(z.astype(jnp.bfloat16), w2_ref[...],
                        preferred_element_type=jnp.float32) + b2_ref[...]

            o_ref[...] = y + res_ref[...]            # DeepGCNLayer 'res+' skip
    return kernel


def gen_conv(em_e, adj, h, residual, conv, *, tn, tk, resident_em):
    n_pad, hd = h.shape
    h2 = conv["w1"].shape[1]

    if resident_em:
        # whole [e*m, e] matrix VMEM-resident: constant block index -> one DMA
        em_spec = pl.BlockSpec((n_pad, 2 * hd), lambda i, k: (0, 0))
    else:
        em_spec = pl.BlockSpec((tk, 2 * hd), lambda i, k: (k, 0))

    return pl.pallas_call(
        _make_gen_agg_kernel(resident_em, tk),
        out_shape=jax.ShapeDtypeStruct((n_pad, hd), jnp.float32),
        grid=(n_pad // tn, n_pad // tk),
        in_specs=[
            pl.BlockSpec(memory_space=pltpu.MemorySpace.SMEM),      # MessageNorm scale
            em_spec,                                                # [e*m, e] (bf16)
            pl.BlockSpec((tn, tk), lambda i, k: (i, k)),            # adjacency (int8)
            pl.BlockSpec((tn, hd), lambda i, k: (i, 0)),            # conv input rows (dst)
            pl.BlockSpec((tn, hd), lambda i, k: (i, 0)),            # outer residual rows
            pl.BlockSpec((hd, h2), lambda i, k: (0, 0)),            # mlp W1 (bf16)
            pl.BlockSpec((1, h2), lambda i, k: (0, 0)),             # mlp b1
            pl.BlockSpec((1, h2), lambda i, k: (0, 0)),             # mlp LN gamma
            pl.BlockSpec((1, h2), lambda i, k: (0, 0)),             # mlp LN beta
            pl.BlockSpec((h2, hd), lambda i, k: (0, 0)),            # mlp W2 (bf16)
            pl.BlockSpec((1, hd), lambda i, k: (0, 0)),             # mlp b2
        ],
        out_specs=pl.BlockSpec((tn, hd), lambda i, k: (i, 0)),
        scratch_shapes=[pltpu.VMEM((tn, 2 * hd), jnp.float32)],
        compiler_params=pltpu.CompilerParams(
            dimension_semantics=("parallel", "arbitrary"),
            vmem_limit_bytes=GEN_CONV_VMEM_LIMIT),
    )(conv["scale"].reshape(1, 1), em_e, adj, h, residual,
      conv["w1"].astype(jnp.bfloat16), conv["b1"].reshape(1, h2),
      conv["g1"].reshape(1, h2), conv["be1"].reshape(1, h2),
      conv["w2"].astype(jnp.bfloat16), conv["b2"].reshape(1, hd))


# ----------------------------------------------------------------------------
# Kernel 5: final  relu(LayerNorm(x)) @ W + b, lane-dense (padded) output
#           (dropout = identity in eval)
# ----------------------------------------------------------------------------
def _ln_relu_linear_kernel(x_ref, g_ref, b_ref, w_ref, bo_ref, o_ref):
    x = x_ref[...]
    mu = jnp.mean(x, axis=-1, keepdims=True)
    var = jnp.mean((x - mu) ** 2, axis=-1, keepdims=True)
    hblk = jnp.maximum(
        (x - mu) * jax.lax.rsqrt(var + EPS_LN) * g_ref[...] + b_ref[...], 0.0)
    o_ref[...] = (jnp.dot(hblk, w_ref[...], preferred_element_type=jnp.float32)
                  + bo_ref[...])


def ln_relu_linear(x, gamma, beta, w, b, *, tn):
    n_pad, hd = x.shape
    fout = w.shape[1]
    fout_pad = _round_up(fout, 128)            # lane-dense stores
    if fout_pad != fout:
        w = jnp.pad(w, ((0, 0), (0, fout_pad - fout)))
        b = jnp.pad(b, ((0, fout_pad - fout),))
    return pl.pallas_call(
        _ln_relu_linear_kernel,
        out_shape=jax.ShapeDtypeStruct((n_pad, fout_pad), jnp.float32),
        grid=(n_pad // tn,),
        in_specs=[
            pl.BlockSpec((tn, hd), lambda i: (i, 0)),
            pl.BlockSpec((1, hd), lambda i: (0, 0)),
            pl.BlockSpec((1, hd), lambda i: (0, 0)),
            pl.BlockSpec((hd, fout_pad), lambda i: (0, 0)),
            pl.BlockSpec((1, fout_pad), lambda i: (0, 0)),
        ],
        out_specs=pl.BlockSpec((tn, fout_pad), lambda i: (i, 0)),
        compiler_params=pltpu.CompilerParams(dimension_semantics=("parallel",)),
    )(x, gamma.reshape(1, hd), beta.reshape(1, hd), w, b.reshape(1, fout_pad))


# ----------------------------------------------------------------------------
# DeeperGCN forward (adjacency build / param plumbing are plain-JAX glue)
# ----------------------------------------------------------------------------
def deeper_gcn_forward(x, edge_index, params):
    n = x.shape[0]
    hd = params["enc_w"].shape[1]
    out_dim = params["out_w"].shape[1]
    assert hd % 128 == 0, "hidden_channels must be a multiple of 128 lanes"

    tn = _pick_tn(n)
    n_pad = _round_up(n, tn)
    tk = _pick_tk(n_pad)
    resident_em = (n_pad * 2 * hd * 2) <= RESIDENT_EM_BYTES

    # Dense dst x src adjacency with edge multiplicities, stored int8 in HBM.
    # TODO(synk): hoist/reuse the adjacency across forward calls for static graphs.
    src, dst = edge_index[0], edge_index[1]
    cnt = jnp.zeros((n_pad, n_pad), jnp.int32).at[dst, src].add(1)
    adj = jnp.clip(cnt, 0, 127).astype(jnp.int8)

    xp = _pad_rows(x.astype(jnp.float32), n_pad)
    layers = params["layers"]

    # node_encoder fused with layer-0 per-tile softmax-logit max
    t0 = layers[0]["conv"]["t"].reshape(1, 1)
    h0, c0t = encoder_linear_smax(xp, params["enc_w"], params["enc_b"], t0, tn=tn)
    c0 = jnp.max(c0t[:, 0, :], axis=0, keepdims=True)   # tiny cross-tile reduce

    # x = layers[0].conv(x)   (no norm/act, no residual)
    em0 = msg(h0, c0, t0, tn=tn)
    xcur = gen_conv(em0, adj, h0, jnp.zeros_like(h0), layers[0]["conv"],
                    tn=tn, tk=tk, resident_em=resident_em)

    # res+ blocks: x = x + conv(dropout(relu(norm(x))))  (dropout identity, eval)
    for lp in layers[1:]:
        t = lp["conv"]["t"].reshape(1, 1)
        h, ct = ln_relu_smax(xcur, lp["norm_g"], lp["norm_b"], t, tn=tn)
        c = jnp.max(ct[:, 0, :], axis=0, keepdims=True)
        em = msg(h, c, t, tn=tn)
        xcur = gen_conv(em, adj, h, xcur, lp["conv"],
                        tn=tn, tk=tk, resident_em=resident_em)

    # final: relu(norm_0(x)) -> dropout (identity) -> lin   (fused, lane-dense)
    out = ln_relu_linear(xcur, layers[0]["norm_g"], layers[0]["norm_b"],
                         params["out_w"], params["out_b"], tn=tn)
    return out[:n, :out_dim]


def init_params(key, f_in, hidden, num_layers, out_dim):
    state = {"key": key}

    def nkey():
        state["key"], sub = jax.random.split(state["key"])
        return sub

    def dense(fan_in, fan_out):
        w = jax.random.normal(nkey(), (fan_in, fan_out), jnp.float32) / jnp.sqrt(
            jnp.float32(fan_in))
        b = 0.01 * jax.random.normal(nkey(), (fan_out,), jnp.float32)
        return w, b

    enc_w, enc_b = dense(f_in, hidden)
    layers = []
    for _ in range(num_layers):
        w1, b1 = dense(hidden, 2 * hidden)
        w2, b2 = dense(2 * hidden, hidden)
        conv = dict(
            t=jnp.array([1.0], jnp.float32),        # learn_t init
            scale=jnp.array([1.0], jnp.float32),    # MessageNorm scale init
            w1=w1, b1=b1,
            g1=jnp.ones((2 * hidden,), jnp.float32),
            be1=jnp.zeros((2 * hidden,), jnp.float32),
            w2=w2, b2=b2,
        )
        layers.append(dict(
            conv=conv,
            norm_g=jnp.ones((hidden,), jnp.float32),
            norm_b=jnp.zeros((hidden,), jnp.float32),
        ))
    out_w, out_b = dense(hidden, out_dim)
    return dict(enc_w=enc_w, enc_b=enc_b, layers=layers, out_w=out_w, out_b=out_b)


if __name__ == "__main__":
    # N deliberately NOT a tile multiple to exercise the row-padding path.
    N, F_IN, HIDDEN, NUM_LAYERS, OUT_DIM, E = 200, 16, 128, 3, 8, 800

    key = jax.random.PRNGKey(0)
    kx, ke, kp = jax.random.split(key, 3)
    x = jax.random.normal(kx, (N, F_IN), jnp.float32)
    edge_index = jax.random.randint(ke, (2, E), 0, N, dtype=jnp.int32)
    params = init_params(kp, F_IN, HIDDEN, NUM_LAYERS, OUT_DIM)

    fwd = jax.jit(deeper_gcn_forward)
    out = fwd(x, edge_index, params)
    out = jax.block_until_ready(out)
    assert out.shape == (N, OUT_DIM)
    assert bool(jnp.all(jnp.isfinite(out)))
    print("KERNEL_OK")
</pallas_src>

<mosaic_0001>
module attributes {stable_mosaic.version = 11 : i64} {
  func.func @_enc_linear_smax_kernel(%arg0: i32, %arg1: memref<1x1xf32, #tpu.memory_space<smem>>, %arg2: memref<256x16xf32, #tpu.memory_space<vmem>>, %arg3: memref<16x128xf32, #tpu.memory_space<vmem>>, %arg4: memref<1x128xf32, #tpu.memory_space<vmem>>, %arg5: memref<256x128xf32, #tpu.memory_space<vmem>>, %arg6: memref<1x1x128xf32, #tpu.memory_space<vmem>>) attributes {dimension_semantics = [#tpu.dimension_semantics<parallel>], iteration_bounds = array<i64: 1>, scalar_prefetch = 0 : i64, scratch_operands = 0 : i64, tpu.core_type = #tpu.core_type<tc>, window_params = [{transform_indices = @transform_0, window_bounds = array<i64: 1, 1>}, {transform_indices = @transform_1, window_bounds = array<i64: 256, 16>}, {pipeline_mode = #tpu.pipeline_mode<synchronous>, transform_indices = @transform_2, window_bounds = array<i64: 16, 128>}, {pipeline_mode = #tpu.pipeline_mode<synchronous>, transform_indices = @transform_3, window_bounds = array<i64: 1, 128>}, {transform_indices = @transform_4, window_bounds = array<i64: 256, 128>}, {transform_indices = @transform_5, window_bounds = array<i64: 1, 1, 128>}]} {
    %c0 = arith.constant 0 : index
    %c0_0 = arith.constant 0 : index
    %0 = vector.load %arg2[%c0, %c0_0] : memref<256x16xf32, #tpu.memory_space<vmem>>, vector<256x16xf32>
    %c0_1 = arith.constant 0 : index
    %c0_2 = arith.constant 0 : index
    %1 = vector.load %arg3[%c0_1, %c0_2] : memref<16x128xf32, #tpu.memory_space<vmem>>, vector<16x128xf32>
    %cst = arith.constant dense<0.000000e+00> : vector<256x128xf32>
    %2 = tpu.matmul %0, %1, %cst {dimension_numbers = #tpu.dot_dimension_numbers<[1], [0], [0], [1], [0, 0, 1, 1], [], []>} : vector<256x16xf32>, vector<16x128xf32>, vector<256x128xf32> -> vector<256x128xf32>
    %c0_3 = arith.constant 0 : index
    %c0_4 = arith.constant 0 : index
    %3 = vector.load %arg4[%c0_3, %c0_4] : memref<1x128xf32, #tpu.memory_space<vmem>>, vector<1x128xf32>
    %4 = vector.broadcast %3 : vector<1x128xf32> to vector<256x128xf32>
    %5 = arith.addf %2, %4 : vector<256x128xf32>
    %c0_5 = arith.constant 0 : index
    %c0_6 = arith.constant 0 : index
    %6 = vector.load %arg5[%c0_5, %c0_6] : memref<256x128xf32, #tpu.memory_space<vmem>>, vector<256x128xf32>
    tpu.vector_store %arg5[%c0_5, %c0_6], %5 {strides = array<i32>} : memref<256x128xf32, #tpu.memory_space<vmem>>, vector<256x128xf32>,
    %c0_7 = arith.constant 0 : index
    %c0_8 = arith.constant 0 : index
    %7 = memref.load %arg1[%c0_7, %c0_8] : memref<1x1xf32, #tpu.memory_space<smem>>
    %cst_9 = arith.constant 0.000000e+00 : f32
    %8 = vector.broadcast %cst_9 : f32 to vector<256x128xf32>
    %9 = arith.maximumf %5, %8 : vector<256x128xf32>
    %cst_10 = arith.constant 1.000000e-07 : f32
    %10 = vector.broadcast %cst_10 : f32 to vector<256x128xf32>
    %11 = arith.addf %9, %10 : vector<256x128xf32>
    %12 = vector.broadcast %7 : f32 to vector<256x128xf32>
    %13 = arith.mulf %12, %11 : vector<256x128xf32>
    %cst_11 = arith.constant dense<0xFF800000> : vector<128xf32>
    %14 = vector.multi_reduction <maximumf>, %13, %cst_11 [0] : vector<256x128xf32> to vector<128xf32>
    %15 = vector.shape_cast %14 : vector<128xf32> to vector<1x128xf32>
    %16 = vector.shape_cast %15 : vector<1x128xf32> to vector<1x1x128xf32>
    %c0_12 = arith.constant 0 : index
    %c0_13 = arith.constant 0 : index
    %c0_14 = arith.constant 0 : index
    %17 = vector.load %arg6[%c0_12, %c0_13, %c0_14] : memref<1x1x128xf32, #tpu.memory_space<vmem>>, vector<1x1x128xf32>
    tpu.vector_store %arg6[%c0_12, %c0_13, %c0_14], %16 {strides = array<i32>} : memref<1x1x128xf32, #tpu.memory_space<vmem>>, vector<1x1x128xf32>,
    return
  }
  func.func @transform_0(%arg0: i32) -> (i32, i32) {
    %c0_i32 = arith.constant 0 : i32
    %c0_i32_0 = arith.constant 0 : i32
    %c0_i32_1 = arith.constant 0 : i32
    return %c0_i32, %c0_i32_0 : i32, i32
  }
  func.func @transform_1(%arg0: i32) -> (i32, i32) {
    %c0_i32 = arith.constant 0 : i32
    %c0_i32_0 = arith.constant 0 : i32
    return %arg0, %c0_i32 : i32, i32
  }
  func.func @transform_2(%arg0: i32) -> (i32, i32) {
    %c0_i32 = arith.constant 0 : i32
    %c0_i32_0 = arith.constant 0 : i32
    %c0_i32_1 = arith.constant 0 : i32
    return %c0_i32, %c0_i32_0 : i32, i32
  }
  func.func @transform_3(%arg0: i32) -> (i32, i32) {
    %c0_i32 = arith.constant 0 : i32
    %c0_i32_0 = arith.constant 0 : i32
    %c0_i32_1 = arith.constant 0 : i32
    return %c0_i32, %c0_i32_0 : i32, i32
  }
  func.func @transform_4(%arg0: i32) -> (i32, i32) {
    %c0_i32 = arith.constant 0 : i32
    %c0_i32_0 = arith.constant 0 : i32
    return %arg0, %c0_i32 : i32, i32
  }
  func.func @transform_5(%arg0: i32) -> (i32, i32, i32) {
    %c0_i32 = arith.constant 0 : i32
    %c0_i32_0 = arith.constant 0 : i32
    %c0_i32_1 = arith.constant 0 : i32
    return %arg0, %c0_i32, %c0_i32_0 : i32, i32, i32
  }
}

module attributes {stable_mosaic.version = 11 : i64} {
  func.func @_msg_kernel(%arg0: i32, %arg1: memref<1x1xf32, #tpu.memory_space<smem>>, %arg2: memref<256x128xf32, #tpu.memory_space<vmem>>, %arg3: memref<1x128xf32, #tpu.memory_space<vmem>>, %arg4: memref<256x256xbf16, #tpu.memory_space<vmem>>) attributes {dimension_semantics = [#tpu.dimension_semantics<parallel>], iteration_bounds = array<i64: 1>, scalar_prefetch = 0 : i64, scratch_operands = 0 : i64, tpu.core_type = #tpu.core_type<tc>, window_params = [{transform_indices = @transform_0, window_bounds = array<i64: 1, 1>}, {transform_indices = @transform_1, window_bounds = array<i64: 256, 128>}, {pipeline_mode = #tpu.pipeline_mode<synchronous>, transform_indices = @transform_2, window_bounds = array<i64: 1, 128>}, {transform_indices = @transform_3, window_bounds = array<i64: 256, 256>}]} {
    %c0 = arith.constant 0 : index
    %c0_0 = arith.constant 0 : index
    %0 = vector.load %arg2[%c0, %c0_0] : memref<256x128xf32, #tpu.memory_space<vmem>>, vector<256x128xf32>
    %cst = arith.constant 0.000000e+00 : f32
    %1 = vector.broadcast %cst : f32 to vector<256x128xf32>
    %2 = arith.maximumf %0, %1 : vector<256x128xf32>
    %cst_1 = arith.constant 1.000000e-07 : f32
    %3 = vector.broadcast %cst_1 : f32 to vector<256x128xf32>
    %4 = arith.addf %2, %3 : vector<256x128xf32>
    %c0_2 = arith.constant 0 : index
    %c0_3 = arith.constant 0 : index
    %5 = memref.load %arg1[%c0_2, %c0_3] : memref<1x1xf32, #tpu.memory_space<smem>>
    %6 = vector.broadcast %5 : f32 to vector<256x128xf32>
    %7 = arith.mulf %6, %4 : vector<256x128xf32>
    %c0_4 = arith.constant 0 : index
    %c0_5 = arith.constant 0 : index
    %8 = vector.load %arg3[%c0_4, %c0_5] : memref<1x128xf32, #tpu.memory_space<vmem>>, vector<1x128xf32>
    %9 = vector.broadcast %8 : vector<1x128xf32> to vector<256x128xf32>
    %10 = arith.subf %7, %9 : vector<256x128xf32>
    %11 = math.exp %10 : vector<256x128xf32>
    %cst_6 = arith.constant 1.000000e-30 : f32
    %12 = vector.broadcast %cst_6 : f32 to vector<256x128xf32>
    %13 = arith.maximumf %11, %12 : vector<256x128xf32>
    %14 = arith.mulf %13, %4 : vector<256x128xf32>
    %15 = arith.truncf %14 : vector<256x128xf32> to vector<256x128xbf16>
    %c0_7 = arith.constant 0 : index
    %c0_8 = arith.constant 0 : index
    %16 = vector.load %arg4[%c0_7, %c0_8] : memref<256x256xbf16, #tpu.memory_space<vmem>>, vector<256x128xbf16>
    tpu.vector_store %arg4[%c0_7, %c0_8], %15 {strides = array<i32>} : memref<256x256xbf16, #tpu.memory_space<vmem>>, vector<256x128xbf16>,
    %17 = arith.truncf %13 : vector<256x128xf32> to vector<256x128xbf16>
    %c0_9 = arith.constant 0 : index
    %c128 = arith.constant 128 : index
    %18 = vector.load %arg4[%c0_9, %c128] : memref<256x256xbf16, #tpu.memory_space<vmem>>, vector<256x128xbf16>
    tpu.vector_store %arg4[%c0_9, %c128], %17 {strides = array<i32>} : memref<256x256xbf16, #tpu.memory_space<vmem>>, vector<256x128xbf16>,
    return
  }
  func.func @transform_0(%arg0: i32) -> (i32, i32) {
    %c0_i32 = arith.constant 0 : i32
    %c0_i32_0 = arith.constant 0 : i32
    %c0_i32_1 = arith.constant 0 : i32
    return %c0_i32, %c0_i32_0 : i32, i32
  }
  func.func @transform_1(%arg0: i32) -> (i32, i32) {
    %c0_i32 = arith.constant 0 : i32
    %c0_i32_0 = arith.constant 0 : i32
    return %arg0, %c0_i32 : i32, i32
  }
  func.func @transform_2(%arg0: i32) -> (i32, i32) {
    %c0_i32 = arith.constant 0 : i32
    %c0_i32_0 = arith.constant 0 : i32
    %c0_i32_1 = arith.constant 0 : i32
    return %c0_i32, %c0_i32_0 : i32, i32
  }
  func.func @transform_3(%arg0: i32) -> (i32, i32) {
    %c0_i32 = arith.constant 0 : i32
    %c0_i32_0 = arith.constant 0 : i32
    return %arg0, %c0_i32 : i32, i32
  }
}

module attributes {stable_mosaic.version = 11 : i64} {
  func.func @_ln_relu_smax_kernel(%arg0: i32, %arg1: memref<1x1xf32, #tpu.memory_space<smem>>, %arg2: memref<256x128xf32, #tpu.memory_space<vmem>>, %arg3: memref<1x128xf32, #tpu.memory_space<vmem>>, %arg4: memref<1x128xf32, #tpu.memory_space<vmem>>, %arg5: memref<256x128xf32, #tpu.memory_space<vmem>>, %arg6: memref<1x1x128xf32, #tpu.memory_space<vmem>>) attributes {dimension_semantics = [#tpu.dimension_semantics<parallel>], iteration_bounds = array<i64: 1>, scalar_prefetch = 0 : i64, scratch_operands = 0 : i64, tpu.core_type = #tpu.core_type<tc>, window_params = [{transform_indices = @transform_0, window_bounds = array<i64: 1, 1>}, {transform_indices = @transform_1, window_bounds = array<i64: 256, 128>}, {pipeline_mode = #tpu.pipeline_mode<synchronous>, transform_indices = @transform_2, window_bounds = array<i64: 1, 128>}, {pipeline_mode = #tpu.pipeline_mode<synchronous>, transform_indices = @transform_3, window_bounds = array<i64: 1, 128>}, {transform_indices = @transform_4, window_bounds = array<i64: 256, 128>}, {transform_indices = @transform_5, window_bounds = array<i64: 1, 1, 128>}]} {
    %c0 = arith.constant 0 : index
    %c0_0 = arith.constant 0 : index
    %0 = vector.load %arg2[%c0, %c0_0] : memref<256x128xf32, #tpu.memory_space<vmem>>, vector<256x128xf32>
    %cst = arith.constant dense<0.000000e+00> : vector<256xf32>
    %1 = vector.multi_reduction <add>, %0, %cst [1] : vector<256x128xf32> to vector<256xf32>
    %2 = vector.shape_cast %1 : vector<256xf32> to vector<256x1xf32>
    %cst_1 = arith.constant 1.280000e+02 : f32
    %3 = vector.broadcast %cst_1 : f32 to vector<256x1xf32>
    %4 = arith.divf %2, %3 : vector<256x1xf32>
    %5 = vector.broadcast %4 : vector<256x1xf32> to vector<256x128xf32>
    %6 = arith.subf %0, %5 : vector<256x128xf32>
    %7 = arith.mulf %6, %6 : vector<256x128xf32>
    %cst_2 = arith.constant dense<0.000000e+00> : vector<256xf32>
    %8 = vector.multi_reduction <add>, %7, %cst_2 [1] : vector<256x128xf32> to vector<256xf32>
    %9 = vector.shape_cast %8 : vector<256xf32> to vector<256x1xf32>
    %cst_3 = arith.constant 1.280000e+02 : f32
    %10 = vector.broadcast %cst_3 : f32 to vector<256x1xf32>
    %11 = arith.divf %9, %10 : vector<256x1xf32>
    %12 = vector.broadcast %4 : vector<256x1xf32> to vector<256x128xf32>
    %13 = arith.subf %0, %12 : vector<256x128xf32>
    %cst_4 = arith.constant 9.99999974E-6 : f32
    %14 = vector.broadcast %cst_4 : f32 to vector<256x1xf32>
    %15 = arith.addf %11, %14 : vector<256x1xf32>
    %16 = math.rsqrt %15 : vector<256x1xf32>
    %17 = vector.broadcast %16 : vector<256x1xf32> to vector<256x128xf32>
    %18 = arith.mulf %13, %17 : vector<256x128xf32>
    %c0_5 = arith.constant 0 : index
    %c0_6 = arith.constant 0 : index
    %19 = vector.load %arg3[%c0_5, %c0_6] : memref<1x128xf32, #tpu.memory_space<vmem>>, vector<1x128xf32>
    %20 = vector.broadcast %19 : vector<1x128xf32> to vector<256x128xf32>
    %21 = arith.mulf %18, %20 : vector<256x128xf32>
    %c0_7 = arith.constant 0 : index
    %c0_8 = arith.constant 0 : index
    %22 = vector.load %arg4[%c0_7, %c0_8] : memref<1x128xf32, #tpu.memory_space<vmem>>, vector<1x128xf32>
    %23 = vector.broadcast %22 : vector<1x128xf32> to vector<256x128xf32>
    %24 = arith.addf %21, %23 : vector<256x128xf32>
    %cst_9 = arith.constant 0.000000e+00 : f32
    %25 = vector.broadcast %cst_9 : f32 to vector<256x128xf32>
    %26 = arith.maximumf %24, %25 : vector<256x128xf32>
    %c0_10 = arith.constant 0 : index
    %c0_11 = arith.constant 0 : index
    %27 = vector.load %arg5[%c0_10, %c0_11] : memref<256x128xf32, #tpu.memory_space<vmem>>, vector<256x128xf32>
    tpu.vector_store %arg5[%c0_10, %c0_11], %26 {strides = array<i32>} : memref<256x128xf32, #tpu.memory_space<vmem>>, vector<256x128xf32>,
    %c0_12 = arith.constant 0 : index
    %c0_13 = arith.constant 0 : index
    %28 = memref.load %arg1[%c0_12, %c0_13] : memref<1x1xf32, #tpu.memory_space<smem>>
    %cst_14 = arith.constant 1.000000e-07 : f32
    %29 = vector.broadcast %cst_14 : f32 to vector<256x128xf32>
    %30 = arith.addf %26, %29 : vector<256x128xf32>
    %31 = vector.broadcast %28 : f32 to vector<256x128xf32>
    %32 = arith.mulf %31, %30 : vector<256x128xf32>
    %cst_15 = arith.constant dense<0xFF800000> : vector<128xf32>
    %33 = vector.multi_reduction <maximumf>, %32, %cst_15 [0] : vector<256x128xf32> to vector<128xf32>
    %34 = vector.shape_cast %33 : vector<128xf32> to vector<1x128xf32>
    %35 = vector.shape_cast %34 : vector<1x128xf32> to vector<1x1x128xf32>
    %c0_16 = arith.constant 0 : index
    %c0_17 = arith.constant 0 : index
    %c0_18 = arith.constant 0 : index
    %36 = vector.load %arg6[%c0_16, %c0_17, %c0_18] : memref<1x1x128xf32, #tpu.memory_space<vmem>>, vector<1x1x128xf32>
    tpu.vector_store %arg6[%c0_16, %c0_17, %c0_18], %35 {strides = array<i32>} : memref<1x1x128xf32, #tpu.memory_space<vmem>>, vector<1x1x128xf32>,
    return
  }
  func.func @transform_0(%arg0: i32) -> (i32, i32) {
    %c0_i32 = arith.constant 0 : i32
    %c0_i32_0 = arith.constant 0 : i32
    %c0_i32_1 = arith.constant 0 : i32
    return %c0_i32, %c0_i32_0 : i32, i32
  }
  func.func @transform_1(%arg0: i32) -> (i32, i32) {
    %c0_i32 = arith.constant 0 : i32
    %c0_i32_0 = arith.constant 0 : i32
    return %arg0, %c0_i32 : i32, i32
  }
  func.func @transform_2(%arg0: i32) -> (i32, i32) {
    %c0_i32 = arith.constant 0 : i32
    %c0_i32_0 = arith.constant 0 : i32
    %c0_i32_1 = arith.constant 0 : i32
    return %c0_i32, %c0_i32_0 : i32, i32
  }
  func.func @transform_3(%arg0: i32) -> (i32, i32) {
    %c0_i32 = arith.constant 0 : i32
    %c0_i32_0 = arith.constant 0 : i32
    %c0_i32_1 = arith.constant 0 : i32
    return %c0_i32, %c0_i32_0 : i32, i32
  }
  func.func @transform_4(%arg0: i32) -> (i32, i32) {
    %c0_i32 = arith.constant 0 : i32
    %c0_i32_0 = arith.constant 0 : i32
    return %arg0, %c0_i32 : i32, i32
  }
  func.func @transform_5(%arg0: i32) -> (i32, i32, i32) {
    %c0_i32 = arith.constant 0 : i32
    %c0_i32_0 = arith.constant 0 : i32
    %c0_i32_1 = arith.constant 0 : i32
    return %arg0, %c0_i32, %c0_i32_0 : i32, i32, i32
  }
}

module attributes {stable_mosaic.version = 11 : i64} {
  func.func @kernel(%arg0: i32, %arg1: i32, %arg2: memref<1x1xf32, #tpu.memory_space<smem>>, %arg3: memref<256x256xbf16, #tpu.memory_space<vmem>>, %arg4: memref<256x256xi8, #tpu.memory_space<vmem>>, %arg5: memref<256x128xf32, #tpu.memory_space<vmem>>, %arg6: memref<256x128xf32, #tpu.memory_space<vmem>>, %arg7: memref<128x256xbf16, #tpu.memory_space<vmem>>, %arg8: memref<1x256xf32, #tpu.memory_space<vmem>>, %arg9: memref<1x256xf32, #tpu.memory_space<vmem>>, %arg10: memref<1x256xf32, #tpu.memory_space<vmem>>, %arg11: memref<256x128xbf16, #tpu.memory_space<vmem>>, %arg12: memref<1x128xf32, #tpu.memory_space<vmem>>, %arg13: memref<256x128xf32, #tpu.memory_space<vmem>>, %arg14: memref<256x256xf32, #tpu.memory_space<vmem>>) attributes {dimension_semantics = [#tpu.dimension_semantics<parallel>, #tpu.dimension_semantics<arbitrary>], iteration_bounds = array<i64: 1, 1>, scalar_prefetch = 0 : i64, scratch_operands = 1 : i64, tpu.core_type = #tpu.core_type<tc>, window_params = [{transform_indices = @transform_0, window_bounds = array<i64: 1, 1>}, {pipeline_mode = #tpu.pipeline_mode<synchronous>, transform_indices = @transform_1, window_bounds = array<i64: 256, 256>}, {transform_indices = @transform_2, window_bounds = array<i64: 256, 256>}, {transform_indices = @transform_3, window_bounds = array<i64: 256, 128>}, {transform_indices = @transform_4, window_bounds = array<i64: 256, 128>}, {pipeline_mode = #tpu.pipeline_mode<synchronous>, transform_indices = @transform_5, window_bounds = array<i64: 128, 256>}, {pipeline_mode = #tpu.pipeline_mode<synchronous>, transform_indices = @transform_6, window_bounds = array<i64: 1, 256>}, {pipeline_mode = #tpu.pipeline_mode<synchronous>, transform_indices = @transform_7, window_bounds = array<i64: 1, 256>}, {pipeline_mode = #tpu.pipeline_mode<synchronous>, transform_indices = @transform_8, window_bounds = array<i64: 1, 256>}, {pipeline_mode = #tpu.pipeline_mode<synchronous>, transform_indices = @transform_9, window_bounds = array<i64: 256, 128>}, {pipeline_mode = #tpu.pipeline_mode<synchronous>, transform_indices = @transform_10, window_bounds = array<i64: 1, 128>}, {transform_indices = @transform_11, window_bounds = array<i64: 256, 128>}]} {
    %c0_i32 = arith.constant 0 : i32
    %0 = arith.cmpi eq, %arg1, %c0_i32 : i32
    %1 = arith.extui %0 : i1 to i32
    %c0_i32_0 = arith.constant 0 : i32
    %2 = arith.cmpi ne, %1, %c0_i32_0 : i32
    scf.if %2 {
      %cst_9 = arith.constant 0.000000e+00 : f32
      %17 = vector.broadcast %cst_9 : f32 to vector<256x256xf32>
      %c0_10 = arith.constant 0 : index
      %c0_11 = arith.constant 0 : index
      %18 = vector.load %arg14[%c0_10, %c0_11] : memref<256x256xf32, #tpu.memory_space<vmem>>, vector<256x256xf32>
      tpu.vector_store %arg14[%c0_10, %c0_11], %17 {strides = array<i32>} : memref<256x256xf32, #tpu.memory_space<vmem>>, vector<256x256xf32>,
    } else {
    }
    %c256_i32 = arith.constant 256 : i32
    %3 = arith.muli %arg1, %c256_i32 : i32
    %4 = tpu.assume_multiple %3, 256 : i32
    %5 = arith.index_cast %4 : i32 to index
    %c0 = arith.constant 0 : index
    %6 = vector.load %arg3[%5, %c0] : memref<256x256xbf16, #tpu.memory_space<vmem>>, vector<256x256xbf16>
    %c0_1 = arith.constant 0 : index
    %c0_2 = arith.constant 0 : index
    %7 = vector.load %arg4[%c0_1, %c0_2] : memref<256x256xi8, #tpu.memory_space<vmem>>, vector<256x256xi8>
    %8 = arith.sitofp %7 : vector<256x256xi8> to vector<256x256xf32>
    %9 = arith.truncf %8 : vector<256x256xf32> to vector<256x256xbf16>
    %c0_3 = arith.constant 0 : index
    %c0_4 = arith.constant 0 : index
    %10 = vector.load %arg14[%c0_3, %c0_4] : memref<256x256xf32, #tpu.memory_space<vmem>>, vector<256x256xf32>
    %cst = arith.constant dense<0.000000e+00> : vector<256x256xf32>
    %11 = tpu.matmul %9, %6, %cst {dimension_numbers = #tpu.dot_dimension_numbers<[1], [0], [0], [1], [0, 0, 1, 1], [], []>} : vector<256x256xbf16>, vector<256x256xbf16>, vector<256x256xf32> -> vector<256x256xf32>
    %12 = arith.addf %10, %11 : vector<256x256xf32>
    %c0_5 = arith.constant 0 : index
    %c0_6 = arith.constant 0 : index
    %13 = vector.load %arg14[%c0_5, %c0_6] : memref<256x256xf32, #tpu.memory_space<vmem>>, vector<256x256xf32>
    tpu.vector_store %arg14[%c0_5, %c0_6], %12 {strides = array<i32>} : memref<256x256xf32, #tpu.memory_space<vmem>>, vector<256x256xf32>,
    %c0_i32_7 = arith.constant 0 : i32
    %14 = arith.cmpi eq, %arg1, %c0_i32_7 : i32
    %15 = arith.extui %14 : i1 to i32
    %c0_i32_8 = arith.constant 0 : i32
    %16 = arith.cmpi ne, %15, %c0_i32_8 : i32
    scf.if %16 {
      %c0_9 = arith.constant 0 : index
      %c0_10 = arith.constant 0 : index
      %17 = vector.load %arg14[%c0_9, %c0_10] : memref<256x256xf32, #tpu.memory_space<vmem>>, vector<256x256xf32>
      %18 = vector.extract_strided_slice %17 {offsets = [0, 0], sizes = [256, 128], strides = [1, 1]} : vector<256x256xf32> to vector<256x128xf32>
      %19 = vector.extract_strided_slice %17 {offsets = [0, 128], sizes = [256, 128], strides = [1, 1]} : vector<256x256xf32> to vector<256x128xf32>
      %cst_11 = arith.constant 0.000000e+00 : f32
      %20 = vector.broadcast %cst_11 : f32 to vector<256x128xf32>
      %21 = arith.cmpf ogt, %19, %20 : vector<256x128xf32>
      %cst_12 = arith.constant 1.000000e+00 : f32
      %22 = vector.broadcast %cst_12 : f32 to vector<256x128xf32>
      %23 = arith.select %21, %19, %22 : vector<256x128xi1>, vector<256x128xf32>
      %24 = arith.divf %18, %23 : vector<256x128xf32>
      %cst_13 = arith.constant 0.000000e+00 : f32
      %25 = vector.broadcast %cst_13 : f32 to vector<256x128xf32>
      %26 = arith.select %21, %24, %25 : vector<256x128xi1>, vector<256x128xf32>
      %c0_14 = arith.constant 0 : index
      %c0_15 = arith.constant 0 : index
      %27 = vector.load %arg5[%c0_14, %c0_15] : memref<256x128xf32, #tpu.memory_space<vmem>>, vector<256x128xf32>
      %28 = arith.mulf %26, %26 : vector<256x128xf32>
      %cst_16 = arith.constant dense<0.000000e+00> : vector<256xf32>
      %29 = vector.multi_reduction <add>, %28, %cst_16 [1] : vector<256x128xf32> to vector<256xf32>
      %30 = vector.shape_cast %29 : vector<256xf32> to vector<256x1xf32>
      %cst_17 = arith.constant 1.000000e-24 : f32
      %31 = vector.broadcast %cst_17 : f32 to vector<256x1xf32>
      %32 = arith.maximumf %30, %31 : vector<256x1xf32>
      %33 = math.rsqrt %32 : vector<256x1xf32>
      %34 = arith.mulf %27, %27 : vector<256x128xf32>
      %cst_18 = arith.constant dense<0.000000e+00> : vector<256xf32>
      %35 = vector.multi_reduction <add>, %34, %cst_18 [1] : vector<256x128xf32> to vector<256xf32>
      %36 = vector.shape_cast %35 : vector<256xf32> to vector<256x1xf32>
      %37 = math.sqrt %36 : vector<256x1xf32>
      %38 = vector.broadcast %33 : vector<256x1xf32> to vector<256x128xf32>
      %39 = arith.mulf %26, %38 : vector<256x128xf32>
      %40 = vector.broadcast %37 : vector<256x1xf32> to vector<256x128xf32>
      %41 = arith.mulf %39, %40 : vector<256x128xf32>
      %c0_19 = arith.constant 0 : index
      %c0_20 = arith.constant 0 : index
      %42 = memref.load %arg2[%c0_19, %c0_20] : memref<1x1xf32, #tpu.memory_space<smem>>
      %43 = vector.broadcast %42 : f32 to vector<256x128xf32>
      %44 = arith.mulf %41, %43 : vector<256x128xf32>
      %45 = arith.addf %44, %27 : vector<256x128xf32>
      %46 = arith.truncf %45 : vector<256x128xf32> to vector<256x128xbf16>
      %c0_21 = arith.constant 0 : index
      %c0_22 = arith.constant 0 : index
      %47 = vector.load %arg7[%c0_21, %c0_22] : memref<128x256xbf16, #tpu.memory_space<vmem>>, vector<128x256xbf16>
      %cst_23 = arith.constant dense<0.000000e+00> : vector<256x256xf32>
      %48 = tpu.matmul %46, %47, %cst_23 {dimension_numbers = #tpu.dot_dimension_numbers<[1], [0], [0], [1], [0, 0, 1, 1], [], []>} : vector<256x128xbf16>, vector<128x256xbf16>, vector<256x256xf32> -> vector<256x256xf32>
      %c0_24 = arith.constant 0 : index
      %c0_25 = arith.constant 0 : index
      %49 = vector.load %arg8[%c0_24, %c0_25] : memref<1x256xf32, #tpu.memory_space<vmem>>, vector<1x256xf32>
      %50 = vector.broadcast %49 : vector<1x256xf32> to vector<256x256xf32>
      %51 = arith.addf %48, %50 : vector<256x256xf32>
      %cst_26 = arith.constant dense<0.000000e+00> : vector<256xf32>
      %52 = vector.multi_reduction <add>, %51, %cst_26 [1] : vector<256x256xf32> to vector<256xf32>
      %53 = vector.shape_cast %52 : vector<256xf32> to vector<256x1xf32>
      %cst_27 = arith.constant 2.560000e+02 : f32
      %54 = vector.broadcast %cst_27 : f32 to vector<256x1xf32>
      %55 = arith.divf %53, %54 : vector<256x1xf32>
      %56 = vector.broadcast %55 : vector<256x1xf32> to vector<256x256xf32>
      %57 = arith.subf %51, %56 : vector<256x256xf32>
      %58 = arith.mulf %57, %57 : vector<256x256xf32>
      %cst_28 = arith.constant dense<0.000000e+00> : vector<256xf32>
      %59 = vector.multi_reduction <add>, %58, %cst_28 [1] : vector<256x256xf32> to vector<256xf32>
      %60 = vector.shape_cast %59 : vector<256xf32> to vector<256x1xf32>
      %cst_29 = arith.constant 2.560000e+02 : f32
      %61 = vector.broadcast %cst_29 : f32 to vector<256x1xf32>
      %62 = arith.divf %60, %61 : vector<256x1xf32>
      %63 = vector.broadcast %55 : vector<256x1xf32> to vector<256x256xf32>
      %64 = arith.subf %51, %63 : vector<256x256xf32>
      %cst_30 = arith.constant 9.99999974E-6 : f32
      %65 = vector.broadcast %cst_30 : f32 to vector<256x1xf32>
      %66 = arith.addf %62, %65 : vector<256x1xf32>
      %67 = math.rsqrt %66 : vector<256x1xf32>
      %68 = vector.broadcast %67 : vector<256x1xf32> to vector<256x256xf32>
      %69 = arith.mulf %64, %68 : vector<256x256xf32>
      %c0_31 = arith.constant 0 : index
      %c0_32 = arith.constant 0 : index
      %70 = vector.load %arg9[%c0_31, %c0_32] : memref<1x256xf32, #tpu.memory_space<vmem>>, vector<1x256xf32>
      %71 = vector.broadcast %70 : vector<1x256xf32> to vector<256x256xf32>
      %72 = arith.mulf %69, %71 : vector<256x256xf32>
      %c0_33 = arith.constant 0 : index
      %c0_34 = arith.constant 0 : index
      %73 = vector.load %arg10[%c0_33, %c0_34] : memref<1x256xf32, #tpu.memory_space<vmem>>, vector<1x256xf32>
      %74 = vector.broadcast %73 : vector<1x256xf32> to vector<256x256xf32>
      %75 = arith.addf %72, %74 : vector<256x256xf32>
      %cst_35 = arith.constant 0.000000e+00 : f32
      %76 = vector.broadcast %cst_35 : f32 to vector<256x256xf32>
      %77 = arith.maximumf %75, %76 : vector<256x256xf32>
      %78 = arith.truncf %77 : vector<256x256xf32> to vector<256x256xbf16>
      %c0_36 = arith.constant 0 : index
      %c0_37 = arith.constant 0 : index
      %79 = vector.load %arg11[%c0_36, %c0_37] : memref<256x128xbf16, #tpu.memory_space<vmem>>, vector<256x128xbf16>
      %cst_38 = arith.constant dense<0.000000e+00> : vector<256x128xf32>
      %80 = tpu.matmul %78, %79, %cst_38 {dimension_numbers = #tpu.dot_dimension_numbers<[1], [0], [0], [1], [0, 0, 1, 1], [], []>} : vector<256x256xbf16>, vector<256x128xbf16>, vector<256x128xf32> -> vector<256x128xf32>
      %c0_39 = arith.constant 0 : index
      %c0_40 = arith.constant 0 : index
      %81 = vector.load %arg12[%c0_39, %c0_40] : memref<1x128xf32, #tpu.memory_space<vmem>>, vector<1x128xf32>
      %82 = vector.broadcast %81 : vector<1x128xf32> to vector<256x128xf32>
      %83 = arith.addf %80, %82 : vector<256x128xf32>
      %c0_41 = arith.constant 0 : index
      %c0_42 = arith.constant 0 : index
      %84 = vector.load %arg6[%c0_41, %c0_42] : memref<256x128xf32, #tpu.memory_space<vmem>>, vector<256x128xf32>
      %85 = arith.addf %83, %84 : vector<256x128xf32>
      %c0_43 = arith.constant 0 : index
      %c0_44 = arith.constant 0 : index
      %86 = vector.load %arg13[%c0_43, %c0_44] : memref<256x128xf32, #tpu.memory_space<vmem>>, vector<256x128xf32>
      tpu.vector_store %arg13[%c0_43, %c0_44], %85 {strides = array<i32>} : memref<256x128xf32, #tpu.memory_space<vmem>>, vector<256x128xf32>,
    } else {
    }
    return
  }
  func.func @transform_0(%arg0: i32, %arg1: i32) -> (i32, i32) {
    %c0_i32 = arith.constant 0 : i32
    %c0_i32_0 = arith.constant 0 : i32
    %c0_i32_1 = arith.constant 0 : i32
    return %c0_i32, %c0_i32_0 : i32, i32
  }
  func.func @transform_1(%arg0: i32, %arg1: i32) -> (i32, i32) {
    %c0_i32 = arith.constant 0 : i32
    %c0_i32_0 = arith.constant 0 : i32
    %c0_i32_1 = arith.constant 0 : i32
    return %c0_i32, %c0_i32_0 : i32, i32
  }
  func.func @transform_2(%arg0: i32, %arg1: i32) -> (i32, i32) {
    %c0_i32 = arith.constant 0 : i32
    return %arg0, %arg1 : i32, i32
  }
  func.func @transform_3(%arg0: i32, %arg1: i32) -> (i32, i32) {
    %c0_i32 = arith.constant 0 : i32
    %c0_i32_0 = arith.constant 0 : i32
    return %arg0, %c0_i32 : i32, i32
  }
  func.func @transform_4(%arg0: i32, %arg1: i32) -> (i32, i32) {
    %c0_i32 = arith.constant 0 : i32
    %c0_i32_0 = arith.constant 0 : i32
    return %arg0, %c0_i32 : i32, i32
  }
  func.func @transform_5(%arg0: i32, %arg1: i32) -> (i32, i32) {
    %c0_i32 = arith.constant 0 : i32
    %c0_i32_0 = arith.constant 0 : i32
    %c0_i32_1 = arith.constant 0 : i32
    return %c0_i32, %c0_i32_0 : i32, i32
  }
  func.func @transform_6(%arg0: i32, %arg1: i32) -> (i32, i32) {
    %c0_i32 = arith.constant 0 : i32
    %c0_i32_0 = arith.constant 0 : i32
    %c0_i32_1 = arith.constant 0 : i32
    return %c0_i32, %c0_i32_0 : i32, i32
  }
  func.func @transform_7(%arg0: i32, %arg1: i32) -> (i32, i32) {
    %c0_i32 = arith.constant 0 : i32
    %c0_i32_0 = arith.constant 0 : i32
    %c0_i32_1 = arith.constant 0 : i32
    return %c0_i32, %c0_i32_0 : i32, i32
  }
  func.func @transform_8(%arg0: i32, %arg1: i32) -> (i32, i32) {
    %c0_i32 = arith.constant 0 : i32
    %c0_i32_0 = arith.constant 0 : i32
    %c0_i32_1 = arith.constant 0 : i32
    return %c0_i32, %c0_i32_0 : i32, i32
  }
  func.func @transform_9(%arg0: i32, %arg1: i32) -> (i32, i32) {
    %c0_i32 = arith.constant 0 : i32
    %c0_i32_0 = arith.constant 0 : i32
    %c0_i32_1 = arith.constant 0 : i32
    return %c0_i32, %c0_i32_0 : i32, i32
  }
  func.func @transform_10(%arg0: i32, %arg1: i32) -> (i32, i32) {
    %c0_i32 = arith.constant 0 : i32
    %c0_i32_0 = arith.constant 0 : i32
    %c0_i32_1 = arith.constant 0 : i32
    return %c0_i32, %c0_i32_0 : i32, i32
  }
  func.func @transform_11(%arg0: i32, %arg1: i32) -> (i32, i32) {
    %c0_i32 = arith.constant 0 : i32
    %c0_i32_0 = arith.constant 0 : i32
    return %arg0, %c0_i32 : i32, i32
  }
}

module attributes {stable_mosaic.version = 11 : i64} {
  func.func @_ln_relu_linear_kernel(%arg0: i32, %arg1: memref<256x128xf32, #tpu.memory_space<vmem>>, %arg2: memref<1x128xf32, #tpu.memory_space<vmem>>, %arg3: memref<1x128xf32, #tpu.memory_space<vmem>>, %arg4: memref<128x128xf32, #tpu.memory_space<vmem>>, %arg5: memref<1x128xf32, #tpu.memory_space<vmem>>, %arg6: memref<256x128xf32, #tpu.memory_space<vmem>>) attributes {dimension_semantics = [#tpu.dimension_semantics<parallel>], iteration_bounds = array<i64: 1>, scalar_prefetch = 0 : i64, scratch_operands = 0 : i64, tpu.core_type = #tpu.core_type<tc>, window_params = [{transform_indices = @transform_0, window_bounds = array<i64: 256, 128>}, {pipeline_mode = #tpu.pipeline_mode<synchronous>, transform_indices = @transform_1, window_bounds = array<i64: 1, 128>}, {pipeline_mode = #tpu.pipeline_mode<synchronous>, transform_indices = @transform_2, window_bounds = array<i64: 1, 128>}, {pipeline_mode = #tpu.pipeline_mode<synchronous>, transform_indices = @transform_3, window_bounds = array<i64: 128, 128>}, {pipeline_mode = #tpu.pipeline_mode<synchronous>, transform_indices = @transform_4, window_bounds = array<i64: 1, 128>}, {transform_indices = @transform_5, window_bounds = array<i64: 256, 128>}]} {
    %c0 = arith.constant 0 : index
    %c0_0 = arith.constant 0 : index
    %0 = vector.load %arg1[%c0, %c0_0] : memref<256x128xf32, #tpu.memory_space<vmem>>, vector<256x128xf32>
    %cst = arith.constant dense<0.000000e+00> : vector<256xf32>
    %1 = vector.multi_reduction <add>, %0, %cst [1] : vector<256x128xf32> to vector<256xf32>
    %2 = vector.shape_cast %1 : vector<256xf32> to vector<256x1xf32>
    %cst_1 = arith.constant 1.280000e+02 : f32
    %3 = vector.broadcast %cst_1 : f32 to vector<256x1xf32>
    %4 = arith.divf %2, %3 : vector<256x1xf32>
    %5 = vector.broadcast %4 : vector<256x1xf32> to vector<256x128xf32>
    %6 = arith.subf %0, %5 : vector<256x128xf32>
    %7 = arith.mulf %6, %6 : vector<256x128xf32>
    %cst_2 = arith.constant dense<0.000000e+00> : vector<256xf32>
    %8 = vector.multi_reduction <add>, %7, %cst_2 [1] : vector<256x128xf32> to vector<256xf32>
    %9 = vector.shape_cast %8 : vector<256xf32> to vector<256x1xf32>
    %cst_3 = arith.constant 1.280000e+02 : f32
    %10 = vector.broadcast %cst_3 : f32 to vector<256x1xf32>
    %11 = arith.divf %9, %10 : vector<256x1xf32>
    %12 = vector.broadcast %4 : vector<256x1xf32> to vector<256x128xf32>
    %13 = arith.subf %0, %12 : vector<256x128xf32>
    %cst_4 = arith.constant 9.99999974E-6 : f32
    %14 = vector.broadcast %cst_4 : f32 to vector<256x1xf32>
    %15 = arith.addf %11, %14 : vector<256x1xf32>
    %16 = math.rsqrt %15 : vector<256x1xf32>
    %17 = vector.broadcast %16 : vector<256x1xf32> to vector<256x128xf32>
    %18 = arith.mulf %13, %17 : vector<256x128xf32>
    %c0_5 = arith.constant 0 : index
    %c0_6 = arith.constant 0 : index
    %19 = vector.load %arg2[%c0_5, %c0_6] : memref<1x128xf32, #tpu.memory_space<vmem>>, vector<1x128xf32>
    %20 = vector.broadcast %19 : vector<1x128xf32> to vector<256x128xf32>
    %21 = arith.mulf %18, %20 : vector<256x128xf32>
    %c0_7 = arith.constant 0 : index
    %c0_8 = arith.constant 0 : index
    %22 = vector.load %arg3[%c0_7, %c0_8] : memref<1x128xf32, #tpu.memory_space<vmem>>, vector<1x128xf32>
    %23 = vector.broadcast %22 : vector<1x128xf32> to vector<256x128xf32>
    %24 = arith.addf %21, %23 : vector<256x128xf32>
    %cst_9 = arith.constant 0.000000e+00 : f32
    %25 = vector.broadcast %cst_9 : f32 to vector<256x128xf32>
    %26 = arith.maximumf %24, %25 : vector<256x128xf32>
    %c0_10 = arith.constant 0 : index
    %c0_11 = arith.constant 0 : index
    %27 = vector.load %arg4[%c0_10, %c0_11] : memref<128x128xf32, #tpu.memory_space<vmem>>, vector<128x128xf32>
    %cst_12 = arith.constant dense<0.000000e+00> : vector<256x128xf32>
    %28 = tpu.matmul %26, %27, %cst_12 {dimension_numbers = #tpu.dot_dimension_numbers<[1], [0], [0], [1], [0, 0, 1, 1], [], []>} : vector<256x128xf32>, vector<128x128xf32>, vector<256x128xf32> -> vector<256x128xf32>
    %c0_13 = arith.constant 0 : index
    %c0_14 = arith.constant 0 : index
    %29 = vector.load %arg5[%c0_13, %c0_14] : memref<1x128xf32, #tpu.memory_space<vmem>>, vector<1x128xf32>
    %30 = vector.broadcast %29 : vector<1x128xf32> to vector<256x128xf32>
    %31 = arith.addf %28, %30 : vector<256x128xf32>
    %c0_15 = arith.constant 0 : index
    %c0_16 = arith.constant 0 : index
    %32 = vector.load %arg6[%c0_15, %c0_16] : memref<256x128xf32, #tpu.memory_space<vmem>>, vector<256x128xf32>
    tpu.vector_store %arg6[%c0_15, %c0_16], %31 {strides = array<i32>} : memref<256x128xf32, #tpu.memory_space<vmem>>, vector<256x128xf32>,
    return
  }
  func.func @transform_0(%arg0: i32) -> (i32, i32) {
    %c0_i32 = arith.constant 0 : i32
    %c0_i32_0 = arith.constant 0 : i32
    return %arg0, %c0_i32 : i32, i32
  }
  func.func @transform_1(%arg0: i32) -> (i32, i32) {
    %c0_i32 = arith.constant 0 : i32
    %c0_i32_0 = arith.constant 0 : i32
    %c0_i32_1 = arith.constant 0 : i32
    return %c0_i32, %c0_i32_0 : i32, i32
  }
  func.func @transform_2(%arg0: i32) -> (i32, i32) {
    %c0_i32 = arith.constant 0 : i32
    %c0_i32_0 = arith.constant 0 : i32
    %c0_i32_1 = arith.constant 0 : i32
    return %c0_i32, %c0_i32_0 : i32, i32
  }
  func.func @transform_3(%arg0: i32) -> (i32, i32) {
    %c0_i32 = arith.constant 0 : i32
    %c0_i32_0 = arith.constant 0 : i32
    %c0_i32_1 = arith.constant 0 : i32
    return %c0_i32, %c0_i32_0 : i32, i32
  }
  func.func @transform_4(%arg0: i32) -> (i32, i32) {
    %c0_i32 = arith.constant 0 : i32
    %c0_i32_0 = arith.constant 0 : i32
    %c0_i32_1 = arith.constant 0 : i32
    return %c0_i32, %c0_i32_0 : i32, i32
  }
  func.func @transform_5(%arg0: i32) -> (i32, i32) {
    %c0_i32 = arith.constant 0 : i32
    %c0_i32_0 = arith.constant 0 : i32
    return %arg0, %c0_i32 : i32, i32
  }
}

</mosaic_0001>

<bundles_post_ra>
// kernel: deeper_gcn_forward.10
= control target key start
LH: loop header
LB: loop body
LE: loop exit
PB: predicated region body
PF: predicated region fallthrough
CT: control target
= control target key end

     0   :  { %vm58_vm0 = vcmask 130048   ;;  %s820_s2 = inlined_call_operand.vmem [shape: f32[16,128], index: 2, kind: input, shape index: {}]   ;;  %s821_s1 = inlined_call_operand.vmem [shape: f32[256,16], index: 1, kind: input, shape index: {}]   ;;  %s822_s3 = inlined_call_operand.vmem [shape: f32[1,128], index: 3, kind: input, shape index: {}]   ;;  %s823_s4 = inlined_call_operand.vmem [shape: f32[256,128], index: 4, kind: output, shape index: {0}]   ;;  %s824_s0 = inlined_call_operand.<no memory space> [shape: f32[1,1], index: 0, kind: input, shape index: {}]   ;;  %s825_s5 = inlined_call_operand.vmem [shape: f32[1,1,128], index: 5, kind: output, shape index: {1}]  }
   0x1   :  { %v53_v0 = vld [vmem:[%s820_s2 + $0x8] sm:$0xff]  ;;  %v52_v1 = vld [vmem:[%s820_s2] sm:$0xff]  ;;  %v22_v10 = vld [vmem:[%s821_s1 + $0x10] sm:$0xff]  ;;  %v664_v45 = vstv %s824_s0 }
   0x2   :  { %169 = vmatpush.msra.mxu0 %v53_v0  ;;  %477 = vmatpush.msra.mxu2 %v53_v0  ;;  %v20_v2 = vld [vmem:[%s821_s1] sm:$0xff]  ;;  %v21_v6 = vld [vmem:[%s821_s1 + $0x8] sm:$0xff]  ;;  %v38_v11 = vld [vmem:[%s821_s1 + $0x90] sm:$0xff] }
   0x3   :  { %v36_v3 = vld [vmem:[%s821_s1 + $0x80] sm:$0xff]  ;;  %476 = vmatpush.msra.mxu1 %v53_v0  ;;  %478 = vmatpush.msra.mxu3 %v53_v0  ;;  %v37_v7 = vld [vmem:[%s821_s1 + $0x88] sm:$0xff]  ;;  %v30_v12 = vld [vmem:[%s821_s1 + $0x50] sm:$0xff] }
   0x4   :  { %170 = vmatpush.msra.mxu0 %v52_v1  ;;  %480 = vmatpush.msra.mxu2 %v52_v1  ;;  %v28_v4 = vld [vmem:[%s821_s1 + $0x40] sm:$0xff]  ;;  %v29_v8 = vld [vmem:[%s821_s1 + $0x48] sm:$0xff]  ;;  %v46_v13 = vld [vmem:[%s821_s1 + $0xd0] sm:$0xff] }
   0x5   :  { %v44_v5 = vld [vmem:[%s821_s1 + $0xc0] sm:$0xff]  ;;  %444 = vmatmul.msk.f32.vlgmr.msra.gmra.mxu0 %vm58_vm0, %v20_v2  ;;  %460 = vmatmul.msk.f32.vlgmr.msra.gmra.mxu2 %vm58_vm0, %v36_v3  ;;  %v45_v9 = vld [vmem:[%s821_s1 + $0xc8] sm:$0xff]  ;;  %v23_v14 = vld [vmem:[%s821_s1 + $0x18] sm:$0xff] }
   0x6   :  { %479 = vmatpush.msra.mxu1 %v52_v1  ;;  %481 = vmatpush.msra.mxu3 %v52_v1  ;;  %v39_v15 = vld [vmem:[%s821_s1 + $0x98] sm:$0xff]  ;;  %v24_v18 = vld [vmem:[%s821_s1 + $0x20] sm:$0xff]  ;;  %v25_v22 = vld [vmem:[%s821_s1 + $0x28] sm:$0xff] }
   0x7   :  { %452 = vmatmul.msk.f32.vlgmr.msra.gmra.mxu1 %vm58_vm0, %v28_v4  ;;  %468 = vmatmul.msk.f32.vlgmr.msra.gmra.mxu3 %vm58_vm0, %v44_v5  ;;  %v31_v16 = vld [vmem:[%s821_s1 + $0x58] sm:$0xff]  ;;  %v40_v19 = vld [vmem:[%s821_s1 + $0xa0] sm:$0xff]  ;;  %v41_v23 = vld [vmem:[%s821_s1 + $0xa8] sm:$0xff] }
   0x8   :  { %v47_v17 = vld [vmem:[%s821_s1 + $0xd8] sm:$0xff]  ;;  %v32_v20 = vld [vmem:[%s821_s1 + $0x60] sm:$0xff]  ;;  %v33_v24 = vld [vmem:[%s821_s1 + $0x68] sm:$0xff] }
   0x9   :  { %v48_v21 = vld [vmem:[%s821_s1 + $0xe0] sm:$0xff]  ;;  %v49_v25 = vld [vmem:[%s821_s1 + $0xe8] sm:$0xff]  ;;  %v26_v26 = vld [vmem:[%s821_s1 + $0x30] sm:$0xff] }
   0xa   :  { %v42_v27 = vld [vmem:[%s821_s1 + $0xb0] sm:$0xff]  ;;  %v27_v30 = vld [vmem:[%s821_s1 + $0x38] sm:$0xff]  ;;  %v650_v34 = vld [vmem:[%s822_s3] ss:$0 sm:$0xff] }
   0xb   :  { %v34_v28 = vld [vmem:[%s821_s1 + $0x70] sm:$0xff]  ;;  %v43_v31 = vld [vmem:[%s821_s1 + $0xb8] sm:$0xff] }
   0xc   :  { %v50_v29 = vld [vmem:[%s821_s1 + $0xf0] sm:$0xff]  ;;  %v35_v32 = vld [vmem:[%s821_s1 + $0x78] sm:$0xff] }
   0xd   :  { %445 = vmatmul.msk.f32.gmra.mxu0 %vm58_vm0, %v21_v6  ;;  %461 = vmatmul.msk.f32.gmra.mxu2 %vm58_vm0, %v37_v7  ;;  %v51_v33 = vld [vmem:[%s821_s1 + $0xf8] sm:$0xff] }
   0xf   :  { %453 = vmatmul.msk.f32.gmra.mxu1 %vm58_vm0, %v29_v8  ;;  %469 = vmatmul.msk.f32.gmra.mxu3 %vm58_vm0, %v45_v9 }
  0x15   :  { %446 = vmatmul.msk.f32.gmra.mxu0 %vm58_vm0, %v22_v10  ;;  %462 = vmatmul.msk.f32.gmra.mxu2 %vm58_vm0, %v38_v11 }
  0x17   :  { %454 = vmatmul.msk.f32.gmra.mxu1 %vm58_vm0, %v30_v12  ;;  %470 = vmatmul.msk.f32.gmra.mxu3 %vm58_vm0, %v46_v13 }
  0x1d   :  { %447 = vmatmul.msk.f32.gmra.mxu0 %vm58_vm0, %v23_v14  ;;  %463 = vmatmul.msk.f32.gmra.mxu2 %vm58_vm0, %v39_v15 }
  0x1f   :  { %455 = vmatmul.msk.f32.gmra.mxu1 %vm58_vm0, %v31_v16  ;;  %471 = vmatmul.msk.f32.gmra.mxu3 %vm58_vm0, %v47_v17 }
  0x25   :  { %448 = vmatmul.msk.f32.gmra.mxu0 %vm58_vm0, %v24_v18  ;;  %464 = vmatmul.msk.f32.gmra.mxu2 %vm58_vm0, %v40_v19 }
  0x27   :  { %456 = vmatmul.msk.f32.gmra.mxu1 %vm58_vm0, %v32_v20  ;;  %472 = vmatmul.msk.f32.gmra.mxu3 %vm58_vm0, %v48_v21 }
  0x2d   :  { %449 = vmatmul.msk.f32.gmra.mxu0 %vm58_vm0, %v25_v22  ;;  %465 = vmatmul.msk.f32.gmra.mxu2 %vm58_vm0, %v41_v23 }
  0x2f   :  { %457 = vmatmul.msk.f32.gmra.mxu1 %vm58_vm0, %v33_v24  ;;  %473 = vmatmul.msk.f32.gmra.mxu3 %vm58_vm0, %v49_v25 }
  0x35   :  { %450 = vmatmul.msk.f32.gmra.mxu0 %vm58_vm0, %v26_v26  ;;  %466 = vmatmul.msk.f32.gmra.mxu2 %vm58_vm0, %v42_v27 }
  0x37   :  { %458 = vmatmul.msk.f32.gmra.mxu1 %vm58_vm0, %v34_v28  ;;  %474 = vmatmul.msk.f32.gmra.mxu3 %vm58_vm0, %v50_v29 }
  0x3d   :  { %451 = vmatmul.msk.f32.gmra.mxu0 %vm58_vm0, %v27_v30  ;;  %467 = vmatmul.msk.f32.gmra.mxu2 %vm58_vm0, %v43_v31 }
  0x3f   :  { %459 = vmatmul.msk.f32.gmra.mxu1 %vm58_vm0, %v35_v32  ;;  %475 = vmatmul.msk.f32.gmra.mxu3 %vm58_vm0, %v51_v33 }
  0x82   :  { %v172_v35 = vpop.f32.mrf.mxu0 }
  0x83   :  { %v173_v36 = vadd.f32 %v650_v34, %v172_v35 }
  0x84   :  { %v196_v37 = vpop.f32.mrf.mxu1 }
  0x85   :  { %268 = vst [vmem:[%s823_s4] sm:$0xff] %v173_v36  ;;  %v301_v38 = vmax.f32 %v173_v36, 0.0  ;;  %v197_v39 = vadd.f32 %v650_v34, %v196_v37 }
  0x87   :  { %276 = vst [vmem:[%s823_s4 + $0x40] sm:$0xff] %v197_v39  ;;  %v309_v40 = vmax.f32 %v197_v39, 0.0  ;;  %v333_v42 = vadd.f32 1e-07, %v301_v38 }
  0x88   :  { %v220_v41 = vpop.f32.mrf.mxu2 }
  0x89   :  { %v341_v43 = vadd.f32 1e-07, %v309_v40  ;;  %v221_v44 = vadd.f32 %v650_v34, %v220_v41  ;;  %v366_v52 = vmul.f32 %v664_v45, %v333_v42 }
  0x8a   :  { %v175_v46 = vpop.f32.mrf.mxu0  ;;  %v244_v47 = vpop.f32.mrf.mxu3 }
  0x8b   :  { %v176_v48 = vadd.f32 %v650_v34, %v175_v46  ;;  %284 = vst [vmem:[%s823_s4 + $0x80] sm:$0xff] %v221_v44  ;;  %v317_v49 = vmax.f32 %v221_v44, 0.0  ;;  %v245_v50 = vadd.f32 %v650_v34, %v244_v47  ;;  %v374_v53 = vmul.f32 %v664_v45, %v341_v43 }
  0x8c   :  { %v199_v51 = vpop.f32.mrf.mxu1 }
  0x8d   :  { %269 = vst [vmem:[%s823_s4 + $0x8] sm:$0xff] %v176_v48  ;;  %v302_v54 = vmax.f32 %v176_v48, 0.0  ;;  %v200_v55 = vadd.f32 %v650_v34, %v199_v51  ;;  %v349_v56 = vadd.f32 1e-07, %v317_v49  ;;  %v325_v57 = vmax.f32 %v245_v50, 0.0 }
  0x8e   :  { %292 = vst [vmem:[%s823_s4 + $0xc0] sm:$0xff] %v245_v50  ;;  %v398_v61 = vmax.f32 %v366_v52, %v374_v53 }
  0x8f   :  { %v334_v58 = vadd.f32 1e-07, %v302_v54  ;;  %277 = vst [vmem:[%s823_s4 + $0x48] sm:$0xff] %v200_v55  ;;  %v310_v59 = vmax.f32 %v200_v55, 0.0  ;;  %v382_v1 = vmul.f32 %v664_v45, %v349_v56  ;;  %v357_v2 = vadd.f32 1e-07, %v325_v57 }
  0x90   :  { %v223_v60 = vpop.f32.mrf.mxu2 }
  0x91   :  { %v367_v62 = vmul.f32 %v664_v45, %v334_v58  ;;  %v342_v63 = vadd.f32 1e-07, %v310_v59  ;;  %v224_v0 = vadd.f32 %v650_v34, %v223_v60  ;;  %v390_v17 = vmul.f32 %v664_v45, %v357_v2 }
  0x92   :  { %v178_v3 = vpop.f32.mrf.mxu0  ;;  %v247_v4 = vpop.f32.mrf.mxu3 }
  0x93   :  { %v402_v5 = vmax.f32 %v398_v61, %v367_v62  ;;  %v375_v6 = vmul.f32 %v664_v45, %v342_v63  ;;  %v179_v7 = vadd.f32 %v650_v34, %v178_v3  ;;  %285 = vst [vmem:[%s823_s4 + $0x88] sm:$0xff] %v224_v0  ;;  %v318_v8 = vmax.f32 %v224_v0, 0.0 }
  0x94   :  { %v202_v9 = vpop.f32.mrf.mxu1  ;;  %v248_v10 = vadd.f32 %v650_v34, %v247_v4 }
  0x95   :  { %v406_v11 = vmax.f32 %v402_v5, %v382_v1  ;;  %270 = vst [vmem:[%s823_s4 + $0x10] sm:$0xff] %v179_v7  ;;  %v303_v12 = vmax.f32 %v179_v7, 0.0  ;;  %v203_v13 = vadd.f32 %v650_v34, %v202_v9  ;;  %v350_v14 = vadd.f32 1e-07, %v318_v8 }
  0x96   :  { %293 = vst [vmem:[%s823_s4 + $0xc8] sm:$0xff] %v248_v10  ;;  %v326_v15 = vmax.f32 %v248_v10, 0.0 }
  0x97   :  { %v399_v16 = vmax.f32 %v375_v6, %v406_v11  ;;  %v335_v18 = vadd.f32 1e-07, %v303_v12  ;;  %278 = vst [vmem:[%s823_s4 + $0x50] sm:$0xff] %v203_v13  ;;  %v311_v19 = vmax.f32 %v203_v13, 0.0  ;;  %v383_v25 = vmul.f32 %v664_v45, %v350_v14 }
  0x98   :  { %v226_v20 = vpop.f32.mrf.mxu2  ;;  %v358_v26 = vadd.f32 1e-07, %v326_v15 }
  0x99   :  { %v410_v21 = vmax.f32 %v390_v17, %v399_v16  ;;  %v368_v22 = vmul.f32 %v664_v45, %v335_v18  ;;  %v343_v23 = vadd.f32 1e-07, %v311_v19  ;;  %v227_v24 = vadd.f32 %v650_v34, %v226_v20 }
  0x9a   :  { %v181_v27 = vpop.f32.mrf.mxu0  ;;  %v250_v28 = vpop.f32.mrf.mxu3  ;;  %v391_v42 = vmul.f32 %v664_v45, %v358_v26 }
  0x9b   :  { %v414_v29 = vmax.f32 %v410_v21, %v368_v22  ;;  %v376_v30 = vmul.f32 %v664_v45, %v343_v23  ;;  %v182_v31 = vadd.f32 %v650_v34, %v181_v27  ;;  %286 = vst [vmem:[%s823_s4 + $0x90] sm:$0xff] %v227_v24  ;;  %v319_v32 = vmax.f32 %v227_v24, 0.0 }
  0x9c   :  { %v205_v33 = vpop.f32.mrf.mxu1  ;;  %v251_v35 = vadd.f32 %v650_v34, %v250_v28 }
  0x9d   :  { %v403_v36 = vmax.f32 %v383_v25, %v414_v29  ;;  %271 = vst [vmem:[%s823_s4 + $0x18] sm:$0xff] %v182_v31  ;;  %v304_v37 = vmax.f32 %v182_v31, 0.0  ;;  %v206_v38 = vadd.f32 %v650_v34, %v205_v33  ;;  %v351_v39 = vadd.f32 1e-07, %v319_v32 }
  0x9e   :  { %294 = vst [vmem:[%s823_s4 + $0xd0] sm:$0xff] %v251_v35  ;;  %v327_v40 = vmax.f32 %v251_v35, 0.0 }
  0x9f   :  { %v407_v41 = vmax.f32 %v403_v36, %v376_v30  ;;  %v336_v43 = vadd.f32 1e-07, %v304_v37  ;;  %279 = vst [vmem:[%s823_s4 + $0x58] sm:$0xff] %v206_v38  ;;  %v312_v44 = vmax.f32 %v206_v38, 0.0  ;;  %v384_v51 = vmul.f32 %v664_v45, %v351_v39 }
  0xa0   :  { %v229_v46 = vpop.f32.mrf.mxu2  ;;  %v359_v52 = vadd.f32 1e-07, %v327_v40 }
  0xa1   :  { %v418_v47 = vmax.f32 %v391_v42, %v407_v41  ;;  %v369_v48 = vmul.f32 %v664_v45, %v336_v43  ;;  %v344_v49 = vadd.f32 1e-07, %v312_v44  ;;  %v230_v50 = vadd.f32 %v650_v34, %v229_v46 }
  0xa2   :  { %v184_v53 = vpop.f32.mrf.mxu0  ;;  %v253_v54 = vpop.f32.mrf.mxu3  ;;  %v392_v3 = vmul.f32 %v664_v45, %v359_v52 }
  0xa3   :  { %v422_v55 = vmax.f32 %v418_v47, %v369_v48  ;;  %v377_v56 = vmul.f32 %v664_v45, %v344_v49  ;;  %v185_v57 = vadd.f32 %v650_v34, %v184_v53  ;;  %287 = vst [vmem:[%s823_s4 + $0x98] sm:$0xff] %v230_v50  ;;  %v320_v58 = vmax.f32 %v230_v50, 0.0 }
  0xa4   :  { %v208_v59 = vpop.f32.mrf.mxu1  ;;  %v254_v60 = vadd.f32 %v650_v34, %v253_v54 }
  0xa5   :  { %v400_v61 = vmax.f32 %v384_v51, %v422_v55  ;;  %272 = vst [vmem:[%s823_s4 + $0x20] sm:$0xff] %v185_v57  ;;  %v305_v62 = vmax.f32 %v185_v57, 0.0  ;;  %v209_v63 = vadd.f32 %v650_v34, %v208_v59  ;;  %v352_v0 = vadd.f32 1e-07, %v320_v58 }
  0xa6   :  { %295 = vst [vmem:[%s823_s4 + $0xd8] sm:$0xff] %v254_v60  ;;  %v328_v1 = vmax.f32 %v254_v60, 0.0 }
  0xa7   :  { %v411_v2 = vmax.f32 %v377_v56, %v400_v61  ;;  %v337_v4 = vadd.f32 1e-07, %v305_v62  ;;  %280 = vst [vmem:[%s823_s4 + $0x60] sm:$0xff] %v209_v63  ;;  %v313_v5 = vmax.f32 %v209_v63, 0.0  ;;  %v385_v11 = vmul.f32 %v664_v45, %v352_v0 }
  0xa8   :  { %v232_v6 = vpop.f32.mrf.mxu2  ;;  %v360_v12 = vadd.f32 1e-07, %v328_v1 }
  0xa9   :  { %v415_v7 = vmax.f32 %v411_v2, %v392_v3  ;;  %v370_v8 = vmul.f32 %v664_v45, %v337_v4  ;;  %v345_v9 = vadd.f32 1e-07, %v313_v5  ;;  %v233_v10 = vadd.f32 %v650_v34, %v232_v6 }
  0xaa   :  { %v187_v13 = vpop.f32.mrf.mxu0  ;;  %v256_v14 = vpop.f32.mrf.mxu3  ;;  %v393_v27 = vmul.f32 %v664_v45, %v360_v12 }
  0xab   :  { %v404_v15 = vmax.f32 %v370_v8, %v415_v7  ;;  %v378_v16 = vmul.f32 %v664_v45, %v345_v9  ;;  %v188_v17 = vadd.f32 %v650_v34, %v187_v13  ;;  %288 = vst [vmem:[%s823_s4 + $0xa0] sm:$0xff] %v233_v10  ;;  %v321_v18 = vmax.f32 %v233_v10, 0.0 }
  0xac   :  { %v211_v19 = vpop.f32.mrf.mxu1  ;;  %v257_v20 = vadd.f32 %v650_v34, %v256_v14 }
  0xad   :  { %v408_v21 = vmax.f32 %v404_v15, %v385_v11  ;;  %273 = vst [vmem:[%s823_s4 + $0x28] sm:$0xff] %v188_v17  ;;  %v306_v22 = vmax.f32 %v188_v17, 0.0  ;;  %v212_v23 = vadd.f32 %v650_v34, %v211_v19  ;;  %v353_v24 = vadd.f32 1e-07, %v321_v18 }
  0xae   :  { %296 = vst [vmem:[%s823_s4 + $0xe0] sm:$0xff] %v257_v20  ;;  %v329_v25 = vmax.f32 %v257_v20, 0.0 }
  0xaf   :  { %v419_v26 = vmax.f32 %v378_v16, %v408_v21  ;;  %v338_v28 = vadd.f32 1e-07, %v306_v22  ;;  %281 = vst [vmem:[%s823_s4 + $0x68] sm:$0xff] %v212_v23  ;;  %v314_v29 = vmax.f32 %v212_v23, 0.0  ;;  %v386_v36 = vmul.f32 %v664_v45, %v353_v24 }
  0xb0   :  { %v235_v30 = vpop.f32.mrf.mxu2  ;;  %v361_v37 = vadd.f32 1e-07, %v329_v25 }
  0xb1   :  { %v423_v31 = vmax.f32 %v419_v26, %v393_v27  ;;  %v371_v32 = vmul.f32 %v664_v45, %v338_v28  ;;  %v346_v33 = vadd.f32 1e-07, %v314_v29  ;;  %v236_v35 = vadd.f32 %v650_v34, %v235_v30 }
  0xb2   :  { %v190_v38 = vpop.f32.mrf.mxu0  ;;  %v259_v39 = vpop.f32.mrf.mxu3  ;;  %v394_v53 = vmul.f32 %v664_v45, %v361_v37 }
  0xb3   :  { %v426_v40 = vmax.f32 %v371_v32, %v423_v31  ;;  %v379_v41 = vmul.f32 %v664_v45, %v346_v33  ;;  %v191_v42 = vadd.f32 %v650_v34, %v190_v38  ;;  %289 = vst [vmem:[%s823_s4 + $0xa8] sm:$0xff] %v236_v35  ;;  %v322_v43 = vmax.f32 %v236_v35, 0.0 }
  0xb4   :  { %v214_v44 = vpop.f32.mrf.mxu1  ;;  %v260_v46 = vadd.f32 %v650_v34, %v259_v39 }
  0xb5   :  { %v401_v47 = vmax.f32 %v386_v36, %v426_v40  ;;  %274 = vst [vmem:[%s823_s4 + $0x30] sm:$0xff] %v191_v42  ;;  %v307_v48 = vmax.f32 %v191_v42, 0.0  ;;  %v215_v49 = vadd.f32 %v650_v34, %v214_v44  ;;  %v354_v50 = vadd.f32 1e-07, %v322_v43 }
  0xb6   :  { %297 = vst [vmem:[%s823_s4 + $0xe8] sm:$0xff] %v260_v46  ;;  %v330_v51 = vmax.f32 %v260_v46, 0.0 }
  0xb7   :  { %v412_v52 = vmax.f32 %v379_v41, %v401_v47  ;;  %v339_v54 = vadd.f32 1e-07, %v307_v48  ;;  %282 = vst [vmem:[%s823_s4 + $0x70] sm:$0xff] %v215_v49  ;;  %v315_v55 = vmax.f32 %v215_v49, 0.0  ;;  %v387_v61 = vmul.f32 %v664_v45, %v354_v50 }
  0xb8   :  { %v238_v56 = vpop.f32.mrf.mxu2  ;;  %v362_v62 = vadd.f32 1e-07, %v330_v51 }
  0xb9   :  { %v416_v57 = vmax.f32 %v412_v52, %v394_v53  ;;  %v372_v58 = vmul.f32 %v664_v45, %v339_v54  ;;  %v347_v59 = vadd.f32 1e-07, %v315_v55  ;;  %v239_v60 = vadd.f32 %v650_v34, %v238_v56 }
  0xba   :  { %v193_v63 = vpop.f32.mrf.mxu0  ;;  %v262_v0 = vpop.f32.mrf.mxu3  ;;  %v395_v13 = vmul.f32 %v664_v45, %v362_v62 }
  0xbb   :  { %v405_v1 = vmax.f32 %v372_v58, %v416_v57  ;;  %v380_v2 = vmul.f32 %v664_v45, %v347_v59  ;;  %v194_v3 = vadd.f32 %v650_v34, %v193_v63  ;;  %290 = vst [vmem:[%s823_s4 + $0xb0] sm:$0xff] %v239_v60  ;;  %v323_v4 = vmax.f32 %v239_v60, 0.0 }
  0xbc   :  { %v217_v5 = vpop.f32.mrf.mxu1  ;;  %v263_v6 = vadd.f32 %v650_v34, %v262_v0 }
  0xbd   :  { %v409_v7 = vmax.f32 %v405_v1, %v387_v61  ;;  %275 = vst [vmem:[%s823_s4 + $0x38] sm:$0xff] %v194_v3  ;;  %v308_v8 = vmax.f32 %v194_v3, 0.0  ;;  %v218_v9 = vadd.f32 %v650_v34, %v217_v5  ;;  %v355_v10 = vadd.f32 1e-07, %v323_v4 }
  0xbe   :  { %298 = vst [vmem:[%s823_s4 + $0xf0] sm:$0xff] %v263_v6  ;;  %v331_v11 = vmax.f32 %v263_v6, 0.0 }
  0xbf   :  { %v420_v12 = vmax.f32 %v380_v2, %v409_v7  ;;  %v340_v14 = vadd.f32 1e-07, %v308_v8  ;;  %283 = vst [vmem:[%s823_s4 + $0x78] sm:$0xff] %v218_v9  ;;  %v316_v15 = vmax.f32 %v218_v9, 0.0  ;;  %v388_v21 = vmul.f32 %v664_v45, %v355_v10 }
  0xc0   :  { %v241_v16 = vpop.f32.mrf.mxu2  ;;  %v363_v22 = vadd.f32 1e-07, %v331_v11 }
  0xc1   :  { %v424_v17 = vmax.f32 %v420_v12, %v395_v13  ;;  %v373_v18 = vmul.f32 %v664_v45, %v340_v14  ;;  %v348_v19 = vadd.f32 1e-07, %v316_v15  ;;  %v242_v20 = vadd.f32 %v650_v34, %v241_v16 }
  0xc2   :  { %v265_v23 = vpop.f32.mrf.mxu3  ;;  %v396_v32 = vmul.f32 %v664_v45, %v363_v22 }
  0xc3   :  { %v413_v24 = vmax.f32 %v373_v18, %v424_v17  ;;  %v381_v25 = vmul.f32 %v664_v45, %v348_v19  ;;  %291 = vst [vmem:[%s823_s4 + $0xb8] sm:$0xff] %v242_v20  ;;  %v324_v26 = vmax.f32 %v242_v20, 0.0  ;;  %v266_v27 = vadd.f32 %v650_v34, %v265_v23 }
  0xc5   :  { %v417_v28 = vmax.f32 %v413_v24, %v388_v21  ;;  %v356_v29 = vadd.f32 1e-07, %v324_v26  ;;  %299 = vst [vmem:[%s823_s4 + $0xf8] sm:$0xff] %v266_v27  ;;  %v332_v30 = vmax.f32 %v266_v27, 0.0 }
  0xc7   :  { %v421_v31 = vmax.f32 %v417_v28, %v381_v25  ;;  %v389_v33 = vmul.f32 %v664_v45, %v356_v29  ;;  %v364_v35 = vadd.f32 1e-07, %v332_v30 }
  0xc9   :  { %v425_v36 = vmax.f32 %v421_v31, %v396_v32  ;;  %v397_v37 = vmul.f32 %v664_v45, %v364_v35 }
  0xcb   :  { %v427_v38 = vmax.f32 %v389_v33, %v425_v36 }
  0xcd   :  { %v428_v39 = vmax.f32 %v397_v37, %v427_v38 }
  0xcf   :  { %v429_v40 = vrot.slane %v428_v39, 4 }
  0xd1   :  { %v430_v34 = vmax.f32 %v428_v39, %v429_v40 }
  0xd3   :  { %v431_v41 = vrot.slane %v430_v34, 2 }
  0xd5   :  { %v432_v42 = vmax.f32 %v430_v34, %v431_v41 }
  0xd7   :  { %v433_v43 = vrot.slane %v432_v42, 1 }
  0xd9   :  { %v434_v44 = vmax.f32 %v432_v42, %v433_v43 }
  0xdb   :  { %435 = vst [vmem:[%s825_s5] sm:$0x1] %v434_v44 }

// kernel: deeper_gcn_forward.11
= control target key start
LH: loop header
LB: loop body
LE: loop exit
PB: predicated region body
PF: predicated region fallthrough
CT: control target
= control target key end

     0   :  { %s1164_s0 = inlined_call_operand.<no memory space> [shape: f32[1,1], index: 0, kind: input, shape index: {}]   ;;  %s1165_s1 = inlined_call_operand.vmem [shape: f32[256,128], index: 1, kind: input, shape index: {}]   ;;  %s1166_s2 = inlined_call_operand.vmem [shape: f32[1,128], index: 2, kind: input, shape index: {}]   ;;  %s1167_s3 = inlined_call_operand.vmem [shape: bf16[256,256], index: 3, kind: output, shape index: {}]  }
   0x1   :  { %v15_v0 = vld [vmem:[%s1165_s1] sm:$0xff]  ;;  %v16_v3 = vld [vmem:[%s1165_s1 + $0x8] sm:$0xff]  ;;  %v17_v4 = vld [vmem:[%s1165_s1 + $0x10] sm:$0xff]  ;;  %v546_v6 = vstv %s1164_s0 }
   0x2   :  { %v47_v1 = vmax.f32 %v15_v0, 0.0  ;;  %v532_v2 = vld [vmem:[%s1166_s2] ss:$0 sm:$0xff]  ;;  %v18_v5 = vld [vmem:[%s1165_s1 + $0x18] sm:$0xff]  ;;  %v48_v7 = vmax.f32 %v16_v3, 0.0  ;;  %v49_v8 = vmax.f32 %v17_v4, 0.0 }
   0x3   :  { %v50_v9 = vmax.f32 %v18_v5, 0.0  ;;  %v19_v10 = vld [vmem:[%s1165_s1 + $0x20] sm:$0xff]  ;;  %v20_v11 = vld [vmem:[%s1165_s1 + $0x28] sm:$0xff]  ;;  %v21_v12 = vld [vmem:[%s1165_s1 + $0x30] sm:$0xff] }
   0x4   :  { %v557_v13 = vadd.f32 1e-07, %v47_v1  ;;  %v51_v14 = vmax.f32 %v19_v10, 0.0  ;;  %v52_v15 = vmax.f32 %v20_v11, 0.0  ;;  %v53_v16 = vmax.f32 %v21_v12, 0.0  ;;  %v22_v17 = vld [vmem:[%s1165_s1 + $0x38] sm:$0xff] }
   0x5   :  { %v562_v18 = vadd.f32 1e-07, %v48_v7  ;;  %v564_v19 = vadd.f32 1e-07, %v49_v8  ;;  %v566_v20 = vadd.f32 1e-07, %v50_v9 }
   0x6   :  { %v113_v21 = vmul.f32 %v546_v6, %v557_v13  ;;  %v570_v22 = vadd.f32 1e-07, %v51_v14  ;;  %v572_v23 = vadd.f32 1e-07, %v52_v15  ;;  %v574_v24 = vadd.f32 1e-07, %v53_v16 }
   0x7   :  { %v114_v25 = vmul.f32 %v546_v6, %v562_v18  ;;  %v115_v26 = vmul.f32 %v546_v6, %v564_v19  ;;  %v116_v27 = vmul.f32 %v546_v6, %v566_v20  ;;  %v54_v28 = vmax.f32 %v22_v17, 0.0  ;;  %v23_v37 = vld [vmem:[%s1165_s1 + $0x40] sm:$0xff]  ;;  %v24_v38 = vld [vmem:[%s1165_s1 + $0x48] sm:$0xff]  ;;  %v25_v43 = vld [vmem:[%s1165_s1 + $0x50] sm:$0xff] }
   0x8   :  { %v149_v29 = vsub.f32 %v113_v21, %v532_v2  ;;  %v117_v30 = vmul.f32 %v546_v6, %v570_v22  ;;  %v118_v31 = vmul.f32 %v546_v6, %v572_v23  ;;  %v119_v32 = vmul.f32 %v546_v6, %v574_v24  ;;  %v26_v44 = vld [vmem:[%s1165_s1 + $0x58] sm:$0xff]  ;;  %v27_v45 = vld [vmem:[%s1165_s1 + $0x60] sm:$0xff]  ;;  %v618_v59 = vld [vmem:[%s1165_s1 + $0x68] sm:$0xff] }
   0x9   :  { %v150_v33 = vsub.f32 %v114_v25, %v532_v2  ;;  %v151_v34 = vsub.f32 %v115_v26, %v532_v2  ;;  %v152_v35 = vsub.f32 %v116_v27, %v532_v2  ;;  %v592_v36 = vadd.f32 1e-07, %v54_v28 }
   0xa   :  { %v181_v39 = vmul.f32 1.442695, %v149_v29  ;;  %v153_v40 = vsub.f32 %v117_v30, %v532_v2  ;;  %v154_v41 = vsub.f32 %v118_v31, %v532_v2  ;;  %v155_v42 = vsub.f32 %v119_v32, %v532_v2 }
   0xb   :  { %v183_v46 = vmul.f32 1.442695, %v150_v33  ;;  %v185_v47 = vmul.f32 1.442695, %v151_v34  ;;  %v187_v48 = vmul.f32 1.442695, %v152_v35  ;;  %v120_v49 = vmul.f32 %v546_v6, %v592_v36 }
   0xc   :  { %442 = vpow2.f32 %v181_v39  ;;  %v189_v50 = vmul.f32 1.442695, %v153_v40  ;;  %v191_v51 = vmul.f32 1.442695, %v154_v41  ;;  %v193_v52 = vmul.f32 1.442695, %v155_v42 }
   0xd   :  { %444 = vpow2.f32 %v183_v46  ;;  %v156_v53 = vsub.f32 %v120_v49, %v532_v2  ;;  %v55_v54 = vmax.f32 %v23_v37, 0.0  ;;  %v56_v55 = vmax.f32 %v24_v38, 0.0 }
   0xe   :  { %446 = vpow2.f32 %v185_v47  ;;  %v57_v56 = vmax.f32 %v25_v43, 0.0  ;;  %v58_v57 = vmax.f32 %v26_v44, 0.0  ;;  %v59_v58 = vmax.f32 %v27_v45, 0.0  ;;  %v29_v47 = vld [vmem:[%s1165_s1 + $0x70] sm:$0xff] }
   0xf   :  { %448 = vpow2.f32 %v187_v48  ;;  %v195_v60 = vmul.f32 1.442695, %v156_v53  ;;  %v620_v61 = vadd.f32 1e-07, %v55_v54  ;;  %v622_v62 = vadd.f32 1e-07, %v56_v55 }
  0x10   :  { %450 = vpow2.f32 %v189_v50  ;;  %v624_v63 = vadd.f32 1e-07, %v57_v56  ;;  %v626_v0 = vadd.f32 1e-07, %v58_v57  ;;  %v628_v1 = vadd.f32 1e-07, %v59_v58 }
  0x11   :  { %452 = vpow2.f32 %v191_v51  ;;  %v121_v3 = vmul.f32 %v546_v6, %v620_v61  ;;  %v122_v4 = vmul.f32 %v546_v6, %v622_v62  ;;  %v60_v5 = vmax.f32 %v618_v59, 0.0  ;;  %v31_v50 = vld [vmem:[%s1165_s1 + $0x80] sm:$0xff] }
  0x12   :  { %v443_v7 = vpop.eup %442  ;;  %454 = vpow2.f32 %v193_v52  ;;  %v123_v8 = vmul.f32 %v546_v6, %v624_v63  ;;  %v124_v9 = vmul.f32 %v546_v6, %v626_v0  ;;  %v125_v10 = vmul.f32 %v546_v6, %v628_v1 }
  0x13   :  { %v445_v11 = vpop.eup %444  ;;  %v641_v12 = vmax.f32 %v443_v7, 1e-30  ;;  %456 = vpow2.f32 %v195_v60  ;;  %v157_v14 = vsub.f32 %v121_v3, %v532_v2  ;;  %v158_v15 = vsub.f32 %v122_v4, %v532_v2 }
  0x14   :  { %v447_v16 = vpop.eup %446  ;;  %v645_v17 = vmax.f32 %v445_v11, 1e-30  ;;  %v159_v21 = vsub.f32 %v123_v8, %v532_v2  ;;  %v160_v25 = vsub.f32 %v124_v9, %v532_v2  ;;  %v161_v26 = vsub.f32 %v125_v10, %v532_v2 }
  0x15   :  { %v449_v27 = vpop.eup %448  ;;  %v277_v28 = vmul.f32 %v641_v12, %v557_v13  ;;  %v652_v29 = vmax.f32 %v447_v16, 1e-30  ;;  %v197_v30 = vmul.f32 1.442695, %v157_v14  ;;  %v199_v31 = vmul.f32 1.442695, %v158_v15 }
  0x16   :  { %v451_v32 = vpop.eup %450  ;;  %v278_v33 = vmul.f32 %v645_v17, %v562_v18  ;;  %v656_v34 = vmax.f32 %v449_v27, 1e-30  ;;  %v201_v35 = vmul.f32 1.442695, %v159_v21  ;;  %v203_v37 = vmul.f32 1.442695, %v160_v25 }
  0x17   :  { %v453_v38 = vpop.eup %452  ;;  %v309_v39 = vpack.c.bf16 %v277_v28, %v277_v28  ;;  %v279_v40 = vmul.f32 %v652_v29, %v564_v19  ;;  %v660_v41 = vmax.f32 %v451_v32, 1e-30  ;;  %458 = vpow2.f32 %v197_v30 }
  0x18   :  { %v455_v13 = vpop.eup %454  ;;  %v310_v42 = vpack.c.bf16 %v278_v33, %v278_v33  ;;  %v280_v43 = vmul.f32 %v656_v34, %v566_v20  ;;  %v664_v44 = vmax.f32 %v453_v38, 1e-30  ;;  %460 = vpow2.f32 %v199_v31  ;;  %v30_v20 = vld [vmem:[%s1165_s1 + $0x78] sm:$0xff]  ;;  %v32_v33 = vld [vmem:[%s1165_s1 + $0x88] sm:$0xff] }
  0x19   :  { %v457_v18 = vpop.eup %456  ;;  %341 = vst [vmem:[%s1167_s3] sm:$0xf] %v309_v39  ;;  %v311_v45 = vpack.c.bf16 %v279_v40, %v279_v40  ;;  %v281_v19 = vmul.f32 %v660_v41, %v570_v22  ;;  %v671_v46 = vmax.f32 %v455_v13, 1e-30  ;;  %462 = vpow2.f32 %v201_v35  ;;  %v34_v39 = vld [vmem:[%s1165_s1 + $0x98] sm:$0xff]  ;;  %v35_v40 = vld [vmem:[%s1165_s1 + $0xa0] sm:$0xff] }
  0x1a   :  { %342 = vst [vmem:[%s1167_s3 + $0x8] sm:$0xf] %v310_v42  ;;  %v312_v48 = vpack.c.bf16 %v280_v43, %v280_v43  ;;  %v282_v49 = vmul.f32 %v664_v44, %v572_v23  ;;  %v684_v22 = vmax.f32 %v457_v18, 1e-30  ;;  %464 = vpow2.f32 %v203_v37  ;;  %v36_v18 = vld [vmem:[%s1165_s1 + $0xa8] sm:$0xff] }
  0x1b   :  { %343 = vst [vmem:[%s1167_s3 + $0x10] sm:$0xf] %v311_v45  ;;  %v313_v51 = vpack.c.bf16 %v281_v19, %v281_v19  ;;  %v283_v52 = vmul.f32 %v671_v46, %v574_v24  ;;  %v205_v53 = vmul.f32 1.442695, %v161_v26  ;;  %v694_v54 = vadd.f32 1e-07, %v60_v5 }
  0x1c   :  { %344 = vst [vmem:[%s1167_s3 + $0x18] sm:$0xf] %v312_v48  ;;  %v314_v23 = vpack.c.bf16 %v282_v49, %v282_v49  ;;  %v284_v55 = vmul.f32 %v684_v22, %v592_v36  ;;  %v61_v56 = vmax.f32 %v29_v47, 0.0  ;;  %v62_v57 = vmax.f32 %v30_v20, 0.0 }
  0x1d   :  { %v459_v58 = vpop.eup %458  ;;  %345 = vst [vmem:[%s1167_s3 + $0x20] sm:$0xf] %v313_v51  ;;  %v315_v59 = vpack.c.bf16 %v283_v52, %v283_v52  ;;  %466 = vpow2.f32 %v205_v53  ;;  %v126_v24 = vmul.f32 %v546_v6, %v694_v54  ;;  %v63_v60 = vmax.f32 %v31_v50, 0.0  ;;  %v37_v51 = vld [vmem:[%s1165_s1 + $0xb0] sm:$0xff] }
  0x1e   :  { %v461_v3 = vpop.eup %460  ;;  %346 = vst [vmem:[%s1167_s3 + $0x28] sm:$0xf] %v314_v23  ;;  %v316_v4 = vpack.c.bf16 %v284_v55, %v284_v55  ;;  %v709_v36 = vmax.f32 %v459_v58, 1e-30  ;;  %v711_v5 = vadd.f32 1e-07, %v61_v56 }
  0x1f   :  { %v463_v7 = vpop.eup %462  ;;  %347 = vst [vmem:[%s1167_s3 + $0x30] sm:$0xf] %v315_v59  ;;  %v716_v8 = vmax.f32 %v461_v3, 1e-30  ;;  %v162_v9 = vsub.f32 %v126_v24, %v532_v2  ;;  %v719_v10 = vadd.f32 1e-07, %v62_v57 }
  0x20   :  { %v465_v11 = vpop.eup %464  ;;  %348 = vst [vmem:[%s1167_s3 + $0x38] sm:$0xf] %v316_v4  ;;  %v285_v14 = vmul.f32 %v709_v36, %v620_v61  ;;  %v726_v15 = vmax.f32 %v463_v7, 1e-30  ;;  %v127_v16 = vmul.f32 %v546_v6, %v711_v5  ;;  %v730_v21 = vadd.f32 1e-07, %v63_v60 }
  0x21   :  { %v286_v25 = vmul.f32 %v716_v8, %v622_v62  ;;  %v734_v26 = vmax.f32 %v465_v11, 1e-30  ;;  %v207_v27 = vmul.f32 1.442695, %v162_v9  ;;  %v128_v28 = vmul.f32 %v546_v6, %v719_v10  ;;  %v33_v62 = vld [vmem:[%s1165_s1 + $0x90] sm:$0xff]  ;;  %v38_v60 = vld [vmem:[%s1165_s1 + $0xb8] sm:$0xff] }
  0x22   :  { %v317_v30 = vpack.c.bf16 %v285_v14, %v285_v14  ;;  %v287_v61 = vmul.f32 %v726_v15, %v624_v63  ;;  %v163_v31 = vsub.f32 %v127_v16, %v532_v2  ;;  %v129_v32 = vmul.f32 %v546_v6, %v730_v21 }
  0x23   :  { %v467_v35 = vpop.eup %466  ;;  %v318_v37 = vpack.c.bf16 %v286_v25, %v286_v25  ;;  %v288_v38 = vmul.f32 %v734_v26, %v626_v0  ;;  %468 = vpow2.f32 %v207_v27  ;;  %v164_v63 = vsub.f32 %v128_v28, %v532_v2 }
  0x24   :  { %349 = vst [vmem:[%s1167_s3 + $0x40] sm:$0xf] %v317_v30  ;;  %v319_v13 = vpack.c.bf16 %v287_v61, %v287_v61  ;;  %v761_v42 = vmax.f32 %v467_v35, 1e-30  ;;  %v209_v43 = vmul.f32 1.442695, %v163_v31  ;;  %v165_v0 = vsub.f32 %v129_v32, %v532_v2 }
  0x25   :  { %350 = vst [vmem:[%s1167_s3 + $0x48] sm:$0xf] %v318_v37  ;;  %v320_v45 = vpack.c.bf16 %v288_v38, %v288_v38  ;;  %v211_v19 = vmul.f32 1.442695, %v164_v63  ;;  %v64_v47 = vmax.f32 %v32_v33, 0.0  ;;  %v65_v20 = vmax.f32 %v33_v62, 0.0 }
  0x26   :  { %351 = vst [vmem:[%s1167_s3 + $0x50] sm:$0xf] %v319_v13  ;;  %v289_v48 = vmul.f32 %v761_v42, %v628_v1  ;;  %470 = vpow2.f32 %v209_v43  ;;  %v213_v49 = vmul.f32 1.442695, %v165_v0  ;;  %v66_v50 = vmax.f32 %v34_v39, 0.0 }
  0x27   :  { %352 = vst [vmem:[%s1167_s3 + $0x58] sm:$0xf] %v320_v45  ;;  %472 = vpow2.f32 %v211_v19  ;;  %v781_v52 = vadd.f32 1e-07, %v64_v47  ;;  %v783_v53 = vadd.f32 1e-07, %v65_v20 }
  0x28   :  { %v321_v23 = vpack.c.bf16 %v289_v48, %v289_v48  ;;  %474 = vpow2.f32 %v213_v49  ;;  %v785_v55 = vadd.f32 1e-07, %v66_v50  ;;  %v67_v1 = vmax.f32 %v35_v40, 0.0  ;;  %v40_v19 = vld [vmem:[%s1165_s1 + $0xc8] sm:$0xff]  ;;  %v42_v49 = vld [vmem:[%s1165_s1 + $0xd8] sm:$0xff] }
  0x29   :  { %v469_v56 = vpop.eup %468  ;;  %v130_v57 = vmul.f32 %v546_v6, %v781_v52  ;;  %v131_v58 = vmul.f32 %v546_v6, %v783_v53  ;;  %v68_v59 = vmax.f32 %v36_v18, 0.0  ;;  %v69_v24 = vmax.f32 %v37_v51, 0.0 }
  0x2a   :  { %353 = vst [vmem:[%s1167_s3 + $0x60] sm:$0xf] %v321_v23  ;;  %v797_v3 = vmax.f32 %v469_v56, 1e-30  ;;  %v132_v4 = vmul.f32 %v546_v6, %v785_v55  ;;  %v801_v7 = vadd.f32 1e-07, %v67_v1 }
  0x2b   :  { %v166_v9 = vsub.f32 %v130_v57, %v532_v2  ;;  %v167_v11 = vsub.f32 %v131_v58, %v532_v2  ;;  %v805_v14 = vadd.f32 1e-07, %v68_v59  ;;  %v807_v16 = vadd.f32 1e-07, %v69_v24 }
  0x2c   :  { %v471_v25 = vpop.eup %470  ;;  %v290_v27 = vmul.f32 %v797_v3, %v694_v54  ;;  %v168_v28 = vsub.f32 %v132_v4, %v532_v2  ;;  %v133_v30 = vmul.f32 %v546_v6, %v801_v7  ;;  %v70_v61 = vmax.f32 %v38_v60, 0.0 }
  0x2d   :  { %v473_v31 = vpop.eup %472  ;;  %v814_v32 = vmax.f32 %v471_v25, 1e-30  ;;  %v215_v33 = vmul.f32 1.442695, %v166_v9  ;;  %v217_v62 = vmul.f32 1.442695, %v167_v11  ;;  %v134_v35 = vmul.f32 %v546_v6, %v805_v14 }
  0x2e   :  { %v475_v37 = vpop.eup %474  ;;  %v322_v38 = vpack.c.bf16 %v290_v27, %v290_v27  ;;  %v818_v63 = vmax.f32 %v473_v31, 1e-30  ;;  %v219_v39 = vmul.f32 1.442695, %v168_v28  ;;  %v169_v54 = vsub.f32 %v133_v30, %v532_v2 }
  0x2f   :  { %v291_v40 = vmul.f32 %v814_v32, %v711_v5  ;;  %v823_v13 = vmax.f32 %v475_v37, 1e-30  ;;  %476 = vpow2.f32 %v215_v33  ;;  %v170_v43 = vsub.f32 %v134_v35, %v532_v2  ;;  %v39_v5 = vld [vmem:[%s1165_s1 + $0xc0] sm:$0xff] }
  0x30   :  { %354 = vst [vmem:[%s1167_s3 + $0x68] sm:$0xf] %v322_v38  ;;  %v292_v0 = vmul.f32 %v818_v63, %v719_v10  ;;  %478 = vpow2.f32 %v217_v62  ;;  %v221_v18 = vmul.f32 1.442695, %v169_v54  ;;  %v135_v45 = vmul.f32 %v546_v6, %v807_v16  ;;  %v41_v10 = vld [vmem:[%s1165_s1 + $0xd0] sm:$0xff] }
  0x31   :  { %v323_v47 = vpack.c.bf16 %v291_v40, %v291_v40  ;;  %v293_v20 = vmul.f32 %v823_v13, %v730_v21  ;;  %480 = vpow2.f32 %v219_v39  ;;  %v223_v48 = vmul.f32 1.442695, %v170_v43 }
  0x32   :  { %v324_v50 = vpack.c.bf16 %v292_v0, %v292_v0  ;;  %482 = vpow2.f32 %v221_v18  ;;  %v171_v51 = vsub.f32 %v135_v45, %v532_v2  ;;  %v848_v23 = vadd.f32 1e-07, %v70_v61 }
  0x33   :  { %355 = vst [vmem:[%s1167_s3 + $0x70] sm:$0xf] %v323_v47  ;;  %v325_v21 = vpack.c.bf16 %v293_v20, %v293_v20  ;;  %484 = vpow2.f32 %v223_v48  ;;  %v71_v1 = vmax.f32 %v39_v5, 0.0  ;;  %v72_v56 = vmax.f32 %v40_v19, 0.0  ;;  %v43_v47 = vld [vmem:[%s1165_s1 + $0xe0] sm:$0xff] }
  0x34   :  { %356 = vst [vmem:[%s1167_s3 + $0x78] sm:$0xf] %v324_v50  ;;  %v225_v57 = vmul.f32 1.442695, %v171_v51  ;;  %v136_v58 = vmul.f32 %v546_v6, %v848_v23  ;;  %v73_v59 = vmax.f32 %v41_v10, 0.0  ;;  %v74_v24 = vmax.f32 %v42_v49, 0.0 }
  0x35   :  { %v477_v60 = vpop.eup %476  ;;  %357 = vst [vmem:[%s1167_s3 + $0x80] sm:$0xf] %v325_v21  ;;  %v861_v4 = vadd.f32 1e-07, %v71_v1  ;;  %v863_v9 = vadd.f32 1e-07, %v72_v56 }
  0x36   :  { %v479_v11 = vpop.eup %478  ;;  %v865_v25 = vmax.f32 %v477_v60, 1e-30  ;;  %486 = vpow2.f32 %v225_v57  ;;  %v172_v27 = vsub.f32 %v136_v58, %v532_v2  ;;  %v868_v28 = vadd.f32 1e-07, %v73_v59  ;;  %v45_v1 = vld [vmem:[%s1165_s1 + $0xf0] sm:$0xff]  ;;  %v46_v58 = vld [vmem:[%s1165_s1 + $0xf8] sm:$0xff] }
  0x37   :  { %v481_v30 = vpop.eup %480  ;;  %v870_v61 = vmax.f32 %v479_v11, 1e-30  ;;  %v137_v31 = vmul.f32 %v546_v6, %v861_v4  ;;  %v138_v33 = vmul.f32 %v546_v6, %v863_v9  ;;  %v876_v62 = vadd.f32 1e-07, %v74_v24 }
  0x38   :  { %v483_v35 = vpop.eup %482  ;;  %v294_v37 = vmul.f32 %v865_v25, %v781_v52  ;;  %v880_v38 = vmax.f32 %v481_v30, 1e-30  ;;  %v227_v39 = vmul.f32 1.442695, %v172_v27  ;;  %v139_v54 = vmul.f32 %v546_v6, %v868_v28 }
  0x39   :  { %v485_v40 = vpop.eup %484  ;;  %v295_v43 = vmul.f32 %v870_v61, %v783_v53  ;;  %v886_v0 = vmax.f32 %v483_v35, 1e-30  ;;  %v173_v18 = vsub.f32 %v137_v31, %v532_v2  ;;  %v174_v45 = vsub.f32 %v138_v33, %v532_v2 }
  0x3a   :  { %v326_v5 = vpack.c.bf16 %v294_v37, %v294_v37  ;;  %v296_v52 = vmul.f32 %v880_v38, %v785_v55  ;;  %v892_v19 = vmax.f32 %v485_v40, 1e-30  ;;  %488 = vpow2.f32 %v227_v39 }
  0x3b   :  { %v327_v20 = vpack.c.bf16 %v295_v43, %v295_v43  ;;  %v297_v53 = vmul.f32 %v886_v0, %v801_v7  ;;  %v229_v48 = vmul.f32 1.442695, %v173_v18  ;;  %v231_v10 = vmul.f32 1.442695, %v174_v45  ;;  %v44_v7 = vld [vmem:[%s1165_s1 + $0xe8] sm:$0xff] }
  0x3c   :  { %v487_v49 = vpop.eup %486  ;;  %358 = vst [vmem:[%s1167_s3 + $0x88] sm:$0xf] %v326_v5  ;;  %v328_v50 = vpack.c.bf16 %v296_v52, %v296_v52  ;;  %v298_v55 = vmul.f32 %v892_v19, %v805_v14  ;;  %v175_v51 = vsub.f32 %v139_v54, %v532_v2  ;;  %v140_v21 = vmul.f32 %v546_v6, %v876_v62 }
  0x3d   :  { %359 = vst [vmem:[%s1167_s3 + $0x90] sm:$0xf] %v327_v20  ;;  %v329_v56 = vpack.c.bf16 %v297_v53, %v297_v53  ;;  %v916_v57 = vmax.f32 %v487_v49, 1e-30  ;;  %490 = vpow2.f32 %v229_v48  ;;  %v75_v14 = vmax.f32 %v43_v47, 0.0 }
  0x3e   :  { %360 = vst [vmem:[%s1167_s3 + $0x98] sm:$0xf] %v328_v50  ;;  %v330_v59 = vpack.c.bf16 %v298_v55, %v298_v55  ;;  %492 = vpow2.f32 %v231_v10  ;;  %v233_v24 = vmul.f32 1.442695, %v175_v51  ;;  %v176_v60 = vsub.f32 %v140_v21, %v532_v2 }
  0x3f   :  { %361 = vst [vmem:[%s1167_s3 + $0xa0] sm:$0xf] %v329_v56  ;;  %v299_v11 = vmul.f32 %v916_v57, %v807_v16  ;;  %v930_v27 = vadd.f32 1e-07, %v75_v14  ;;  %v76_v30 = vmax.f32 %v44_v7, 0.0  ;;  %v77_v31 = vmax.f32 %v45_v1, 0.0 }
  0x40   :  { %v489_v33 = vpop.eup %488  ;;  %362 = vst [vmem:[%s1167_s3 + $0xa8] sm:$0xf] %v330_v59  ;;  %494 = vpow2.f32 %v233_v24  ;;  %v235_v35 = vmul.f32 1.442695, %v176_v60  ;;  %v78_v37 = vmax.f32 %v46_v58, 0.0  ;;  %v373_v39 = vpack.c.bf16 %v641_v12, %v641_v12 }
  0x41   :  { %v331_v54 = vpack.c.bf16 %v299_v11, %v299_v11  ;;  %v937_v40 = vmax.f32 %v489_v33, 1e-30  ;;  %v141_v16 = vmul.f32 %v546_v6, %v930_v27  ;;  %v941_v43 = vadd.f32 1e-07, %v76_v30 }
  0x42   :  { %496 = vpow2.f32 %v235_v35  ;;  %v943_v18 = vadd.f32 1e-07, %v77_v31  ;;  %v945_v45 = vadd.f32 1e-07, %v78_v37  ;;  %405 = vst [vmem:[%s1167_s3 + $0x4] sm:$0xf] %v373_v39  ;;  %v374_v12 = vpack.c.bf16 %v645_v17, %v645_v17 }
  0x43   :  { %v491_v5 = vpop.eup %490  ;;  %363 = vst [vmem:[%s1167_s3 + $0xb0] sm:$0xf] %v331_v54  ;;  %v300_v52 = vmul.f32 %v937_v40, %v848_v23  ;;  %v177_v47 = vsub.f32 %v141_v16, %v532_v2  ;;  %v142_v20 = vmul.f32 %v546_v6, %v941_v43  ;;  %v375_v53 = vpack.c.bf16 %v652_v29, %v652_v29 }
  0x44   :  { %v493_v48 = vpop.eup %492  ;;  %v962_v10 = vmax.f32 %v491_v5, 1e-30  ;;  %v143_v17 = vmul.f32 %v546_v6, %v943_v18  ;;  %v144_v49 = vmul.f32 %v546_v6, %v945_v45  ;;  %406 = vst [vmem:[%s1167_s3 + $0xc] sm:$0xf] %v374_v12  ;;  %v376_v23 = vpack.c.bf16 %v656_v34, %v656_v34 }
  0x45   :  { %v332_v50 = vpack.c.bf16 %v300_v52, %v300_v52  ;;  %v973_v55 = vmax.f32 %v493_v48, 1e-30  ;;  %v237_v29 = vmul.f32 1.442695, %v177_v47  ;;  %v178_v51 = vsub.f32 %v142_v20, %v532_v2  ;;  %407 = vst [vmem:[%s1167_s3 + $0x14] sm:$0xf] %v375_v53 }
  0x46   :  { %v495_v21 = vpop.eup %494  ;;  %v301_v6 = vmul.f32 %v962_v10, %v861_v4  ;;  %v179_v7 = vsub.f32 %v143_v17, %v532_v2  ;;  %v180_v1 = vsub.f32 %v144_v49, %v532_v2  ;;  %408 = vst [vmem:[%s1167_s3 + $0x1c] sm:$0xf] %v376_v23  ;;  %v377_v34 = vpack.c.bf16 %v660_v41, %v660_v41 }
  0x47   :  { %364 = vst [vmem:[%s1167_s3 + $0xb8] sm:$0xf] %v332_v50  ;;  %v302_v56 = vmul.f32 %v973_v55, %v863_v9  ;;  %v993_v14 = vmax.f32 %v495_v21, 1e-30  ;;  %498 = vpow2.f32 %v237_v29  ;;  %v239_v4 = vmul.f32 1.442695, %v178_v51 }
  0x48   :  { %v497_v58 = vpop.eup %496  ;;  %v333_v2 = vpack.c.bf16 %v301_v6, %v301_v6  ;;  %v241_v59 = vmul.f32 1.442695, %v179_v7  ;;  %v243_v24 = vmul.f32 1.442695, %v180_v1  ;;  %409 = vst [vmem:[%s1167_s3 + $0x24] sm:$0xf] %v377_v34  ;;  %v378_v41 = vpack.c.bf16 %v664_v44, %v664_v44 }
  0x49   :  { %v334_v60 = vpack.c.bf16 %v302_v56, %v302_v56  ;;  %v303_v11 = vmul.f32 %v993_v14, %v868_v28  ;;  %v1002_v9 = vmax.f32 %v497_v58, 1e-30  ;;  %500 = vpow2.f32 %v239_v4 }
  0x4a   :  { %365 = vst [vmem:[%s1167_s3 + $0xc0] sm:$0xf] %v333_v2  ;;  %502 = vpow2.f32 %v241_v59  ;;  %v379_v30 = vpack.c.bf16 %v671_v46, %v671_v46  ;;  %v380_v28 = vpack.c.bf16 %v684_v22, %v684_v22  ;;  %v381_v35 = vpack.c.bf16 %v709_v36, %v709_v36 }
  0x4b   :  { %366 = vst [vmem:[%s1167_s3 + $0xc8] sm:$0xf] %v334_v60  ;;  %v335_v44 = vpack.c.bf16 %v303_v11, %v303_v11  ;;  %v304_v31 = vmul.f32 %v1002_v9, %v876_v62  ;;  %504 = vpow2.f32 %v243_v24  ;;  %v382_v62 = vpack.c.bf16 %v716_v8, %v716_v8 }
  0x4c   :  { %410 = vst [vmem:[%s1167_s3 + $0x2c] sm:$0xf] %v378_v41  ;;  %v383_v22 = vpack.c.bf16 %v726_v15, %v726_v15  ;;  %v384_v8 = vpack.c.bf16 %v734_v26, %v734_v26  ;;  %v386_v48 = vpack.c.bf16 %v797_v3, %v797_v3  ;;  %v389_v3 = vpack.c.bf16 %v823_v13, %v823_v13 }
  0x4d   :  { %v499_v33 = vpop.eup %498  ;;  %367 = vst [vmem:[%s1167_s3 + $0xd0] sm:$0xf] %v335_v44  ;;  %v336_v46 = vpack.c.bf16 %v304_v31, %v304_v31  ;;  %v392_v13 = vpack.c.bf16 %v880_v38, %v880_v38  ;;  %v395_v38 = vpack.c.bf16 %v916_v57, %v916_v57  ;;  %v398_v57 = vpack.c.bf16 %v973_v55, %v973_v55 }
  0x4e   :  { %v1024_v37 = vmax.f32 %v499_v33, 1e-30  ;;  %411 = vst [vmem:[%s1167_s3 + $0x34] sm:$0xf] %v379_v30 }
  0x4f   :  { %v501_v39 = vpop.eup %500  ;;  %368 = vst [vmem:[%s1167_s3 + $0xd8] sm:$0xf] %v336_v46 }
  0x50   :  { %v503_v54 = vpop.eup %502  ;;  %v305_v36 = vmul.f32 %v1024_v37, %v930_v27  ;;  %v274_v16 = vmax.f32 %v501_v39, 1e-30  ;;  %412 = vst [vmem:[%s1167_s3 + $0x3c] sm:$0xf] %v380_v28  ;;  %v401_v17 = vpack.c.bf16 %v1024_v37, %v1024_v37 }
  0x51   :  { %v505_v12 = vpop.eup %504  ;;  %v275_v5 = vmax.f32 %v503_v54, 1e-30  ;;  %413 = vst [vmem:[%s1167_s3 + $0x44] sm:$0xf] %v381_v35 }
  0x52   :  { %v337_v52 = vpack.c.bf16 %v305_v36, %v305_v36  ;;  %v306_v15 = vmul.f32 %v274_v16, %v941_v43  ;;  %v276_v47 = vmax.f32 %v505_v12, 1e-30  ;;  %414 = vst [vmem:[%s1167_s3 + $0x4c] sm:$0xf] %v382_v62  ;;  %v385_v43 = vpack.c.bf16 %v761_v42, %v761_v42 }
  0x53   :  { %v307_v27 = vmul.f32 %v275_v5, %v943_v18  ;;  %415 = vst [vmem:[%s1167_s3 + $0x54] sm:$0xf] %v383_v22  ;;  %v388_v42 = vpack.c.bf16 %v818_v63, %v818_v63  ;;  %v391_v63 = vpack.c.bf16 %v870_v61, %v870_v61  ;;  %v394_v61 = vpack.c.bf16 %v892_v19, %v892_v19 }
  0x54   :  { %369 = vst [vmem:[%s1167_s3 + $0xe0] sm:$0xf] %v337_v52  ;;  %v338_v20 = vpack.c.bf16 %v306_v15, %v306_v15  ;;  %v308_v26 = vmul.f32 %v276_v47, %v945_v45  ;;  %v387_v45 = vpack.c.bf16 %v814_v32, %v814_v32  ;;  %v390_v32 = vpack.c.bf16 %v865_v25, %v865_v25 }
  0x55   :  { %v339_v53 = vpack.c.bf16 %v307_v27, %v307_v27  ;;  %416 = vst [vmem:[%s1167_s3 + $0x5c] sm:$0xf] %v384_v8  ;;  %v393_v25 = vpack.c.bf16 %v886_v0, %v886_v0  ;;  %v396_v0 = vpack.c.bf16 %v937_v40, %v937_v40  ;;  %v397_v19 = vpack.c.bf16 %v962_v10, %v962_v10 }
  0x56   :  { %370 = vst [vmem:[%s1167_s3 + $0xe8] sm:$0xf] %v338_v20  ;;  %v340_v18 = vpack.c.bf16 %v308_v26, %v308_v26  ;;  %v399_v40 = vpack.c.bf16 %v993_v14, %v993_v14  ;;  %v400_v10 = vpack.c.bf16 %v1002_v9, %v1002_v9  ;;  %v402_v49 = vpack.c.bf16 %v274_v16, %v274_v16 }
  0x57   :  { %371 = vst [vmem:[%s1167_s3 + $0xf0] sm:$0xf] %v339_v53  ;;  %v403_v23 = vpack.c.bf16 %v275_v5, %v275_v5  ;;  %v404_v50 = vpack.c.bf16 %v276_v47, %v276_v47 }
  0x58   :  { %372 = vst [vmem:[%s1167_s3 + $0xf8] sm:$0xf] %v340_v18 }
  0x59   :  { %417 = vst [vmem:[%s1167_s3 + $0x64] sm:$0xf] %v385_v43 }
  0x5a   :  { %418 = vst [vmem:[%s1167_s3 + $0x6c] sm:$0xf] %v386_v48 }
  0x5b   :  { %419 = vst [vmem:[%s1167_s3 + $0x74] sm:$0xf] %v387_v45 }
  0x5c   :  { %420 = vst [vmem:[%s1167_s3 + $0x7c] sm:$0xf] %v388_v42 }
  0x5d   :  { %421 = vst [vmem:[%s1167_s3 + $0x84] sm:$0xf] %v389_v3 }
  0x5e   :  { %422 = vst [vmem:[%s1167_s3 + $0x8c] sm:$0xf] %v390_v32 }
  0x5f   :  { %423 = vst [vmem:[%s1167_s3 + $0x94] sm:$0xf] %v391_v63 }
  0x60   :  { %424 = vst [vmem:[%s1167_s3 + $0x9c] sm:$0xf] %v392_v13 }
  0x61   :  { %425 = vst [vmem:[%s1167_s3 + $0xa4] sm:$0xf] %v393_v25 }
  0x62   :  { %426 = vst [vmem:[%s1167_s3 + $0xac] sm:$0xf] %v394_v61 }
  0x63   :  { %427 = vst [vmem:[%s1167_s3 + $0xb4] sm:$0xf] %v395_v38 }
  0x64   :  { %428 = vst [vmem:[%s1167_s3 + $0xbc] sm:$0xf] %v396_v0 }
  0x65   :  { %429 = vst [vmem:[%s1167_s3 + $0xc4] sm:$0xf] %v397_v19 }
  0x66   :  { %430 = vst [vmem:[%s1167_s3 + $0xcc] sm:$0xf] %v398_v57 }
  0x67   :  { %431 = vst [vmem:[%s1167_s3 + $0xd4] sm:$0xf] %v399_v40 }
  0x68   :  { %432 = vst [vmem:[%s1167_s3 + $0xdc] sm:$0xf] %v400_v10 }
  0x69   :  { %433 = vst [vmem:[%s1167_s3 + $0xe4] sm:$0xf] %v401_v17 }
  0x6a   :  { %434 = vst [vmem:[%s1167_s3 + $0xec] sm:$0xf] %v402_v49 }
  0x6b   :  { %435 = vst [vmem:[%s1167_s3 + $0xf4] sm:$0xf] %v403_v23 }
  0x6c   :  { %436 = vst [vmem:[%s1167_s3 + $0xfc] sm:$0xf] %v404_v50 }

// kernel: deeper_gcn_forward.13
= control target key start
LH: loop header
LB: loop body
LE: loop exit
PB: predicated region body
PF: predicated region fallthrough
CT: control target
= control target key end

     0   :  { %v1018_v32 = vmov 128.0   ;;  %s2165_s1 = inlined_call_operand.vmem [shape: f32[256,128], index: 1, kind: input, shape index: {}]   ;;  %s2166_s2 = inlined_call_operand.vmem [shape: f32[1,128], index: 2, kind: input, shape index: {}]   ;;  %s2167_s3 = inlined_call_operand.vmem [shape: f32[1,128], index: 3, kind: input, shape index: {}]   ;;  %s2168_s0 = inlined_call_operand.<no memory space> [shape: f32[1,1], index: 0, kind: input, shape index: {}]   ;;  %s2169_s4 = inlined_call_operand.vmem [shape: f32[256,128], index: 4, kind: output, shape index: {0}]   ;;  %s2170_s5 = inlined_call_operand.vmem [shape: f32[1,1,128], index: 5, kind: output, shape index: {1}]  }
   0x1   :  { %v1052_v0 = vld [vmem:[%s2165_s1 + $0x20] sm:$0xff]  ;;  %v1057_v1 = vld [vmem:[%s2165_s1 + $0x10] sm:$0xff]  ;;  %v1070_v3 = vld [vmem:[%s2165_s1 + $0x28] sm:$0xff]  ;;  %950 = vrcp.f32 %v1018_v32 }
   0x2   :  { %v1062_v2 = vld [vmem:[%s2165_s1] sm:$0xff]  ;;  %60 = vadd.xlane.f32.xlu2 %v1052_v0  ;;  %56 = vadd.xlane.f32.xlu1 %v1057_v1  ;;  %v1075_v4 = vld [vmem:[%s2165_s1 + $0x18] sm:$0xff]  ;;  %v1080_v5 = vld [vmem:[%s2165_s1 + $0x8] sm:$0xff] }
   0x3   :  { %52 = vadd.xlane.f32.xlu0 %v1062_v2  ;;  %v1088_v6 = vld [vmem:[%s2165_s1 + $0x40] sm:$0xff]  ;;  %v1093_v7 = vld [vmem:[%s2165_s1 + $0x38] sm:$0xff]  ;;  %v1098_v8 = vld [vmem:[%s2165_s1 + $0x30] sm:$0xff] }
   0x4   :  { %v1106_v9 = vld [vmem:[%s2165_s1 + $0x58] sm:$0xff]  ;;  %v1111_v10 = vld [vmem:[%s2165_s1 + $0x50] sm:$0xff]  ;;  %v1116_v11 = vld [vmem:[%s2165_s1 + $0x48] sm:$0xff] }
   0x5   :  { %v1124_v12 = vld [vmem:[%s2165_s1 + $0x70] sm:$0xff]  ;;  %v1129_v13 = vld [vmem:[%s2165_s1 + $0x68] sm:$0xff]  ;;  %v1134_v14 = vld [vmem:[%s2165_s1 + $0x60] sm:$0xff] }
   0x6   :  { %v1142_v15 = vld [vmem:[%s2165_s1 + $0x88] sm:$0xff]  ;;  %v1147_v16 = vld [vmem:[%s2165_s1 + $0x80] sm:$0xff]  ;;  %v1152_v17 = vld [vmem:[%s2165_s1 + $0x78] sm:$0xff] }
   0x7   :  { %v1160_v18 = vld [vmem:[%s2165_s1 + $0xa0] sm:$0xff]  ;;  %v1165_v19 = vld [vmem:[%s2165_s1 + $0x98] sm:$0xff]  ;;  %v1170_v20 = vld [vmem:[%s2165_s1 + $0x90] sm:$0xff]  ;;  %v951_v33 = vpop.eup %950 }
   0x8   :  { %v1178_v21 = vld [vmem:[%s2165_s1 + $0xb8] sm:$0xff]  ;;  %v1183_v22 = vld [vmem:[%s2165_s1 + $0xb0] sm:$0xff]  ;;  %v1188_v23 = vld [vmem:[%s2165_s1 + $0xa8] sm:$0xff]  ;;  %v117_v34 = vmul.f32 128.0, %v951_v33  ;;  %vm121_vm0 = vweird.f32 %v951_v33 }
   0x9   :  { %v1196_v24 = vld [vmem:[%s2165_s1 + $0xd0] sm:$0xff]  ;;  %v1201_v25 = vld [vmem:[%s2165_s1 + $0xc8] sm:$0xff]  ;;  %v1206_v26 = vld [vmem:[%s2165_s1 + $0xc0] sm:$0xff] }
   0xa   :  { %62 = vadd.xlane.f32.xlu2 %v1070_v3  ;;  %58 = vadd.xlane.f32.xlu1 %v1075_v4  ;;  %v1214_v27 = vld [vmem:[%s2165_s1 + $0xe8] sm:$0xff]  ;;  %v1219_v28 = vld [vmem:[%s2165_s1 + $0xe0] sm:$0xff]  ;;  %v1224_v29 = vld [vmem:[%s2165_s1 + $0xd8] sm:$0xff]  ;;  %v118_v35 = vsub.f32 1.0, %v117_v34 }
   0xb   :  { %54 = vadd.xlane.f32.xlu0 %v1080_v5  ;;  %v1232_v30 = vld [vmem:[%s2165_s1 + $0xf8] sm:$0xff]  ;;  %v1237_v31 = vld [vmem:[%s2165_s1 + $0xf0] sm:$0xff] }
   0xc   :  { %v119_v36 = vmul.f32 %v951_v33, %v118_v35 }
   0xe   :  { %v120_v37 = vadd.f32 %v951_v33, %v119_v36 }
  0x10   :  { %v1241_v38 = vsel %vm121_vm0, %v951_v33, %v120_v37 }
  0x12   :  { %68 = vadd.xlane.f32.xlu2 %v1088_v6  ;;  %66 = vadd.xlane.f32.xlu1 %v1093_v7 }
  0x13   :  { %64 = vadd.xlane.f32.xlu0 %v1098_v8 }
  0x1a   :  { %74 = vadd.xlane.f32.xlu2 %v1106_v9  ;;  %72 = vadd.xlane.f32.xlu1 %v1111_v10 }
  0x1b   :  { %70 = vadd.xlane.f32.xlu0 %v1116_v11 }
  0x22   :  { %80 = vadd.xlane.f32.xlu2 %v1124_v12  ;;  %78 = vadd.xlane.f32.xlu1 %v1129_v13 }
  0x23   :  { %76 = vadd.xlane.f32.xlu0 %v1134_v14 }
  0x2a   :  { %86 = vadd.xlane.f32.xlu2 %v1142_v15  ;;  %84 = vadd.xlane.f32.xlu1 %v1147_v16 }
  0x2b   :  { %82 = vadd.xlane.f32.xlu0 %v1152_v17 }
  0x32   :  { %92 = vadd.xlane.f32.xlu2 %v1160_v18  ;;  %90 = vadd.xlane.f32.xlu1 %v1165_v19 }
  0x33   :  { %88 = vadd.xlane.f32.xlu0 %v1170_v20 }
  0x3a   :  { %98 = vadd.xlane.f32.xlu2 %v1178_v21  ;;  %96 = vadd.xlane.f32.xlu1 %v1183_v22 }
  0x3b   :  { %94 = vadd.xlane.f32.xlu0 %v1188_v23 }
  0x42   :  { %104 = vadd.xlane.f32.xlu2 %v1196_v24  ;;  %102 = vadd.xlane.f32.xlu1 %v1201_v25 }
  0x43   :  { %100 = vadd.xlane.f32.xlu0 %v1206_v26 }
  0x4a   :  { %110 = vadd.xlane.f32.xlu2 %v1214_v27  ;;  %108 = vadd.xlane.f32.xlu1 %v1219_v28 }
  0x4b   :  { %106 = vadd.xlane.f32.xlu0 %v1224_v29 }
  0x52   :  { %114 = vadd.xlane.f32.xlu1 %v1232_v30 }
  0x53   :  { %112 = vadd.xlane.f32.xlu0 %v1237_v31 }
  0x75   :  { %v61_v39 = vpop.xlane.xlu2 %60  ;;  %v57_v40 = vpop.xlane.xlu1 %56 }
  0x76   :  { %v125_v41 = vmul.f32 %v1241_v38, %v57_v40  ;;  %v53_v42 = vpop.xlane.xlu0 %52  ;;  %v127_v59 = vmul.f32 %v1241_v38, %v61_v39 }
  0x77   :  { %v123_v43 = vmul.f32 %v1241_v38, %v53_v42 }
  0x78   :  { %v1246_v44 = vsub.f32 %v1057_v1, %v125_v41 }
  0x79   :  { %v1249_v45 = vsub.f32 %v1062_v2, %v123_v43  ;;  %v1276_v2 = vsub.f32 %v1052_v0, %v127_v59 }
  0x7a   :  { %v189_v46 = vmul.f32 %v1246_v44, %v1246_v44 }
  0x7b   :  { %v187_v47 = vmul.f32 %v1249_v45, %v1249_v45  ;;  %v191_v34 = vmul.f32 %v1276_v2, %v1276_v2 }
  0x7c   :  { %223 = vadd.xlane.f32.xlu1 %v189_v46 }
  0x7d   :  { %219 = vadd.xlane.f32.xlu2 %v187_v47  ;;  %v63_v48 = vpop.xlane.xlu2 %62  ;;  %v59_v49 = vpop.xlane.xlu1 %58 }
  0x7e   :  { %v128_v50 = vmul.f32 %v1241_v38, %v63_v48  ;;  %v126_v51 = vmul.f32 %v1241_v38, %v59_v49  ;;  %v55_v52 = vpop.xlane.xlu0 %54 }
  0x7f   :  { %v124_v53 = vmul.f32 %v1241_v38, %v55_v52 }
  0x80   :  { %v1259_v54 = vsub.f32 %v1070_v3, %v128_v50  ;;  %v1262_v55 = vsub.f32 %v1075_v4, %v126_v51 }
  0x81   :  { %v1265_v56 = vsub.f32 %v1080_v5, %v124_v53 }
  0x82   :  { %v192_v57 = vmul.f32 %v1259_v54, %v1259_v54  ;;  %v190_v58 = vmul.f32 %v1262_v55, %v1262_v55 }
  0x83   :  { %v188_v60 = vmul.f32 %v1265_v56, %v1265_v56 }
  0x84   :  { %229 = vadd.xlane.f32.xlu1 %v192_v57 }
  0x85   :  { %225 = vadd.xlane.f32.xlu2 %v190_v58  ;;  %221 = vadd.xlane.f32.xlu0 %v188_v60  ;;  %v69_v61 = vpop.xlane.xlu2 %68  ;;  %v67_v62 = vpop.xlane.xlu1 %66 }
  0x86   :  { %v131_v63 = vmul.f32 %v1241_v38, %v69_v61  ;;  %v65_v1 = vpop.xlane.xlu0 %64  ;;  %v130_v32 = vmul.f32 %v1241_v38, %v67_v62 }
  0x87   :  { %v129_v3 = vmul.f32 %v1241_v38, %v65_v1 }
  0x88   :  { %v1280_v4 = vsub.f32 %v1088_v6, %v131_v63  ;;  %v1293_v6 = vsub.f32 %v1093_v7, %v130_v32 }
  0x89   :  { %v1283_v5 = vsub.f32 %v1098_v8, %v129_v3 }
  0x8a   :  { %v195_v33 = vmul.f32 %v1280_v4, %v1280_v4  ;;  %v194_v42 = vmul.f32 %v1293_v6, %v1293_v6 }
  0x8b   :  { %v193_v0 = vmul.f32 %v1283_v5, %v1283_v5 }
  0x8c   :  { %235 = vadd.xlane.f32.xlu1 %v195_v33 }
  0x8d   :  { %227 = vadd.xlane.f32.xlu0 %v191_v34  ;;  %231 = vadd.xlane.f32.xlu2 %v193_v0  ;;  %v75_v35 = vpop.xlane.xlu2 %74  ;;  %v73_v8 = vpop.xlane.xlu1 %72 }
  0x8e   :  { %v134_v36 = vmul.f32 %v1241_v38, %v75_v35  ;;  %v71_v37 = vpop.xlane.xlu0 %70  ;;  %v133_v43 = vmul.f32 %v1241_v38, %v73_v8 }
  0x8f   :  { %v132_v39 = vmul.f32 %v1241_v38, %v71_v37 }
  0x90   :  { %v1298_v40 = vsub.f32 %v1106_v9, %v134_v36  ;;  %v1311_v9 = vsub.f32 %v1111_v10, %v133_v43 }
  0x91   :  { %v1301_v41 = vsub.f32 %v1116_v11, %v132_v39 }
  0x92   :  { %v198_v7 = vmul.f32 %v1298_v40, %v1298_v40  ;;  %v197_v53 = vmul.f32 %v1311_v9, %v1311_v9 }
  0x93   :  { %v196_v46 = vmul.f32 %v1301_v41, %v1301_v41 }
  0x94   :  { %241 = vadd.xlane.f32.xlu1 %v198_v7 }
  0x95   :  { %233 = vadd.xlane.f32.xlu0 %v194_v42  ;;  %237 = vadd.xlane.f32.xlu2 %v196_v46  ;;  %v81_v47 = vpop.xlane.xlu2 %80  ;;  %v79_v11 = vpop.xlane.xlu1 %78 }
  0x96   :  { %v137_v48 = vmul.f32 %v1241_v38, %v81_v47  ;;  %v77_v49 = vpop.xlane.xlu0 %76  ;;  %v136_v57 = vmul.f32 %v1241_v38, %v79_v11 }
  0x97   :  { %v135_v50 = vmul.f32 %v1241_v38, %v77_v49 }
  0x98   :  { %v1316_v51 = vsub.f32 %v1124_v12, %v137_v48  ;;  %v1329_v12 = vsub.f32 %v1129_v13, %v136_v57 }
  0x99   :  { %v1319_v52 = vsub.f32 %v1134_v14, %v135_v50 }
  0x9a   :  { %v201_v10 = vmul.f32 %v1316_v51, %v1316_v51  ;;  %v200_v3 = vmul.f32 %v1329_v12, %v1329_v12 }
  0x9b   :  { %v199_v58 = vmul.f32 %v1319_v52, %v1319_v52 }
  0x9c   :  { %247 = vadd.xlane.f32.xlu1 %v201_v10 }
  0x9d   :  { %239 = vadd.xlane.f32.xlu0 %v197_v53  ;;  %243 = vadd.xlane.f32.xlu2 %v199_v58  ;;  %v87_v59 = vpop.xlane.xlu2 %86  ;;  %v85_v14 = vpop.xlane.xlu1 %84 }
  0x9e   :  { %v140_v60 = vmul.f32 %v1241_v38, %v87_v59  ;;  %v83_v61 = vpop.xlane.xlu0 %82  ;;  %v139_v32 = vmul.f32 %v1241_v38, %v85_v14 }
  0x9f   :  { %v138_v62 = vmul.f32 %v1241_v38, %v83_v61 }
  0xa0   :  { %v1334_v63 = vsub.f32 %v1142_v15, %v140_v60  ;;  %v1347_v15 = vsub.f32 %v1147_v16, %v139_v32 }
  0xa1   :  { %v1337_v1 = vsub.f32 %v1152_v17, %v138_v62 }
  0xa2   :  { %v204_v13 = vmul.f32 %v1334_v63, %v1334_v63  ;;  %v203_v39 = vmul.f32 %v1347_v15, %v1347_v15 }
  0xa3   :  { %v202_v33 = vmul.f32 %v1337_v1, %v1337_v1 }
  0xa4   :  { %253 = vadd.xlane.f32.xlu1 %v204_v13 }
  0xa5   :  { %245 = vadd.xlane.f32.xlu0 %v200_v3  ;;  %249 = vadd.xlane.f32.xlu2 %v202_v33  ;;  %v93_v34 = vpop.xlane.xlu2 %92  ;;  %v91_v17 = vpop.xlane.xlu1 %90 }
  0xa6   :  { %v143_v0 = vmul.f32 %v1241_v38, %v93_v34  ;;  %v89_v35 = vpop.xlane.xlu0 %88  ;;  %v142_v42 = vmul.f32 %v1241_v38, %v91_v17 }
  0xa7   :  { %v141_v8 = vmul.f32 %v1241_v38, %v89_v35 }
  0xa8   :  { %v1352_v36 = vsub.f32 %v1160_v18, %v143_v0  ;;  %v1365_v18 = vsub.f32 %v1165_v19, %v142_v42 }
  0xa9   :  { %v1355_v37 = vsub.f32 %v1170_v20, %v141_v8 }
  0xaa   :  { %v207_v16 = vmul.f32 %v1352_v36, %v1352_v36  ;;  %v206_v50 = vmul.f32 %v1365_v18, %v1365_v18 }
  0xab   :  { %v205_v43 = vmul.f32 %v1355_v37, %v1355_v37 }
  0xac   :  { %259 = vadd.xlane.f32.xlu1 %v207_v16 }
  0xad   :  { %251 = vadd.xlane.f32.xlu0 %v203_v39  ;;  %255 = vadd.xlane.f32.xlu2 %v205_v43  ;;  %v99_v7 = vpop.xlane.xlu2 %98  ;;  %v97_v20 = vpop.xlane.xlu1 %96 }
  0xae   :  { %v146_v46 = vmul.f32 %v1241_v38, %v99_v7  ;;  %v95_v47 = vpop.xlane.xlu0 %94  ;;  %v145_v53 = vmul.f32 %v1241_v38, %v97_v20 }
  0xaf   :  { %v144_v11 = vmul.f32 %v1241_v38, %v95_v47 }
  0xb0   :  { %v1370_v48 = vsub.f32 %v1178_v21, %v146_v46  ;;  %v1383_v21 = vsub.f32 %v1183_v22, %v145_v53 }
  0xb1   :  { %v1373_v49 = vsub.f32 %v1188_v23, %v144_v11 }
  0xb2   :  { %v210_v19 = vmul.f32 %v1370_v48, %v1370_v48  ;;  %v209_v62 = vmul.f32 %v1383_v21, %v1383_v21 }
  0xb3   :  { %v208_v57 = vmul.f32 %v1373_v49, %v1373_v49 }
  0xb4   :  { %265 = vadd.xlane.f32.xlu1 %v210_v19 }
  0xb5   :  { %257 = vadd.xlane.f32.xlu0 %v206_v50  ;;  %261 = vadd.xlane.f32.xlu2 %v208_v57  ;;  %v105_v10 = vpop.xlane.xlu2 %104  ;;  %v103_v23 = vpop.xlane.xlu1 %102 }
  0xb6   :  { %v149_v58 = vmul.f32 %v1241_v38, %v105_v10  ;;  %v101_v59 = vpop.xlane.xlu0 %100  ;;  %v148_v3 = vmul.f32 %v1241_v38, %v103_v23 }
  0xb7   :  { %v147_v14 = vmul.f32 %v1241_v38, %v101_v59 }
  0xb8   :  { %v1388_v60 = vsub.f32 %v1196_v24, %v149_v58  ;;  %v1401_v24 = vsub.f32 %v1201_v25, %v148_v3 }
  0xb9   :  { %v1391_v61 = vsub.f32 %v1206_v26, %v147_v14 }
  0xba   :  { %v213_v22 = vmul.f32 %v1388_v60, %v1388_v60  ;;  %v212_v8 = vmul.f32 %v1401_v24, %v1401_v24 }
  0xbb   :  { %v211_v32 = vmul.f32 %v1391_v61, %v1391_v61 }
  0xbc   :  { %271 = vadd.xlane.f32.xlu1 %v213_v22 }
  0xbd   :  { %263 = vadd.xlane.f32.xlu0 %v209_v62  ;;  %267 = vadd.xlane.f32.xlu2 %v211_v32  ;;  %v111_v13 = vpop.xlane.xlu2 %110  ;;  %v109_v26 = vpop.xlane.xlu1 %108 }
  0xbe   :  { %v152_v33 = vmul.f32 %v1241_v38, %v111_v13  ;;  %v107_v34 = vpop.xlane.xlu0 %106  ;;  %v151_v39 = vmul.f32 %v1241_v38, %v109_v26 }
  0xbf   :  { %v150_v17 = vmul.f32 %v1241_v38, %v107_v34 }
  0xc0   :  { %v1406_v0 = vsub.f32 %v1214_v27, %v152_v33  ;;  %v1419_v27 = vsub.f32 %v1219_v28, %v151_v39 }
  0xc1   :  { %v1409_v35 = vsub.f32 %v1224_v29, %v150_v17 }
  0xc2   :  { %v216_v25 = vmul.f32 %v1406_v0, %v1406_v0  ;;  %v215_v20 = vmul.f32 %v1419_v27, %v1419_v27 }
  0xc3   :  { %v214_v42 = vmul.f32 %v1409_v35, %v1409_v35 }
  0xc4   :  { %277 = vadd.xlane.f32.xlu1 %v216_v25 }
  0xc5   :  { %269 = vadd.xlane.f32.xlu0 %v212_v8  ;;  %273 = vadd.xlane.f32.xlu2 %v214_v42  ;;  %v115_v29 = vpop.xlane.xlu1 %114  ;;  %v1452_v42 = vstv %s2168_s0 }
  0xc6   :  { %v113_v16 = vpop.xlane.xlu0 %112  ;;  %v154_v46 = vmul.f32 %v1241_v38, %v115_v29 }
  0xc7   :  { %v153_v43 = vmul.f32 %v1241_v38, %v113_v16 }
  0xc8   :  { %v1431_v28 = vsub.f32 %v1232_v30, %v154_v46 }
  0xc9   :  { %v1423_v7 = vsub.f32 %v1237_v31, %v153_v43 }
  0xca   :  { %v218_v11 = vmul.f32 %v1431_v28, %v1431_v28 }
  0xcb   :  { %v217_v47 = vmul.f32 %v1423_v7, %v1423_v7 }
  0xcd   :  { %275 = vadd.xlane.f32.xlu0 %v215_v20  ;;  %279 = vadd.xlane.f32.xlu2 %v217_v47 }
  0xd5   :  { %281 = vadd.xlane.f32.xlu0 %v218_v11 }
  0xef   :  { %v224_v50 = vpop.xlane.xlu1 %223 }
  0xf0   :  { %v285_v31 = vmul.f32 %v224_v50, %v1241_v38  ;;  %v220_v53 = vpop.xlane.xlu2 %219 }
  0xf1   :  { %v283_v19 = vmul.f32 %v220_v53, %v1241_v38 }
  0xf2   :  { %v317_v57 = vadd.f32 1e-05, %v285_v31 }
  0xf3   :  { %v315_v10 = vadd.f32 1e-05, %v283_v19 }
  0xf4   :  { %952 = vrsqrt.f32 %v317_v57  ;;  %vm373_vm1 = vweird.f32 %v317_v57 }
  0xf5   :  { %954 = vrsqrt.f32 %v315_v10  ;;  %vm353_vm3 = vweird.f32 %v315_v10 }
  0xf7   :  { %v230_v23 = vpop.xlane.xlu1 %229 }
  0xf8   :  { %v288_v58 = vmul.f32 %v230_v23, %v1241_v38  ;;  %v226_v59 = vpop.xlane.xlu2 %225  ;;  %v222_v30 = vpop.xlane.xlu0 %221 }
  0xf9   :  { %v286_v14 = vmul.f32 %v226_v59, %v1241_v38  ;;  %v284_v62 = vmul.f32 %v222_v30, %v1241_v38  ;;  %v1472_v30 = vld [vmem:[%s2166_s2] ss:$0 sm:$0xff] }
  0xfa   :  { %v953_v3 = vpop.eup %952  ;;  %v1440_v22 = vadd.f32 1e-05, %v288_v58 }
  0xfb   :  { %v955_v32 = vpop.eup %954  ;;  %v368_v13 = vmul.f32 %v953_v3, %v317_v57  ;;  %v1442_v26 = vadd.f32 1e-05, %v286_v14  ;;  %v1444_v33 = vadd.f32 1e-05, %v284_v62  ;;  %vm374_vm2 = vweird.f32 %v953_v3 }
  0xfc   :  { %v348_v34 = vmul.f32 %v955_v32, %v315_v10  ;;  %956 = vrsqrt.f32 %v1440_v22  ;;  %vm354_vm4 = vweird.f32 %v955_v32  ;;  %vm403_vm5 = vweird.f32 %v1440_v22  ;;  %vm375_vm6 = vmor %vm373_vm1, %vm374_vm2 }
  0xfd   :  { %v369_v17 = vmul.f32 %v953_v3, %v368_v13  ;;  %958 = vrsqrt.f32 %v1442_v26  ;;  %vm383_vm7 = vweird.f32 %v1442_v26  ;;  %vm355_vm8 = vmor %vm353_vm3, %vm354_vm4  ;;  %vm363_vm9 = vweird.f32 %v1444_v33 }
  0xfe   :  { %v349_v8 = vmul.f32 %v955_v32, %v348_v34  ;;  %960 = vrsqrt.f32 %v1444_v33 }
  0xff   :  { %v370_v39 = vmul.f32 0.5, %v369_v17  ;;  %v236_v25 = vpop.xlane.xlu1 %235 }
 0x100   :  { %v350_v16 = vmul.f32 0.5, %v349_v8  ;;  %v291_v29 = vmul.f32 %v236_v25, %v1241_v38  ;;  %v232_v43 = vpop.xlane.xlu2 %231  ;;  %v228_v47 = vpop.xlane.xlu0 %227  ;;  %v1490_v8 = vld [vmem:[%s2167_s3] ss:$0 sm:$0xff] }
 0x101   :  { %v371_v20 = vsub.f32 1.5, %v370_v39  ;;  %v289_v46 = vmul.f32 %v232_v43, %v1241_v38  ;;  %v287_v13 = vmul.f32 %v228_v47, %v1241_v38 }
 0x102   :  { %v1456_v11 = vpop.eup %956  ;;  %v351_v50 = vsub.f32 1.5, %v350_v16  ;;  %v1458_v31 = vadd.f32 1e-05, %v291_v29 }
 0x103   :  { %v1460_v53 = vpop.eup %958  ;;  %v372_v19 = vmul.f32 %v953_v3, %v371_v20  ;;  %v398_v23 = vmul.f32 %v1456_v11, %v1440_v22  ;;  %v1465_v58 = vadd.f32 1e-05, %v289_v46  ;;  %vm404_vm10 = vweird.f32 %v1456_v11 }
 0x104   :  { %v1467_v59 = vpop.eup %960  ;;  %v352_v14 = vmul.f32 %v955_v32, %v351_v50  ;;  %v378_v62 = vmul.f32 %v1460_v53, %v1442_v26  ;;  %962 = vrsqrt.f32 %v1458_v31  ;;  %vm384_vm11 = vweird.f32 %v1460_v53  ;;  %vm405_vm14 = vmor %vm403_vm5, %vm404_vm10 }
 0x105   :  { %v376_v34 = vsel %vm375_vm6, %v953_v3, %v372_v19  ;;  %v399_v17 = vmul.f32 %v1456_v11, %v398_v23  ;;  %v358_v57 = vmul.f32 %v1467_v59, %v1444_v33  ;;  %964 = vrsqrt.f32 %v1465_v58  ;;  %vm385_vm0 = vmor %vm383_vm7, %vm384_vm11 }
 0x106   :  { %v669_v39 = vmul.f32 %v376_v34, %v1246_v44  ;;  %v356_v25 = vsel %vm355_vm8, %v955_v32, %v352_v14  ;;  %v379_v10 = vmul.f32 %v1460_v53, %v378_v62  ;;  %v1500_v46 = vadd.f32 1e-05, %v287_v13 }
 0x107   :  { %v667_v3 = vmul.f32 %v356_v25, %v1249_v45  ;;  %v400_v16 = vmul.f32 0.5, %v399_v17  ;;  %v359_v29 = vmul.f32 %v1467_v59, %v358_v57  ;;  %vm364_vm12 = vweird.f32 %v1467_v59  ;;  %v242_v50 = vpop.xlane.xlu1 %241 }
 0x108   :  { %v705_v43 = vmul.f32 %v1472_v30, %v669_v39  ;;  %v380_v20 = vmul.f32 0.5, %v379_v10  ;;  %vm433_vm13 = vweird.f32 %v1458_v31  ;;  %966 = vrsqrt.f32 %v1500_v46  ;;  %vm365_vm1 = vmor %vm363_vm9, %vm364_vm12 }
 0x109   :  { %v703_v44 = vmul.f32 %v1472_v30, %v667_v3  ;;  %v401_v32 = vsub.f32 1.5, %v400_v16  ;;  %v360_v47 = vmul.f32 0.5, %v359_v29  ;;  %v294_v39 = vmul.f32 %v242_v50, %v1241_v38 }
 0x10a   :  { %v1504_v45 = vpop.eup %962  ;;  %v741_v19 = vadd.f32 %v1490_v8, %v705_v43  ;;  %v381_v23 = vsub.f32 1.5, %v380_v20  ;;  %vm413_vm2 = vweird.f32 %v1465_v58  ;;  %vm393_vm4 = vweird.f32 %v1500_v46 }
 0x10b   :  { %v739_v14 = vadd.f32 %v1490_v8, %v703_v44  ;;  %v402_v62 = vmul.f32 %v1456_v11, %v401_v32  ;;  %v361_v13 = vsub.f32 1.5, %v360_v47  ;;  %v428_v34 = vmul.f32 %v1504_v45, %v1458_v31  ;;  %v1520_v25 = vpop.eup %964 }
 0x10c   :  { %v773_v17 = vmax.f32 %v741_v19, 0.0  ;;  %v382_v57 = vmul.f32 %v1460_v53, %v381_v23  ;;  %vm434_vm15 = vweird.f32 %v1504_v45  ;;  %v408_v26 = vmul.f32 %v1520_v25, %v1465_v58 }
 0x10d   :  { %v771_v10 = vmax.f32 %v739_v14, 0.0  ;;  %v406_v3 = vsel %vm405_vm14, %v1456_v11, %v402_v62  ;;  %v362_v16 = vmul.f32 %v1467_v59, %v361_v13  ;;  %v429_v22 = vmul.f32 %v1504_v45, %v428_v34  ;;  %vm435_vm5 = vmor %vm433_vm13, %vm434_vm15 }
 0x10e   :  { %805 = vst [vmem:[%s2169_s4 + $0x10] sm:$0xff] %v773_v17  ;;  %v838_v29 = vadd.f32 1e-07, %v773_v17  ;;  %v672_v43 = vmul.f32 %v406_v3, %v1259_v54  ;;  %v386_v20 = vsel %vm385_vm0, %v1460_v53, %v382_v57  ;;  %v1546_v32 = vpop.eup %966  ;;  %v409_v19 = vmul.f32 %v1520_v25, %v408_v26  ;;  %v238_v57 = vpop.xlane.xlu2 %237 }
 0x10f   :  { %803 = vst [vmem:[%s2169_s4] sm:$0xff] %v771_v10  ;;  %v836_v11 = vadd.f32 1e-07, %v771_v10  ;;  %v670_v44 = vmul.f32 %v386_v20, %v1262_v55  ;;  %v366_v54 = vsel %vm365_vm1, %v1467_v59, %v362_v16  ;;  %v430_v53 = vmul.f32 0.5, %v429_v22 }
 0x110   :  { %v871_v33 = vmul.f32 %v1452_v42, %v838_v29  ;;  %v708_v47 = vmul.f32 %v1472_v30, %v672_v43  ;;  %v668_v50 = vmul.f32 %v366_v54, %v1265_v56  ;;  %v1554_v13 = vadd.f32 1e-05, %v294_v39  ;;  %v234_v43 = vpop.xlane.xlu0 %233 }
 0x111   :  { %v869_v23 = vmul.f32 %v1452_v42, %v836_v11  ;;  %v706_v14 = vmul.f32 %v1472_v30, %v670_v44  ;;  %v431_v62 = vsub.f32 1.5, %v430_v53  ;;  %v410_v34 = vmul.f32 0.5, %v409_v19 }
 0x112   :  { %v744_v55 = vadd.f32 %v1490_v8, %v708_v47  ;;  %v704_v59 = vmul.f32 %v1472_v30, %v668_v50  ;;  %v388_v17 = vmul.f32 %v1546_v32, %v1500_v46  ;;  %vm414_vm3 = vweird.f32 %v1520_v25  ;;  %v248_v50 = vpop.xlane.xlu1 %247 }
 0x113   :  { %v903_v10 = vmax.f32 %v871_v33, %v869_v23  ;;  %v742_v56 = vadd.f32 %v1490_v8, %v706_v14  ;;  %v432_v3 = vmul.f32 %v1504_v45, %v431_v62  ;;  %v411_v22 = vsub.f32 1.5, %v410_v34  ;;  %vm415_vm7 = vmor %vm413_vm2, %vm414_vm3 }
 0x114   :  { %v776_v39 = vmax.f32 %v744_v55, 0.0  ;;  %v740_v16 = vadd.f32 %v1490_v8, %v704_v59  ;;  %v389_v29 = vmul.f32 %v1546_v32, %v388_v17  ;;  %vm394_vm6 = vweird.f32 %v1546_v32 }
 0x115   :  { %v774_v20 = vmax.f32 %v742_v56, 0.0  ;;  %v436_v26 = vsel %vm435_vm5, %v1504_v45, %v432_v3  ;;  %968 = vrsqrt.f32 %v1554_v13  ;;  %v412_v54 = vmul.f32 %v1520_v25, %v411_v22  ;;  %vm395_vm8 = vmor %vm393_vm4, %vm394_vm6 }
 0x116   :  { %808 = vst [vmem:[%s2169_s4 + $0x28] sm:$0xff] %v776_v39  ;;  %v841_v11 = vadd.f32 1e-07, %v776_v39  ;;  %v772_v44 = vmax.f32 %v740_v16, 0.0  ;;  %v675_v31 = vmul.f32 %v436_v26, %v1280_v4  ;;  %v390_v45 = vmul.f32 0.5, %v389_v29 }
 0x117   :  { %806 = vst [vmem:[%s2169_s4 + $0x18] sm:$0xff] %v774_v20  ;;  %v839_v53 = vadd.f32 1e-07, %v774_v20  ;;  %v292_v33 = vmul.f32 %v238_v57, %v1241_v38  ;;  %v290_v47 = vmul.f32 %v234_v43, %v1241_v38  ;;  %v416_v14 = vsel %vm415_vm7, %v1520_v25, %v412_v54  ;;  %v244_v43 = vpop.xlane.xlu2 %243 }
 0x118   :  { %v874_v4 = vmul.f32 %v1452_v42, %v841_v11  ;;  %804 = vst [vmem:[%s2169_s4 + $0x8] sm:$0xff] %v772_v44  ;;  %v837_v19 = vadd.f32 1e-07, %v772_v44  ;;  %v711_v23 = vmul.f32 %v1472_v30, %v675_v31  ;;  %v673_v62 = vmul.f32 %v416_v14, %v1283_v5  ;;  %v240_v46 = vpop.xlane.xlu0 %239 }
 0x119   :  { %v872_v58 = vmul.f32 %v1452_v42, %v839_v53  ;;  %v391_v55 = vsub.f32 1.5, %v390_v45  ;;  %v1595_v59 = vadd.f32 1e-05, %v292_v33  ;;  %v1599_v57 = vadd.f32 1e-05, %v290_v47 }
 0x11a   :  { %v870_v34 = vmul.f32 %v1452_v42, %v837_v19  ;;  %v747_v17 = vadd.f32 %v1490_v8, %v711_v23  ;;  %v297_v56 = vmul.f32 %v248_v50, %v1241_v38  ;;  %v709_v16 = vmul.f32 %v1472_v30, %v673_v62  ;;  %v254_v62 = vpop.xlane.xlu1 %253 }
 0x11b   :  { %v969_v3 = vpop.eup %968  ;;  %v901_v39 = vmax.f32 %v872_v58, %v903_v10  ;;  %v392_v25 = vmul.f32 %v1546_v32, %v391_v55  ;;  %970 = vrsqrt.f32 %v1595_v59  ;;  %v295_v45 = vmul.f32 %v244_v43, %v1241_v38 }
 0x11c   :  { %v902_v5 = vmax.f32 %v870_v34, %v874_v4  ;;  %v779_v22 = vmax.f32 %v747_v17, 0.0  ;;  %v458_v29 = vmul.f32 %v969_v3, %v1554_v13  ;;  %v745_v20 = vadd.f32 %v1490_v8, %v709_v16 }
 0x11d   :  { %v396_v10 = vsel %vm395_vm8, %v1546_v32, %v392_v25  ;;  %972 = vrsqrt.f32 %v1599_v57  ;;  %v1617_v53 = vadd.f32 1e-05, %v297_v56  ;;  %vm463_vm9 = vweird.f32 %v1554_v13 }
 0x11e   :  { %v906_v26 = vmax.f32 %v902_v5, %v901_v39  ;;  %811 = vst [vmem:[%s2169_s4 + $0x40] sm:$0xff] %v779_v22  ;;  %v844_v11 = vadd.f32 1e-07, %v779_v22  ;;  %v671_v44 = vmul.f32 %v396_v10, %v1276_v2  ;;  %v459_v31 = vmul.f32 %v969_v3, %v458_v29 }
 0x11f   :  { %v777_v54 = vmax.f32 %v745_v20, 0.0  ;;  %vm464_vm10 = vweird.f32 %v969_v3  ;;  %974 = vrsqrt.f32 %v1617_v53  ;;  %v1627_v2 = vadd.f32 1e-05, %v295_v45 }
 0x120   :  { %v707_v33 = vmul.f32 %v1472_v30, %v671_v44  ;;  %v460_v32 = vmul.f32 0.5, %v459_v31  ;;  %v877_v50 = vmul.f32 %v1452_v42, %v844_v11  ;;  %v293_v4 = vmul.f32 %v240_v46, %v1241_v38  ;;  %vm465_vm12 = vmor %vm463_vm9, %vm464_vm10 }
 0x121   :  { %v971_v47 = vpop.eup %970  ;;  %809 = vst [vmem:[%s2169_s4 + $0x30] sm:$0xff] %v777_v54  ;;  %v842_v19 = vadd.f32 1e-07, %v777_v54  ;;  %vm443_vm11 = vweird.f32 %v1595_v59  ;;  %976 = vrsqrt.f32 %v1627_v2  ;;  %vm423_vm13 = vweird.f32 %v1599_v57  ;;  %v250_v54 = vpop.xlane.xlu2 %249 }
 0x122   :  { %v743_v23 = vadd.f32 %v1490_v8, %v707_v33  ;;  %v461_v14 = vsub.f32 1.5, %v460_v32  ;;  %v438_v58 = vmul.f32 %v971_v47, %v1595_v59  ;;  %v904_v16 = vmax.f32 %v877_v50, %v906_v26 }
 0x123   :  { %v1632_v55 = vpop.eup %972  ;;  %v1642_v25 = vadd.f32 1e-05, %v293_v4  ;;  %v300_v5 = vmul.f32 %v254_v62, %v1241_v38  ;;  %v875_v22 = vmul.f32 %v1452_v42, %v842_v19  ;;  %vm444_vm14 = vweird.f32 %v971_v47 }
 0x124   :  { %v775_v34 = vmax.f32 %v743_v23, 0.0  ;;  %v462_v17 = vmul.f32 %v969_v3, %v461_v14  ;;  %v439_v56 = vmul.f32 %v971_v47, %v438_v58  ;;  %v418_v39 = vmul.f32 %v1632_v55, %v1599_v57  ;;  %vm445_vm1 = vmor %vm443_vm11, %vm444_vm14 }
 0x125   :  { %v1650_v10 = vpop.eup %974  ;;  %978 = vrsqrt.f32 %v1642_v25  ;;  %v1654_v11 = vadd.f32 1e-05, %v300_v5  ;;  %v1660_v45 = vmax.f32 %v875_v22, %v904_v16  ;;  %vm493_vm15 = vweird.f32 %v1617_v53 }
 0x126   :  { %807 = vst [vmem:[%s2169_s4 + $0x20] sm:$0xff] %v775_v34  ;;  %v466_v29 = vsel %vm465_vm12, %v969_v3, %v462_v17  ;;  %v440_v43 = vmul.f32 0.5, %v439_v56  ;;  %v419_v20 = vmul.f32 %v1632_v55, %v418_v39  ;;  %v840_v13 = vadd.f32 1e-07, %v775_v34 }
 0x127   :  { %v678_v26 = vmul.f32 %v466_v29, %v1298_v40  ;;  %v488_v46 = vmul.f32 %v1650_v10, %v1617_v53  ;;  %v1658_v3 = vpop.eup %976  ;;  %980 = vrsqrt.f32 %v1654_v11  ;;  %vm424_vm0 = vweird.f32 %v1632_v55 }
 0x128   :  { %v441_v44 = vsub.f32 1.5, %v440_v43  ;;  %v420_v31 = vmul.f32 0.5, %v419_v20  ;;  %v873_v4 = vmul.f32 %v1452_v42, %v840_v13  ;;  %v468_v23 = vmul.f32 %v1658_v3, %v1627_v2  ;;  %vm425_vm4 = vmor %vm423_vm13, %vm424_vm0 }
 0x129   :  { %v714_v33 = vmul.f32 %v1472_v30, %v678_v26  ;;  %v489_v50 = vmul.f32 %v1650_v10, %v488_v46  ;;  %v298_v14 = vmul.f32 %v250_v54, %v1241_v38  ;;  %vm494_vm2 = vweird.f32 %v1650_v10 }
 0x12a   :  { %v442_v40 = vmul.f32 %v971_v47, %v441_v44  ;;  %v421_v32 = vsub.f32 1.5, %v420_v31  ;;  %vm473_vm3 = vweird.f32 %v1627_v2  ;;  %v909_v56 = vmax.f32 %v1660_v45, %v873_v4  ;;  %vm495_vm8 = vmor %vm493_vm15, %vm494_vm2 }
 0x12b   :  { %v750_v19 = vadd.f32 %v1490_v8, %v714_v33  ;;  %v490_v34 = vmul.f32 0.5, %v489_v50  ;;  %v1678_v17 = vpop.eup %978  ;;  %vm453_vm5 = vweird.f32 %v1642_v25  ;;  %vm523_vm6 = vweird.f32 %v1654_v11 }
 0x12c   :  { %v446_v58 = vsel %vm445_vm1, %v971_v47, %v442_v40  ;;  %v422_v62 = vmul.f32 %v1632_v55, %v421_v32  ;;  %v469_v47 = vmul.f32 %v1658_v3, %v468_v23  ;;  %v448_v22 = vmul.f32 %v1678_v17, %v1642_v25  ;;  %v256_v25 = vpop.xlane.xlu2 %255 }
 0x12d   :  { %v782_v39 = vmax.f32 %v750_v19, 0.0  ;;  %v676_v59 = vmul.f32 %v446_v58, %v1301_v41  ;;  %v491_v5 = vsub.f32 1.5, %v490_v34  ;;  %v1692_v29 = vadd.f32 1e-05, %v298_v14  ;;  %v246_v41 = vpop.xlane.xlu0 %245  ;;  %v1694_v43 = vpop.eup %980 }
 0x12e   :  { %v426_v16 = vsel %vm425_vm4, %v1632_v55, %v422_v62  ;;  %v470_v13 = vmul.f32 0.5, %v469_v47  ;;  %vm474_vm7 = vweird.f32 %v1658_v3  ;;  %v449_v44 = vmul.f32 %v1678_v17, %v448_v22 }
 0x12f   :  { %814 = vst [vmem:[%s2169_s4 + $0x58] sm:$0xff] %v782_v39  ;;  %v847_v57 = vadd.f32 1e-07, %v782_v39  ;;  %v712_v55 = vmul.f32 %v1472_v30, %v676_v59  ;;  %v674_v20 = vmul.f32 %v426_v16, %v1293_v6  ;;  %v492_v26 = vmul.f32 %v1650_v10, %v491_v5  ;;  %vm475_vm10 = vmor %vm473_vm3, %vm474_vm7  ;;  %v260_v39 = vpop.xlane.xlu1 %259 }
 0x130   :  { %v518_v31 = vmul.f32 %v1694_v43, %v1654_v11  ;;  %v471_v6 = vsub.f32 1.5, %v470_v13  ;;  %v296_v45 = vmul.f32 %v246_v41, %v1241_v38  ;;  %v450_v40 = vmul.f32 0.5, %v449_v44 }
 0x131   :  { %v748_v46 = vadd.f32 %v1490_v8, %v712_v55  ;;  %v710_v54 = vmul.f32 %v1472_v30, %v674_v20  ;;  %v496_v33 = vsel %vm495_vm8, %v1650_v10, %v492_v26  ;;  %982 = vrsqrt.f32 %v1692_v29 }
 0x132   :  { %v519_v32 = vmul.f32 %v1694_v43, %v518_v31  ;;  %v880_v50 = vmul.f32 %v1452_v42, %v847_v57  ;;  %v681_v23 = vmul.f32 %v496_v33, %v1316_v51  ;;  %v472_v53 = vmul.f32 %v1658_v3, %v471_v6 }
 0x133   :  { %v780_v4 = vmax.f32 %v748_v46, 0.0  ;;  %v746_v19 = vadd.f32 %v1490_v8, %v710_v54  ;;  %v451_v14 = vsub.f32 1.5, %v450_v40  ;;  %vm454_vm9 = vweird.f32 %v1678_v17 }
 0x134   :  { %v520_v58 = vmul.f32 0.5, %v519_v32  ;;  %v717_v34 = vmul.f32 %v1472_v30, %v681_v23  ;;  %v1729_v51 = vadd.f32 1e-05, %v296_v45  ;;  %v476_v59 = vsel %vm475_vm10, %v1658_v3, %v472_v53  ;;  %vm455_vm12 = vmor %vm453_vm5, %vm454_vm9 }
 0x135   :  { %812 = vst [vmem:[%s2169_s4 + $0x48] sm:$0xff] %v780_v4  ;;  %v845_v10 = vadd.f32 1e-07, %v780_v4  ;;  %v778_v62 = vmax.f32 %v746_v19, 0.0  ;;  %v452_v47 = vmul.f32 %v1678_v17, %v451_v14  ;;  %vm524_vm11 = vweird.f32 %v1694_v43  ;;  %v252_v55 = vpop.xlane.xlu0 %251 }
 0x136   :  { %v521_v16 = vsub.f32 1.5, %v520_v58  ;;  %v907_v5 = vmax.f32 %v880_v50, %v909_v56  ;;  %v753_v22 = vadd.f32 %v1490_v8, %v717_v34  ;;  %v679_v2 = vmul.f32 %v476_v59, %v1319_v52  ;;  %vm525_vm13 = vmor %vm523_vm6, %vm524_vm11 }
 0x137   :  { %810 = vst [vmem:[%s2169_s4 + $0x38] sm:$0xff] %v778_v62  ;;  %v1743_v3 = vpop.eup %982  ;;  %v456_v41 = vsel %vm455_vm12, %v1678_v17, %v452_v47  ;;  %984 = vrsqrt.f32 %v1729_v51  ;;  %v303_v56 = vmul.f32 %v260_v39, %v1241_v38  ;;  %v878_v20 = vmul.f32 %v1452_v42, %v845_v10  ;;  %v266_v47 = vpop.xlane.xlu1 %265 }
 0x138   :  { %v522_v57 = vmul.f32 %v1694_v43, %v521_v16  ;;  %v843_v13 = vadd.f32 1e-07, %v778_v62  ;;  %v785_v52 = vmax.f32 %v753_v22, 0.0  ;;  %v715_v26 = vmul.f32 %v1472_v30, %v679_v2 }
 0x139   :  { %v677_v17 = vmul.f32 %v456_v41, %v1311_v9  ;;  %v498_v31 = vmul.f32 %v1743_v3, %v1692_v29  ;;  %v908_v46 = vmax.f32 %v878_v20, %v907_v5  ;;  %v1766_v9 = vadd.f32 1e-05, %v303_v56  ;;  %v262_v20 = vpop.xlane.xlu2 %261 }
 0x13a   :  { %v526_v44 = vsel %vm525_vm13, %v1694_v43, %v522_v57  ;;  %817 = vst [vmem:[%s2169_s4 + $0x70] sm:$0xff] %v785_v52  ;;  %v850_v54 = vadd.f32 1e-07, %v785_v52  ;;  %v751_v6 = vadd.f32 %v1490_v8, %v715_v26  ;;  %v301_v43 = vmul.f32 %v256_v25, %v1241_v38 }
 0x13b   :  { %v684_v45 = vmul.f32 %v526_v44, %v1334_v63  ;;  %v713_v11 = vmul.f32 %v1472_v30, %v677_v17  ;;  %v499_v33 = vmul.f32 %v1743_v3, %v498_v31  ;;  %v876_v40 = vmul.f32 %v1452_v42, %v843_v13 }
 0x13c   :  { %v783_v32 = vmax.f32 %v751_v6, 0.0  ;;  %v299_v4 = vmul.f32 %v252_v55, %v1241_v38  ;;  %v883_v23 = vmul.f32 %v1452_v42, %v850_v54  ;;  %986 = vrsqrt.f32 %v1766_v9 }
 0x13d   :  { %v720_v50 = vmul.f32 %v1472_v30, %v684_v45  ;;  %v985_v19 = vpop.eup %984  ;;  %v749_v63 = vadd.f32 %v1490_v8, %v713_v11  ;;  %v500_v53 = vmul.f32 0.5, %v499_v33  ;;  %v912_v14 = vmax.f32 %v908_v46, %v876_v40  ;;  %v258_v57 = vpop.xlane.xlu0 %257 }
 0x13e   :  { %815 = vst [vmem:[%s2169_s4 + $0x60] sm:$0xff] %v783_v32  ;;  %vm504_vm14 = vweird.f32 %v1743_v3  ;;  %v478_v10 = vmul.f32 %v985_v19, %v1729_v51  ;;  %v848_v62 = vadd.f32 1e-07, %v783_v32  ;;  %v1781_v59 = vadd.f32 1e-05, %v301_v43 }
 0x13f   :  { %v756_v58 = vadd.f32 %v1490_v8, %v720_v50  ;;  %v781_v34 = vmax.f32 %v749_v63, 0.0  ;;  %v501_v39 = vsub.f32 1.5, %v500_v53  ;;  %v1783_v22 = vadd.f32 1e-05, %v299_v4 }
 0x140   :  { %v479_v5 = vmul.f32 %v985_v19, %v478_v10  ;;  %v910_v2 = vmax.f32 %v883_v23, %v912_v14  ;;  %vm503_vm15 = vweird.f32 %v1692_v29  ;;  %988 = vrsqrt.f32 %v1781_v59  ;;  %v272_v10 = vpop.xlane.xlu1 %271 }
 0x141   :  { %v788_v16 = vmax.f32 %v756_v58, 0.0  ;;  %813 = vst [vmem:[%s2169_s4 + $0x50] sm:$0xff] %v781_v34  ;;  %v502_v41 = vmul.f32 %v1743_v3, %v501_v39  ;;  %v846_v56 = vadd.f32 1e-07, %v781_v34  ;;  %vm505_vm0 = vmor %vm503_vm15, %vm504_vm14  ;;  %vm483_vm1 = vweird.f32 %v1729_v51 }
 0x142   :  { %v480_v55 = vmul.f32 0.5, %v479_v5  ;;  %990 = vrsqrt.f32 %v1783_v22  ;;  %v987_v13 = vpop.eup %986  ;;  %v881_v29 = vmul.f32 %v1452_v42, %v848_v62  ;;  %v306_v25 = vmul.f32 %v266_v47, %v1241_v38 }
 0x143   :  { %820 = vst [vmem:[%s2169_s4 + $0x88] sm:$0xff] %v788_v16  ;;  %v853_v52 = vadd.f32 1e-07, %v788_v16  ;;  %v506_v26 = vsel %vm505_vm0, %v1743_v3, %v502_v41  ;;  %vm484_vm2 = vweird.f32 %v985_v19  ;;  %v548_v31 = vmul.f32 %v987_v13, %v1766_v9 }
 0x144   :  { %v682_v17 = vmul.f32 %v506_v26, %v1337_v1  ;;  %v481_v44 = vsub.f32 1.5, %v480_v55  ;;  %v911_v46 = vmax.f32 %v881_v29, %v910_v2  ;;  %vm553_vm3 = vweird.f32 %v1766_v9  ;;  %vm485_vm4 = vmor %vm483_vm1, %vm484_vm2 }
 0x145   :  { %v1804_v54 = vadd.f32 1e-05, %v306_v25  ;;  %v304_v6 = vmul.f32 %v262_v20, %v1241_v38  ;;  %v879_v45 = vmul.f32 %v1452_v42, %v846_v56  ;;  %v549_v33 = vmul.f32 %v987_v13, %v548_v31 }
 0x146   :  { %v718_v11 = vmul.f32 %v1472_v30, %v682_v17  ;;  %v482_v3 = vmul.f32 %v985_v19, %v481_v44  ;;  %v1809_v43 = vpop.eup %988  ;;  %v886_v1 = vmul.f32 %v1452_v42, %v853_v52  ;;  %v302_v32 = vmul.f32 %v258_v57, %v1241_v38 }
 0x147   :  { %992 = vrsqrt.f32 %v1804_v54  ;;  %v1815_v40 = vadd.f32 1e-05, %v304_v6  ;;  %v550_v63 = vmul.f32 0.5, %v549_v33  ;;  %v528_v53 = vmul.f32 %v1809_v43, %v1781_v59 }
 0x148   :  { %v1818_v50 = vpop.eup %990  ;;  %v754_v4 = vadd.f32 %v1490_v8, %v718_v11  ;;  %v486_v23 = vsel %vm485_vm4, %v985_v19, %v482_v3  ;;  %vm533_vm5 = vweird.f32 %v1781_v59  ;;  %v915_v14 = vmax.f32 %v911_v46, %v879_v45 }
 0x149   :  { %v680_v51 = vmul.f32 %v486_v23, %v1329_v12  ;;  %vm554_vm6 = vweird.f32 %v987_v13  ;;  %v508_v58 = vmul.f32 %v1818_v50, %v1783_v22  ;;  %vm513_vm7 = vweird.f32 %v1783_v22  ;;  %v1834_v12 = vpop.xlane.xlu0 %263 }
 0x14a   :  { %v786_v62 = vmax.f32 %v754_v4, 0.0  ;;  %v551_v34 = vsub.f32 1.5, %v550_v63  ;;  %v529_v19 = vmul.f32 %v1809_v43, %v528_v53  ;;  %994 = vrsqrt.f32 %v1815_v40  ;;  %vm555_vm8 = vmor %vm553_vm3, %vm554_vm6 }
 0x14b   :  { %v913_v39 = vmax.f32 %v886_v1, %v915_v14  ;;  %v716_v47 = vmul.f32 %v1472_v30, %v680_v51  ;;  %v509_v16 = vmul.f32 %v1818_v50, %v508_v58  ;;  %v1832_v5 = vadd.f32 1e-05, %v302_v32  ;;  %v268_v1 = vpop.xlane.xlu2 %267 }
 0x14c   :  { %818 = vst [vmem:[%s2169_s4 + $0x78] sm:$0xff] %v786_v62  ;;  %v851_v2 = vadd.f32 1e-07, %v786_v62  ;;  %v552_v41 = vmul.f32 %v987_v13, %v551_v34  ;;  %v530_v57 = vmul.f32 0.5, %v529_v19  ;;  %v309_v56 = vmul.f32 %v272_v10, %v1241_v38 }
 0x14d   :  { %v1840_v55 = vpop.eup %992  ;;  %v752_v20 = vadd.f32 %v1490_v8, %v716_v47  ;;  %v510_v29 = vmul.f32 0.5, %v509_v16  ;;  %vm583_vm9 = vweird.f32 %v1804_v54  ;;  %996 = vrsqrt.f32 %v1832_v5 }
 0x14e   :  { %v556_v52 = vsel %vm555_vm8, %v987_v13, %v552_v41  ;;  %v531_v26 = vsub.f32 1.5, %v530_v57  ;;  %vm534_vm10 = vweird.f32 %v1809_v43  ;;  %v578_v25 = vmul.f32 %v1840_v55, %v1804_v54 }
 0x14f   :  { %v784_v17 = vmax.f32 %v752_v20, 0.0  ;;  %v687_v44 = vmul.f32 %v556_v52, %v1352_v36  ;;  %v511_v31 = vsub.f32 1.5, %v510_v29  ;;  %vm514_vm11 = vweird.f32 %v1818_v50  ;;  %vm535_vm12 = vmor %vm533_vm5, %vm534_vm10 }
 0x150   :  { %v1853_v9 = vpop.eup %994  ;;  %v884_v46 = vmul.f32 %v1452_v42, %v851_v2  ;;  %v532_v6 = vmul.f32 %v1809_v43, %v531_v26  ;;  %v579_v13 = vmul.f32 %v1840_v55, %v578_v25  ;;  %v1858_v45 = vadd.f32 1e-05, %v309_v56  ;;  %vm515_vm13 = vmor %vm513_vm7, %vm514_vm11 }
 0x151   :  { %816 = vst [vmem:[%s2169_s4 + $0x68] sm:$0xff] %v784_v17  ;;  %v849_v11 = vadd.f32 1e-07, %v784_v17  ;;  %v723_v36 = vmul.f32 %v1472_v30, %v687_v44  ;;  %v512_v3 = vmul.f32 %v1818_v50, %v511_v31  ;;  %v558_v33 = vmul.f32 %v1853_v9, %v1815_v40 }
 0x152   :  { %v536_v32 = vsel %vm535_vm12, %v1809_v43, %v532_v6  ;;  %v580_v4 = vmul.f32 0.5, %v579_v13  ;;  %vm584_vm14 = vweird.f32 %v1840_v55  ;;  %vm563_vm15 = vweird.f32 %v1815_v40 }
 0x153   :  { %998 = vrsqrt.f32 %v1858_v45  ;;  %v1875_v59 = vpop.eup %996  ;;  %v914_v23 = vmax.f32 %v884_v46, %v913_v39  ;;  %v759_v63 = vadd.f32 %v1490_v8, %v723_v36  ;;  %v685_v53 = vmul.f32 %v536_v32, %v1355_v37  ;;  %v1888_v37 = vpop.xlane.xlu0 %269  ;;  %vm585_vm2 = vmor %vm583_vm9, %vm584_vm14 }
 0x154   :  { %v516_v14 = vsel %vm515_vm13, %v1818_v50, %v512_v3  ;;  %v581_v22 = vsub.f32 1.5, %v580_v4  ;;  %v559_v51 = vmul.f32 %v1853_v9, %v558_v33  ;;  %v538_v58 = vmul.f32 %v1875_v59, %v1832_v5 }
 0x155   :  { %v683_v43 = vmul.f32 %v516_v14, %v1347_v15  ;;  %vm543_vm0 = vweird.f32 %v1832_v5  ;;  %v882_v10 = vmul.f32 %v1452_v42, %v849_v11  ;;  %v791_v62 = vmax.f32 %v759_v63, 0.0  ;;  %v274_v11 = vpop.xlane.xlu2 %273 }
 0x156   :  { %v721_v34 = vmul.f32 %v1472_v30, %v685_v53  ;;  %vm564_vm1 = vweird.f32 %v1853_v9  ;;  %v582_v15 = vmul.f32 %v1840_v55, %v581_v22  ;;  %v560_v19 = vmul.f32 0.5, %v559_v51 }
 0x157   :  { %v719_v50 = vmul.f32 %v1472_v30, %v683_v43  ;;  %v539_v39 = vmul.f32 %v1875_v59, %v538_v58  ;;  %v918_v47 = vmax.f32 %v914_v23, %v882_v10  ;;  %823 = vst [vmem:[%s2169_s4 + $0xa0] sm:$0xff] %v791_v62  ;;  %v856_v16 = vadd.f32 1e-07, %v791_v62  ;;  %vm565_vm4 = vmor %vm563_vm15, %vm564_vm1  ;;  %v278_v23 = vpop.xlane.xlu1 %277 }
 0x158   :  { %v757_v2 = vadd.f32 %v1490_v8, %v721_v34  ;;  %v307_v41 = vmul.f32 %v268_v1, %v1241_v38  ;;  %v586_v20 = vsel %vm585_vm2, %v1840_v55, %v582_v15  ;;  %v561_v29 = vsub.f32 1.5, %v560_v19 }
 0x159   :  { %v1902_v57 = vpop.eup %998  ;;  %v755_v56 = vadd.f32 %v1490_v8, %v719_v50  ;;  %v540_v52 = vmul.f32 0.5, %v539_v39  ;;  %v889_v26 = vmul.f32 %v1452_v42, %v856_v16  ;;  %v690_v17 = vmul.f32 %v586_v20, %v1370_v48 }
 0x15a   :  { %v789_v25 = vmax.f32 %v757_v2, 0.0  ;;  %v608_v44 = vmul.f32 %v1902_v57, %v1858_v45  ;;  %v562_v31 = vmul.f32 %v1853_v9, %v561_v29  ;;  %vm544_vm3 = vweird.f32 %v1875_v59 }
 0x15b   :  { %v787_v54 = vmax.f32 %v755_v56, 0.0  ;;  %v541_v46 = vsub.f32 1.5, %v540_v52  ;;  %v916_v6 = vmax.f32 %v889_v26, %v918_v47  ;;  %v726_v13 = vmul.f32 %v1472_v30, %v690_v17  ;;  %vm545_vm6 = vmor %vm543_vm0, %vm544_vm3  ;;  %v276_v22 = vpop.xlane.xlu0 %275 }
 0x15c   :  { %821 = vst [vmem:[%s2169_s4 + $0x90] sm:$0xff] %v789_v25  ;;  %v854_v55 = vadd.f32 1e-07, %v789_v25  ;;  %v609_v48 = vmul.f32 %v1902_v57, %v608_v44  ;;  %v566_v36 = vsel %vm565_vm4, %v1853_v9, %v562_v31  ;;  %vm613_vm5 = vweird.f32 %v1858_v45 }
 0x15d   :  { %819 = vst [vmem:[%s2169_s4 + $0x80] sm:$0xff] %v787_v54  ;;  %v542_v3 = vmul.f32 %v1875_v59, %v541_v46  ;;  %v1927_v33 = vadd.f32 1e-05, %v307_v41  ;;  %v762_v40 = vadd.f32 %v1490_v8, %v726_v13  ;;  %v688_v32 = vmul.f32 %v566_v36, %v1373_v49  ;;  %v280_v26 = vpop.xlane.xlu2 %279 }
 0x15e   :  { %v887_v1 = vmul.f32 %v1452_v42, %v854_v55  ;;  %v610_v4 = vmul.f32 0.5, %v609_v48  ;;  %v852_v9 = vadd.f32 1e-07, %v787_v54  ;;  %vm614_vm7 = vweird.f32 %v1902_v57 }
 0x15f   :  { %v546_v63 = vsel %vm545_vm6, %v1875_v59, %v542_v3  ;;  %1000 = vrsqrt.f32 %v1927_v33  ;;  %v794_v14 = vmax.f32 %v762_v40, 0.0  ;;  %v724_v43 = vmul.f32 %v1472_v30, %v688_v32  ;;  %vm615_vm8 = vmor %vm613_vm5, %vm614_vm7 }
 0x160   :  { %v917_v53 = vmax.f32 %v887_v1, %v916_v6  ;;  %v686_v49 = vmul.f32 %v546_v63, %v1365_v18  ;;  %v611_v51 = vsub.f32 1.5, %v610_v4  ;;  %v305_v5 = vmul.f32 %v1834_v12, %v1241_v38 }
 0x161   :  { %v312_v58 = vmul.f32 %v278_v23, %v1241_v38  ;;  %v310_v10 = vmul.f32 %v274_v11, %v1241_v38  ;;  %826 = vst [vmem:[%s2169_s4 + $0xb8] sm:$0xff] %v794_v14  ;;  %v859_v59 = vadd.f32 1e-07, %v794_v14  ;;  %v760_v62 = vadd.f32 %v1490_v8, %v724_v43 }
 0x162   :  { %v722_v34 = vmul.f32 %v1472_v30, %v686_v49  ;;  %v885_v18 = vmul.f32 %v1452_v42, %v852_v9  ;;  %v612_v50 = vmul.f32 %v1902_v57, %v611_v51  ;;  %v1952_v15 = vadd.f32 1e-05, %v305_v5 }
 0x163   :  { %v1954_v12 = vadd.f32 1e-05, %v312_v58  ;;  %v892_v19 = vmul.f32 %v1452_v42, %v859_v59  ;;  %v792_v39 = vmax.f32 %v760_v62, 0.0  ;;  %v1962_v16 = vadd.f32 1e-05, %v310_v10  ;;  %v282_v55 = vpop.xlane.xlu0 %281 }
 0x164   :  { %v758_v47 = vadd.f32 %v1490_v8, %v722_v34  ;;  %v921_v41 = vmax.f32 %v917_v53, %v885_v18  ;;  %v616_v56 = vsel %vm615_vm8, %v1902_v57, %v612_v50  ;;  %1002 = vrsqrt.f32 %v1952_v15 }
 0x165   :  { %v1001_v2 = vpop.eup %1000  ;;  %v308_v20 = vmul.f32 %v1888_v37, %v1241_v38  ;;  %824 = vst [vmem:[%s2169_s4 + $0xa8] sm:$0xff] %v792_v39  ;;  %v857_v29 = vadd.f32 1e-07, %v792_v39  ;;  %v693_v45 = vmul.f32 %v616_v56, %v1388_v60  ;;  %1004 = vrsqrt.f32 %v1954_v12 }
 0x166   :  { %v790_v52 = vmax.f32 %v758_v47, 0.0  ;;  %v919_v25 = vmax.f32 %v892_v19, %v921_v41  ;;  %v588_v17 = vmul.f32 %v1001_v2, %v1927_v33  ;;  %1006 = vrsqrt.f32 %v1962_v16 }
 0x167   :  { %v890_v57 = vmul.f32 %v1452_v42, %v857_v29  ;;  %v729_v44 = vmul.f32 %v1472_v30, %v693_v45  ;;  %v1980_v31 = vadd.f32 1e-05, %v308_v20  ;;  %v313_v60 = vmul.f32 %v280_v26, %v1241_v38  ;;  %v2062_v45 = vld [vmem:[%s2167_s3] ss:$0 sm:$0xff] }
 0x168   :  { %822 = vst [vmem:[%s2169_s4 + $0x98] sm:$0xff] %v790_v52  ;;  %v855_v37 = vadd.f32 1e-07, %v790_v52  ;;  %v589_v54 = vmul.f32 %v1001_v2, %v588_v17  ;;  %v311_v46 = vmul.f32 %v276_v22, %v1241_v38  ;;  %vm593_vm9 = vweird.f32 %v1927_v33 }
 0x169   :  { %v765_v6 = vadd.f32 %v1490_v8, %v729_v44  ;;  %v920_v48 = vmax.f32 %v890_v57, %v919_v25  ;;  %1008 = vrsqrt.f32 %v1980_v31  ;;  %v1989_v30 = vadd.f32 1e-05, %v313_v60 }
 0x16a   :  { %v1986_v13 = vpop.eup %1002  ;;  %v590_v11 = vmul.f32 0.5, %v589_v54  ;;  %v888_v36 = vmul.f32 %v1452_v42, %v855_v37  ;;  %vm594_vm10 = vweird.f32 %v1001_v2  ;;  %vm573_vm11 = vweird.f32 %v1952_v15 }
 0x16b   :  { %v797_v3 = vmax.f32 %v765_v6, 0.0  ;;  %v568_v1 = vmul.f32 %v1986_v13, %v1952_v15  ;;  %v1995_v8 = vpop.eup %1004  ;;  %1010 = vrsqrt.f32 %v1989_v30  ;;  %v1998_v32 = vadd.f32 1e-05, %v311_v46  ;;  %vm595_vm14 = vmor %vm593_vm9, %vm594_vm10 }
 0x16c   :  { %v591_v40 = vsub.f32 1.5, %v590_v11  ;;  %v314_v4 = vmul.f32 %v282_v55, %v1241_v38  ;;  %v2001_v23 = vpop.eup %1006  ;;  %v638_v53 = vmul.f32 %v1995_v8, %v1954_v12  ;;  %vm643_vm12 = vweird.f32 %v1954_v12 }
 0x16d   :  { %829 = vst [vmem:[%s2169_s4 + $0xd0] sm:$0xff] %v797_v3  ;;  %v862_v9 = vadd.f32 1e-07, %v797_v3  ;;  %v569_v63 = vmul.f32 %v1986_v13, %v568_v1  ;;  %v2010_v14 = vmax.f32 %v920_v48, %v888_v36  ;;  %v618_v38 = vmul.f32 %v2001_v23, %v1962_v16 }
 0x16e   :  { %v592_v43 = vmul.f32 %v1001_v2, %v591_v40  ;;  %vm623_vm13 = vweird.f32 %v1962_v16  ;;  %1012 = vrsqrt.f32 %v1998_v32  ;;  %vm574_vm15 = vweird.f32 %v1986_v13 }
 0x16f   :  { %v2017_v49 = vmul.f32 %v1452_v42, %v862_v9  ;;  %v570_v22 = vmul.f32 0.5, %v569_v63  ;;  %v639_v51 = vmul.f32 %v1995_v8, %v638_v53  ;;  %v2024_v5 = vpop.eup %1008  ;;  %vm644_vm0 = vweird.f32 %v1995_v8  ;;  %vm575_vm4 = vmor %vm573_vm11, %vm574_vm15 }
 0x170   :  { %v596_v58 = vsel %vm595_vm14, %v1001_v2, %v592_v43  ;;  %v619_v10 = vmul.f32 %v2001_v23, %v618_v38  ;;  %v2028_v59 = vadd.f32 1e-05, %v314_v4  ;;  %vm624_vm1 = vweird.f32 %v2001_v23  ;;  %vm645_vm7 = vmor %vm643_vm12, %vm644_vm0 }
 0x171   :  { %v691_v62 = vmul.f32 %v596_v58, %v1391_v61  ;;  %v571_v34 = vsub.f32 1.5, %v570_v22  ;;  %v640_v18 = vmul.f32 0.5, %v639_v51  ;;  %v2032_v33 = vpop.eup %1010  ;;  %v922_v50 = vmax.f32 %v2017_v49, %v2010_v14  ;;  %v2043_v61 = vld [vmem:[%s2166_s2] ss:$0 sm:$0xff]  ;;  %vm625_vm8 = vmor %vm623_vm13, %vm624_vm1 }
 0x172   :  { %v620_v19 = vmul.f32 0.5, %v619_v10  ;;  %v598_v39 = vmul.f32 %v2024_v5, %v1980_v31  ;;  %vm603_vm2 = vweird.f32 %v1980_v31  ;;  %1014 = vrsqrt.f32 %v2028_v59 }
 0x173   :  { %v727_v47 = vmul.f32 %v2043_v61, %v691_v62  ;;  %v572_v2 = vmul.f32 %v1986_v13, %v571_v34  ;;  %v641_v41 = vsub.f32 1.5, %v640_v18  ;;  %v648_v56 = vmul.f32 %v2032_v33, %v1989_v30 }
 0x174   :  { %vm653_vm3 = vweird.f32 %v1989_v30  ;;  %v2050_v20 = vpop.eup %1012  ;;  %v621_v29 = vsub.f32 1.5, %v620_v19  ;;  %v599_v52 = vmul.f32 %v2024_v5, %v598_v39  ;;  %vm604_vm5 = vweird.f32 %v2024_v5 }
 0x175   :  { %vm654_vm6 = vweird.f32 %v2032_v33  ;;  %v763_v26 = vadd.f32 %v2062_v45, %v727_v47  ;;  %v576_v25 = vsel %vm575_vm4, %v1986_v13, %v572_v2  ;;  %v642_v17 = vmul.f32 %v1995_v8, %v641_v41  ;;  %vm605_vm10 = vmor %vm603_vm2, %vm604_vm5 }
 0x176   :  { %v649_v15 = vmul.f32 %v2032_v33, %v648_v56  ;;  %v689_v57 = vmul.f32 %v576_v25, %v1383_v21  ;;  %v622_v37 = vmul.f32 %v2001_v23, %v621_v29  ;;  %v600_v44 = vmul.f32 0.5, %v599_v52  ;;  %vm655_vm11 = vmor %vm653_vm3, %vm654_vm6 }
 0x177   :  { %v628_v54 = vmul.f32 %v2050_v20, %v1998_v32  ;;  %v795_v60 = vmax.f32 %v763_v26, 0.0  ;;  %v646_v46 = vsel %vm645_vm7, %v1995_v8, %v642_v17  ;;  %vm634_vm9 = vweird.f32 %v2050_v20 }
 0x178   :  { %v650_v21 = vmul.f32 0.5, %v649_v15  ;;  %v2082_v6 = vpop.eup %1014  ;;  %v725_v12 = vmul.f32 %v2043_v61, %v689_v57  ;;  %v696_v55 = vmul.f32 %v646_v46, %v1406_v0  ;;  %v626_v13 = vsel %vm625_vm8, %v2001_v23, %v622_v37 }
 0x179   :  { %v601_v48 = vsub.f32 1.5, %v600_v44  ;;  %827 = vst [vmem:[%s2169_s4 + $0xc0] sm:$0xff] %v795_v60  ;;  %v860_v11 = vadd.f32 1e-07, %v795_v60  ;;  %v694_v16 = vmul.f32 %v626_v13, %v1409_v35  ;;  %v629_v3 = vmul.f32 %v2050_v20, %v628_v54 }
 0x17a   :  { %v651_v36 = vsub.f32 1.5, %v650_v21  ;;  %v761_v1 = vadd.f32 %v2062_v45, %v725_v12  ;;  %v732_v8 = vmul.f32 %v2043_v61, %v696_v55  ;;  %v658_v0 = vmul.f32 %v2082_v6, %v2028_v59 }
 0x17b   :  { %v602_v40 = vmul.f32 %v2024_v5, %v601_v48  ;;  %v893_v4 = vmul.f32 %v1452_v42, %v860_v11  ;;  %v730_v23 = vmul.f32 %v2043_v61, %v694_v16  ;;  %v630_v9 = vmul.f32 0.5, %v629_v3 }
 0x17c   :  { %v652_v35 = vmul.f32 %v2032_v33, %v651_v36  ;;  %v793_v63 = vmax.f32 %v761_v1, 0.0  ;;  %v768_v53 = vadd.f32 %v2062_v45, %v732_v8  ;;  %v659_v43 = vmul.f32 %v2082_v6, %v658_v0 }
 0x17d   :  { %v606_v14 = vsel %vm605_vm10, %v2024_v5, %v602_v40  ;;  %v926_v38 = vmax.f32 %v922_v50, %v893_v4  ;;  %v766_v49 = vadd.f32 %v2062_v45, %v730_v23  ;;  %v631_v10 = vsub.f32 1.5, %v630_v9 }
 0x17e   :  { %v692_v31 = vmul.f32 %v606_v14, %v1401_v24  ;;  %v656_v22 = vsel %vm655_vm11, %v2032_v33, %v652_v35  ;;  %825 = vst [vmem:[%s2169_s4 + $0xb0] sm:$0xff] %v793_v63  ;;  %v858_v51 = vadd.f32 1e-07, %v793_v63  ;;  %v800_v5 = vmax.f32 %v768_v53, 0.0 }
 0x17f   :  { %v697_v58 = vmul.f32 %v656_v22, %v1423_v7  ;;  %v798_v30 = vmax.f32 %v766_v49, 0.0  ;;  %vm633_vm12 = vweird.f32 %v1998_v32  ;;  %v660_v34 = vmul.f32 0.5, %v659_v43 }
 0x180   :  { %v728_v62 = vmul.f32 %v2043_v61, %v692_v31  ;;  %v891_v18 = vmul.f32 %v1452_v42, %v858_v51  ;;  %832 = vst [vmem:[%s2169_s4 + $0xe8] sm:$0xff] %v800_v5  ;;  %v865_v24 = vadd.f32 1e-07, %v800_v5  ;;  %v632_v50 = vmul.f32 %v2050_v20, %v631_v10  ;;  %vm635_vm13 = vmor %vm633_vm12, %vm634_vm9 }
 0x181   :  { %v733_v33 = vmul.f32 %v2043_v61, %v697_v58  ;;  %830 = vst [vmem:[%s2169_s4 + $0xd8] sm:$0xff] %v798_v30  ;;  %v863_v7 = vadd.f32 1e-07, %v798_v30  ;;  %v661_v32 = vsub.f32 1.5, %v660_v34  ;;  %vm664_vm14 = vweird.f32 %v2082_v6 }
 0x182   :  { %v764_v19 = vadd.f32 %v2062_v45, %v728_v62  ;;  %v923_v39 = vmax.f32 %v891_v18, %v926_v38  ;;  %v898_v47 = vmul.f32 %v1452_v42, %v865_v24  ;;  %v636_v41 = vsel %vm635_vm13, %v2050_v20, %v632_v50 }
 0x183   :  { %v769_v2 = vadd.f32 %v2062_v45, %v733_v33  ;;  %v695_v29 = vmul.f32 %v636_v41, %v1419_v27  ;;  %v662_v52 = vmul.f32 %v2082_v6, %v661_v32  ;;  %vm663_vm15 = vweird.f32 %v2028_v59 }
 0x184   :  { %v796_v56 = vmax.f32 %v764_v19, 0.0  ;;  %v927_v26 = vmax.f32 %v923_v39, %v898_v47  ;;  %v896_v25 = vmul.f32 %v1452_v42, %v863_v7  ;;  %vm665_vm0 = vmor %vm663_vm15, %vm664_vm14 }
 0x185   :  { %v801_v17 = vmax.f32 %v769_v2, 0.0  ;;  %v731_v57 = vmul.f32 %v2043_v61, %v695_v29  ;;  %v666_v20 = vsel %vm665_vm0, %v2082_v6, %v662_v52 }
 0x186   :  { %828 = vst [vmem:[%s2169_s4 + $0xc8] sm:$0xff] %v796_v56  ;;  %v861_v15 = vadd.f32 1e-07, %v796_v56  ;;  %v925_v37 = vmax.f32 %v896_v25, %v927_v26  ;;  %v698_v59 = vmul.f32 %v666_v20, %v1431_v28 }
 0x187   :  { %833 = vst [vmem:[%s2169_s4 + $0xf0] sm:$0xff] %v801_v17  ;;  %v866_v27 = vadd.f32 1e-07, %v801_v17  ;;  %v767_v44 = vadd.f32 %v2062_v45, %v731_v57 }
 0x188   :  { %v894_v54 = vmul.f32 %v1452_v42, %v861_v15  ;;  %v734_v46 = vmul.f32 %v2043_v61, %v698_v59 }
 0x189   :  { %v899_v60 = vmul.f32 %v1452_v42, %v866_v27  ;;  %v799_v21 = vmax.f32 %v767_v44, 0.0 }
 0x18a   :  { %v929_v12 = vmax.f32 %v925_v37, %v894_v54  ;;  %v770_v6 = vadd.f32 %v2062_v45, %v734_v46 }
 0x18b   :  { %831 = vst [vmem:[%s2169_s4 + $0xe0] sm:$0xff] %v799_v21  ;;  %v864_v55 = vadd.f32 1e-07, %v799_v21 }
 0x18c   :  { %v928_v13 = vmax.f32 %v899_v60, %v929_v12  ;;  %v802_v48 = vmax.f32 %v770_v6, 0.0 }
 0x18d   :  { %v897_v28 = vmul.f32 %v1452_v42, %v864_v55 }
 0x18e   :  { %834 = vst [vmem:[%s2169_s4 + $0xf8] sm:$0xff] %v802_v48  ;;  %v867_v11 = vadd.f32 1e-07, %v802_v48 }
 0x18f   :  { %v930_v16 = vmax.f32 %v897_v28, %v928_v13 }
 0x190   :  { %v900_v61 = vmul.f32 %v1452_v42, %v867_v11 }
 0x192   :  { %v931_v36 = vmax.f32 %v900_v61, %v930_v16 }
 0x194   :  { %v932_v3 = vrot.slane %v931_v36, 4 }
 0x196   :  { %v933_v45 = vmax.f32 %v931_v36, %v932_v3 }
 0x198   :  { %v934_v1 = vrot.slane %v933_v45, 2 }
 0x19a   :  { %v935_v8 = vmax.f32 %v933_v45, %v934_v1 }
 0x19c   :  { %v936_v40 = vrot.slane %v935_v8, 1 }
 0x19e   :  { %v937_v0 = vmax.f32 %v935_v8, %v936_v40 }
 0x1a0   :  { %938 = vst [vmem:[%s2170_s5] sm:$0x1] %v937_v0 }

// kernel: deeper_gcn_forward.19
= control target key start
LH: loop header
LB: loop body
LE: loop exit
PB: predicated region body
PF: predicated region fallthrough
CT: control target
= control target key end

     0   :  { %v1092_v32 = vmov 128.0   ;;  %s2491_s0 = inlined_call_operand.vmem [shape: f32[256,128], index: 0, kind: input, shape index: {}]   ;;  %s2492_s1 = inlined_call_operand.vmem [shape: f32[1,128], index: 1, kind: input, shape index: {}]   ;;  %s2493_s2 = inlined_call_operand.vmem [shape: f32[1,128], index: 2, kind: input, shape index: {}]   ;;  %s2494_s3 = inlined_call_operand.vmem [shape: f32[128,128], index: 3, kind: input, shape index: {}]   ;;  %s2495_s4 = inlined_call_operand.vmem [shape: f32[1,128], index: 4, kind: input, shape index: {}]   ;;  %s2496_s5 = inlined_call_operand.vmem [shape: f32[256,128], index: 5, kind: output, shape index: {}]  }
   0x1   :  { %v1126_v0 = vld [vmem:[%s2491_s0 + $0x88] sm:$0xff]  ;;  %v1131_v1 = vld [vmem:[%s2491_s0 + $0x80] sm:$0xff]  ;;  %v1162_v6 = vld [vmem:[%s2491_s0 + $0x90] sm:$0xff]  ;;  %1024 = vrcp.f32 %v1092_v32 }
   0x2   :  { %v1136_v2 = vld [vmem:[%s2491_s0] sm:$0xff]  ;;  %86 = vadd.xlane.f32.xlu2 %v1126_v0  ;;  %84 = vadd.xlane.f32.xlu0 %v1131_v1  ;;  %v1144_v3 = vld [vmem:[%s2491_s0 + $0xc8] sm:$0xff]  ;;  %v1180_v9 = vld [vmem:[%s2491_s0 + $0x50] sm:$0xff] }
   0x3   :  { %52 = vadd.xlane.f32.xlu1 %v1136_v2  ;;  %v1149_v4 = vld [vmem:[%s2491_s0 + $0xc0] sm:$0xff]  ;;  %v1167_v7 = vld [vmem:[%s2491_s0 + $0x8] sm:$0xff]  ;;  %v1185_v10 = vld [vmem:[%s2491_s0 + $0xd0] sm:$0xff] }
   0x4   :  { %v1154_v5 = vld [vmem:[%s2491_s0 + $0x40] sm:$0xff]  ;;  %v1172_v8 = vld [vmem:[%s2491_s0 + $0x48] sm:$0xff]  ;;  %v1190_v11 = vld [vmem:[%s2491_s0 + $0x10] sm:$0xff] }
   0x5   :  { %v1198_v12 = vld [vmem:[%s2491_s0 + $0x18] sm:$0xff]  ;;  %v1216_v15 = vld [vmem:[%s2491_s0 + $0xe0] sm:$0xff]  ;;  %v1234_v18 = vld [vmem:[%s2491_s0 + $0xa8] sm:$0xff] }
   0x6   :  { %v1203_v13 = vld [vmem:[%s2491_s0 + $0x98] sm:$0xff]  ;;  %v1226_v17 = vld [vmem:[%s2491_s0 + $0xa0] sm:$0xff]  ;;  %v1252_v21 = vld [vmem:[%s2491_s0 + $0x68] sm:$0xff] }
   0x7   :  { %v1208_v14 = vld [vmem:[%s2491_s0 + $0xd8] sm:$0xff]  ;;  %v1239_v19 = vld [vmem:[%s2491_s0 + $0x20] sm:$0xff]  ;;  %v1257_v22 = vld [vmem:[%s2491_s0 + $0xe8] sm:$0xff]  ;;  %v1025_v33 = vpop.eup %1024 }
   0x8   :  { %v1221_v16 = vld [vmem:[%s2491_s0 + $0x58] sm:$0xff]  ;;  %v1244_v20 = vld [vmem:[%s2491_s0 + $0x60] sm:$0xff]  ;;  %v1262_v23 = vld [vmem:[%s2491_s0 + $0x28] sm:$0xff]  ;;  %v117_v34 = vmul.f32 128.0, %v1025_v33  ;;  %vm121_vm0 = vweird.f32 %v1025_v33 }
   0x9   :  { %v1270_v24 = vld [vmem:[%s2491_s0 + $0xb0] sm:$0xff]  ;;  %v1288_v27 = vld [vmem:[%s2491_s0 + $0xf8] sm:$0xff] }
   0xa   :  { %102 = vadd.xlane.f32.xlu2 %v1144_v3  ;;  %100 = vadd.xlane.f32.xlu0 %v1149_v4  ;;  %v1275_v25 = vld [vmem:[%s2491_s0 + $0xf0] sm:$0xff]  ;;  %v1298_v29 = vld [vmem:[%s2491_s0 + $0xb8] sm:$0xff]  ;;  %v118_v35 = vsub.f32 1.0, %v117_v34 }
   0xb   :  { %68 = vadd.xlane.f32.xlu1 %v1154_v5  ;;  %v1280_v26 = vld [vmem:[%s2491_s0 + $0x70] sm:$0xff]  ;;  %v1306_v30 = vld [vmem:[%s2491_s0 + $0x38] sm:$0xff] }
   0xc   :  { %v1293_v28 = vld [vmem:[%s2491_s0 + $0x30] sm:$0xff]  ;;  %v1311_v31 = vld [vmem:[%s2491_s0 + $0x78] sm:$0xff]  ;;  %v119_v36 = vmul.f32 %v1025_v33, %v118_v35 }
   0xe   :  { %v120_v37 = vadd.f32 %v1025_v33, %v119_v36 }
  0x10   :  { %v1315_v38 = vsel %vm121_vm0, %v1025_v33, %v120_v37 }
  0x12   :  { %88 = vadd.xlane.f32.xlu2 %v1162_v6  ;;  %54 = vadd.xlane.f32.xlu0 %v1167_v7 }
  0x13   :  { %70 = vadd.xlane.f32.xlu1 %v1172_v8 }
  0x1a   :  { %72 = vadd.xlane.f32.xlu2 %v1180_v9  ;;  %104 = vadd.xlane.f32.xlu0 %v1185_v10 }
  0x1b   :  { %56 = vadd.xlane.f32.xlu1 %v1190_v11 }
  0x22   :  { %58 = vadd.xlane.f32.xlu2 %v1198_v12  ;;  %90 = vadd.xlane.f32.xlu0 %v1203_v13 }
  0x23   :  { %106 = vadd.xlane.f32.xlu1 %v1208_v14 }
  0x2a   :  { %108 = vadd.xlane.f32.xlu2 %v1216_v15  ;;  %74 = vadd.xlane.f32.xlu0 %v1221_v16 }
  0x2b   :  { %92 = vadd.xlane.f32.xlu1 %v1226_v17 }
  0x32   :  { %94 = vadd.xlane.f32.xlu2 %v1234_v18  ;;  %60 = vadd.xlane.f32.xlu0 %v1239_v19 }
  0x33   :  { %76 = vadd.xlane.f32.xlu1 %v1244_v20 }
  0x3a   :  { %78 = vadd.xlane.f32.xlu2 %v1252_v21  ;;  %110 = vadd.xlane.f32.xlu0 %v1257_v22 }
  0x3b   :  { %62 = vadd.xlane.f32.xlu1 %v1262_v23 }
  0x42   :  { %96 = vadd.xlane.f32.xlu2 %v1270_v24  ;;  %112 = vadd.xlane.f32.xlu0 %v1275_v25 }
  0x43   :  { %80 = vadd.xlane.f32.xlu1 %v1280_v26 }
  0x4a   :  { %114 = vadd.xlane.f32.xlu2 %v1288_v27  ;;  %64 = vadd.xlane.f32.xlu0 %v1293_v28 }
  0x4b   :  { %98 = vadd.xlane.f32.xlu1 %v1298_v29 }
  0x52   :  { %66 = vadd.xlane.f32.xlu2 %v1306_v30  ;;  %82 = vadd.xlane.f32.xlu0 %v1311_v31 }
  0x75   :  { %v87_v39 = vpop.xlane.xlu2 %86  ;;  %v85_v40 = vpop.xlane.xlu0 %84 }
  0x76   :  { %v139_v41 = vmul.f32 %v1315_v38, %v85_v40  ;;  %v53_v42 = vpop.xlane.xlu1 %52  ;;  %v140_v57 = vmul.f32 %v1315_v38, %v87_v39 }
  0x77   :  { %v123_v54 = vmul.f32 %v1315_v38, %v53_v42 }
  0x78   :  { %v1319_v43 = vsub.f32 %v1131_v1, %v139_v41  ;;  %v1348_v1 = vsub.f32 %v1126_v0, %v140_v57 }
  0x79   :  { %v1344_v61 = vsub.f32 %v1136_v2, %v123_v54 }
  0x7a   :  { %v203_v44 = vmul.f32 %v1319_v43, %v1319_v43  ;;  %v204_v2 = vmul.f32 %v1348_v1, %v1348_v1 }
  0x7b   :  { %v187_v32 = vmul.f32 %v1344_v61, %v1344_v61 }
  0x7c   :  { %251 = vadd.xlane.f32.xlu0 %v203_v44 }
  0x7d   :  { %v103_v45 = vpop.xlane.xlu2 %102  ;;  %v101_v46 = vpop.xlane.xlu0 %100 }
  0x7e   :  { %v148_v47 = vmul.f32 %v1315_v38, %v103_v45  ;;  %v147_v48 = vmul.f32 %v1315_v38, %v101_v46  ;;  %v69_v49 = vpop.xlane.xlu1 %68 }
  0x7f   :  { %v131_v50 = vmul.f32 %v1315_v38, %v69_v49 }
  0x80   :  { %v1327_v51 = vsub.f32 %v1144_v3, %v148_v47  ;;  %v1330_v52 = vsub.f32 %v1149_v4, %v147_v48 }
  0x81   :  { %v1333_v53 = vsub.f32 %v1154_v5, %v131_v50 }
  0x82   :  { %v212_v55 = vmul.f32 %v1327_v51, %v1327_v51  ;;  %v211_v56 = vmul.f32 %v1330_v52, %v1330_v52 }
  0x83   :  { %v195_v58 = vmul.f32 %v1333_v53, %v1333_v53 }
  0x84   :  { %269 = vadd.xlane.f32.xlu0 %v212_v55  ;;  %267 = vadd.xlane.f32.xlu1 %v211_v56 }
  0x85   :  { %235 = vadd.xlane.f32.xlu2 %v195_v58  ;;  %v89_v59 = vpop.xlane.xlu2 %88  ;;  %v55_v60 = vpop.xlane.xlu0 %54 }
  0x86   :  { %v124_v62 = vmul.f32 %v1315_v38, %v55_v60  ;;  %v71_v63 = vpop.xlane.xlu1 %70 }
  0x87   :  { %v132_v4 = vmul.f32 %v1315_v38, %v71_v63 }
  0x88   :  { %v1351_v3 = vsub.f32 %v1167_v7, %v124_v62 }
  0x89   :  { %v1361_v33 = vsub.f32 %v1172_v8, %v132_v4  ;;  %v141_v8 = vmul.f32 %v1315_v38, %v89_v59 }
  0x8a   :  { %v188_v5 = vmul.f32 %v1351_v3, %v1351_v3 }
  0x8b   :  { %v196_v39 = vmul.f32 %v1361_v33, %v1361_v33  ;;  %v1379_v45 = vsub.f32 %v1162_v6, %v141_v8 }
  0x8c   :  { %221 = vadd.xlane.f32.xlu0 %v188_v5  ;;  %219 = vadd.xlane.f32.xlu1 %v187_v32 }
  0x8d   :  { %253 = vadd.xlane.f32.xlu2 %v204_v2  ;;  %v73_v0 = vpop.xlane.xlu2 %72  ;;  %v105_v7 = vpop.xlane.xlu0 %104  ;;  %v205_v6 = vmul.f32 %v1379_v45, %v1379_v45 }
  0x8e   :  { %v149_v34 = vmul.f32 %v1315_v38, %v105_v7  ;;  %v57_v35 = vpop.xlane.xlu1 %56  ;;  %v133_v50 = vmul.f32 %v1315_v38, %v73_v0 }
  0x8f   :  { %v125_v36 = vmul.f32 %v1315_v38, %v57_v35 }
  0x90   :  { %v1366_v37 = vsub.f32 %v1185_v10, %v149_v34  ;;  %v1397_v57 = vsub.f32 %v1180_v9, %v133_v50 }
  0x91   :  { %v1371_v40 = vsub.f32 %v1190_v11, %v125_v36 }
  0x92   :  { %v213_v41 = vmul.f32 %v1366_v37, %v1366_v37  ;;  %v197_v9 = vmul.f32 %v1397_v57, %v1397_v57 }
  0x93   :  { %v189_v42 = vmul.f32 %v1371_v40, %v1371_v40 }
  0x94   :  { %237 = vadd.xlane.f32.xlu1 %v196_v39 }
  0x95   :  { %271 = vadd.xlane.f32.xlu2 %v213_v41  ;;  %223 = vadd.xlane.f32.xlu0 %v189_v42  ;;  %v59_v44 = vpop.xlane.xlu2 %58  ;;  %v91_v10 = vpop.xlane.xlu0 %90 }
  0x96   :  { %v142_v46 = vmul.f32 %v1315_v38, %v91_v10  ;;  %v107_v11 = vpop.xlane.xlu1 %106  ;;  %v126_v63 = vmul.f32 %v1315_v38, %v59_v44 }
  0x97   :  { %v150_v47 = vmul.f32 %v1315_v38, %v107_v11 }
  0x98   :  { %v1384_v48 = vsub.f32 %v1203_v13, %v142_v46  ;;  %v1415_v2 = vsub.f32 %v1198_v12, %v126_v63 }
  0x99   :  { %v1387_v49 = vsub.f32 %v1208_v14, %v150_v47 }
  0x9a   :  { %v206_v54 = vmul.f32 %v1384_v48, %v1384_v48  ;;  %v190_v12 = vmul.f32 %v1415_v2, %v1415_v2 }
  0x9b   :  { %v214_v55 = vmul.f32 %v1387_v49, %v1387_v49 }
  0x9c   :  { %255 = vadd.xlane.f32.xlu1 %v205_v6 }
  0x9d   :  { %257 = vadd.xlane.f32.xlu2 %v206_v54  ;;  %273 = vadd.xlane.f32.xlu0 %v214_v55  ;;  %v109_v56 = vpop.xlane.xlu2 %108  ;;  %v75_v13 = vpop.xlane.xlu0 %74 }
  0x9e   :  { %v134_v14 = vmul.f32 %v1315_v38, %v75_v13  ;;  %v93_v58 = vpop.xlane.xlu1 %92  ;;  %v151_v36 = vmul.f32 %v1315_v38, %v109_v56 }
  0x9f   :  { %v143_v59 = vmul.f32 %v1315_v38, %v93_v58 }
  0xa0   :  { %v1402_v60 = vsub.f32 %v1221_v16, %v134_v14  ;;  %v1433_v42 = vsub.f32 %v1216_v15, %v151_v36 }
  0xa1   :  { %v1405_v62 = vsub.f32 %v1226_v17, %v143_v59 }
  0xa2   :  { %v198_v4 = vmul.f32 %v1402_v60, %v1402_v60  ;;  %v215_v15 = vmul.f32 %v1433_v42, %v1433_v42 }
  0xa3   :  { %v207_v5 = vmul.f32 %v1405_v62, %v1405_v62 }
  0xa4   :  { %239 = vadd.xlane.f32.xlu1 %v197_v9 }
  0xa5   :  { %241 = vadd.xlane.f32.xlu2 %v198_v4  ;;  %259 = vadd.xlane.f32.xlu0 %v207_v5  ;;  %v95_v32 = vpop.xlane.xlu2 %94  ;;  %v61_v16 = vpop.xlane.xlu0 %60 }
  0xa6   :  { %v127_v17 = vmul.f32 %v1315_v38, %v61_v16  ;;  %v77_v0 = vpop.xlane.xlu1 %76  ;;  %v144_v47 = vmul.f32 %v1315_v38, %v95_v32 }
  0xa7   :  { %v135_v7 = vmul.f32 %v1315_v38, %v77_v0 }
  0xa8   :  { %v1420_v34 = vsub.f32 %v1239_v19, %v127_v17  ;;  %v1454_v55 = vsub.f32 %v1234_v18, %v144_v47 }
  0xa9   :  { %v1423_v35 = vsub.f32 %v1244_v20, %v135_v7 }
  0xaa   :  { %v191_v39 = vmul.f32 %v1420_v34, %v1420_v34  ;;  %v208_v9 = vmul.f32 %v1454_v55, %v1454_v55 }
  0xab   :  { %v199_v8 = vmul.f32 %v1423_v35, %v1423_v35 }
  0xac   :  { %225 = vadd.xlane.f32.xlu1 %v190_v12 }
  0xad   :  { %227 = vadd.xlane.f32.xlu2 %v191_v39  ;;  %243 = vadd.xlane.f32.xlu0 %v199_v8  ;;  %v79_v41 = vpop.xlane.xlu2 %78  ;;  %v111_v19 = vpop.xlane.xlu0 %110 }
  0xae   :  { %v152_v20 = vmul.f32 %v1315_v38, %v111_v19  ;;  %v63_v44 = vpop.xlane.xlu1 %62  ;;  %v136_v18 = vmul.f32 %v1315_v38, %v79_v41 }
  0xaf   :  { %v128_v10 = vmul.f32 %v1315_v38, %v63_v44 }
  0xb0   :  { %v1438_v46 = vsub.f32 %v1257_v22, %v152_v20  ;;  %v818_v22 = vld [vmem:[%s2494_s3 + $0x78] sm:$0xff]  ;;  %v1476_v16 = vsub.f32 %v1252_v21, %v136_v18  ;;  %v807_v18 = vld [vmem:[%s2494_s3 + $0x20] sm:$0xff] }
  0xb1   :  { %v1441_v11 = vsub.f32 %v1262_v23, %v128_v10  ;;  %973 = vmatpush.msra.mxu2 %v818_v22  ;;  %972 = vmatpush.msra.mxu1 %v818_v22 }
  0xb2   :  { %v216_v50 = vmul.f32 %v1438_v46, %v1438_v46  ;;  %974 = vmatpush.msra.mxu3 %v818_v22  ;;  %823 = vmatpush.msra.mxu0 %v818_v22  ;;  %v814_v22 = vld [vmem:[%s2494_s3 + $0x58] sm:$0xff] }
  0xb3   :  { %v192_v54 = vmul.f32 %v1441_v11, %v1441_v11 }
  0xb4   :  { %275 = vadd.xlane.f32.xlu1 %v215_v15 }
  0xb5   :  { %277 = vadd.xlane.f32.xlu2 %v216_v50  ;;  %229 = vadd.xlane.f32.xlu0 %v192_v54  ;;  %v97_v23 = vpop.xlane.xlu2 %96  ;;  %v113_v6 = vpop.xlane.xlu0 %112  ;;  %v816_v54 = vld [vmem:[%s2494_s3 + $0x68] sm:$0xff] }
  0xb6   :  { %v145_v56 = vmul.f32 %v1315_v38, %v97_v23  ;;  %v153_v13 = vmul.f32 %v1315_v38, %v113_v6  ;;  %v81_v14 = vpop.xlane.xlu1 %80  ;;  %v813_v23 = vld [vmem:[%s2494_s3 + $0x50] sm:$0xff]  ;;  %v812_v6 = vld [vmem:[%s2494_s3 + $0x48] sm:$0xff] }
  0xb7   :  { %v137_v63 = vmul.f32 %v1315_v38, %v81_v14  ;;  %v809_v14 = vld [vmem:[%s2494_s3 + $0x30] sm:$0xff] }
  0xb8   :  { %v1459_v58 = vsub.f32 %v1270_v24, %v145_v56  ;;  %v1462_v59 = vsub.f32 %v1275_v25, %v153_v13  ;;  %v811_v56 = vld [vmem:[%s2494_s3 + $0x40] sm:$0xff]  ;;  %v810_v13 = vld [vmem:[%s2494_s3 + $0x38] sm:$0xff] }
  0xb9   :  { %v1473_v24 = vsub.f32 %v1280_v26, %v137_v63  ;;  %v200_v26 = vmul.f32 %v1476_v16, %v1476_v16  ;;  %v808_v63 = vld [vmem:[%s2494_s3 + $0x28] sm:$0xff] }
  0xba   :  { %v209_v4 = vmul.f32 %v1459_v58, %v1459_v58  ;;  %v217_v5 = vmul.f32 %v1462_v59, %v1462_v59 }
  0xbb   :  { %2503 = vst [vmem:[#allocation2_spill] sm:$0xff] %v1473_v24  ;;  %v201_v39 = vmul.f32 %v1473_v24, %v1473_v24 }
  0xbc   :  { %261 = vadd.xlane.f32.xlu1 %v208_v9  ;;  %v805_v9 = vld [vmem:[%s2494_s3 + $0x10] sm:$0xff] }
  0xbd   :  { %263 = vadd.xlane.f32.xlu2 %v209_v4  ;;  %279 = vadd.xlane.f32.xlu0 %v217_v5  ;;  %v115_v25 = vpop.xlane.xlu2 %114  ;;  %v65_v32 = vpop.xlane.xlu0 %64  ;;  %v806_v4 = vld [vmem:[%s2494_s3 + $0x18] sm:$0xff]  ;;  %v804_v5 = vld [vmem:[%s2494_s3 + $0x8] sm:$0xff] }
  0xbe   :  { %v99_v17 = vpop.xlane.xlu1 %98  ;;  %v129_v7 = vmul.f32 %v1315_v38, %v65_v32 }
  0xbf   :  { %v146_v0 = vmul.f32 %v1315_v38, %v99_v17  ;;  %v803_v17 = vld [vmem:[%s2494_s3] sm:$0xff] }
  0xc0   :  { %v1490_v21 = vsub.f32 %v1293_v28, %v129_v7  ;;  %v154_v28 = vmul.f32 %v1315_v38, %v115_v25 }
  0xc1   :  { %v1481_v36 = vsub.f32 %v1298_v29, %v146_v0 }
  0xc2   :  { %2505 = vst [vmem:[#allocation4_spill] sm:$0xff] %v1490_v21  ;;  %v193_v10 = vmul.f32 %v1490_v21, %v1490_v21 }
  0xc3   :  { %2504 = vst [vmem:[#allocation3_spill] sm:$0xff] %v1481_v36  ;;  %v210_v12 = vmul.f32 %v1481_v36, %v1481_v36 }
  0xc4   :  { %245 = vadd.xlane.f32.xlu1 %v200_v26 }
  0xc5   :  { %247 = vadd.xlane.f32.xlu2 %v201_v39  ;;  %265 = vadd.xlane.f32.xlu0 %v210_v12  ;;  %v67_v8 = vpop.xlane.xlu2 %66  ;;  %v83_v41 = vpop.xlane.xlu0 %82 }
  0xc6   :  { %v130_v29 = vmul.f32 %v1315_v38, %v67_v8  ;;  %v138_v19 = vmul.f32 %v1315_v38, %v83_v41 }
  0xc8   :  { %v1495_v20 = vsub.f32 %v1306_v30, %v130_v29  ;;  %v1498_v44 = vsub.f32 %v1311_v31, %v138_v19  ;;  %v1508_v30 = vsub.f32 %v1288_v27, %v154_v28  ;;  %v817_v31 = vld [vmem:[%s2494_s3 + $0x70] sm:$0xff]  ;;  %v815_v27 = vld [vmem:[%s2494_s3 + $0x60] sm:$0xff] }
  0xc9   :  { %976 = vmatpush.msra.mxu2 %v817_v31  ;;  %975 = vmatpush.msra.mxu1 %v817_v31 }
  0xca   :  { %2506 = vst [vmem:[#allocation5_spill] sm:$0xff] %v1495_v20  ;;  %v194_v47 = vmul.f32 %v1495_v20, %v1495_v20  ;;  %v202_v50 = vmul.f32 %v1498_v44, %v1498_v44  ;;  %v218_v15 = vmul.f32 %v1508_v30, %v1508_v30  ;;  %977 = vmatpush.msra.mxu3 %v817_v31 }
  0xcb   :  { %2507 = vst [vmem:[#allocation6_spill] sm:$0xff] %v1498_v44  ;;  %824 = vmatpush.msra.mxu0 %v817_v31  ;;  %979 = vmatpush.msra.mxu2 %v816_v54 }
  0xcc   :  { %231 = vadd.xlane.f32.xlu1 %v193_v10  ;;  %2508 = vst [vmem:[#allocation7_spill] sm:$0xff] %v1508_v30  ;;  %978 = vmatpush.msra.mxu1 %v816_v54 }
  0xcd   :  { %233 = vadd.xlane.f32.xlu2 %v194_v47  ;;  %249 = vadd.xlane.f32.xlu0 %v202_v50 }
  0xce   :  { %980 = vmatpush.msra.mxu3 %v816_v54  ;;  %982 = vmatpush.msra.mxu2 %v815_v27 }
  0xcf   :  { %825 = vmatpush.msra.mxu0 %v816_v54  ;;  %981 = vmatpush.msra.mxu1 %v815_v27 }
  0xd0   :  { %983 = vmatpush.msra.mxu3 %v815_v27  ;;  %985 = vmatpush.msra.mxu2 %v814_v22 }
  0xd1   :  { %826 = vmatpush.msra.mxu0 %v815_v27  ;;  %984 = vmatpush.msra.mxu1 %v814_v22 }
  0xd2   :  { %986 = vmatpush.msra.mxu3 %v814_v22  ;;  %988 = vmatpush.msra.mxu2 %v813_v23 }
  0xd3   :  { %827 = vmatpush.msra.mxu0 %v814_v22  ;;  %987 = vmatpush.msra.mxu1 %v813_v23 }
  0xd4   :  { %281 = vadd.xlane.f32.xlu1 %v218_v15  ;;  %989 = vmatpush.msra.mxu3 %v813_v23 }
  0xd5   :  { %828 = vmatpush.msra.mxu0 %v813_v23  ;;  %991 = vmatpush.msra.mxu2 %v812_v6 }
  0xd6   :  { %990 = vmatpush.msra.mxu1 %v812_v6  ;;  %992 = vmatpush.msra.mxu3 %v812_v6 }
  0xd7   :  { %829 = vmatpush.msra.mxu0 %v812_v6  ;;  %994 = vmatpush.msra.mxu2 %v811_v56 }
  0xd8   :  { %993 = vmatpush.msra.mxu1 %v811_v56  ;;  %995 = vmatpush.msra.mxu3 %v811_v56 }
  0xd9   :  { %830 = vmatpush.msra.mxu0 %v811_v56  ;;  %997 = vmatpush.msra.mxu2 %v810_v13 }
  0xda   :  { %996 = vmatpush.msra.mxu1 %v810_v13  ;;  %998 = vmatpush.msra.mxu3 %v810_v13 }
  0xdb   :  { %831 = vmatpush.msra.mxu0 %v810_v13  ;;  %1000 = vmatpush.msra.mxu2 %v809_v14 }
  0xdc   :  { %999 = vmatpush.msra.mxu1 %v809_v14  ;;  %1001 = vmatpush.msra.mxu3 %v809_v14 }
  0xdd   :  { %832 = vmatpush.msra.mxu0 %v809_v14  ;;  %1003 = vmatpush.msra.mxu2 %v808_v63 }
  0xde   :  { %1002 = vmatpush.msra.mxu1 %v808_v63  ;;  %1004 = vmatpush.msra.mxu3 %v808_v63 }
  0xdf   :  { %833 = vmatpush.msra.mxu0 %v808_v63  ;;  %1006 = vmatpush.msra.mxu2 %v807_v18 }
  0xe0   :  { %1005 = vmatpush.msra.mxu1 %v807_v18  ;;  %1007 = vmatpush.msra.mxu3 %v807_v18 }
  0xe1   :  { %834 = vmatpush.msra.mxu0 %v807_v18  ;;  %1009 = vmatpush.msra.mxu2 %v806_v4 }
  0xe2   :  { %1008 = vmatpush.msra.mxu1 %v806_v4  ;;  %1010 = vmatpush.msra.mxu3 %v806_v4 }
  0xe3   :  { %835 = vmatpush.msra.mxu0 %v806_v4  ;;  %1012 = vmatpush.msra.mxu2 %v805_v9 }
  0xe4   :  { %1011 = vmatpush.msra.mxu1 %v805_v9  ;;  %1013 = vmatpush.msra.mxu3 %v805_v9 }
  0xe5   :  { %836 = vmatpush.msra.mxu0 %v805_v9  ;;  %1015 = vmatpush.msra.mxu2 %v804_v5 }
  0xe6   :  { %1014 = vmatpush.msra.mxu1 %v804_v5  ;;  %1016 = vmatpush.msra.mxu3 %v804_v5 }
  0xe7   :  { %837 = vmatpush.msra.mxu0 %v804_v5  ;;  %1018 = vmatpush.msra.mxu2 %v803_v17 }
  0xe8   :  { %1017 = vmatpush.msra.mxu1 %v803_v17  ;;  %1019 = vmatpush.msra.mxu3 %v803_v17 }
  0xe9   :  { %838 = vmatpush.msra.mxu0 %v803_v17 }
  0xef   :  { %v252_v25 = vpop.xlane.xlu0 %251 }
  0xf0   :  { %v299_v32 = vmul.f32 %v252_v25, %v1315_v38 }
  0xf2   :  { %v331_v0 = vadd.f32 1e-05, %v299_v32 }
  0xf4   :  { %1026 = vrsqrt.f32 %v331_v0  ;;  %vm513_vm2 = vweird.f32 %v331_v0 }
  0xf7   :  { %v270_v7 = vpop.xlane.xlu0 %269  ;;  %v268_v39 = vpop.xlane.xlu1 %267 }
  0xf8   :  { %v236_v26 = vpop.xlane.xlu2 %235  ;;  %v307_v12 = vmul.f32 %v268_v39, %v1315_v38  ;;  %v308_v28 = vmul.f32 %v270_v7, %v1315_v38 }
  0xf9   :  { %v291_v8 = vmul.f32 %v236_v26, %v1315_v38 }
  0xfa   :  { %v1027_v41 = vpop.eup %1026  ;;  %v1560_v29 = vadd.f32 1e-05, %v307_v12  ;;  %v1567_v54 = vadd.f32 1e-05, %v308_v28  ;;  %v1596_v28 = vld [vmem:[%s2492_s1] ss:$0 sm:$0xff] }
  0xfb   :  { %v508_v19 = vmul.f32 %v1027_v41, %v331_v0  ;;  %v1562_v10 = vadd.f32 1e-05, %v291_v8  ;;  %vm514_vm1 = vweird.f32 %v1027_v41 }
  0xfc   :  { %vm515_vm3 = vmor %vm513_vm2, %vm514_vm1  ;;  %vm593_vm8 = vweird.f32 %v1560_v29  ;;  %vm603_vm10 = vweird.f32 %v1567_v54 }
  0xfd   :  { %v509_v47 = vmul.f32 %v1027_v41, %v508_v19  ;;  %1028 = vrsqrt.f32 %v1562_v10  ;;  %vm433_vm4 = vweird.f32 %v1562_v10 }
  0xfe   :  { %1030 = vrsqrt.f32 %v1560_v29 }
  0xff   :  { %v510_v50 = vmul.f32 0.5, %v509_v47  ;;  %v222_v31 = vpop.xlane.xlu0 %221  ;;  %v220_v15 = vpop.xlane.xlu1 %219  ;;  %1032 = vrsqrt.f32 %v1567_v54 }
 0x100   :  { %v254_v27 = vpop.xlane.xlu2 %253  ;;  %v283_v22 = vmul.f32 %v220_v15, %v1315_v38  ;;  %v284_v56 = vmul.f32 %v222_v31, %v1315_v38 }
 0x101   :  { %v511_v23 = vsub.f32 1.5, %v510_v50  ;;  %v300_v6 = vmul.f32 %v254_v27, %v1315_v38 }
 0x102   :  { %v1572_v13 = vadd.f32 1e-05, %v283_v22  ;;  %v1586_v32 = vadd.f32 1e-05, %v284_v56 }
 0x103   :  { %v1574_v14 = vpop.eup %1028  ;;  %v512_v63 = vmul.f32 %v1027_v41, %v511_v23  ;;  %v1576_v18 = vadd.f32 1e-05, %v300_v6  ;;  %v1613_v6 = vld [vmem:[%s2493_s2] ss:$0 sm:$0xff] }
 0x104   :  { %v1578_v4 = vpop.eup %1030  ;;  %v428_v9 = vmul.f32 %v1574_v14, %v1562_v10  ;;  %1034 = vrsqrt.f32 %v1572_v13  ;;  %vm434_vm5 = vweird.f32 %v1574_v14  ;;  %vm353_vm13 = vweird.f32 %v1572_v13 }
 0x105   :  { %v588_v5 = vmul.f32 %v1578_v4, %v1560_v29  ;;  %1036 = vrsqrt.f32 %v1576_v18  ;;  %v516_v39 = vsel %vm515_vm3, %v1027_v41, %v512_v63  ;;  %v1599_v50 = vpop.eup %1032  ;;  %vm435_vm6 = vmor %vm433_vm4, %vm434_vm5  ;;  %vm594_vm7 = vweird.f32 %v1578_v4 }
 0x106   :  { %v429_v25 = vmul.f32 %v1574_v14, %v428_v9  ;;  %v683_v19 = vmul.f32 %v516_v39, %v1319_v43  ;;  %1038 = vrsqrt.f32 %v1586_v32  ;;  %v598_v63 = vmul.f32 %v1599_v50, %v1567_v54  ;;  %vm1649_vm9 = vmor %vm593_vm8, %vm594_vm7 }
 0x107   :  { %v589_v17 = vmul.f32 %v1578_v4, %v588_v5  ;;  %v238_v7 = vpop.xlane.xlu1 %237  ;;  %vm604_vm12 = vweird.f32 %v1599_v50  ;;  %vm363_vm14 = vweird.f32 %v1586_v32  ;;  %vm523_vm3 = vweird.f32 %v1576_v18 }
 0x108   :  { %v430_v26 = vmul.f32 0.5, %v429_v25  ;;  %v272_v12 = vpop.xlane.xlu2 %271  ;;  %v224_v8 = vpop.xlane.xlu0 %223  ;;  %v292_v0 = vmul.f32 %v238_v7, %v1315_v38  ;;  %v719_v23 = vmul.f32 %v1596_v28, %v683_v19  ;;  %v599_v19 = vmul.f32 %v1599_v50, %v598_v63  ;;  %vm1705_vm1 = vmor %vm603_vm10, %vm604_vm12 }
 0x109   :  { %v309_v47 = vmul.f32 %v272_v12, %v1315_v38  ;;  %v590_v15 = vmul.f32 0.5, %v589_v17  ;;  %v285_v41 = vmul.f32 %v224_v8, %v1315_v38 }
 0x10a   :  { %v431_v31 = vsub.f32 1.5, %v430_v26  ;;  %v1603_v27 = vpop.eup %1034  ;;  %v1607_v43 = vadd.f32 1e-05, %v292_v0  ;;  %v755_v12 = vadd.f32 %v1613_v6, %v719_v23  ;;  %v600_v44 = vmul.f32 0.5, %v599_v19 }
 0x10b   :  { %v1605_v22 = vadd.f32 1e-05, %v309_v47  ;;  %v1615_v56 = vpop.eup %1036  ;;  %v348_v9 = vmul.f32 %v1603_v27, %v1572_v13  ;;  %v591_v25 = vsub.f32 1.5, %v590_v15  ;;  %v1625_v17 = vadd.f32 1e-05, %v285_v41 }
 0x10c   :  { %v432_v5 = vmul.f32 %v1574_v14, %v431_v31  ;;  %v1627_v39 = vpop.eup %1038  ;;  %v518_v26 = vmul.f32 %v1615_v56, %v1576_v18  ;;  %v787_v15 = vmax.f32 %v755_v12, 0.0  ;;  %vm354_vm11 = vweird.f32 %v1603_v27 }
 0x10d   :  { %1040 = vrsqrt.f32 %v1605_v22  ;;  %v349_v47 = vmul.f32 %v1603_v27, %v348_v9  ;;  %v592_v31 = vmul.f32 %v1578_v4, %v591_v25  ;;  %v358_v23 = vmul.f32 %v1627_v39, %v1586_v32  ;;  %vm355_vm0 = vmor %vm353_vm13, %vm354_vm11 }
 0x10e   :  { %1042 = vrsqrt.f32 %v1607_v43  ;;  %v436_v41 = vsel %vm435_vm6, %v1574_v14, %v432_v5  ;;  %v519_v10 = vmul.f32 %v1615_v56, %v518_v26  ;;  %887 = vmatmul.f32.vlgmr.msra.gmra.mxu2 %v787_v15  ;;  %vm524_vm15 = vweird.f32 %v1615_v56 }
 0x10f   :  { %v256_v7 = vpop.xlane.xlu1 %255  ;;  %1044 = vrsqrt.f32 %v1625_v17  ;;  %v675_v9 = vmul.f32 %v436_v41, %v1333_v53  ;;  %v350_v12 = vmul.f32 0.5, %v349_v47  ;;  %v596_v29 = vsel %vm1649_vm9, %v1578_v4, %v592_v31  ;;  %vm1726_vm5 = vmor %vm523_vm3, %vm524_vm15 }
 0x110   :  { %v258_v8 = vpop.xlane.xlu2 %257  ;;  %v274_v0 = vpop.xlane.xlu0 %273  ;;  %v301_v63 = vmul.f32 %v256_v7, %v1315_v38  ;;  %v359_v7 = vmul.f32 %v1627_v39, %v358_v23  ;;  %v520_v47 = vmul.f32 0.5, %v519_v10  ;;  %v691_v4 = vmul.f32 %v596_v29, %v1330_v52 }
 0x111   :  { %v302_v14 = vmul.f32 %v258_v8, %v1315_v38  ;;  %v310_v20 = vmul.f32 %v274_v0, %v1315_v38  ;;  %v711_v19 = vmul.f32 %v1596_v28, %v675_v9  ;;  %v351_v15 = vsub.f32 1.5, %v350_v12 }
 0x112   :  { %v1666_v8 = vadd.f32 1e-05, %v301_v63  ;;  %v601_v23 = vsub.f32 1.5, %v600_v44  ;;  %v360_v21 = vmul.f32 0.5, %v359_v7  ;;  %v521_v24 = vsub.f32 1.5, %v520_v47 }
 0x113   :  { %v1643_v30 = vpop.eup %1040  ;;  %v1671_v41 = vadd.f32 1e-05, %v302_v14  ;;  %v1675_v25 = vadd.f32 1e-05, %v310_v20  ;;  %v747_v10 = vadd.f32 %v1613_v6, %v711_v19  ;;  %v727_v14 = vmul.f32 %v1596_v28, %v691_v4 }
 0x114   :  { %v1654_v5 = vpop.eup %1042  ;;  %v608_v53 = vmul.f32 %v1643_v30, %v1605_v22  ;;  %1046 = vrsqrt.f32 %v1666_v8  ;;  %v352_v20 = vmul.f32 %v1603_v27, %v351_v15  ;;  %v602_v47 = vmul.f32 %v1599_v50, %v601_v23 }
 0x115   :  { %v1663_v26 = vpop.eup %1044  ;;  %v438_v0 = vmul.f32 %v1654_v5, %v1607_v43  ;;  %v779_v52 = vmax.f32 %v747_v10, 0.0  ;;  %1048 = vrsqrt.f32 %v1671_v41  ;;  %v361_v19 = vsub.f32 1.5, %v360_v21 }
 0x116   :  { %v609_v9 = vmul.f32 %v1643_v30, %v608_v53  ;;  %v368_v12 = vmul.f32 %v1663_v26, %v1625_v17  ;;  %1050 = vrsqrt.f32 %v1675_v25  ;;  %v763_v53 = vadd.f32 %v1613_v6, %v727_v14 }
 0x117   :  { %v240_v36 = vpop.xlane.xlu1 %239  ;;  %v439_v29 = vmul.f32 %v1654_v5, %v438_v0  ;;  %863 = vmatmul.f32.vlgmr.msra.gmra.mxu1 %v779_v52  ;;  %v522_v0 = vmul.f32 %v1615_v56, %v521_v24  ;;  %v356_v10 = vsel %vm355_vm0, %v1603_v27, %v352_v20  ;;  %vm364_vm2 = vweird.f32 %v1627_v39 }
 0x118   :  { %v242_v31 = vpop.xlane.xlu2 %241  ;;  %v260_v63 = vpop.xlane.xlu0 %259  ;;  %v293_v7 = vmul.f32 %v240_v36, %v1315_v38  ;;  %v610_v4 = vmul.f32 0.5, %v609_v9  ;;  %v369_v15 = vmul.f32 %v1663_v26, %v368_v12  ;;  %v795_v36 = vmax.f32 %v763_v53, 0.0  ;;  %vm1776_vm9 = vmor %vm363_vm14, %vm364_vm2 }
 0x119   :  { %v294_v44 = vmul.f32 %v242_v31, %v1315_v38  ;;  %v440_v31 = vmul.f32 0.5, %v439_v29  ;;  %v303_v23 = vmul.f32 %v260_v63, %v1315_v38  ;;  %vm613_vm4 = vweird.f32 %v1605_v22 }
 0x11a   :  { %v1710_v24 = vadd.f32 1e-05, %v293_v7  ;;  %v1713_v9 = vpop.eup %1046  ;;  %911 = vmatmul.f32.vlgmr.msra.gmra.mxu3 %v795_v36  ;;  %v667_v54 = vmul.f32 %v356_v10, %v1344_v61  ;;  %v1722_v14 = vmul.f32 %v1627_v39, %v361_v19  ;;  %v611_v63 = vsub.f32 1.5, %v610_v4 }
 0x11b   :  { %v1699_v13 = vadd.f32 1e-05, %v294_v44  ;;  %v1719_v12 = vpop.eup %1048  ;;  %v370_v52 = vmul.f32 0.5, %v369_v15  ;;  %vm443_vm6 = vweird.f32 %v1607_v43  ;;  %v526_v20 = vsel %vm1726_vm5, %v1615_v56, %v522_v0 }
 0x11c   :  { %1052 = vrsqrt.f32 %v1710_v24  ;;  %v1731_v44 = vpop.eup %1050  ;;  %v703_v61 = vmul.f32 %v1596_v28, %v667_v54  ;;  %v606_v29 = vsel %vm1705_vm1, %v1599_v50, %v602_v47  ;;  %vm614_vm7 = vweird.f32 %v1643_v30 }
 0x11d   :  { %1054 = vrsqrt.f32 %v1699_v13  ;;  %v441_v19 = vsub.f32 1.5, %v440_v31  ;;  %v528_v4 = vmul.f32 %v1713_v9, %v1666_v8  ;;  %v1745_v15 = vadd.f32 1e-05, %v303_v23  ;;  %vm1788_vm12 = vmor %vm613_vm4, %vm614_vm7 }
 0x11e   :  { %v739_v36 = vadd.f32 %v1613_v6, %v703_v61  ;;  %v684_v10 = vmul.f32 %v526_v20, %v1348_v1  ;;  %v692_v56 = vmul.f32 %v606_v29, %v1327_v51  ;;  %v612_v50 = vmul.f32 %v1643_v30, %v611_v63 }
 0x11f   :  { %v226_v53 = vpop.xlane.xlu1 %225  ;;  %vm444_vm8 = vweird.f32 %v1654_v5  ;;  %v538_v47 = vmul.f32 %v1719_v12, %v1671_v41  ;;  %v618_v21 = vmul.f32 %v1731_v44, %v1675_v25  ;;  %v371_v31 = vsub.f32 1.5, %v370_v52 }
 0x120   :  { %v228_v18 = vpop.xlane.xlu2 %227  ;;  %v244_v7 = vpop.xlane.xlu0 %243  ;;  %v771_v23 = vmax.f32 %v739_v36, 0.0  ;;  %v720_v54 = vmul.f32 %v1596_v28, %v684_v10  ;;  %v728_v1 = vmul.f32 %v1596_v28, %v692_v56  ;;  %v529_v51 = vmul.f32 %v1713_v9, %v528_v4  ;;  %vm1801_vm13 = vmor %vm443_vm6, %vm444_vm8 }
 0x121   :  { %v287_v0 = vmul.f32 %v228_v18, %v1315_v38  ;;  %1056 = vrsqrt.f32 %v1745_v15  ;;  %v295_v63 = vmul.f32 %v244_v7, %v1315_v38  ;;  %v286_v18 = vmul.f32 %v226_v53, %v1315_v38 }
 0x122   :  { %v1759_v27 = vpop.eup %1052  ;;  %v442_v20 = vmul.f32 %v1654_v5, %v441_v19  ;;  %839 = vmatmul.f32.vlgmr.msra.gmra.mxu0 %v771_v23  ;;  %v756_v52 = vadd.f32 %v1613_v6, %v720_v54  ;;  %v764_v29 = vadd.f32 %v1613_v6, %v728_v1  ;;  %vm373_vm10 = vweird.f32 %v1625_v17 }
 0x123   :  { %v1765_v61 = vpop.eup %1054  ;;  %v1770_v36 = vadd.f32 1e-05, %v287_v0  ;;  %vm374_vm11 = vweird.f32 %v1663_v26  ;;  %v539_v7 = vmul.f32 %v1719_v12, %v538_v47  ;;  %v619_v53 = vmul.f32 %v1731_v44, %v618_v21 }
 0x124   :  { %v1793_v32 = vmul.f32 %v1663_v26, %v371_v31  ;;  %v448_v10 = vmul.f32 %v1759_v27, %v1710_v24  ;;  %v788_v56 = vmax.f32 %v756_v52, 0.0  ;;  %v796_v0 = vmax.f32 %v764_v29, 0.0  ;;  %vm1859_vm1 = vmor %vm373_vm10, %vm374_vm11 }
 0x125   :  { %vm623_vm14 = vweird.f32 %v1675_v25  ;;  %vm624_vm15 = vweird.f32 %v1731_v44  ;;  %v530_v22 = vmul.f32 0.5, %v529_v51  ;;  %v458_v21 = vmul.f32 %v1765_v61, %v1699_v13 }
 0x126   :  { %v1809_v31 = vadd.f32 1e-05, %v295_v63  ;;  %v1811_v23 = vadd.f32 1e-05, %v286_v18  ;;  %vm534_vm0 = vweird.f32 %v1713_v9  ;;  %890 = vmatmul.f32.gmra.mxu2 %v788_v56  ;;  %914 = vmatmul.f32.gmra.mxu3 %v796_v0  ;;  %1058 = vrsqrt.f32 %v1770_v36  ;;  %vm1879_vm3 = vmor %vm623_vm14, %vm624_vm15 }
 0x127   :  { %v366_v43 = vsel %vm1776_vm9, %v1627_v39, %v1722_v14  ;;  %v446_v1 = vsel %vm1801_vm13, %v1654_v5, %v442_v20  ;;  %v616_v51 = vsel %vm1788_vm12, %v1643_v30, %v612_v50  ;;  %v276_v18 = vpop.xlane.xlu1 %275  ;;  %v1825_v52 = vpop.eup %1056  ;;  %v540_v29 = vmul.f32 0.5, %v539_v7 }
 0x128   :  { %v278_v54 = vpop.xlane.xlu2 %277  ;;  %v230_v63 = vpop.xlane.xlu0 %229  ;;  %v620_v56 = vmul.f32 0.5, %v619_v53  ;;  %1060 = vrsqrt.f32 %v1811_v23  ;;  %v668_v0 = vmul.f32 %v366_v43, %v1351_v3  ;;  %v449_v39 = vmul.f32 %v1759_v27, %v448_v10 }
 0x129   :  { %v676_v14 = vmul.f32 %v446_v1, %v1361_v33  ;;  %v693_v5 = vmul.f32 %v616_v51, %v1366_v37  ;;  %v312_v20 = vmul.f32 %v278_v54, %v1315_v38  ;;  %v459_v30 = vmul.f32 %v1765_v61, %v458_v21 }
 0x12a   :  { %v704_v50 = vmul.f32 %v1596_v28, %v668_v0  ;;  %v288_v4 = vmul.f32 %v230_v63, %v1315_v38  ;;  %v311_v7 = vmul.f32 %v276_v18, %v1315_v38  ;;  %v531_v53 = vsub.f32 1.5, %v530_v22 }
 0x12b   :  { %v548_v3 = vmul.f32 %v1825_v52, %v1745_v15  ;;  %1062 = vrsqrt.f32 %v1809_v31  ;;  %v712_v33 = vmul.f32 %v1596_v28, %v676_v14  ;;  %v541_v19 = vsub.f32 1.5, %v540_v29 }
 0x12c   :  { %v621_v37 = vsub.f32 1.5, %v620_v56  ;;  %v740_v10 = vadd.f32 %v1613_v6, %v704_v50  ;;  %v729_v47 = vmul.f32 %v1596_v28, %v693_v5  ;;  %v1843_v21 = vpop.eup %1058  ;;  %v450_v54 = vmul.f32 0.5, %v449_v39 }
 0x12d   :  { %v748_v43 = vadd.f32 %v1613_v6, %v712_v33  ;;  %v1846_v1 = vadd.f32 1e-05, %v312_v20  ;;  %v1848_v22 = vadd.f32 1e-05, %v288_v4  ;;  %v460_v63 = vmul.f32 0.5, %v459_v30 }
 0x12e   :  { %v1850_v51 = vpop.eup %1060  ;;  %v772_v18 = vmax.f32 %v740_v10, 0.0  ;;  %v765_v29 = vadd.f32 %v1613_v6, %v729_v47  ;;  %v1853_v56 = vadd.f32 1e-05, %v311_v7  ;;  %v532_v39 = vmul.f32 %v1713_v9, %v531_v53 }
 0x12f   :  { %v549_v14 = vmul.f32 %v1825_v52, %v548_v3  ;;  %v378_v5 = vmul.f32 %v1850_v51, %v1811_v23  ;;  %v780_v20 = vmax.f32 %v748_v43, 0.0  ;;  %v622_v30 = vmul.f32 %v1731_v44, %v621_v37 }
 0x130   :  { %vm533_vm2 = vweird.f32 %v1666_v8  ;;  %842 = vmatmul.f32.gmra.mxu0 %v772_v18  ;;  %v797_v50 = vmax.f32 %v765_v29, 0.0  ;;  %1064 = vrsqrt.f32 %v1846_v1  ;;  %v1873_v4 = vmul.f32 %v1719_v12, %v541_v19  ;;  %v264_v8 = vpop.xlane.xlu2 %263  ;;  %v262_v18 = vpop.xlane.xlu1 %261 }
 0x131   :  { %v1870_v17 = vpop.eup %1062  ;;  %v451_v53 = vsub.f32 1.5, %v450_v54  ;;  %vm453_vm4 = vweird.f32 %v1710_v24  ;;  %866 = vmatmul.f32.gmra.mxu1 %v780_v20  ;;  %1066 = vrsqrt.f32 %v1848_v22  ;;  %vm535_vm5 = vmor %vm533_vm2, %vm534_vm0  ;;  %v461_v3 = vsub.f32 1.5, %v460_v63  ;;  %v280_v54 = vpop.xlane.xlu0 %279 }
 0x132   :  { %v388_v33 = vmul.f32 %v1843_v21, %v1770_v36  ;;  %917 = vmatmul.f32.gmra.mxu3 %v797_v50  ;;  %1068 = vrsqrt.f32 %v1853_v56  ;;  %v376_v25 = vsel %vm1859_vm1, %v1663_v26, %v1793_v32  ;;  %vm543_vm6 = vweird.f32 %v1671_v41 }
 0x133   :  { %vm544_vm7 = vweird.f32 %v1719_v12  ;;  %v550_v19 = vmul.f32 0.5, %v549_v14  ;;  %v379_v37 = vmul.f32 %v1850_v51, %v378_v5  ;;  %v669_v10 = vmul.f32 %v376_v25, %v1371_v40 }
 0x134   :  { %v536_v47 = vsel %vm535_vm5, %v1713_v9, %v532_v39  ;;  %v468_v43 = vmul.f32 %v1870_v17, %v1809_v31  ;;  %v626_v26 = vsel %vm1879_vm3, %v1731_v44, %v622_v30  ;;  %v305_v32 = vmul.f32 %v264_v8, %v1315_v38  ;;  %vm545_vm15 = vmor %vm543_vm6, %vm544_vm7 }
 0x135   :  { %v685_v63 = vmul.f32 %v536_v47, %v1379_v45  ;;  %v452_v29 = vmul.f32 %v1759_v27, %v451_v53  ;;  %vm454_vm8 = vweird.f32 %v1759_v27  ;;  %v705_v40 = vmul.f32 %v1596_v28, %v669_v10 }
 0x136   :  { %v694_v9 = vmul.f32 %v626_v26, %v1387_v49  ;;  %v1910_v0 = vpop.eup %1064  ;;  %v1913_v39 = vmul.f32 %v1765_v61, %v461_v3  ;;  %v389_v45 = vmul.f32 %v1843_v21, %v388_v33  ;;  %v1917_v14 = vadd.f32 1e-05, %v305_v32  ;;  %vm1927_vm9 = vmor %vm453_vm4, %vm454_vm8 }
 0x137   :  { %v721_v44 = vmul.f32 %v1596_v28, %v685_v63  ;;  %v1919_v5 = vpop.eup %1066  ;;  %v551_v20 = vsub.f32 1.5, %v550_v19  ;;  %v380_v30 = vmul.f32 0.5, %v379_v37  ;;  %v741_v50 = vadd.f32 %v1613_v6, %v705_v40 }
 0x138   :  { %v313_v7 = vmul.f32 %v280_v54, %v1315_v38  ;;  %v1923_v49 = vpop.eup %1068  ;;  %v469_v8 = vmul.f32 %v1870_v17, %v468_v43  ;;  %v730_v33 = vmul.f32 %v1596_v28, %v694_v9  ;;  %v304_v25 = vmul.f32 %v262_v18, %v1315_v38  ;;  %v248_v9 = vpop.xlane.xlu2 %247 }
 0x139   :  { %v757_v3 = vadd.f32 %v1613_v6, %v721_v44  ;;  %vm553_vm10 = vweird.f32 %v1745_v15  ;;  %vm554_vm11 = vweird.f32 %v1825_v52  ;;  %v638_v19 = vmul.f32 %v1910_v0, %v1846_v1 }
 0x13a   :  { %v398_v24 = vmul.f32 %v1919_v5, %v1848_v22  ;;  %v773_v37 = vmax.f32 %v741_v50, 0.0  ;;  %v456_v10 = vsel %vm1927_vm9, %v1759_v27, %v452_v29  ;;  %v390_v47 = vmul.f32 0.5, %v389_v45  ;;  %v266_v50 = vpop.xlane.xlu0 %265  ;;  %vm2010_vm2 = vmor %vm553_vm10, %vm554_vm11 }
 0x13b   :  { %v789_v54 = vmax.f32 %v757_v3, 0.0  ;;  %v766_v43 = vadd.f32 %v1613_v6, %v730_v33  ;;  %1070 = vrsqrt.f32 %v1917_v14  ;;  %vm463_vm12 = vweird.f32 %v1699_v13 }
 0x13c   :  { %vm464_vm13 = vweird.f32 %v1765_v61  ;;  %v381_v63 = vsub.f32 1.5, %v380_v30  ;;  %vm383_vm14 = vweird.f32 %v1811_v23  ;;  %v628_v26 = vmul.f32 %v1923_v49, %v1853_v56  ;;  %845 = vmatmul.f32.gmra.mxu0 %v773_v37 }
 0x13d   :  { %v1951_v32 = vadd.f32 1e-05, %v313_v7  ;;  %v470_v27 = vmul.f32 0.5, %v469_v8  ;;  %893 = vmatmul.f32.gmra.mxu2 %v789_v54  ;;  %v798_v18 = vmax.f32 %v766_v43, 0.0  ;;  %v1953_v29 = vadd.f32 1e-05, %v304_v25  ;;  %vm2030_vm5 = vmor %vm463_vm12, %vm464_vm13 }
 0x13e   :  { %v677_v40 = vmul.f32 %v456_v10, %v1397_v57  ;;  %v1957_v45 = vmul.f32 %v1825_v52, %v551_v20  ;;  %v639_v44 = vmul.f32 %v1910_v0, %v638_v19  ;;  %v399_v30 = vmul.f32 %v1919_v5, %v398_v24  ;;  %v246_v20 = vpop.xlane.xlu1 %245 }
 0x13f   :  { %1072 = vrsqrt.f32 %v1951_v32  ;;  %v391_v7 = vsub.f32 1.5, %v390_v47  ;;  %vm384_vm0 = vweird.f32 %v1850_v51  ;;  %920 = vmatmul.f32.gmra.mxu3 %v798_v18  ;;  %v382_v53 = vmul.f32 %v1850_v51, %v381_v63 }
 0x140   :  { %1074 = vrsqrt.f32 %v1953_v29  ;;  %v713_v57 = vmul.f32 %v1596_v28, %v677_v40  ;;  %v629_v8 = vmul.f32 %v1923_v49, %v628_v26  ;;  %v546_v3 = vsel %vm545_vm15, %v1719_v12, %v1873_v4  ;;  %vm1987_vm1 = vmor %vm383_vm14, %vm384_vm0 }
 0x141   :  { %v297_v33 = vmul.f32 %v248_v9, %v1315_v38  ;;  %v1974_v41 = vpop.eup %1070  ;;  %v471_v25 = vsub.f32 1.5, %v470_v27  ;;  %v686_v24 = vmul.f32 %v546_v3, %v1384_v48  ;;  %v306_v37 = vmul.f32 %v266_v50, %v1315_v38 }
 0x142   :  { %v749_v19 = vadd.f32 %v1613_v6, %v713_v57  ;;  %v640_v10 = vmul.f32 0.5, %v639_v44  ;;  %v400_v47 = vmul.f32 0.5, %v399_v30  ;;  %v568_v54 = vmul.f32 %v1974_v41, %v1917_v14 }
 0x143   :  { %v1981_v43 = vadd.f32 1e-05, %v297_v33  ;;  %v722_v48 = vmul.f32 %v1596_v28, %v686_v24  ;;  %v1992_v63 = vadd.f32 1e-05, %v306_v37  ;;  %v296_v26 = vmul.f32 %v246_v20, %v1315_v38 }
 0x144   :  { %v781_v4 = vmax.f32 %v749_v19, 0.0  ;;  %v1998_v18 = vmul.f32 %v1843_v21, %v391_v7  ;;  %v630_v40 = vmul.f32 0.5, %v629_v8  ;;  %v386_v23 = vsel %vm1987_vm1, %v1850_v51, %v382_v53 }
 0x145   :  { %v1995_v27 = vpop.eup %1072  ;;  %1076 = vrsqrt.f32 %v1981_v43  ;;  %v569_v30 = vmul.f32 %v1974_v41, %v568_v54  ;;  %v758_v7 = vadd.f32 %v1613_v6, %v722_v48  ;;  %vm393_vm3 = vweird.f32 %v1770_v36 }
 0x146   :  { %v2004_v9 = vpop.eup %1074  ;;  %v648_v50 = vmul.f32 %v1995_v27, %v1951_v32  ;;  %869 = vmatmul.f32.gmra.mxu1 %v781_v4  ;;  %1078 = vrsqrt.f32 %v1992_v63  ;;  %vm394_vm4 = vweird.f32 %v1843_v21  ;;  %v2022_v15 = vmul.f32 %v1870_v17, %v471_v25 }
 0x147   :  { %v641_v51 = vsub.f32 1.5, %v640_v10  ;;  %v401_v57 = vsub.f32 1.5, %v400_v47  ;;  %v558_v20 = vmul.f32 %v2004_v9, %v1953_v29  ;;  %vm473_vm6 = vweird.f32 %v1809_v31  ;;  %v232_v47 = vpop.xlane.xlu1 %231  ;;  %vm2093_vm15 = vmor %vm393_vm3, %vm394_vm4 }
 0x148   :  { %vm474_vm7 = vweird.f32 %v1870_v17  ;;  %v649_v8 = vmul.f32 %v1995_v27, %v648_v50  ;;  %v790_v3 = vmax.f32 %v758_v7, 0.0  ;;  %v2037_v33 = vadd.f32 1e-05, %v296_v26 }
 0x149   :  { %v670_v25 = vmul.f32 %v386_v23, %v1415_v2  ;;  %vm403_vm8 = vweird.f32 %v1848_v22  ;;  %v631_v19 = vsub.f32 1.5, %v630_v40  ;;  %v559_v13 = vmul.f32 %v2004_v9, %v558_v20  ;;  %v234_v40 = vpop.xlane.xlu2 %233 }
 0x14a   :  { %v466_v24 = vsel %vm2030_vm5, %v1765_v61, %v1913_v39  ;;  %v556_v37 = vsel %vm2010_vm2, %v1825_v52, %v1957_v45  ;;  %vm404_vm9 = vweird.f32 %v1919_v5  ;;  %v570_v10 = vmul.f32 0.5, %v569_v30  ;;  %896 = vmatmul.f32.gmra.mxu2 %v790_v3  ;;  %v250_v30 = vpop.xlane.xlu0 %249  ;;  %vm2108_vm5 = vmor %vm473_vm6, %vm474_vm7 }
 0x14b   :  { %1080 = vrsqrt.f32 %v2037_v33  ;;  %v706_v2 = vmul.f32 %v1596_v28, %v670_v25  ;;  %v2053_v54 = vpop.eup %1076  ;;  %vm643_vm10 = vweird.f32 %v1846_v1  ;;  %vm644_vm11 = vweird.f32 %v1910_v0  ;;  %vm2126_vm3 = vmor %vm403_vm8, %vm404_vm9 }
 0x14c   :  { %vm634_vm12 = vweird.f32 %v1923_v49  ;;  %v650_v61 = vmul.f32 0.5, %v649_v8  ;;  %v678_v52 = vmul.f32 %v466_v24, %v1402_v60  ;;  %v687_v39 = vmul.f32 %v556_v37, %v1405_v62  ;;  %v2060_v45 = vpop.eup %1078  ;;  %vm2149_vm7 = vmor %vm643_vm10, %vm644_vm11 }
 0x14d   :  { %v2063_v12 = vmul.f32 %v1910_v0, %v641_v51  ;;  %vm633_vm13 = vweird.f32 %v1853_v56  ;;  %v560_v4 = vmul.f32 0.5, %v559_v13  ;;  %v488_v48 = vmul.f32 %v2053_v54, %v1981_v43 }
 0x14e   :  { %v742_v26 = vadd.f32 %v1613_v6, %v706_v2  ;;  %v2070_v23 = vmul.f32 %v1919_v5, %v401_v57  ;;  %v632_v60 = vmul.f32 %v1923_v49, %v631_v19  ;;  %v578_v62 = vmul.f32 %v2060_v45, %v1992_v63  ;;  %vm2140_vm6 = vmor %vm633_vm13, %vm634_vm12 }
 0x14f   :  { %v714_v44 = vmul.f32 %v1596_v28, %v678_v52  ;;  %v571_v50 = vsub.f32 1.5, %v570_v10  ;;  %vm563_vm14 = vweird.f32 %v1953_v29  ;;  %v489_v7 = vmul.f32 %v2053_v54, %v488_v48 }
 0x150   :  { %v774_v51 = vmax.f32 %v742_v26, 0.0  ;;  %v723_v20 = vmul.f32 %v1596_v28, %v687_v39  ;;  %v651_v53 = vsub.f32 1.5, %v650_v61  ;;  %v579_v57 = vmul.f32 %v2060_v45, %v578_v62 }
 0x151   :  { %v750_v8 = vadd.f32 %v1613_v6, %v714_v44  ;;  %v290_v3 = vmul.f32 %v234_v40, %v1315_v38  ;;  %v2082_v25 = vpop.eup %1080  ;;  %v561_v19 = vsub.f32 1.5, %v560_v4  ;;  %v298_v24 = vmul.f32 %v250_v30, %v1315_v38 }
 0x152   :  { %848 = vmatmul.f32.gmra.mxu0 %v774_v51  ;;  %v759_v13 = vadd.f32 %v1613_v6, %v723_v20  ;;  %v289_v37 = vmul.f32 %v232_v47, %v1315_v38  ;;  %v490_v10 = vmul.f32 0.5, %v489_v7  ;;  %v580_v2 = vmul.f32 0.5, %v579_v57  ;;  %v282_v7 = vpop.xlane.xlu1 %281 }
 0x153   :  { %v478_v61 = vmul.f32 %v2082_v25, %v2037_v33  ;;  %v782_v52 = vmax.f32 %v750_v8, 0.0  ;;  %vm573_vm0 = vweird.f32 %v1917_v14  ;;  %vm574_vm1 = vweird.f32 %v1974_v41 }
 0x154   :  { %vm564_vm2 = vweird.f32 %v2004_v9  ;;  %v791_v47 = vmax.f32 %v759_v13, 0.0  ;;  %v2100_v4 = vadd.f32 1e-05, %v290_v3  ;;  %v2102_v48 = vadd.f32 1e-05, %v298_v24 }
 0x155   :  { %v2113_v26 = vmul.f32 %v1974_v41, %v571_v50  ;;  %v479_v40 = vmul.f32 %v2082_v25, %v478_v61  ;;  %872 = vmatmul.f32.gmra.mxu1 %v782_v52  ;;  %v2116_v62 = vadd.f32 1e-05, %v289_v37  ;;  %v396_v44 = vsel %vm2093_vm15, %v1843_v21, %v1998_v18  ;;  %vm2169_vm11 = vmor %vm563_vm14, %vm564_vm2 }
 0x156   :  { %v2131_v30 = vmul.f32 %v1995_v27, %v651_v53  ;;  %v562_v50 = vmul.f32 %v2004_v9, %v561_v19  ;;  %vm484_vm4 = vweird.f32 %v2082_v25  ;;  %899 = vmatmul.f32.gmra.mxu2 %v791_v47  ;;  %1082 = vrsqrt.f32 %v2100_v4 }
 0x157   :  { %v491_v22 = vsub.f32 1.5, %v490_v10  ;;  %v581_v18 = vsub.f32 1.5, %v580_v2  ;;  %v480_v51 = vmul.f32 0.5, %v479_v40  ;;  %1084 = vrsqrt.f32 %v2102_v48 }
 0x158   :  { %vm483_vm8 = vweird.f32 %v2037_v33  ;;  %1086 = vrsqrt.f32 %v2116_v62  ;;  %v671_v56 = vmul.f32 %v396_v44, %v1420_v34  ;;  %v476_v53 = vsel %vm2108_vm5, %v1870_v17, %v2022_v15 }
 0x159   :  { %v636_v57 = vsel %vm2140_vm6, %v1923_v49, %v632_v60  ;;  %vm653_vm9 = vweird.f32 %v1951_v32  ;;  %vm654_vm10 = vweird.f32 %v1995_v27  ;;  %v481_v34 = vsub.f32 1.5, %v480_v51 }
 0x15a   :  { %v679_v8 = vmul.f32 %v476_v53, %v1423_v35  ;;  %v695_v17 = vmul.f32 %v636_v57, %v1433_v42  ;;  %v314_v15 = vmul.f32 %v282_v7, %v1315_v38  ;;  %vm493_vm12 = vweird.f32 %v1981_v43 }
 0x15b   :  { %vm494_vm13 = vweird.f32 %v2053_v54  ;;  %v707_v49 = vmul.f32 %v1596_v28, %v671_v56  ;;  %v406_v29 = vsel %vm2126_vm3, %v1919_v5, %v2070_v23  ;;  %v566_v60 = vsel %vm2169_vm11, %v2004_v9, %v562_v50  ;;  %vm2226_vm3 = vmor %vm573_vm0, %vm574_vm1 }
 0x15c   :  { %v646_v38 = vsel %vm2149_vm7, %v1910_v0, %v2063_v12  ;;  %v2191_v35 = vmul.f32 %v2053_v54, %v491_v22  ;;  %vm583_vm14 = vweird.f32 %v1992_v63  ;;  %vm584_vm15 = vweird.f32 %v2060_v45  ;;  %v2199_v3 = vpop.eup %1082  ;;  %vm2241_vm0 = vmor %vm483_vm8, %vm484_vm4 }
 0x15d   :  { %v715_v42 = vmul.f32 %v1596_v28, %v679_v8  ;;  %v731_v5 = vmul.f32 %v1596_v28, %v695_v17  ;;  %v2197_v23 = vadd.f32 1e-05, %v314_v15  ;;  %v2202_v9 = vmul.f32 %v2060_v45, %v581_v18  ;;  %v2208_v13 = vpop.eup %1084  ;;  %vm2264_vm4 = vmor %vm653_vm9, %vm654_vm10 }
 0x15e   :  { %vm423_vm2 = vweird.f32 %v2100_v4  ;;  %v743_v0 = vadd.f32 %v1613_v6, %v707_v49  ;;  %v672_v12 = vmul.f32 %v406_v29, %v1441_v11  ;;  %v688_v19 = vmul.f32 %v566_v60, %v1454_v55  ;;  %v2215_v61 = vpop.eup %1086  ;;  %vm2275_vm8 = vmor %vm493_vm12, %vm494_vm13 }
 0x15f   :  { %v418_v24 = vmul.f32 %v2199_v3, %v2100_v4  ;;  %v751_v37 = vadd.f32 %v1613_v6, %v715_v42  ;;  %v767_v10 = vadd.f32 %v1613_v6, %v731_v5  ;;  %v696_v2 = vmul.f32 %v646_v38, %v1438_v46  ;;  %vm2286_vm10 = vmor %vm583_vm14, %vm584_vm15 }
 0x160   :  { %v482_v52 = vmul.f32 %v2082_v25, %v481_v34  ;;  %v498_v11 = vmul.f32 %v2208_v13, %v2102_v48  ;;  %vm503_vm5 = vweird.f32 %v2102_v48  ;;  %v775_v55 = vmax.f32 %v743_v0, 0.0 }
 0x161   :  { %1088 = vrsqrt.f32 %v2197_v23  ;;  %v419_v46 = vmul.f32 %v2199_v3, %v418_v24  ;;  %v408_v47 = vmul.f32 %v2215_v61, %v2116_v62  ;;  %vm413_vm6 = vweird.f32 %v2116_v62 }
 0x162   :  { %v783_v36 = vmax.f32 %v751_v37, 0.0  ;;  %vm424_vm7 = vweird.f32 %v2199_v3  ;;  %v499_v40 = vmul.f32 %v2208_v13, %v498_v11  ;;  %851 = vmatmul.f32.gmra.mxu0 %v775_v55  ;;  %v799_v44 = vmax.f32 %v767_v10, 0.0  ;;  %v2561_v37 = vld [vmem:[#allocation2_spill] sm:$0xff]  ;;  %v2563_v55 = vld [vmem:[#allocation3_spill] sm:$0xff] }
 0x163   :  { %v708_v14 = vmul.f32 %v1596_v28, %v672_v12  ;;  %v420_v50 = vmul.f32 0.5, %v419_v46  ;;  %v409_v7 = vmul.f32 %v2215_v61, %v408_v47  ;;  %v724_v21 = vmul.f32 %v1596_v28, %v688_v19  ;;  %vm2297_vm11 = vmor %vm423_vm2, %vm424_vm7  ;;  %v1091_v46 = vld [vmem:[%s2493_s2] ss:$0 sm:$0xff] }
 0x164   :  { %875 = vmatmul.f32.gmra.mxu1 %v783_v36  ;;  %v732_v22 = vmul.f32 %v1596_v28, %v696_v2  ;;  %v500_v18 = vmul.f32 0.5, %v499_v40  ;;  %923 = vmatmul.f32.gmra.mxu3 %v799_v44  ;;  %v486_v33 = vsel %vm2241_vm0, %v2082_v25, %v482_v52  ;;  %v576_v20 = vsel %vm2226_vm3, %v1974_v41, %v2113_v26 }
 0x165   :  { %v744_v51 = vadd.f32 %v1613_v6, %v708_v14  ;;  %v421_v56 = vsub.f32 1.5, %v420_v50  ;;  %vm504_vm1 = vweird.f32 %v2208_v13  ;;  %v410_v53 = vmul.f32 0.5, %v409_v7  ;;  %v2564_v14 = vld [vmem:[#allocation5_spill] sm:$0xff] }
 0x166   :  { %v760_v57 = vadd.f32 %v1613_v6, %v724_v21  ;;  %v501_v25 = vsub.f32 1.5, %v500_v18  ;;  %v768_v8 = vadd.f32 %v1613_v6, %v732_v22  ;;  %v680_v41 = vmul.f32 %v486_v33, %v1476_v16  ;;  %vm2324_vm13 = vmor %vm503_vm5, %vm504_vm1  ;;  %v2565_v22 = vld [vmem:[#allocation6_spill] sm:$0xff] }
 0x167   :  { %v2258_v1 = vpop.eup %1088  ;;  %v689_v26 = vmul.f32 %v576_v20, %v1459_v58  ;;  %v411_v32 = vsub.f32 1.5, %v410_v53  ;;  %vm414_vm9 = vweird.f32 %v2215_v61  ;;  %v776_v49 = vmax.f32 %v744_v51, 0.0 }
 0x168   :  { %v658_v15 = vmul.f32 %v2258_v1, %v2197_v23  ;;  %v422_v16 = vmul.f32 %v2199_v3, %v421_v56  ;;  %v502_v43 = vmul.f32 %v2208_v13, %v501_v25  ;;  %v792_v29 = vmax.f32 %v760_v57, 0.0  ;;  %vm2310_vm12 = vmor %vm413_vm6, %vm414_vm9 }
 0x169   :  { %v716_v60 = vmul.f32 %v1596_v28, %v680_v41  ;;  %v412_v63 = vmul.f32 %v2215_v61, %v411_v32  ;;  %v725_v5 = vmul.f32 %v1596_v28, %v689_v26  ;;  %v656_v0 = vsel %vm2264_vm4, %v1995_v27, %v2131_v30 }
 0x16a   :  { %v659_v42 = vmul.f32 %v2258_v1, %v658_v15  ;;  %854 = vmatmul.f32.gmra.mxu0 %v776_v49  ;;  %902 = vmatmul.f32.gmra.mxu2 %v792_v29  ;;  %v800_v4 = vmax.f32 %v768_v8, 0.0  ;;  %v697_v24 = vmul.f32 %v656_v0, %v1462_v59  ;;  %v496_v28 = vsel %vm2275_vm8, %v2053_v54, %v2191_v35  ;;  %v1090_v54 = vld [vmem:[%s2492_s1] ss:$0 sm:$0xff]  ;;  %v2562_v35 = vld [vmem:[#allocation4_spill] sm:$0xff] }
 0x16b   :  { %v752_v19 = vadd.f32 %v1613_v6, %v716_v60  ;;  %v761_v30 = vadd.f32 %v1613_v6, %v725_v5  ;;  %v416_v59 = vsel %vm2310_vm12, %v2215_v61, %v412_v63  ;;  %v681_v10 = vmul.f32 %v496_v28, %v2561_v37  ;;  %v2361_v15 = vld [vmem:[%s2495_s4] ss:$0 sm:$0xff] }
 0x16c   :  { %v660_v62 = vmul.f32 0.5, %v659_v42  ;;  %926 = vmatmul.f32.gmra.mxu3 %v800_v4  ;;  %v733_v48 = vmul.f32 %v1090_v54, %v697_v24  ;;  %v673_v52 = vmul.f32 %v416_v59, %v2562_v35  ;;  %v586_v6 = vsel %vm2286_vm10, %v2060_v45, %v2202_v9 }
 0x16d   :  { %v784_v2 = vmax.f32 %v752_v19, 0.0  ;;  %vm664_vm14 = vweird.f32 %v2258_v1  ;;  %v717_v61 = vmul.f32 %v1090_v54, %v681_v10  ;;  %v690_v39 = vmul.f32 %v586_v6, %v2563_v55 }
 0x16e   :  { %v661_v11 = vsub.f32 1.5, %v660_v62  ;;  %v769_v47 = vadd.f32 %v1091_v46, %v733_v48  ;;  %v709_v36 = vmul.f32 %v1090_v54, %v673_v52  ;;  %v426_v40 = vsel %vm2297_vm11, %v2199_v3, %v422_v16 }
 0x16f   :  { %878 = vmatmul.f32.gmra.mxu1 %v784_v2  ;;  %v506_v45 = vsel %vm2324_vm13, %v2208_v13, %v502_v43  ;;  %vm663_vm15 = vweird.f32 %v2197_v23  ;;  %v793_v44 = vmax.f32 %v761_v30, 0.0  ;;  %v674_v31 = vmul.f32 %v426_v40, %v2564_v14  ;;  %v2566_v13 = vld [vmem:[#allocation7_spill] sm:$0xff] }
 0x170   :  { %v662_v9 = vmul.f32 %v2258_v1, %v661_v11  ;;  %vm665_vm2 = vmor %vm663_vm15, %vm664_vm14  ;;  %v745_v50 = vadd.f32 %v1091_v46, %v709_v36  ;;  %v753_v7 = vadd.f32 %v1091_v46, %v717_v61  ;;  %v726_v21 = vmul.f32 %v1090_v54, %v690_v39 }
 0x171   :  { %v682_v18 = vmul.f32 %v506_v45, %v2565_v22  ;;  %v801_v3 = vmax.f32 %v769_v47, 0.0  ;;  %v710_v20 = vmul.f32 %v1090_v54, %v674_v31 }
 0x172   :  { %v666_v51 = vsel %vm665_vm2, %v2258_v1, %v662_v9  ;;  %905 = vmatmul.f32.gmra.mxu2 %v793_v44  ;;  %v777_v33 = vmax.f32 %v745_v50, 0.0  ;;  %v785_v23 = vmax.f32 %v753_v7, 0.0  ;;  %v762_v53 = vadd.f32 %v1091_v46, %v726_v21 }
 0x173   :  { %v698_v56 = vmul.f32 %v666_v51, %v2566_v13  ;;  %v718_v57 = vmul.f32 %v1090_v54, %v682_v18  ;;  %v746_v25 = vadd.f32 %v1091_v46, %v710_v20 }
 0x174   :  { %929 = vmatmul.f32.gmra.mxu3 %v801_v3  ;;  %857 = vmatmul.f32.gmra.mxu0 %v777_v33  ;;  %v794_v41 = vmax.f32 %v762_v53, 0.0 }
 0x175   :  { %v734_v34 = vmul.f32 %v1090_v54, %v698_v56  ;;  %v754_v26 = vadd.f32 %v1091_v46, %v718_v57  ;;  %v778_v1 = vmax.f32 %v746_v25, 0.0 }
 0x177   :  { %881 = vmatmul.f32.gmra.mxu1 %v785_v23  ;;  %v770_v8 = vadd.f32 %v1091_v46, %v734_v34  ;;  %v786_v32 = vmax.f32 %v754_v26, 0.0 }
 0x179   :  { %v802_v17 = vmax.f32 %v770_v8, 0.0 }
 0x17a   :  { %908 = vmatmul.f32.gmra.mxu2 %v794_v41 }
 0x17c   :  { %860 = vmatmul.f32.gmra.mxu0 %v778_v1  ;;  %932 = vmatmul.f32.gmra.mxu3 %v802_v17 }
 0x17f   :  { %884 = vmatmul.f32.gmra.mxu1 %v786_v32 }
 0x191   :  { %v888_v49 = vpop.f32.mrf.mxu2 }
 0x192   :  { %v889_v58 = vadd.f32 %v2361_v15, %v888_v49 }
 0x194   :  { %952 = vst [vmem:[%s2496_s5 + $0x80] sm:$0xff] %v889_v58  ;;  %v864_v16 = vpop.f32.mrf.mxu1 }
 0x195   :  { %v865_v43 = vadd.f32 %v2361_v15, %v864_v16 }
 0x197   :  { %944 = vst [vmem:[%s2496_s5 + $0x40] sm:$0xff] %v865_v43 }
 0x19d   :  { %v912_v29 = vpop.f32.mrf.mxu3 }
 0x19e   :  { %v913_v60 = vadd.f32 %v2361_v15, %v912_v29 }
 0x19f   :  { %v840_v38 = vpop.f32.mrf.mxu0 }
 0x1a0   :  { %960 = vst [vmem:[%s2496_s5 + $0xc0] sm:$0xff] %v913_v60  ;;  %v841_v63 = vadd.f32 %v2361_v15, %v840_v38 }
 0x1a2   :  { %936 = vst [vmem:[%s2496_s5] sm:$0xff] %v841_v63 }
 0x1a9   :  { %v891_v42 = vpop.f32.mrf.mxu2  ;;  %v915_v5 = vpop.f32.mrf.mxu3 }
 0x1aa   :  { %v892_v0 = vadd.f32 %v2361_v15, %v891_v42  ;;  %v916_v12 = vadd.f32 %v2361_v15, %v915_v5 }
 0x1ac   :  { %953 = vst [vmem:[%s2496_s5 + $0x88] sm:$0xff] %v892_v0 }
 0x1ad   :  { %v843_v4 = vpop.f32.mrf.mxu0  ;;  %961 = vst [vmem:[%s2496_s5 + $0xc8] sm:$0xff] %v916_v12 }
 0x1ae   :  { %v844_v19 = vadd.f32 %v2361_v15, %v843_v4  ;;  %v867_v24 = vpop.f32.mrf.mxu1 }
 0x1af   :  { %v868_v28 = vadd.f32 %v2361_v15, %v867_v24 }
 0x1b0   :  { %937 = vst [vmem:[%s2496_s5 + $0x8] sm:$0xff] %v844_v19 }
 0x1b1   :  { %945 = vst [vmem:[%s2496_s5 + $0x48] sm:$0xff] %v868_v28 }
 0x1b5   :  { %v918_v27 = vpop.f32.mrf.mxu3 }
 0x1b6   :  { %v919_v62 = vadd.f32 %v2361_v15, %v918_v27 }
 0x1b8   :  { %962 = vst [vmem:[%s2496_s5 + $0xd0] sm:$0xff] %v919_v62 }
 0x1b9   :  { %v846_v30 = vpop.f32.mrf.mxu0 }
 0x1ba   :  { %v847_v59 = vadd.f32 %v2361_v15, %v846_v30 }
 0x1bc   :  { %938 = vst [vmem:[%s2496_s5 + $0x10] sm:$0xff] %v847_v59 }
 0x1c0   :  { %v894_v37 = vpop.f32.mrf.mxu2 }
 0x1c1   :  { %v895_v10 = vadd.f32 %v2361_v15, %v894_v37 }
 0x1c2   :  { %v921_v2 = vpop.f32.mrf.mxu3 }
 0x1c3   :  { %v870_v54 = vpop.f32.mrf.mxu1  ;;  %954 = vst [vmem:[%s2496_s5 + $0x90] sm:$0xff] %v895_v10  ;;  %v922_v48 = vadd.f32 %v2361_v15, %v921_v2 }
 0x1c4   :  { %v871_v35 = vadd.f32 %v2361_v15, %v870_v54 }
 0x1c5   :  { %963 = vst [vmem:[%s2496_s5 + $0xd8] sm:$0xff] %v922_v48 }
 0x1c6   :  { %946 = vst [vmem:[%s2496_s5 + $0x50] sm:$0xff] %v871_v35 }
 0x1cd   :  { %v897_v52 = vpop.f32.mrf.mxu2 }
 0x1ce   :  { %v898_v11 = vadd.f32 %v2361_v15, %v897_v52 }
 0x1cf   :  { %v849_v6 = vpop.f32.mrf.mxu0 }
 0x1d0   :  { %v850_v61 = vadd.f32 %v2361_v15, %v849_v6  ;;  %955 = vst [vmem:[%s2496_s5 + $0x98] sm:$0xff] %v898_v11 }
 0x1d2   :  { %v873_v55 = vpop.f32.mrf.mxu1  ;;  %939 = vst [vmem:[%s2496_s5 + $0x18] sm:$0xff] %v850_v61 }
 0x1d3   :  { %v874_v39 = vadd.f32 %v2361_v15, %v873_v55 }
 0x1d5   :  { %947 = vst [vmem:[%s2496_s5 + $0x58] sm:$0xff] %v874_v39 }
 0x1d9   :  { %v900_v46 = vpop.f32.mrf.mxu2 }
 0x1da   :  { %v901_v47 = vadd.f32 %v2361_v15, %v900_v46 }
 0x1dc   :  { %956 = vst [vmem:[%s2496_s5 + $0xa0] sm:$0xff] %v901_v47 }
 0x1df   :  { %v852_v36 = vpop.f32.mrf.mxu0 }
 0x1e0   :  { %v853_v40 = vadd.f32 %v2361_v15, %v852_v36 }
 0x1e1   :  { %v876_v45 = vpop.f32.mrf.mxu1 }
 0x1e2   :  { %v877_v9 = vadd.f32 %v2361_v15, %v876_v45  ;;  %940 = vst [vmem:[%s2496_s5 + $0x20] sm:$0xff] %v853_v40 }
 0x1e4   :  { %948 = vst [vmem:[%s2496_s5 + $0x60] sm:$0xff] %v877_v9 }
 0x1e7   :  { %v924_v44 = vpop.f32.mrf.mxu3  ;;  %v855_v14 = vpop.f32.mrf.mxu0 }
 0x1e8   :  { %v925_v31 = vadd.f32 %v2361_v15, %v924_v44  ;;  %v856_v50 = vadd.f32 %v2361_v15, %v855_v14 }
 0x1ea   :  { %964 = vst [vmem:[%s2496_s5 + $0xe0] sm:$0xff] %v925_v31 }
 0x1eb   :  { %941 = vst [vmem:[%s2496_s5 + $0x28] sm:$0xff] %v856_v50 }
 0x1ec   :  { %v879_v7 = vpop.f32.mrf.mxu1 }
 0x1ed   :  { %v880_v21 = vadd.f32 %v2361_v15, %v879_v7  ;;  %v903_v22 = vpop.f32.mrf.mxu2 }
 0x1ee   :  { %v904_v18 = vadd.f32 %v2361_v15, %v903_v22 }
 0x1ef   :  { %949 = vst [vmem:[%s2496_s5 + $0x68] sm:$0xff] %v880_v21  ;;  %v927_v51 = vpop.f32.mrf.mxu3 }
 0x1f0   :  { %957 = vst [vmem:[%s2496_s5 + $0xa8] sm:$0xff] %v904_v18  ;;  %v928_v3 = vadd.f32 %v2361_v15, %v927_v51 }
 0x1f1   :  { %v858_v33 = vpop.f32.mrf.mxu0 }
 0x1f2   :  { %965 = vst [vmem:[%s2496_s5 + $0xe8] sm:$0xff] %v928_v3  ;;  %v859_v20 = vadd.f32 %v2361_v15, %v858_v33 }
 0x1f4   :  { %v882_v13 = vpop.f32.mrf.mxu1  ;;  %942 = vst [vmem:[%s2496_s5 + $0x30] sm:$0xff] %v859_v20 }
 0x1f5   :  { %v883_v56 = vadd.f32 %v2361_v15, %v882_v13  ;;  %v906_v23 = vpop.f32.mrf.mxu2 }
 0x1f6   :  { %v907_v53 = vadd.f32 %v2361_v15, %v906_v23 }
 0x1f7   :  { %950 = vst [vmem:[%s2496_s5 + $0x70] sm:$0xff] %v883_v56  ;;  %v930_v57 = vpop.f32.mrf.mxu3 }
 0x1f8   :  { %958 = vst [vmem:[%s2496_s5 + $0xb0] sm:$0xff] %v907_v53  ;;  %v931_v34 = vadd.f32 %v2361_v15, %v930_v57 }
 0x1f9   :  { %v861_v25 = vpop.f32.mrf.mxu0 }
 0x1fa   :  { %966 = vst [vmem:[%s2496_s5 + $0xf0] sm:$0xff] %v931_v34  ;;  %v862_v8 = vadd.f32 %v2361_v15, %v861_v25 }
 0x1fc   :  { %v885_v41 = vpop.f32.mrf.mxu1  ;;  %943 = vst [vmem:[%s2496_s5 + $0x38] sm:$0xff] %v862_v8 }
 0x1fd   :  { %v886_v26 = vadd.f32 %v2361_v15, %v885_v41  ;;  %v909_v17 = vpop.f32.mrf.mxu2 }
 0x1fe   :  { %v910_v1 = vadd.f32 %v2361_v15, %v909_v17 }
 0x1ff   :  { %951 = vst [vmem:[%s2496_s5 + $0x78] sm:$0xff] %v886_v26  ;;  %v933_v32 = vpop.f32.mrf.mxu3 }
 0x200   :  { %959 = vst [vmem:[%s2496_s5 + $0xb8] sm:$0xff] %v910_v1  ;;  %v934_v49 = vadd.f32 %v2361_v15, %v933_v32 }
 0x202   :  { %967 = vst [vmem:[%s2496_s5 + $0xf8] sm:$0xff] %v934_v49 }

// kernel: deeper_gcn_forward.12
= control target key start
LH: loop header
LB: loop body
LE: loop exit
PB: predicated region body
PF: predicated region fallthrough
CT: control target
= control target key end

     0   :  { %s9522_s1 = inlined_call_operand.vmem [shape: bf16[256,256], index: 1, kind: input, shape index: {}]   ;;  %s9523_s2 = inlined_call_operand.vmem [shape: s8[256,256], index: 2, kind: input, shape index: {}]   ;;  %s9524_s5 = inlined_call_operand.vmem [shape: bf16[128,256], index: 5, kind: input, shape index: {}]   ;;  %s9525_s3 = inlined_call_operand.vmem [shape: f32[256,128], index: 3, kind: input, shape index: {}]   ;;  %s9526_s0 = inlined_call_operand.<no memory space> [shape: f32[1,1], index: 0, kind: input, shape index: {}]   ;;  %s9527_s6 = inlined_call_operand.vmem [shape: f32[1,256], index: 6, kind: input, shape index: {}]   ;;  %s9528_s9 = inlined_call_operand.vmem [shape: bf16[256,128], index: 9, kind: input, shape index: {}]   ;;  %s9529_s7 = inlined_call_operand.vmem [shape: f32[1,256], index: 7, kind: input, shape index: {}]   ;;  %s9530_s8 = inlined_call_operand.vmem [shape: f32[1,256], index: 8, kind: input, shape index: {}]   ;;  %s9531_s10 = inlined_call_operand.vmem [shape: f32[1,128], index: 10, kind: input, shape index: {}]   ;;  %s9532_s4 = inlined_call_operand.vmem [shape: f32[256,128], index: 4, kind: input, shape index: {}]   ;;  %s9533_s11 = inlined_call_operand.vmem [shape: f32[256,128], index: 11, kind: output, shape index: {}]  }
   0x1   :  { %v4783_v0 = vld [vmem:[%s9522_s1 + $0x74] sm:$0xf]  ;;  %v4573_v1 = vld [vmem:[%s9522_s1 + $0x78] sm:$0xf0]  ;;  %v4781_v5 = vld [vmem:[%s9522_s1 + $0x64] sm:$0xf] }
   0x2   :  { %v4799_v2 = vld [vmem:[%s9522_s1 + $0xf4] sm:$0xf]  ;;  %v4576_v3 = vor.u32 %v4783_v0, %v4573_v1  ;;  %v4637_v4 = vld [vmem:[%s9522_s1 + $0xf8] sm:$0xf0]  ;;  %v4565_v6 = vld [vmem:[%s9522_s1 + $0x68] sm:$0xf0] }
   0x3   :  { %v4640_v7 = vor.u32 %v4799_v2, %v4637_v4  ;;  %v4797_v8 = vld [vmem:[%s9522_s1 + $0xe4] sm:$0xf]  ;;  %v4629_v9 = vld [vmem:[%s9522_s1 + $0xe8] sm:$0xf0]  ;;  %v4568_v10 = vor.u32 %v4781_v5, %v4565_v6  ;;  %v4779_v12 = vld [vmem:[%s9522_s1 + $0x54] sm:$0xf] }
   0x4   :  { %723 = vmatpush.bf16.msra.mxu2 %v4576_v3  ;;  %v4632_v11 = vor.u32 %v4797_v8, %v4629_v9  ;;  %v4557_v13 = vld [vmem:[%s9522_s1 + $0x58] sm:$0xf0]  ;;  %v4795_v14 = vld [vmem:[%s9522_s1 + $0xd4] sm:$0xf]  ;;  %v4571_v16 = vld [vmem:[%s9522_s1 + $0x70] sm:$0xf] }
   0x5   :  { %812 = vmatpush.bf16.msra.mxu3 %v4640_v7  ;;  %v4621_v15 = vld [vmem:[%s9522_s1 + $0xd8] sm:$0xf0]  ;;  %v4560_v17 = vor.u32 %v4779_v12, %v4557_v13  ;;  %v4784_v18 = vld [vmem:[%s9522_s1 + $0x74] sm:$0xf0]  ;;  %v4635_v19 = vld [vmem:[%s9522_s1 + $0xf0] sm:$0xf] }
   0x6   :  { %v4800_v20 = vld [vmem:[%s9522_s1 + $0xf4] sm:$0xf0]  ;;  %v4624_v21 = vor.u32 %v4795_v14, %v4621_v15  ;;  %v4777_v22 = vld [vmem:[%s9522_s1 + $0x44] sm:$0xf]  ;;  %v4549_v23 = vld [vmem:[%s9522_s1 + $0x48] sm:$0xf0]  ;;  %v4572_v25 = vor.u32 %v4784_v18, %v4571_v16 }
   0x7   :  { %v4793_v24 = vld [vmem:[%s9522_s1 + $0xc4] sm:$0xf]  ;;  %v4636_v26 = vor.u32 %v4800_v20, %v4635_v19  ;;  %v4613_v27 = vld [vmem:[%s9522_s1 + $0xc8] sm:$0xf0]  ;;  %v4563_v28 = vld [vmem:[%s9522_s1 + $0x60] sm:$0xf]  ;;  %v4552_v33 = vor.u32 %v4777_v22, %v4549_v23 }
   0x8   :  { %724 = vmatpush.bf16.msra.mxu2 %v4568_v10  ;;  %v4782_v29 = vld [vmem:[%s9522_s1 + $0x64] sm:$0xf0]  ;;  %545 = vmatpush.bf16.msra.mxu0 %v4572_v25  ;;  %v4627_v31 = vld [vmem:[%s9522_s1 + $0xe0] sm:$0xf]  ;;  %v4775_v34 = vld [vmem:[%s9522_s1 + $0x34] sm:$0xf]  ;;  %v4616_v37 = vor.u32 %v4793_v24, %v4613_v27 }
   0x9   :  { %813 = vmatpush.bf16.msra.mxu3 %v4632_v11  ;;  %634 = vmatpush.bf16.msra.mxu1 %v4636_v26  ;;  %v4564_v30 = vor.u32 %v4782_v29, %v4563_v28  ;;  %v4798_v32 = vld [vmem:[%s9522_s1 + $0xe4] sm:$0xf0]  ;;  %v4541_v35 = vld [vmem:[%s9522_s1 + $0x38] sm:$0xf0]  ;;  %v4555_v38 = vld [vmem:[%s9522_s1 + $0x50] sm:$0xf] }
   0xa   :  { %v4628_v36 = vor.u32 %v4798_v32, %v4627_v31  ;;  %v4780_v39 = vld [vmem:[%s9522_s1 + $0x54] sm:$0xf0]  ;;  %v4619_v40 = vld [vmem:[%s9522_s1 + $0xd0] sm:$0xf]  ;;  %v4791_v41 = vld [vmem:[%s9522_s1 + $0xb4] sm:$0xf]  ;;  %v4544_v47 = vor.u32 %v4775_v34, %v4541_v35 }
   0xb   :  { %v4605_v42 = vld [vmem:[%s9522_s1 + $0xb8] sm:$0xf0]  ;;  %v4796_v43 = vld [vmem:[%s9522_s1 + $0xd4] sm:$0xf0]  ;;  %v4556_v44 = vor.u32 %v4780_v39, %v4555_v38  ;;  %v4547_v46 = vld [vmem:[%s9522_s1 + $0x40] sm:$0xf] }
   0xc   :  { %725 = vmatpush.bf16.msra.mxu2 %v4560_v17  ;;  %546 = vmatpush.bf16.msra.mxu0 %v4564_v30  ;;  %v4620_v45 = vor.u32 %v4796_v43, %v4619_v40  ;;  %v4778_v48 = vld [vmem:[%s9522_s1 + $0x44] sm:$0xf0]  ;;  %v4611_v49 = vld [vmem:[%s9522_s1 + $0xc0] sm:$0xf]  ;;  %v4608_v51 = vor.u32 %v4791_v41, %v4605_v42  ;;  %v4773_v52 = vld [vmem:[%s9522_s1 + $0x24] sm:$0xf] }
   0xd   :  { %814 = vmatpush.bf16.msra.mxu3 %v4624_v21  ;;  %635 = vmatpush.bf16.msra.mxu1 %v4628_v36  ;;  %v4794_v50 = vld [vmem:[%s9522_s1 + $0xc4] sm:$0xf0]  ;;  %v4533_v53 = vld [vmem:[%s9522_s1 + $0x28] sm:$0xf0]  ;;  %v4789_v54 = vld [vmem:[%s9522_s1 + $0xa4] sm:$0xf]  ;;  %v4548_v56 = vor.u32 %v4778_v48, %v4547_v46 }
   0xe   :  { %v4597_v55 = vld [vmem:[%s9522_s1 + $0xa8] sm:$0xf0]  ;;  %v4612_v57 = vor.u32 %v4794_v50, %v4611_v49  ;;  %v5306_v58 = vld [vmem:[%s9523_s2] sm:$0xff]  ;;  %v4539_v59 = vld [vmem:[%s9522_s1 + $0x30] sm:$0xf]  ;;  %v4536_v60 = vor.u32 %v4773_v52, %v4533_v53 }
   0xf   :  { %v4776_v61 = vld [vmem:[%s9522_s1 + $0x34] sm:$0xf0]  ;;  %v4603_v62 = vld [vmem:[%s9522_s1 + $0xb0] sm:$0xf]  ;;  %v4600_v0 = vor.u32 %v4789_v54, %v4597_v55  ;;  %v4771_v1 = vld [vmem:[%s9522_s1 + $0x14] sm:$0xf]  ;;  %v161_v6 = vunpack.c.0.s8 %v5306_v58  ;;  %v163_v7 = vunpack.c.1.s8 %v5306_v58 }
  0x10   :  { %726 = vmatpush.bf16.msra.mxu2 %v4552_v33  ;;  %547 = vmatpush.bf16.msra.mxu0 %v4556_v44  ;;  %v4792_v63 = vld [vmem:[%s9522_s1 + $0xb4] sm:$0xf0]  ;;  %v4525_v2 = vld [vmem:[%s9522_s1 + $0x18] sm:$0xf0]  ;;  %v5329_v3 = vld [vmem:[%s9523_s2 + $0x8] sm:$0xff]  ;;  %v4540_v8 = vor.u32 %v4776_v61, %v4539_v59  ;;  %v165_v44 = vunpack.c.2.s8 %v5306_v58 }
  0x11   :  { %815 = vmatpush.bf16.msra.mxu3 %v4616_v37  ;;  %636 = vmatpush.bf16.msra.mxu1 %v4620_v45  ;;  %v4787_v4 = vld [vmem:[%s9522_s1 + $0x94] sm:$0xf]  ;;  %v4589_v5 = vld [vmem:[%s9522_s1 + $0x98] sm:$0xf0]  ;;  %v4604_v9 = vor.u32 %v4792_v63, %v4603_v62  ;;  %v4531_v10 = vld [vmem:[%s9522_s1 + $0x20] sm:$0xf]  ;;  %v4528_v11 = vor.u32 %v4771_v1, %v4525_v2  ;;  %v162_v12 = vunpack.c.0.s8 %v5329_v3  ;;  %v164_v13 = vunpack.c.1.s8 %v5329_v3 }
  0x12   :  { %v4774_v14 = vld [vmem:[%s9522_s1 + $0x24] sm:$0xf0]  ;;  %v4595_v15 = vld [vmem:[%s9522_s1 + $0xa0] sm:$0xf]  ;;  %v4592_v17 = vor.u32 %v4787_v4, %v4589_v5  ;;  %v4769_v18 = vld [vmem:[%s9522_s1 + $0x4] sm:$0xf]  ;;  %v225_v22 = vcvt.s32.f32 %v161_v6  ;;  %v227_v23 = vcvt.s32.f32 %v163_v7  ;;  %v167_v45 = vunpack.c.3.s8 %v5306_v58 }
  0x13   :  { %v4790_v16 = vld [vmem:[%s9522_s1 + $0xa4] sm:$0xf0]  ;;  %v4517_v19 = vld [vmem:[%s9522_s1 + $0x8] sm:$0xf0]  ;;  %v4785_v20 = vld [vmem:[%s9522_s1 + $0x84] sm:$0xf]  ;;  %v4532_v24 = vor.u32 %v4774_v14, %v4531_v10  ;;  %v226_v27 = vcvt.s32.f32 %v162_v12  ;;  %v228_v28 = vcvt.s32.f32 %v164_v13  ;;  %v166_v46 = vunpack.c.2.s8 %v5329_v3 }
  0x14   :  { %727 = vmatpush.bf16.msra.mxu2 %v4544_v47  ;;  %548 = vmatpush.bf16.msra.mxu0 %v4548_v56  ;;  %v4581_v21 = vld [vmem:[%s9522_s1 + $0x88] sm:$0xf0]  ;;  %v4596_v25 = vor.u32 %v4790_v16, %v4595_v15  ;;  %v4520_v26 = vor.u32 %v4769_v18, %v4517_v19  ;;  %v4523_v29 = vld [vmem:[%s9522_s1 + $0x10] sm:$0xf]  ;;  %v4772_v30 = vld [vmem:[%s9522_s1 + $0x14] sm:$0xf0]  ;;  %v289_v34 = vpack.c.bf16 %v227_v23, %v225_v22  ;;  %v168_v47 = vunpack.c.3.s8 %v5329_v3 }
  0x15   :  { %816 = vmatpush.bf16.msra.mxu3 %v4608_v51  ;;  %637 = vmatpush.bf16.msra.mxu1 %v4612_v57  ;;  %v4584_v31 = vor.u32 %v4785_v20, %v4581_v21  ;;  %v4587_v32 = vld [vmem:[%s9522_s1 + $0x90] sm:$0xf]  ;;  %v4788_v33 = vld [vmem:[%s9522_s1 + $0x94] sm:$0xf0]  ;;  %v4524_v35 = vor.u32 %v4772_v30, %v4523_v29  ;;  %v290_v36 = vpack.c.bf16 %v228_v28, %v226_v27  ;;  %v4515_v38 = vld [vmem:[%s9522_s1] sm:$0xf]  ;;  %v229_v48 = vcvt.s32.f32 %v165_v44 }
  0x16   :  { %v4588_v37 = vor.u32 %v4788_v33, %v4587_v32  ;;  %v4770_v39 = vld [vmem:[%s9522_s1 + $0x4] sm:$0xf0]  ;;  %v4579_v40 = vld [vmem:[%s9522_s1 + $0x80] sm:$0xf]  ;;  %v231_v49 = vcvt.s32.f32 %v167_v45  ;;  %v230_v50 = vcvt.s32.f32 %v166_v46  ;;  %v232_v51 = vcvt.s32.f32 %v168_v47  ;;  %v147_v54 = vld [vmem:[%s9523_s2 + $0x10] sm:$0xff] }
  0x17   :  { %v4786_v41 = vld [vmem:[%s9522_s1 + $0x84] sm:$0xf0]  ;;  %v4516_v42 = vor.u32 %v4770_v39, %v4515_v38  ;;  %v4699_v55 = vld [vmem:[%s9524_s5 + $0x70] sm:$0xf]  ;;  %v4816_v56 = vld [vmem:[%s9524_s5 + $0x74] sm:$0xf0]  ;;  %v169_v62 = vunpack.c.0.s8 %v147_v54  ;;  %v171_v63 = vunpack.c.1.s8 %v147_v54 }
  0x18   :  { %728 = vmatpush.bf16.msra.mxu2 %v4536_v60  ;;  %549 = vmatpush.bf16.msra.mxu0 %v4540_v8  ;;  %v4580_v43 = vor.u32 %v4786_v41, %v4579_v40  ;;  %v291_v52 = vpack.c.bf16 %v231_v49, %v229_v48  ;;  %v292_v53 = vpack.c.bf16 %v232_v51, %v230_v50  ;;  %v4815_v57 = vld [vmem:[%s9524_s5 + $0x74] sm:$0xf]  ;;  %v148_v58 = vld [vmem:[%s9523_s2 + $0x18] sm:$0xff]  ;;  %v173_v8 = vunpack.c.2.s8 %v147_v54  ;;  %v149_v18 = vld [vmem:[%s9523_s2 + $0x20] sm:$0xff] }
  0x19   :  { %817 = vmatpush.bf16.msra.mxu3 %v4600_v0  ;;  %638 = vmatpush.bf16.msra.mxu1 %v4604_v9  ;;  %v4700_v59 = vor.u32 %v4816_v56, %v4699_v55  ;;  %v4701_v60 = vld [vmem:[%s9524_s5 + $0x78] sm:$0xf0]  ;;  %v170_v0 = vunpack.c.0.s8 %v148_v58  ;;  %v172_v1 = vunpack.c.1.s8 %v148_v58  ;;  %v233_v2 = vcvt.s32.f32 %v169_v62  ;;  %v4691_v19 = vld [vmem:[%s9524_s5 + $0x60] sm:$0xf]  ;;  %v4814_v20 = vld [vmem:[%s9524_s5 + $0x64] sm:$0xf0] }
  0x1a   :  { %v4704_v61 = vor.u32 %v4815_v57, %v4701_v60  ;;  %v235_v3 = vcvt.s32.f32 %v171_v63  ;;  %v175_v9 = vunpack.c.3.s8 %v147_v54  ;;  %v174_v10 = vunpack.c.2.s8 %v148_v58  ;;  %v4813_v21 = vld [vmem:[%s9524_s5 + $0x64] sm:$0xf]  ;;  %v150_v22 = vld [vmem:[%s9523_s2 + $0x28] sm:$0xff]  ;;  %v151_v46 = vld [vmem:[%s9523_s2 + $0x30] sm:$0xff] }
  0x1b   :  { %v234_v4 = vcvt.s32.f32 %v170_v0  ;;  %v236_v5 = vcvt.s32.f32 %v172_v1  ;;  %v237_v12 = vcvt.s32.f32 %v173_v8  ;;  %v4692_v23 = vor.u32 %v4814_v20, %v4691_v19  ;;  %v4683_v47 = vld [vmem:[%s9524_s5 + $0x50] sm:$0xf]  ;;  %v4812_v48 = vld [vmem:[%s9524_s5 + $0x54] sm:$0xf0]  ;;  %v4811_v49 = vld [vmem:[%s9524_s5 + $0x54] sm:$0xf] }
  0x1c   :  { %729 = vmatpush.bf16.msra.mxu2 %v4528_v11  ;;  %550 = vmatpush.bf16.msra.mxu0 %v4532_v24  ;;  %v293_v6 = vpack.c.bf16 %v235_v3, %v233_v2  ;;  %v176_v11 = vunpack.c.3.s8 %v148_v58  ;;  %v239_v13 = vcvt.s32.f32 %v175_v9  ;;  %v238_v14 = vcvt.s32.f32 %v174_v10  ;;  %v4693_v24 = vld [vmem:[%s9524_s5 + $0x68] sm:$0xf0]  ;;  %v152_v50 = vld [vmem:[%s9523_s2 + $0x38] sm:$0xff]  ;;  %v1672_v8 = vld [vmem:[%s9525_s3] sm:$0xff] }
  0x1d   :  { %818 = vmatpush.bf16.msra.mxu3 %v4592_v17  ;;  %639 = vmatpush.bf16.msra.mxu1 %v4596_v25  ;;  %v294_v7 = vpack.c.bf16 %v236_v5, %v234_v4  ;;  %v4696_v25 = vor.u32 %v4813_v21, %v4693_v24  ;;  %v179_v27 = vunpack.c.1.s8 %v149_v18  ;;  %v178_v28 = vunpack.c.0.s8 %v150_v22  ;;  %v4675_v20 = vld [vmem:[%s9524_s5 + $0x40] sm:$0xf]  ;;  %v4810_v21 = vld [vmem:[%s9524_s5 + $0x44] sm:$0xf0]  ;;  %v4677_v24 = vld [vmem:[%s9524_s5 + $0x48] sm:$0xf0] }
  0x1e   :  { %v240_v15 = vcvt.s32.f32 %v176_v11  ;;  %v295_v16 = vpack.c.bf16 %v239_v13, %v237_v12  ;;  %v180_v29 = vunpack.c.1.s8 %v150_v22  ;;  %v182_v38 = vunpack.c.2.s8 %v150_v22  ;;  %v153_v12 = vld [vmem:[%s9523_s2 + $0x40] sm:$0xff]  ;;  %v154_v13 = vld [vmem:[%s9523_s2 + $0x48] sm:$0xff] }
  0x1f   :  { %v242_v32 = vcvt.s32.f32 %v178_v28  ;;  %v184_v39 = vunpack.c.3.s8 %v150_v22  ;;  %v4684_v51 = vor.u32 %v4812_v48, %v4683_v47  ;;  %v185_v54 = vunpack.c.0.s8 %v151_v46  ;;  %v4809_v22 = vld [vmem:[%s9524_s5 + $0x44] sm:$0xf] }
  0x20   :  { %730 = vmatpush.bf16.msra.mxu2 %v4520_v26  ;;  %551 = vmatpush.bf16.msra.mxu0 %v4524_v35  ;;  %v296_v17 = vpack.c.bf16 %v240_v15, %v238_v14  ;;  %v177_v26 = vunpack.c.0.s8 %v149_v18  ;;  %v244_v33 = vcvt.s32.f32 %v180_v29  ;;  %v187_v55 = vunpack.c.1.s8 %v151_v46  ;;  %v1673_v14 = vld [vmem:[%s9525_s3 + $0x8] sm:$0xff] }
  0x21   :  { %819 = vmatpush.bf16.msra.mxu3 %v4584_v31  ;;  %640 = vmatpush.bf16.msra.mxu1 %v4588_v37  ;;  %v243_v31 = vcvt.s32.f32 %v179_v27  ;;  %v183_v37 = vunpack.c.3.s8 %v149_v18  ;;  %v186_v56 = vunpack.c.0.s8 %v152_v50  ;;  %v188_v57 = vunpack.c.1.s8 %v152_v50 }
  0x22   :  { %v241_v30 = vcvt.s32.f32 %v177_v26  ;;  %v298_v35 = vpack.c.bf16 %v244_v33, %v242_v32  ;;  %v249_v58 = vcvt.s32.f32 %v185_v54  ;;  %v189_v0 = vunpack.c.2.s8 %v151_v46  ;;  %v1675_v32 = vld [vmem:[%s9525_s3 + $0x18] sm:$0xff] }
  0x23   :  { %731 = vmatmul.bf16.vlgmr.msra.gmra.mxu2 %v289_v34  ;;  %v247_v41 = vcvt.s32.f32 %v183_v37  ;;  %v250_v60 = vcvt.s32.f32 %v186_v56  ;;  %v191_v1 = vunpack.c.3.s8 %v151_v46  ;;  %v190_v2 = vunpack.c.2.s8 %v152_v50 }
  0x24   :  { %820 = vmatmul.bf16.vlgmr.msra.gmra.mxu3 %v290_v36  ;;  %552 = vmatpush.bf16.msra.mxu0 %v4516_v42  ;;  %v246_v42 = vcvt.s32.f32 %v182_v38  ;;  %v192_v3 = vunpack.c.3.s8 %v152_v50  ;;  %v253_v4 = vcvt.s32.f32 %v189_v0  ;;  %v2152_v9 = vmul.f32 %v1672_v8, %v1672_v8 }
  0x25   :  { %641 = vmatpush.bf16.msra.mxu1 %v4580_v43  ;;  %v248_v43 = vcvt.s32.f32 %v184_v39  ;;  %v255_v5 = vcvt.s32.f32 %v191_v1  ;;  %v2153_v15 = vmul.f32 %v1673_v14, %v1673_v14  ;;  %v196_v19 = vunpack.c.1.s8 %v154_v13 }
  0x26   :  { %2184 = vadd.xlane.f32.xlu1 %v2152_v9  ;;  %v197_v37 = vunpack.c.2.s8 %v153_v12  ;;  %v199_v38 = vunpack.c.3.s8 %v153_v12 }
  0x27   :  { %553 = vmatmul.bf16.vlgmr.msra.gmra.mxu0 %v289_v34  ;;  %v297_v34 = vpack.c.bf16 %v243_v31, %v241_v30  ;;  %v300_v45 = vpack.c.bf16 %v248_v43, %v246_v42  ;;  %v303_v10 = vpack.c.bf16 %v255_v5, %v253_v4  ;;  %v260_v29 = vcvt.s32.f32 %v196_v19 }
  0x28   :  { %642 = vmatmul.bf16.vlgmr.msra.gmra.mxu1 %v290_v36  ;;  %2880 = vmatpush.bf16.msrb.mxu0 %v4700_v59  ;;  %v181_v36 = vunpack.c.2.s8 %v149_v18  ;;  %v251_v59 = vcvt.s32.f32 %v187_v55  ;;  %v194_v18 = vunpack.c.0.s8 %v154_v13  ;;  %v200_v42 = vunpack.c.3.s8 %v154_v13 }
  0x29   :  { %2969 = vmatpush.bf16.msrb.mxu1 %v4704_v61  ;;  %v252_v61 = vcvt.s32.f32 %v188_v57  ;;  %v261_v43 = vcvt.s32.f32 %v197_v37  ;;  %v5488_v57 = vld [vmem:[%s9523_s2 + $0x50] sm:$0xff] }
  0x2a   :  { %v245_v40 = vcvt.s32.f32 %v181_v36  ;;  %v301_v62 = vpack.c.bf16 %v251_v59, %v249_v58  ;;  %v258_v28 = vcvt.s32.f32 %v194_v18  ;;  %v264_v47 = vcvt.s32.f32 %v200_v42 }
  0x2b   :  { %v302_v63 = vpack.c.bf16 %v252_v61, %v250_v60  ;;  %v5499_v60 = vld [vmem:[%s9523_s2 + $0x58] sm:$0xff]  ;;  %v203_v0 = vunpack.c.1.s8 %v5488_v57 }
  0x2c   :  { %2881 = vmatpush.bf16.msrb.mxu0 %v4692_v23  ;;  %v299_v44 = vpack.c.bf16 %v247_v41, %v245_v40  ;;  %v4676_v23 = vor.u32 %v4810_v21, %v4675_v20  ;;  %v306_v31 = vpack.c.bf16 %v260_v29, %v258_v28  ;;  %v198_v41 = vunpack.c.2.s8 %v154_v13 }
  0x2d   :  { %2970 = vmatpush.bf16.msrb.mxu1 %v4696_v25  ;;  %v4680_v25 = vor.u32 %v4809_v22, %v4677_v24  ;;  %v204_v8 = vunpack.c.1.s8 %v5499_v60  ;;  %v267_v14 = vcvt.s32.f32 %v203_v0 }
  0x2e   :  { %2186 = vadd.xlane.f32.xlu1 %v2153_v15  ;;  %v262_v46 = vcvt.s32.f32 %v198_v41 }
  0x2f   :  { %v268_v20 = vcvt.s32.f32 %v204_v8 }
  0x30   :  { %2882 = vmatpush.bf16.msrb.mxu0 %v4684_v51 }
  0x33   :  { %736 = vmatmul.bf16.gmra.mxu2 %v291_v52 }
  0x34   :  { %825 = vmatmul.bf16.gmra.mxu3 %v292_v53  ;;  %2883 = vmatpush.bf16.msrb.mxu0 %v4676_v23 }
  0x37   :  { %558 = vmatmul.bf16.gmra.mxu0 %v291_v52  ;;  %v4685_v52 = vld [vmem:[%s9524_s5 + $0x58] sm:$0xf0] }
  0x38   :  { %647 = vmatmul.bf16.gmra.mxu1 %v292_v53  ;;  %v4688_v53 = vor.u32 %v4811_v49, %v4685_v52 }
  0x3a   :  { %2971 = vmatpush.bf16.msrb.mxu1 %v4688_v53  ;;  %v308_v53 = vpack.c.bf16 %v264_v47, %v262_v46 }
  0x3e   :  { %2972 = vmatpush.bf16.msrb.mxu1 %v4680_v25 }
  0x43   :  { %741 = vmatmul.bf16.gmra.mxu2 %v293_v6 }
  0x44   :  { %830 = vmatmul.bf16.gmra.mxu3 %v294_v7 }
  0x47   :  { %563 = vmatmul.bf16.gmra.mxu0 %v293_v6  ;;  %v254_v6 = vcvt.s32.f32 %v190_v2 }
  0x48   :  { %652 = vmatmul.bf16.gmra.mxu1 %v294_v7  ;;  %v256_v7 = vcvt.s32.f32 %v192_v3 }
  0x4a   :  { %v304_v11 = vpack.c.bf16 %v256_v7, %v254_v6  ;;  %v202_v7 = vunpack.c.0.s8 %v5499_v60 }
  0x4c   :  { %v266_v19 = vcvt.s32.f32 %v202_v7 }
  0x53   :  { %746 = vmatmul.bf16.gmra.mxu2 %v295_v16 }
  0x54   :  { %835 = vmatmul.bf16.gmra.mxu3 %v296_v17 }
  0x57   :  { %568 = vmatmul.bf16.gmra.mxu0 %v295_v16  ;;  %v193_v16 = vunpack.c.0.s8 %v153_v12 }
  0x58   :  { %657 = vmatmul.bf16.gmra.mxu1 %v296_v17  ;;  %v195_v17 = vunpack.c.1.s8 %v153_v12 }
  0x59   :  { %v257_v26 = vcvt.s32.f32 %v193_v16 }
  0x5a   :  { %v259_v27 = vcvt.s32.f32 %v195_v17 }
  0x5c   :  { %v305_v30 = vpack.c.bf16 %v259_v27, %v257_v26 }
  0x63   :  { %751 = vmatmul.bf16.gmra.mxu2 %v297_v34 }
  0x64   :  { %840 = vmatmul.bf16.gmra.mxu3 %v298_v35 }
  0x67   :  { %573 = vmatmul.bf16.gmra.mxu0 %v297_v34  ;;  %v2155_v34 = vmul.f32 %v1675_v32, %v1675_v32 }
  0x68   :  { %662 = vmatmul.bf16.gmra.mxu1 %v298_v35 }
  0x69   :  { %2190 = vadd.xlane.f32.xlu1 %v2155_v34 }
  0x73   :  { %756 = vmatmul.bf16.gmra.mxu2 %v299_v44 }
  0x74   :  { %845 = vmatmul.bf16.gmra.mxu3 %v300_v45 }
  0x77   :  { %578 = vmatmul.bf16.gmra.mxu0 %v299_v44  ;;  %v263_v44 = vcvt.s32.f32 %v199_v38 }
  0x78   :  { %667 = vmatmul.bf16.gmra.mxu1 %v300_v45 }
  0x79   :  { %v307_v50 = vpack.c.bf16 %v263_v44, %v261_v43 }
  0x83   :  { %761 = vmatmul.bf16.gmra.mxu2 %v301_v62 }
  0x84   :  { %850 = vmatmul.bf16.gmra.mxu3 %v302_v63 }
  0x87   :  { %583 = vmatmul.bf16.gmra.mxu0 %v301_v62 }
  0x88   :  { %672 = vmatmul.bf16.gmra.mxu1 %v302_v63  ;;  %v201_v63 = vunpack.c.0.s8 %v5488_v57 }
  0x8a   :  { %v265_v13 = vcvt.s32.f32 %v201_v63 }
  0x8c   :  { %v5519_v24 = vpack.c.bf16 %v267_v14, %v265_v13 }
  0x93   :  { %766 = vmatmul.bf16.gmra.mxu2 %v303_v10 }
  0x94   :  { %855 = vmatmul.bf16.gmra.mxu3 %v304_v11 }
  0x97   :  { %588 = vmatmul.bf16.gmra.mxu0 %v303_v10 }
  0x98   :  { %677 = vmatmul.bf16.gmra.mxu1 %v304_v11 }
  0xa3   :  { %771 = vmatmul.bf16.gmra.mxu2 %v305_v30 }
  0xa4   :  { %860 = vmatmul.bf16.gmra.mxu3 %v306_v31  ;;  %v554_v36 = vpop.f32.mrf.mxu0 }
  0xa5   :  { %v643_v40 = vpop.f32.mrf.mxu1 }
  0xa6   :  { %v732_v33 = vpop.f32.mrf.mxu2  ;;  %v644_v9 = vadd.f32 %v643_v40, %v554_v36  ;;  %v1676_v36 = vld [vmem:[%s9525_s3 + $0x20] sm:$0xff] }
  0xa7   :  { %v821_v35 = vpop.f32.mrf.mxu3  ;;  %593 = vmatmul.bf16.gmra.mxu0 %v305_v30  ;;  %v2156_v40 = vmul.f32 %v1676_v36, %v1676_v36 }
  0xa8   :  { %v5474_v39 = vadd.f32 %v821_v35, %v732_v33  ;;  %682 = vmatmul.bf16.gmra.mxu1 %v306_v31  ;;  %v5533_v33 = vpack.c.bf16 %v268_v20, %v266_v19 }
  0xa9   :  { %2192 = vadd.xlane.f32.xlu1 %v2156_v40 }
  0xaa   :  { %vm1096_vm0 = vcmp.gt.f32.partialorder %v5474_v39, 0.0 }
  0xab   :  { %v1128_v45 = vsel %vm1096_vm0, %v5474_v39, 1.0 }
  0xac   :  { %4835 = vrcp.f32 %v1128_v45  ;;  %v5480_v51 = vpop.f32.mrf.mxu0  ;;  %v1171_v62 = vand.u32 2147483648, %v1128_v45  ;;  %v1169_v4 = vand.u32 2147483647, %v1128_v45  ;;  %vm1165_vm3 = vweird.f32 %v1128_v45 }
  0xad   :  { %v645_v54 = vpop.f32.mrf.mxu1 }
  0xae   :  { %v734_v48 = vpop.f32.mrf.mxu2  ;;  %v1172_v12 = vor.u32 1.1754944e-38, %v1171_v62  ;;  %vm1170_vm6 = vcmp.eq.f32.partialorder %v1169_v4, 8.507059e+37  ;;  %v646_v38 = vadd.f32 %v645_v54, %v5480_v51  ;;  %v207_v51 = vunpack.c.3.s8 %v5488_v57 }
  0xaf   :  { %v823_v49 = vpop.f32.mrf.mxu3  ;;  %v208_v62 = vunpack.c.3.s8 %v5499_v60 }
  0xb0   :  { %v5482_v52 = vadd.f32 %v823_v49, %v734_v48 }
  0xb2   :  { %v4836_v55 = vpop.eup %4835  ;;  %vm1097_vm1 = vcmp.gt.f32.partialorder %v5482_v52, 0.0 }
  0xb3   :  { %776 = vmatmul.bf16.gmra.mxu2 %v307_v50  ;;  %v1161_v56 = vmul.f32 %v4836_v55, %v1128_v45  ;;  %v5493_v58 = vsel %vm1097_vm1, %v5482_v52, 1.0  ;;  %vm1166_vm2 = vweird.f32 %v4836_v55 }
  0xb4   :  { %865 = vmatmul.bf16.gmra.mxu3 %v308_v53  ;;  %4837 = vrcp.f32 %v5493_v58  ;;  %v5503_v2 = vpop.f32.mrf.mxu0  ;;  %vm1167_vm4 = vmor %vm1165_vm3, %vm1166_vm2  ;;  %v1186_v25 = vand.u32 2147483648, %v5493_v58  ;;  %v1184_v30 = vand.u32 2147483647, %v5493_v58  ;;  %vm1180_vm8 = vweird.f32 %v5493_v58 }
  0xb5   :  { %v1162_v59 = vsub.f32 1.0, %v1161_v56  ;;  %v5507_v6 = vpop.f32.mrf.mxu1  ;;  %v206_v56 = vunpack.c.2.s8 %v5499_v60 }
  0xb6   :  { %v737_v61 = vpop.f32.mrf.mxu2  ;;  %v1187_v39 = vor.u32 1.1754944e-38, %v1186_v25  ;;  %vm1185_vm11 = vcmp.eq.f32.partialorder %v1184_v30, 8.507059e+37  ;;  %v649_v4 = vadd.f32 %v5507_v6, %v5503_v2  ;;  %v1674_v2 = vld [vmem:[%s9525_s3 + $0x10] sm:$0xff] }
  0xb7   :  { %v826_v1 = vpop.f32.mrf.mxu3  ;;  %v1163_v3 = vmul.f32 %v4836_v55, %v1162_v59  ;;  %598 = vmatmul.bf16.gmra.mxu0 %v307_v50  ;;  %v205_v50 = vunpack.c.2.s8 %v5488_v57  ;;  %v4667_v59 = vld [vmem:[%s9524_s5 + $0x30] sm:$0xf]  ;;  %v2154_v20 = vmul.f32 %v1674_v2, %v1674_v2 }
  0xb8   :  { %v5505_v5 = vadd.f32 %v826_v1, %v737_v61  ;;  %687 = vmatmul.bf16.gmra.mxu1 %v308_v53  ;;  %v4808_v61 = vld [vmem:[%s9524_s5 + $0x34] sm:$0xf0]  ;;  %v4807_v1 = vld [vmem:[%s9524_s5 + $0x34] sm:$0xf] }
  0xb9   :  { %v1164_v10 = vadd.f32 %v4836_v55, %v1163_v3  ;;  %v4668_v0 = vor.u32 %v4808_v61, %v4667_v59  ;;  %v4669_v3 = vld [vmem:[%s9524_s5 + $0x38] sm:$0xf0] }
  0xba   :  { %v4838_v11 = vpop.eup %4837  ;;  %vm1098_vm5 = vcmp.gt.f32.partialorder %v5505_v5, 0.0  ;;  %v4672_v8 = vor.u32 %v4807_v1, %v4669_v3 }
  0xbb   :  { %v1168_v15 = vsel %vm1167_vm4, %v4836_v55, %v1164_v10  ;;  %v1176_v16 = vmul.f32 %v4838_v11, %v5493_v58  ;;  %v5516_v17 = vsel %vm1098_vm5, %v5505_v5, 1.0  ;;  %vm1181_vm7 = vweird.f32 %v4838_v11  ;;  %2884 = vmatpush.bf16.msrb.mxu0 %v4668_v0 }
  0xbc   :  { %v1173_v18 = vsel %vm1170_vm6, %v1172_v12, %v1168_v15  ;;  %4839 = vrcp.f32 %v5516_v17  ;;  %v5526_v28 = vpop.f32.mrf.mxu0  ;;  %vm1182_vm9 = vmor %vm1180_vm8, %vm1181_vm7  ;;  %v1199_v48 = vand.u32 2147483647, %v5516_v17  ;;  %v1201_v49 = vand.u32 2147483648, %v5516_v17  ;;  %2973 = vmatpush.bf16.msrb.mxu1 %v4672_v8 }
  0xbd   :  { %v1174_v21 = vmul.f32 %v1173_v18, %v644_v9  ;;  %v1177_v22 = vsub.f32 1.0, %v1176_v16  ;;  %v5535_v34 = vpop.f32.mrf.mxu1  ;;  %vm1195_vm13 = vweird.f32 %v5516_v17  ;;  %v269_v10 = vcvt.s32.f32 %v205_v50 }
  0xbe   :  { %v739_v23 = vpop.f32.mrf.mxu2  ;;  %v1202_v60 = vor.u32 1.1754944e-38, %v1201_v49  ;;  %v270_v15 = vcvt.s32.f32 %v206_v56  ;;  %v272_v16 = vcvt.s32.f32 %v208_v62 }
  0xbf   :  { %v828_v26 = vpop.f32.mrf.mxu3  ;;  %v5524_v27 = vsel %vm1096_vm0, %v1174_v21, 0.0  ;;  %v1178_v29 = vmul.f32 %v4838_v11, %v1177_v22  ;;  %vm1200_vm0 = vcmp.eq.f32.partialorder %v1199_v48, 8.507059e+37 }
  0xc0   :  { %v5529_v31 = vadd.f32 %v828_v26, %v739_v23  ;;  %v1704_v32 = vmul.f32 %v5524_v27, %v5524_v27 }
  0xc1   :  { %v1179_v35 = vadd.f32 %v4838_v11, %v1178_v29 }
  0xc2   :  { %v4840_v37 = vpop.eup %4839  ;;  %1736 = vadd.xlane.f32.xlu0 %v1704_v32  ;;  %vm1099_vm10 = vcmp.gt.f32.partialorder %v5529_v31, 0.0 }
  0xc3   :  { %781 = vmatmul.bf16.gmra.mxu2 %v5519_v24  ;;  %v1183_v41 = vsel %vm1182_vm9, %v4838_v11, %v1179_v35  ;;  %v1191_v42 = vmul.f32 %v4840_v37, %v5516_v17  ;;  %v5548_v43 = vsel %vm1099_vm10, %v5529_v31, 1.0  ;;  %vm1196_vm12 = vweird.f32 %v4840_v37 }
  0xc4   :  { %870 = vmatmul.bf16.gmra.mxu3 %v5533_v33  ;;  %v1188_v44 = vsel %vm1185_vm11, %v1187_v39, %v1183_v41  ;;  %4841 = vrcp.f32 %v5548_v43  ;;  %v5561_v58 = vpop.f32.mrf.mxu0  ;;  %vm1197_vm15 = vmor %vm1195_vm13, %vm1196_vm12  ;;  %v271_v11 = vcvt.s32.f32 %v207_v51  ;;  %v1216_v22 = vand.u32 2147483648, %v5548_v43  ;;  %v5624_v41 = vld [vmem:[%s9523_s2 + $0x60] sm:$0xff] }
  0xc5   :  { %v1189_v45 = vmul.f32 %v1188_v44, %v646_v38  ;;  %v1192_v46 = vsub.f32 1.0, %v1191_v42  ;;  %v5574_v63 = vpop.f32.mrf.mxu1  ;;  %v1214_v26 = vand.u32 2147483647, %v5548_v43  ;;  %vm1210_vm2 = vweird.f32 %v5548_v43 }
  0xc6   :  { %v742_v47 = vpop.f32.mrf.mxu2  ;;  %v5599_v21 = vpack.c.bf16 %v271_v11, %v269_v10  ;;  %v1217_v38 = vor.u32 1.1754944e-38, %v1216_v22  ;;  %v209_v48 = vunpack.c.0.s8 %v5624_v41  ;;  %v211_v49 = vunpack.c.1.s8 %v5624_v41 }
  0xc7   :  { %v831_v53 = vpop.f32.mrf.mxu3  ;;  %v5558_v54 = vsel %vm1097_vm1, %v1189_v45, 0.0  ;;  %v1193_v55 = vmul.f32 %v4840_v37, %v1192_v46  ;;  %603 = vmatmul.bf16.gmra.mxu0 %v5519_v24  ;;  %v654_v31 = vadd.f32 %v5574_v63, %v5561_v58 }
  0xc8   :  { %v5569_v57 = vadd.f32 %v831_v53, %v742_v47  ;;  %v1705_v52 = vmul.f32 %v5558_v54, %v5558_v54  ;;  %692 = vmatmul.bf16.gmra.mxu1 %v5533_v33  ;;  %v312_v33 = vpack.c.bf16 %v272_v16, %v270_v15  ;;  %v275_v8 = vcvt.s32.f32 %v211_v49 }
  0xc9   :  { %v1194_v7 = vadd.f32 %v4840_v37, %v1193_v55 }
  0xca   :  { %v4842_v9 = vpop.eup %4841  ;;  %vm1100_vm14 = vcmp.gt.f32.partialorder %v5569_v57, 0.0  ;;  %1738 = vadd.xlane.f32.xlu0 %v1705_v52 }
  0xcb   :  { %v5590_v12 = vsel %vm1100_vm14, %v5569_v57, 1.0  ;;  %v1198_v6 = vsel %vm1197_vm15, %v4840_v37, %v1194_v7  ;;  %v1206_v13 = vmul.f32 %v4842_v9, %v5548_v43  ;;  %vm1211_vm1 = vweird.f32 %v4842_v9 }
  0xcc   :  { %4843 = vrcp.f32 %v5590_v12  ;;  %v1203_v14 = vsel %vm1200_vm0, %v1202_v60, %v1198_v6  ;;  %v5607_v29 = vpop.f32.mrf.mxu0  ;;  %v651_v37 = vadd.f32 %v5535_v34, %v5526_v28  ;;  %vm1212_vm3 = vmor %vm1210_vm2, %vm1211_vm1  ;;  %v5629_v28 = vld [vmem:[%s9523_s2 + $0x68] sm:$0xff]  ;;  %vm1225_vm6 = vweird.f32 %v5590_v12 }
  0xcd   :  { %v1204_v17 = vmul.f32 %v1203_v14, %v649_v4  ;;  %v1207_v18 = vsub.f32 1.0, %v1206_v13  ;;  %v5613_v35 = vpop.f32.mrf.mxu1  ;;  %v1231_v42 = vand.u32 2147483648, %v5590_v12  ;;  %v1229_v45 = vand.u32 2147483647, %v5590_v12 }
  0xce   :  { %v744_v19 = vpop.f32.mrf.mxu2  ;;  %v210_v50 = vunpack.c.0.s8 %v5629_v28  ;;  %v212_v56 = vunpack.c.1.s8 %v5629_v28  ;;  %v273_v7 = vcvt.s32.f32 %v209_v48 }
  0xcf   :  { %v833_v23 = vpop.f32.mrf.mxu3  ;;  %v5604_v25 = vsel %vm1098_vm5, %v1204_v17, 0.0  ;;  %v1208_v24 = vmul.f32 %v4842_v9, %v1207_v18  ;;  %vm1215_vm5 = vcmp.eq.f32.partialorder %v1214_v26, 8.507059e+37  ;;  %v1232_v62 = vor.u32 1.1754944e-38, %v1231_v42 }
  0xd0   :  { %v5609_v30 = vadd.f32 %v833_v23, %v744_v19  ;;  %v1706_v32 = vmul.f32 %v5604_v25, %v5604_v25  ;;  %vm1230_vm9 = vcmp.eq.f32.partialorder %v1229_v45, 8.507059e+37  ;;  %v276_v11 = vcvt.s32.f32 %v212_v56 }
  0xd1   :  { %v1209_v36 = vadd.f32 %v4842_v9, %v1208_v24  ;;  %v5675_v17 = vpack.c.bf16 %v275_v8, %v273_v7  ;;  %v656_v26 = vadd.f32 %v5613_v35, %v5607_v29  ;;  %v215_v45 = vunpack.c.3.s8 %v5624_v41 }
  0xd2   :  { %v4844_v5 = vpop.eup %4843  ;;  %2188 = vadd.xlane.f32.xlu0 %v2154_v20  ;;  %1740 = vadd.xlane.f32.xlu2 %v1706_v32  ;;  %vm1101_vm4 = vcmp.gt.f32.partialorder %v5609_v30, 0.0 }
  0xd3   :  { %v1221_v39 = vmul.f32 %v4844_v5, %v5590_v12  ;;  %786 = vmatmul.bf16.gmra.mxu2 %v5599_v21  ;;  %v1213_v40 = vsel %vm1212_vm3, %v4842_v9, %v1209_v36  ;;  %v1133_v34 = vsel %vm1101_vm4, %v5609_v30, 1.0  ;;  %vm1226_vm7 = vweird.f32 %v4844_v5 }
  0xd4   :  { %875 = vmatmul.bf16.gmra.mxu3 %v312_v33  ;;  %v1218_v43 = vsel %vm1215_vm5, %v1217_v38, %v1213_v40  ;;  %4845 = vrcp.f32 %v1133_v34  ;;  %v5645_v59 = vpop.f32.mrf.mxu0  ;;  %vm5651_vm8 = vmor %vm1225_vm6, %vm1226_vm7  ;;  %v274_v9 = vcvt.s32.f32 %v210_v50  ;;  %vm1240_vm11 = vweird.f32 %v1133_v34 }
  0xd5   :  { %v1222_v44 = vsub.f32 1.0, %v1221_v39  ;;  %v1219_v46 = vmul.f32 %v1218_v43, %v651_v37  ;;  %v5657_v1 = vpop.f32.mrf.mxu1  ;;  %v1246_v63 = vand.u32 2147483648, %v1133_v34  ;;  %v1244_v13 = vand.u32 2147483647, %v1133_v34  ;;  %v1677_v37 = vld [vmem:[%s9525_s3 + $0x28] sm:$0xff] }
  0xd6   :  { %v747_v47 = vpop.f32.mrf.mxu2  ;;  %v5683_v22 = vpack.c.bf16 %v276_v11, %v274_v9  ;;  %v2157_v43 = vmul.f32 %v1677_v37, %v1677_v37  ;;  %v216_v50 = vunpack.c.3.s8 %v5629_v28  ;;  %v279_v11 = vcvt.s32.f32 %v215_v45 }
  0xd7   :  { %v1223_v51 = vmul.f32 %v4844_v5, %v1222_v44  ;;  %v836_v53 = vpop.f32.mrf.mxu3  ;;  %v5642_v55 = vsel %vm1099_vm10, %v1219_v46, 0.0  ;;  %608 = vmatmul.bf16.gmra.mxu0 %v5599_v21  ;;  %v1247_v57 = vor.u32 1.1754944e-38, %v1246_v63  ;;  %v213_v44 = vunpack.c.2.s8 %v5624_v41  ;;  %v4806_v41 = vld [vmem:[%s9524_s5 + $0x24] sm:$0xf0] }
  0xd8   :  { %v5647_v61 = vadd.f32 %v836_v53, %v747_v47  ;;  %v1707_v0 = vmul.f32 %v5642_v55, %v5642_v55  ;;  %697 = vmatmul.bf16.gmra.mxu1 %v312_v33  ;;  %v214_v46 = vunpack.c.2.s8 %v5629_v28  ;;  %v4659_v53 = vld [vmem:[%s9524_s5 + $0x20] sm:$0xf]  ;;  %v280_v63 = vcvt.s32.f32 %v216_v50 }
  0xd9   :  { %v1224_v3 = vadd.f32 %v4844_v5, %v1223_v51 }
  0xda   :  { %v4846_v4 = vpop.eup %4845  ;;  %vm1102_vm10 = vcmp.gt.f32.partialorder %v5647_v61, 0.0  ;;  %1742 = vadd.xlane.f32.xlu2 %v1707_v0  ;;  %v4660_v0 = vor.u32 %v4806_v41, %v4659_v53 }
  0xdb   :  { %v5665_v60 = vsel %vm1102_vm10, %v5647_v61, 1.0  ;;  %v1228_v10 = vsel %vm5651_vm8, %v4844_v5, %v1224_v3  ;;  %v1236_v12 = vmul.f32 %v4846_v4, %v1133_v34  ;;  %vm1241_vm12 = vweird.f32 %v4846_v4  ;;  %v4661_v3 = vld [vmem:[%s9524_s5 + $0x28] sm:$0xf0] }
  0xdc   :  { %4847 = vrcp.f32 %v5665_v60  ;;  %v1233_v58 = vsel %vm1230_vm9, %v1232_v62, %v1228_v10  ;;  %v5677_v19 = vpop.f32.mrf.mxu0  ;;  %vm5686_vm13 = vmor %vm1240_vm11, %vm1241_vm12  ;;  %vm1255_vm0 = vweird.f32 %v5665_v60  ;;  %v1261_v35 = vand.u32 2147483648, %v5665_v60  ;;  %2885 = vmatpush.bf16.msrb.mxu0 %v4660_v0 }
  0xdd   :  { %v1234_v2 = vmul.f32 %v1233_v58, %v654_v31  ;;  %v1237_v6 = vsub.f32 1.0, %v1236_v12  ;;  %v5690_v24 = vpop.f32.mrf.mxu1  ;;  %v1259_v40 = vand.u32 2147483647, %v5665_v60  ;;  %v4805_v31 = vld [vmem:[%s9524_s5 + $0x24] sm:$0xf]  ;;  %v277_v10 = vcvt.s32.f32 %v213_v44 }
  0xde   :  { %v749_v14 = vpop.f32.mrf.mxu2  ;;  %v1262_v28 = vor.u32 1.1754944e-38, %v1261_v35  ;;  %v4664_v9 = vor.u32 %v4805_v31, %v4661_v3  ;;  %v278_v12 = vcvt.s32.f32 %v214_v46 }
  0xdf   :  { %v838_v15 = vpop.f32.mrf.mxu3  ;;  %v5673_v16 = vsel %vm1100_vm14, %v1234_v2, 0.0  ;;  %v1238_v18 = vmul.f32 %v4846_v4, %v1237_v6  ;;  %vm1245_vm14 = vcmp.eq.f32.partialorder %v1244_v13, 8.507059e+37  ;;  %vm5749_vm3 = vcmp.eq.f32.partialorder %v1259_v40, 8.507059e+37 }
  0xe0   :  { %v5679_v20 = vadd.f32 %v838_v15, %v749_v14  ;;  %v1708_v21 = vmul.f32 %v5673_v16, %v5673_v16  ;;  %2974 = vmatpush.bf16.msrb.mxu1 %v4664_v9 }
  0xe1   :  { %v1239_v32 = vadd.f32 %v4846_v4, %v1238_v18 }
  0xe2   :  { %v4848_v33 = vpop.eup %4847  ;;  %1744 = vadd.xlane.f32.xlu2 %v1708_v21  ;;  %vm1103_vm15 = vcmp.gt.f32.partialorder %v5679_v20, 0.0 }
  0xe3   :  { %v1251_v36 = vmul.f32 %v4848_v33, %v5665_v60  ;;  %791 = vmatmul.bf16.gmra.mxu2 %v5675_v17  ;;  %v1243_v5 = vsel %vm5686_vm13, %v4846_v4, %v1239_v32  ;;  %v5705_v29 = vsel %vm1103_vm15, %v5679_v20, 1.0  ;;  %vm1256_vm1 = vweird.f32 %v4848_v33 }
  0xe4   :  { %880 = vmatmul.bf16.gmra.mxu3 %v5683_v22  ;;  %v1248_v38 = vsel %vm1245_vm14, %v1247_v57, %v1243_v5  ;;  %4849 = vrcp.f32 %v5705_v29  ;;  %v5720_v51 = vpop.f32.mrf.mxu0  ;;  %vm5733_vm2 = vmor %vm1255_vm0, %vm1256_vm1  ;;  %v659_v4 = vadd.f32 %v5657_v1, %v5645_v59  ;;  %v1678_v1 = vld [vmem:[%s9525_s3 + $0x30] sm:$0xff]  ;;  %vm1270_vm5 = vweird.f32 %v5705_v29 }
  0xe5   :  { %v1252_v39 = vsub.f32 1.0, %v1251_v36  ;;  %v1249_v34 = vmul.f32 %v1248_v38, %v656_v26  ;;  %v5739_v62 = vpop.f32.mrf.mxu1  ;;  %v1276_v13 = vand.u32 2147483648, %v5705_v29  ;;  %v1274_v18 = vand.u32 2147483647, %v5705_v29 }
  0xe6   :  { %v752_v42 = vpop.f32.mrf.mxu2  ;;  %v2158_v23 = vmul.f32 %v1678_v1, %v1678_v1  ;;  %v5777_v32 = vpack.c.bf16 %v279_v11, %v277_v10  ;;  %v316_v5 = vpack.c.bf16 %v280_v63, %v278_v12  ;;  %v661_v38 = vadd.f32 %v5690_v24, %v5677_v19  ;;  %v5806_v19 = vld [vmem:[%s9523_s2 + $0x70] sm:$0xff]  ;;  %v5811_v24 = vld [vmem:[%s9523_s2 + $0x78] sm:$0xff] }
  0xe7   :  { %v1253_v47 = vmul.f32 %v4848_v33, %v1252_v39  ;;  %v841_v48 = vpop.f32.mrf.mxu3  ;;  %v5717_v49 = vsel %vm1101_vm4, %v1249_v34, 0.0  ;;  %613 = vmatmul.bf16.gmra.mxu0 %v5675_v17  ;;  %v1277_v61 = vor.u32 1.1754944e-38, %v1276_v13  ;;  %vm1275_vm8 = vcmp.eq.f32.partialorder %v1274_v18, 8.507059e+37 }
  0xe8   :  { %v5728_v56 = vadd.f32 %v841_v48, %v752_v42  ;;  %v1709_v52 = vmul.f32 %v5717_v49, %v5717_v49  ;;  %702 = vmatmul.bf16.gmra.mxu1 %v5683_v22  ;;  %v1679_v42 = vld [vmem:[%s9525_s3 + $0x38] sm:$0xff]  ;;  %v217_v41 = vunpack.c.0.s8 %v5806_v19  ;;  %v219_v30 = vunpack.c.1.s8 %v5806_v19 }
  0xe9   :  { %v1254_v7 = vadd.f32 %v4848_v33, %v1253_v47  ;;  %v2159_v53 = vmul.f32 %v1679_v42, %v1679_v42  ;;  %v220_v3 = vunpack.c.1.s8 %v5811_v24  ;;  %v664_v20 = vadd.f32 %v5739_v62, %v5720_v51  ;;  %v1680_v51 = vld [vmem:[%s9525_s3 + $0x40] sm:$0xff] }
  0xea   :  { %v4850_v60 = vpop.eup %4849  ;;  %vm1104_vm4 = vcmp.gt.f32.partialorder %v5728_v56, 0.0  ;;  %1746 = vadd.xlane.f32.xlu0 %v1709_v52  ;;  %2194 = vadd.xlane.f32.xlu2 %v2157_v43 }
  0xeb   :  { %v5757_v58 = vsel %vm1104_vm4, %v5728_v56, 1.0  ;;  %v1258_v59 = vsel %vm5733_vm2, %v4848_v33, %v1254_v7  ;;  %v1266_v2 = vmul.f32 %v4850_v60, %v5705_v29  ;;  %vm1271_vm6 = vweird.f32 %v4850_v60 }
  0xec   :  { %4851 = vrcp.f32 %v5757_v58  ;;  %v1263_v6 = vsel %vm5749_vm3, %v1262_v28, %v1258_v59  ;;  %v5779_v36 = vpop.f32.mrf.mxu0  ;;  %vm5787_vm7 = vmor %vm1270_vm5, %vm1271_vm6  ;;  %v1291_v44 = vand.u32 2147483648, %v5757_v58  ;;  %v1289_v47 = vand.u32 2147483647, %v5757_v58 }
  0xed   :  { %v1264_v14 = vmul.f32 %v1263_v6, %v659_v4  ;;  %v1267_v15 = vsub.f32 1.0, %v1266_v2  ;;  %v5791_v35 = vpop.f32.mrf.mxu1  ;;  %v218_v28 = vunpack.c.0.s8 %v5811_v24  ;;  %v283_v59 = vcvt.s32.f32 %v219_v30 }
  0xee   :  { %v754_v21 = vpop.f32.mrf.mxu2  ;;  %v1292_v9 = vor.u32 1.1754944e-38, %v1291_v44  ;;  %vm1290_vm13 = vcmp.eq.f32.partialorder %v1289_v47, 8.507059e+37  ;;  %v284_v62 = vcvt.s32.f32 %v220_v3 }
  0xef   :  { %v843_v57 = vpop.f32.mrf.mxu3  ;;  %v5775_v26 = vsel %vm1102_vm10, %v1264_v14, 0.0  ;;  %v1268_v33 = vmul.f32 %v4850_v60, %v1267_v15  ;;  %vm1285_vm10 = vweird.f32 %v5757_v58  ;;  %v282_v1 = vcvt.s32.f32 %v218_v28 }
  0xf0   :  { %v5781_v17 = vadd.f32 %v843_v57, %v754_v21  ;;  %v1710_v22 = vmul.f32 %v5775_v26, %v5775_v26  ;;  %v2160_v57 = vmul.f32 %v1680_v51, %v1680_v51  ;;  %v221_v28 = vunpack.c.2.s8 %v5806_v19  ;;  %v4653_v51 = vld [vmem:[%s9524_s5 + $0x18] sm:$0xf0] }
  0xf1   :  { %v1269_v39 = vadd.f32 %v4850_v60, %v1268_v33 }
  0xf2   :  { %v4852_v40 = vpop.eup %4851  ;;  %1748 = vadd.xlane.f32.xlu0 %v1710_v22  ;;  %2196 = vadd.xlane.f32.xlu2 %v2158_v23  ;;  %vm1105_vm9 = vcmp.gt.f32.partialorder %v5781_v17, 0.0 }
  0xf3   :  { %v1281_v34 = vmul.f32 %v4852_v40, %v5757_v58  ;;  %796 = vmatmul.bf16.gmra.mxu2 %v5777_v32  ;;  %v1273_v29 = vsel %vm5787_vm7, %v4850_v60, %v1269_v39  ;;  %v5816_v43 = vsel %vm1105_vm9, %v5781_v17, 1.0  ;;  %vm1286_vm11 = vweird.f32 %v4852_v40 }
  0xf4   :  { %885 = vmatmul.bf16.gmra.mxu3 %v316_v5  ;;  %v1278_v45 = vsel %vm1275_vm8, %v1277_v61, %v1273_v29  ;;  %4853 = vrcp.f32 %v5816_v43  ;;  %v5830_v4 = vpop.f32.mrf.mxu0  ;;  %vm5836_vm12 = vmor %vm1285_vm10, %vm1286_vm11  ;;  %v281_v58 = vcvt.s32.f32 %v217_v41  ;;  %v1306_v14 = vand.u32 2147483648, %v5816_v43 }
  0xf5   :  { %v1282_v46 = vsub.f32 1.0, %v1281_v34  ;;  %v1279_v48 = vmul.f32 %v1278_v45, %v661_v38  ;;  %v5842_v10 = vpop.f32.mrf.mxu1  ;;  %v1304_v21 = vand.u32 2147483647, %v5816_v43  ;;  %v666_v29 = vadd.f32 %v5791_v35, %v5779_v36 }
  0xf6   :  { %v757_v50 = vpop.f32.mrf.mxu2  ;;  %v5867_v37 = vpack.c.bf16 %v283_v59, %v281_v58  ;;  %v1307_v56 = vor.u32 1.1754944e-38, %v1306_v14 }
  0xf7   :  { %v1283_v52 = vmul.f32 %v4852_v40, %v1282_v46  ;;  %v846_v0 = vpop.f32.mrf.mxu3  ;;  %v5827_v31 = vsel %vm1103_vm15, %v1279_v48, 0.0  ;;  %vm1300_vm15 = vweird.f32 %v5816_v43  ;;  %618 = vmatmul.bf16.gmra.mxu0 %v5777_v32  ;;  %vm1305_vm2 = vcmp.eq.f32.partialorder %v1304_v21, 8.507059e+37  ;;  %v1681_v46 = vld [vmem:[%s9525_s3 + $0x48] sm:$0xff] }
  0xf8   :  { %v5832_v7 = vadd.f32 %v846_v0, %v757_v50  ;;  %v1711_v60 = vmul.f32 %v5827_v31, %v5827_v31  ;;  %707 = vmatmul.bf16.gmra.mxu1 %v316_v5  ;;  %v5875_v5 = vpack.c.bf16 %v284_v62, %v282_v1  ;;  %v2161_v30 = vmul.f32 %v1681_v46, %v1681_v46 }
  0xf9   :  { %v1284_v11 = vadd.f32 %v4852_v40, %v1283_v52  ;;  %v223_v52 = vunpack.c.3.s8 %v5806_v19  ;;  %v222_v0 = vunpack.c.2.s8 %v5811_v24  ;;  %v4804_v19 = vld [vmem:[%s9524_s5 + $0x14] sm:$0xf0] }
  0xfa   :  { %v4854_v12 = vpop.eup %4853  ;;  %vm1106_vm14 = vcmp.gt.f32.partialorder %v5832_v7, 0.0  ;;  %1750 = vadd.xlane.f32.xlu1 %v1711_v60  ;;  %2198 = vadd.xlane.f32.xlu0 %v2159_v53  ;;  %v224_v60 = vunpack.c.3.s8 %v5811_v24 }
  0xfb   :  { %v5850_v63 = vsel %vm1106_vm14, %v5832_v7, 1.0  ;;  %v1288_v2 = vsel %vm5836_vm12, %v4852_v40, %v1284_v11  ;;  %v1296_v6 = vmul.f32 %v4854_v12, %v5816_v43  ;;  %vm1301_vm0 = vweird.f32 %v4854_v12  ;;  %v4651_v11 = vld [vmem:[%s9524_s5 + $0x10] sm:$0xf] }
  0xfc   :  { %4855 = vrcp.f32 %v5850_v63  ;;  %v1293_v13 = vsel %vm1290_vm13, %v1292_v9, %v1288_v2  ;;  %v5869_v38 = vpop.f32.mrf.mxu0  ;;  %vm5879_vm1 = vmor %vm1300_vm15, %vm1301_vm0  ;;  %v1321_v35 = vand.u32 2147483648, %v5850_v63  ;;  %v1319_v50 = vand.u32 2147483647, %v5850_v63  ;;  %v4803_v2 = vld [vmem:[%s9524_s5 + $0x14] sm:$0xf] }
  0xfd   :  { %v1294_v15 = vmul.f32 %v1293_v13, %v664_v20  ;;  %v1297_v18 = vsub.f32 1.0, %v1296_v6  ;;  %v5883_v34 = vpop.f32.mrf.mxu1  ;;  %v4652_v1 = vor.u32 %v4804_v19, %v4651_v11  ;;  %v4656_v13 = vor.u32 %v4803_v2, %v4653_v51 }
  0xfe   :  { %v759_v23 = vpop.f32.mrf.mxu2  ;;  %v1322_v24 = vor.u32 1.1754944e-38, %v1321_v35  ;;  %vm5942_vm7 = vcmp.eq.f32.partialorder %v1319_v50, 8.507059e+37  ;;  %v286_v21 = vcvt.s32.f32 %v222_v0  ;;  %v1683_v0 = vld [vmem:[%s9525_s3 + $0x58] sm:$0xff] }
  0xff   :  { %v848_v33 = vpop.f32.mrf.mxu3  ;;  %v5865_v22 = vsel %vm1104_vm4, %v1294_v15, 0.0  ;;  %v1298_v61 = vmul.f32 %v4854_v12, %v1297_v18  ;;  %vm1315_vm4 = vweird.f32 %v5850_v63  ;;  %v285_v15 = vcvt.s32.f32 %v221_v28  ;;  %2886 = vmatpush.bf16.msrb.mxu0 %v4652_v1  ;;  %2975 = vmatpush.bf16.msrb.mxu1 %v4656_v13 }
 0x100   :  { %v5871_v39 = vadd.f32 %v848_v33, %v759_v23  ;;  %v1712_v32 = vmul.f32 %v5865_v22, %v5865_v22  ;;  %v287_v18 = vcvt.s32.f32 %v223_v52 }
 0x101   :  { %v1299_v42 = vadd.f32 %v4854_v12, %v1298_v61 }
 0x102   :  { %v4856_v44 = vpop.eup %4855  ;;  %1752 = vadd.xlane.f32.xlu1 %v1712_v32  ;;  %2200 = vadd.xlane.f32.xlu0 %v2160_v57  ;;  %vm1107_vm3 = vcmp.gt.f32.partialorder %v5871_v39, 0.0  ;;  %v288_v57 = vcvt.s32.f32 %v224_v60  ;;  %v319_v46 = vpack.c.bf16 %v287_v18, %v285_v15 }
 0x103   :  { %v1311_v45 = vmul.f32 %v4856_v44, %v5850_v63  ;;  %801 = vmatmul.bf16.gmra.mxu2 %v5867_v37  ;;  %v1303_v43 = vsel %vm5879_vm1, %v4854_v12, %v1299_v42  ;;  %v5898_v36 = vsel %vm1107_vm3, %v5871_v39, 1.0  ;;  %vm1316_vm5 = vweird.f32 %v4856_v44 }
 0x104   :  { %890 = vmatmul.bf16.gmra.mxu3 %v5875_v5  ;;  %v1308_v47 = vsel %vm1305_vm2, %v1307_v56, %v1303_v43  ;;  %4857 = vrcp.f32 %v5898_v36  ;;  %v5913_v20 = vpop.f32.mrf.mxu0  ;;  %vm5926_vm6 = vmor %vm1315_vm4, %vm1316_vm5  ;;  %v669_v63 = vadd.f32 %v5842_v10, %v5830_v4  ;;  %v1682_v10 = vld [vmem:[%s9525_s3 + $0x50] sm:$0xff]  ;;  %v1336_v32 = vand.u32 2147483648, %v5898_v36 }
 0x105   :  { %v1312_v48 = vsub.f32 1.0, %v1311_v45  ;;  %v1309_v53 = vmul.f32 %v1308_v47, %v666_v29  ;;  %v5932_v59 = vpop.f32.mrf.mxu1  ;;  %v1334_v29 = vand.u32 2147483647, %v5898_v36 }
 0x106   :  { %v762_v41 = vpop.f32.mrf.mxu2  ;;  %v674_v13 = vadd.f32 %v5932_v59, %v5913_v20  ;;  %v1684_v20 = vld [vmem:[%s9525_s3 + $0x60] sm:$0xff] }
 0x107   :  { %v1313_v3 = vmul.f32 %v4856_v44, %v1312_v48  ;;  %v851_v8 = vpop.f32.mrf.mxu3  ;;  %v5910_v9 = vsel %vm1105_vm9, %v1309_v53, 0.0  ;;  %vm1330_vm9 = vweird.f32 %v5898_v36  ;;  %623 = vmatmul.bf16.gmra.mxu0 %v5867_v37  ;;  %v1337_v53 = vor.u32 1.1754944e-38, %v1336_v32 }
 0x108   :  { %v5921_v12 = vadd.f32 %v851_v8, %v762_v41  ;;  %v1713_v58 = vmul.f32 %v5910_v9, %v5910_v9  ;;  %712 = vmatmul.bf16.gmra.mxu1 %v5875_v5  ;;  %v320_v5 = vpack.c.bf16 %v288_v57, %v286_v21  ;;  %v671_v41 = vadd.f32 %v5883_v34, %v5869_v38  ;;  %v5996_v8 = vpop.xlane.xlu1 %2184 }
 0x109   :  { %v1314_v62 = vadd.f32 %v4856_v44, %v1313_v3  ;;  %vm1335_vm12 = vcmp.eq.f32.partialorder %v1334_v29, 8.507059e+37 }
 0x10a   :  { %v4858_v14 = vpop.eup %4857  ;;  %vm1108_vm8 = vcmp.gt.f32.partialorder %v5921_v12, 0.0  ;;  %1754 = vadd.xlane.f32.xlu2 %v1713_v58  ;;  %2202 = vadd.xlane.f32.xlu1 %v2161_v30 }
 0x10b   :  { %v5950_v23 = vsel %vm1108_vm8, %v5921_v12, 1.0  ;;  %v1318_v4 = vsel %vm5926_vm6, %v4856_v44, %v1314_v62  ;;  %v1326_v33 = vmul.f32 %v4858_v14, %v5898_v36  ;;  %vm1331_vm10 = vweird.f32 %v4858_v14 }
 0x10c   :  { %4859 = vrcp.f32 %v5950_v23  ;;  %v1323_v61 = vsel %vm5942_vm7, %v1322_v24, %v1318_v4  ;;  %v2162_v44 = vmul.f32 %v1682_v10, %v1682_v10  ;;  %v5970_v47 = vpop.f32.mrf.mxu0  ;;  %vm5978_vm11 = vmor %vm1330_vm9, %vm1331_vm10  ;;  %v1349_v38 = vand.u32 2147483647, %v5950_v23 }
 0x10d   :  { %v1324_v40 = vmul.f32 %v1323_v61, %v669_v63  ;;  %v1327_v56 = vsub.f32 1.0, %v1326_v33  ;;  %v5982_v7 = vpop.f32.mrf.mxu1  ;;  %v1351_v34 = vand.u32 2147483648, %v5950_v23  ;;  %v2163_v24 = vmul.f32 %v1683_v0, %v1683_v0 }
 0x10e   :  { %v764_v42 = vpop.f32.mrf.mxu2  ;;  %vm1350_vm1 = vcmp.eq.f32.partialorder %v1349_v38, 8.507059e+37  ;;  %v2164_v33 = vmul.f32 %v1684_v20, %v1684_v20 }
 0x10f   :  { %v853_v45 = vpop.f32.mrf.mxu3  ;;  %v5968_v43 = vsel %vm1106_vm14, %v1324_v40, 0.0  ;;  %v1328_v35 = vmul.f32 %v4858_v14, %v1327_v56  ;;  %vm1345_vm14 = vweird.f32 %v5950_v23  ;;  %v1352_v62 = vor.u32 1.1754944e-38, %v1351_v34 }
 0x110   :  { %v5972_v48 = vadd.f32 %v853_v45, %v764_v42  ;;  %v1714_v37 = vmul.f32 %v5968_v43, %v5968_v43  ;;  %v6029_v32 = vpop.xlane.xlu1 %2186 }
 0x111   :  { %v1329_v30 = vadd.f32 %v4858_v14, %v1328_v35 }
 0x112   :  { %v4860_v28 = vpop.eup %4859  ;;  %1756 = vadd.xlane.f32.xlu2 %v1714_v37  ;;  %2204 = vadd.xlane.f32.xlu1 %v2162_v44  ;;  %vm1109_vm13 = vcmp.gt.f32.partialorder %v5972_v48, 0.0 }
 0x113   :  { %v1341_v52 = vmul.f32 %v4860_v28, %v5950_v23  ;;  %806 = vmatmul.bf16.gmra.mxu2 %v319_v46  ;;  %v1333_v36 = vsel %vm5978_vm11, %v4858_v14, %v1329_v30  ;;  %v1141_v60 = vsel %vm1109_vm13, %v5972_v48, 1.0  ;;  %vm1346_vm15 = vweird.f32 %v4860_v28 }
 0x114   :  { %895 = vmatmul.bf16.gmra.mxu3 %v320_v5  ;;  %v1338_v3 = vsel %vm1335_vm12, %v1337_v53, %v1333_v36  ;;  %4861 = vrcp.f32 %v1141_v60  ;;  %vm6009_vm0 = vmor %vm1345_vm14, %vm1346_vm15  ;;  %v6018_v39 = vpop.f32.mrf.mxu0  ;;  %v1366_v61 = vand.u32 2147483648, %v1141_v60  ;;  %v1364_v44 = vand.u32 2147483647, %v1141_v60 }
 0x115   :  { %v1342_v11 = vsub.f32 1.0, %v1341_v52  ;;  %v1339_v19 = vmul.f32 %v1338_v3, %v671_v41  ;;  %4863 = vrsqrt.f32 %v5996_v8  ;;  %v678_v15 = vpop.f32.mrf.mxu1 }
 0x116   :  { %v767_v17 = vpop.f32.mrf.mxu2  ;;  %v1367_v53 = vor.u32 1.1754944e-38, %v1366_v61  ;;  %vm1365_vm7 = vcmp.eq.f32.partialorder %v1364_v44, 8.507059e+37  ;;  %v4802_v61 = vld [vmem:[%s9524_s5 + $0x4] sm:$0xf0] }
 0x117   :  { %v1343_v58 = vmul.f32 %v4860_v28, %v1342_v11  ;;  %v856_v1 = vpop.f32.mrf.mxu3  ;;  %v6003_v2 = vsel %vm1107_vm3, %v1339_v19, 0.0  ;;  %628 = vmatmul.bf16.gmra.mxu0 %v319_v46  ;;  %vm1360_vm3 = vweird.f32 %v1141_v60 }
 0x118   :  { %v6005_v51 = vadd.f32 %v856_v1, %v767_v17  ;;  %v1715_v6 = vmul.f32 %v6003_v2, %v6003_v2  ;;  %717 = vmatmul.bf16.gmra.mxu1 %v320_v5  ;;  %v676_v5 = vadd.f32 %v5982_v7, %v5970_v47  ;;  %v1685_v47 = vld [vmem:[%s9525_s3 + $0x68] sm:$0xff] }
 0x119   :  { %v1344_v14 = vadd.f32 %v4860_v28, %v1343_v58  ;;  %v2165_v11 = vmul.f32 %v1685_v47, %v1685_v47 }
 0x11a   :  { %vm1110_vm2 = vcmp.gt.f32.partialorder %v6005_v51, 0.0  ;;  %1758 = vadd.xlane.f32.xlu0 %v1715_v6  ;;  %2206 = vadd.xlane.f32.xlu2 %v2163_v24  ;;  %v4862_v18 = vpop.eup %4861 }
 0x11b   :  { %v1142_v21 = vsel %vm1110_vm2, %v6005_v51, 1.0  ;;  %v1348_v23 = vsel %vm6009_vm0, %v4860_v28, %v1344_v14  ;;  %v1356_v10 = vmul.f32 %v4862_v18, %v1141_v60  ;;  %v6031_v40 = vpop.eup %4863  ;;  %vm1361_vm4 = vweird.f32 %v4862_v18 }
 0x11c   :  { %4865 = vrcp.f32 %v1142_v21  ;;  %v1353_v59 = vsel %vm1350_vm1, %v1352_v62, %v1348_v23  ;;  %v2249_v12 = vmul.f32 %v6031_v40, %v5996_v8  ;;  %vm6047_vm5 = vmor %vm1360_vm3, %vm1361_vm4  ;;  %v6055_v7 = vpop.f32.mrf.mxu0  ;;  %v1381_v52 = vand.u32 2147483648, %v1142_v21 }
 0x11d   :  { %v1354_v4 = vmul.f32 %v1353_v59, %v674_v13  ;;  %v1357_v42 = vsub.f32 1.0, %v1356_v10  ;;  %4867 = vrsqrt.f32 %v6029_v32  ;;  %v680_v36 = vpop.f32.mrf.mxu1  ;;  %v1379_v38 = vand.u32 2147483647, %v1142_v21 }
 0x11e   :  { %v769_v57 = vpop.f32.mrf.mxu2  ;;  %v2250_v24 = vmul.f32 %v6031_v40, %v2249_v12  ;;  %v1382_v6 = vor.u32 1.1754944e-38, %v1381_v52  ;;  %v679_v13 = vadd.f32 %v678_v15, %v6018_v39  ;;  %v1686_v15 = vld [vmem:[%s9525_s3 + $0x70] sm:$0xff]  ;;  %v681_v51 = vadd.f32 %v680_v36, %v6055_v7 }
 0x11f   :  { %v858_v56 = vpop.f32.mrf.mxu3  ;;  %v6035_v29 = vsel %vm1108_vm8, %v1354_v4, 0.0  ;;  %v1358_v35 = vmul.f32 %v4862_v18, %v1357_v42  ;;  %vm1375_vm8 = vweird.f32 %v1142_v21  ;;  %vm1380_vm11 = vcmp.eq.f32.partialorder %v1379_v38, 8.507059e+37 }
 0x120   :  { %v6037_v45 = vadd.f32 %v858_v56, %v769_v57  ;;  %v1716_v46 = vmul.f32 %v6035_v29, %v6035_v29  ;;  %v2251_v59 = vmul.f32 0.5, %v2250_v24  ;;  %v2166_v12 = vmul.f32 %v1686_v15, %v1686_v15 }
 0x121   :  { %v1359_v30 = vadd.f32 %v4862_v18, %v1358_v35  ;;  %v4801_v35 = vld [vmem:[%s9524_s5 + $0x4] sm:$0xf] }
 0x122   :  { %v4866_v37 = vpop.eup %4865  ;;  %1760 = vadd.xlane.f32.xlu0 %v1716_v46  ;;  %2208 = vadd.xlane.f32.xlu2 %v2164_v33  ;;  %vm1111_vm6 = vcmp.gt.f32.partialorder %v6037_v45, 0.0  ;;  %v4643_v33 = vld [vmem:[%s9524_s5] sm:$0xf] }
 0x123   :  { %v1371_v41 = vmul.f32 %v4866_v37, %v1142_v21  ;;  %v6060_v28 = vsel %vm1111_vm6, %v6037_v45, 1.0  ;;  %vm1376_vm9 = vweird.f32 %v4866_v37  ;;  %v1363_v34 = vsel %vm6047_vm5, %v4862_v18, %v1359_v30  ;;  %v6065_v19 = vpop.eup %4867 }
 0x124   :  { %4869 = vrcp.f32 %v6060_v28  ;;  %v1368_v60 = vsel %vm1365_vm7, %v1367_v53, %v1363_v34  ;;  %vm6071_vm10 = vmor %vm1375_vm8, %vm1376_vm9  ;;  %v2261_v21 = vmul.f32 %v6065_v19, %v6029_v32  ;;  %v1396_v57 = vand.u32 2147483648, %v6060_v28  ;;  %v594_v42 = vpop.f32.mrf.mxu0 }
 0x125   :  { %v1372_v0 = vsub.f32 1.0, %v1371_v41  ;;  %v1369_v1 = vmul.f32 %v1368_v60, %v676_v5  ;;  %v1394_v46 = vand.u32 2147483647, %v6060_v28  ;;  %v683_v50 = vpop.f32.mrf.mxu1  ;;  %v4644_v53 = vor.u32 %v4802_v61, %v4643_v33  ;;  %v4645_v41 = vld [vmem:[%s9524_s5 + $0x8] sm:$0xf0] }
 0x126   :  { %v772_v3 = vpop.f32.mrf.mxu2  ;;  %v2252_v30 = vsub.f32 1.5, %v2251_v59  ;;  %v1397_v60 = vor.u32 1.1754944e-38, %v1396_v57 }
 0x127   :  { %v1373_v17 = vmul.f32 %v4866_v37, %v1372_v0  ;;  %v861_v58 = vpop.f32.mrf.mxu3  ;;  %v6078_v18 = vsel %vm1109_vm13, %v1369_v1, 0.0  ;;  %vm1390_vm13 = vweird.f32 %v6060_v28  ;;  %2887 = vmatpush.bf16.msrb.mxu0 %v4644_v53  ;;  %vm1395_vm0 = vcmp.eq.f32.partialorder %v1394_v46, 8.507059e+37 }
 0x128   :  { %v6068_v63 = vadd.f32 %v861_v58, %v772_v3  ;;  %v1717_v20 = vmul.f32 %v6078_v18, %v6078_v18  ;;  %v2253_v1 = vmul.f32 %v6031_v40, %v2252_v30  ;;  %v1687_v40 = vld [vmem:[%s9525_s3 + $0x78] sm:$0xff] }
 0x129   :  { %v1374_v14 = vadd.f32 %v4866_v37, %v1373_v17  ;;  %v2167_v33 = vmul.f32 %v1687_v40, %v1687_v40 }
 0x12a   :  { %v4870_v23 = vpop.eup %4869  ;;  %vm1112_vm12 = vcmp.gt.f32.partialorder %v6068_v63, 0.0  ;;  %2210 = vadd.xlane.f32.xlu0 %v2165_v11  ;;  %1762 = vadd.xlane.f32.xlu1 %v1717_v20  ;;  %v4648_v11 = vor.u32 %v4801_v35, %v4645_v41 }
 0x12b   :  { %v6088_v39 = vsel %vm1112_vm12, %v6068_v63, 1.0  ;;  %v1378_v48 = vsel %vm6071_vm10, %v4866_v37, %v1374_v14  ;;  %v1386_v4 = vmul.f32 %v4870_v23, %v6060_v28  ;;  %vm1391_vm14 = vweird.f32 %v4870_v23 }
 0x12c   :  { %4871 = vrcp.f32 %v6088_v39  ;;  %v1383_v10 = vsel %vm1380_vm11, %v1382_v6, %v1378_v48  ;;  %v2262_v37 = vmul.f32 %v6065_v19, %v2261_v21  ;;  %vm6124_vm15 = vmor %vm1390_vm13, %vm1391_vm14  ;;  %2976 = vmatpush.bf16.msrb.mxu1 %v4648_v11  ;;  %v1411_v7 = vand.u32 2147483648, %v6088_v39  ;;  %v596_v61 = vpop.f32.mrf.mxu0  ;;  %v1688_v11 = vld [vmem:[%s9525_s3 + $0x80] sm:$0xff] }
 0x12d   :  { %v1384_v56 = vmul.f32 %v1383_v10, %v679_v13  ;;  %v1387_v44 = vsub.f32 1.0, %v1386_v4  ;;  %v6141_v13 = vpop.xlane.xlu1 %2190  ;;  %v1409_v20 = vand.u32 2147483647, %v6088_v39  ;;  %v685_v35 = vpop.f32.mrf.mxu1  ;;  %vm2267_vm10 = vcmp.eq.f32.partialorder %v6029_v32, inf }
 0x12e   :  { %v774_v5 = vpop.f32.mrf.mxu2  ;;  %v2263_v58 = vmul.f32 0.5, %v2262_v37  ;;  %v1412_v46 = vor.u32 1.1754944e-38, %v1411_v7  ;;  %v2254_v37 = vmul.f32 %v2253_v1, %v5996_v8  ;;  %v1689_v7 = vld [vmem:[%s9525_s3 + $0x88] sm:$0xff]  ;;  %vm2257_vm14 = vcmp.eq.f32.partialorder %v5996_v8, 0.0 }
 0x12f   :  { %v863_v47 = vpop.f32.mrf.mxu3  ;;  %v6115_v52 = vsel %vm1110_vm2, %v1384_v56, 0.0  ;;  %v1388_v0 = vmul.f32 %v4870_v23, %v1387_v44  ;;  %vm1405_vm2 = vweird.f32 %v6088_v39  ;;  %vm1410_vm5 = vcmp.eq.f32.partialorder %v1409_v20, 8.507059e+37 }
 0x130   :  { %v6117_v38 = vadd.f32 %v863_v47, %v774_v5  ;;  %v1718_v34 = vmul.f32 %v6115_v52, %v6115_v52  ;;  %v2264_v59 = vsub.f32 1.5, %v2263_v58  ;;  %v684_v5 = vadd.f32 %v683_v50, %v594_v42 }
 0x131   :  { %v1389_v17 = vadd.f32 %v4870_v23, %v1388_v0  ;;  %v2258_v50 = vand.u32 2147483648, %v5996_v8  ;;  %v2270_v0 = vand.u32 2147483648, %v6029_v32 }
 0x132   :  { %v4872_v24 = vpop.eup %4871  ;;  %2212 = vadd.xlane.f32.xlu0 %v2166_v12  ;;  %vm1113_vm1 = vcmp.gt.f32.partialorder %v6117_v38, 0.0  ;;  %1764 = vadd.xlane.f32.xlu1 %v1718_v34 }
 0x133   :  { %v1401_v28 = vmul.f32 %v4872_v24, %v6088_v39  ;;  %v1393_v62 = vsel %vm6124_vm15, %v4870_v23, %v1389_v17  ;;  %v6137_v6 = vsel %vm1113_vm1, %v6117_v38, 1.0  ;;  %vm1406_vm3 = vweird.f32 %v4872_v24 }
 0x134   :  { %v1398_v36 = vsel %vm1395_vm0, %v1397_v60, %v1393_v62  ;;  %4873 = vrcp.f32 %v6137_v6  ;;  %vm6160_vm4 = vmor %vm1405_vm2, %vm1406_vm3  ;;  %v2265_v39 = vmul.f32 %v6065_v19, %v2264_v59  ;;  %v1426_v62 = vand.u32 2147483648, %v6137_v6 }
 0x135   :  { %v1402_v14 = vsub.f32 1.0, %v1401_v28  ;;  %v1737_v23 = vpop.xlane.xlu0 %1736  ;;  %v1399_v21 = vmul.f32 %v1398_v36, %v681_v51  ;;  %4875 = vrsqrt.f32 %v6141_v13  ;;  %v1424_v28 = vand.u32 2147483647, %v6137_v6  ;;  %v6217_v59 = vpop.xlane.xlu1 %2192 }
 0x136   :  { %v6148_v48 = vmax.f32 %v1737_v23, 1e-24  ;;  %v777_v15 = vpop.f32.mrf.mxu2  ;;  %vm1420_vm8 = vweird.f32 %v6137_v6 }
 0x137   :  { %v1403_v4 = vmul.f32 %v4872_v24, %v1402_v14  ;;  %v866_v10 = vpop.f32.mrf.mxu3  ;;  %v6152_v57 = vsel %vm1111_vm6, %v1399_v21, 0.0  ;;  %vm2255_vm6 = vcmp.eq.f32.partialorder %v5996_v8, inf  ;;  %v2168_v21 = vmul.f32 %v1688_v11, %v1688_v11 }
 0x138   :  { %9589 = vst [vmem:[#allocation4_spill] sm:$0xff] %v6152_v57  ;;  %4877 = vrsqrt.f32 %v6148_v48  ;;  %v6156_v56 = vadd.f32 %v866_v10, %v777_v15  ;;  %v1719_v45 = vmul.f32 %v6152_v57, %v6152_v57  ;;  %v6187_v34 = vsel %vm2255_vm6, %v5996_v8, %v2254_v37 }
 0x139   :  { %v1404_v12 = vadd.f32 %v4872_v24, %v1403_v4  ;;  %v599_v4 = vpop.f32.mrf.mxu0  ;;  %vm1838_vm2 = vweird.f32 %v6148_v48 }
 0x13a   :  { %v6167_v53 = vpop.eup %4873  ;;  %vm1114_vm7 = vcmp.gt.f32.partialorder %v6156_v56, 0.0  ;;  %1766 = vadd.xlane.f32.xlu2 %v1719_v45  ;;  %2214 = vadd.xlane.f32.xlu1 %v2167_v33  ;;  %v2169_v33 = vmul.f32 %v1689_v7, %v1689_v7  ;;  %v688_v45 = vpop.f32.mrf.mxu1 }
 0x13b   :  { %v6175_v41 = vsel %vm1114_vm7, %v6156_v56, 1.0  ;;  %v1408_v30 = vsel %vm6160_vm4, %v4872_v24, %v1404_v12  ;;  %v1416_v42 = vmul.f32 %v6167_v53, %v6137_v6  ;;  %v6183_v19 = vpop.eup %4875  ;;  %v6195_v24 = vmul.f32 %v2265_v39, %v6029_v32 }
 0x13c   :  { %4879 = vrcp.f32 %v6175_v41  ;;  %v1413_v47 = vsel %vm1410_vm5, %v1412_v46, %v1408_v30  ;;  %vm1421_vm9 = vweird.f32 %v6167_v53  ;;  %v6223_v15 = vmul.f32 %v6183_v19, %v6141_v13 }
 0x13d   :  { %v1414_v3 = vmul.f32 %v1413_v47, %v684_v5  ;;  %v1739_v60 = vpop.xlane.xlu0 %1738  ;;  %v1417_v51 = vsub.f32 1.0, %v1416_v42  ;;  %v686_v46 = vadd.f32 %v685_v35, %v596_v61  ;;  %vm6230_vm11 = vmor %vm1420_vm8, %vm1421_vm9  ;;  %v1427_v12 = vor.u32 1.1754944e-38, %v1426_v62 }
 0x13e   :  { %v6192_v17 = vpop.eup %4877  ;;  %v6197_v58 = vmax.f32 %v1739_v60, 1e-24  ;;  %v779_v1 = vpop.f32.mrf.mxu2  ;;  %vm1435_vm15 = vweird.f32 %v6175_v41  ;;  %v1439_v6 = vand.u32 2147483647, %v6175_v41  ;;  %v1441_v30 = vand.u32 2147483648, %v6175_v41 }
 0x13f   :  { %v1833_v36 = vmul.f32 %v6192_v17, %v6148_v48  ;;  %v868_v40 = vpop.f32.mrf.mxu3  ;;  %v6208_v14 = vsel %vm1112_vm12, %v1414_v3, 0.0  ;;  %v1418_v10 = vmul.f32 %v6167_v53, %v1417_v51  ;;  %vm6234_vm12 = vcmp.eq.f32.partialorder %v1424_v28, 8.507059e+37 }
 0x140   :  { %9592 = vst [vmem:[#allocation5_spill] sm:$0xff] %v6208_v14  ;;  %4881 = vrsqrt.f32 %v6197_v58  ;;  %v6213_v23 = vadd.f32 %v868_v40, %v779_v1  ;;  %v1720_v20 = vmul.f32 %v6208_v14, %v6208_v14  ;;  %vm1839_vm3 = vweird.f32 %v6192_v17 }
 0x141   :  { %v1834_v63 = vmul.f32 %v6192_v17, %v1833_v36  ;;  %v1419_v35 = vadd.f32 %v6167_v53, %v1418_v10  ;;  %4883 = vrsqrt.f32 %v6217_v59  ;;  %v1442_v37 = vor.u32 1.1754944e-38, %v1441_v30  ;;  %vm6283_vm5 = vmor %vm1838_vm2, %vm1839_vm3  ;;  %v601_v38 = vpop.f32.mrf.mxu0 }
 0x142   :  { %v4880_v44 = vpop.eup %4879  ;;  %1768 = vadd.xlane.f32.xlu2 %v1720_v20  ;;  %vm1115_vm13 = vcmp.gt.f32.partialorder %v6213_v23, 0.0  ;;  %2216 = vadd.xlane.f32.xlu1 %v2168_v21  ;;  %vm1440_vm6 = vcmp.eq.f32.partialorder %v1439_v6, 8.507059e+37  ;;  %v6368_v56 = vstv %s9526_s0 }
 0x143   :  { %v1835_v39 = vmul.f32 0.5, %v1834_v63  ;;  %v1431_v61 = vmul.f32 %v4880_v44, %v6175_v41  ;;  %v6249_v42 = vsel %vm1115_vm13, %v6213_v23, 1.0  ;;  %vm1436_vm0 = vweird.f32 %v4880_v44  ;;  %v5094_v23 = vld [vmem:[%s9525_s3 + $0x8] sm:$0xff] }
 0x144   :  { %v1423_v11 = vsel %vm6230_vm11, %v6167_v53, %v1419_v35  ;;  %4885 = vrcp.f32 %v6249_v42  ;;  %v689_v63 = vadd.f32 %v688_v45, %v599_v4  ;;  %vm6273_vm4 = vmor %vm1435_vm15, %vm1436_vm0  ;;  %v1690_v45 = vld [vmem:[%s9525_s3 + $0x90] sm:$0xff] }
 0x145   :  { %v1836_v47 = vsub.f32 1.5, %v1835_v39  ;;  %v1432_v3 = vsub.f32 1.0, %v1431_v61  ;;  %v1741_v60 = vpop.xlane.xlu2 %1740  ;;  %v6258_v1 = vpop.xlane.xlu0 %2188  ;;  %v1428_v7 = vsel %vm6234_vm12, %v1427_v12, %v1423_v11 }
 0x146   :  { %v6254_v51 = vpop.eup %4881  ;;  %v6260_v28 = vmax.f32 %v1741_v60, 1e-24  ;;  %v782_v62 = vpop.f32.mrf.mxu2  ;;  %v1429_v5 = vmul.f32 %v1428_v7, %v686_v46  ;;  %4887 = vrsqrt.f32 %v6258_v1  ;;  %v2170_v7 = vmul.f32 %v1690_v45, %v1690_v45 }
 0x147   :  { %v1837_v36 = vmul.f32 %v6192_v17, %v1836_v47  ;;  %v1433_v40 = vmul.f32 %v4880_v44, %v1432_v3  ;;  %v1843_v53 = vmul.f32 %v6254_v51, %v6197_v58  ;;  %v871_v20 = vpop.f32.mrf.mxu3  ;;  %v6277_v12 = vpop.eup %4883  ;;  %vm1849_vm9 = vweird.f32 %v6254_v51 }
 0x148   :  { %v6268_v21 = vadd.f32 %v871_v20, %v782_v62  ;;  %4889 = vrsqrt.f32 %v6260_v28  ;;  %v6296_v48 = vsel %vm1113_vm1, %v1429_v5, 0.0  ;;  %vm2269_vm1 = vcmp.eq.f32.partialorder %v6029_v32, 0.0  ;;  %v690_v47 = vpop.f32.mrf.mxu1 }
 0x149   :  { %v1844_v4 = vmul.f32 %v6254_v51, %v1843_v53  ;;  %v1434_v41 = vadd.f32 %v4880_v44, %v1433_v40  ;;  %v1841_v46 = vsel %vm6283_vm5, %v6192_v17, %v1837_v36  ;;  %9601 = vst [vmem:[#allocation6_spill] sm:$0xff] %v6296_v48  ;;  %v1721_v6 = vmul.f32 %v6296_v48, %v6296_v48 }
 0x14a   :  { %vm1116_vm8 = vcmp.gt.f32.partialorder %v6268_v21, 0.0  ;;  %2218 = vadd.xlane.f32.xlu2 %v2169_v33  ;;  %v2268_v33 = vsel %vm2267_vm10, %v6029_v32, %v6195_v24  ;;  %v6316_v3 = vpop.eup %4885  ;;  %v2632_v36 = vmul.f32 %v1841_v46, %v5524_v27  ;;  %v2297_v53 = vmul.f32 %v6277_v12, %v6217_v59 }
 0x14b   :  { %v1845_v61 = vmul.f32 0.5, %v1844_v4  ;;  %v6304_v35 = vsel %vm1116_vm8, %v6268_v21, 1.0  ;;  %v1438_v17 = vsel %vm6273_vm4, %v4880_v44, %v1434_v41  ;;  %v2286_v44 = vmul.f32 %v6183_v19, %v6223_v15  ;;  %1770 = vadd.xlane.f32.xlu0 %v1721_v6 }
 0x14c   :  { %4891 = vrcp.f32 %v6304_v35  ;;  %v1443_v30 = vsel %vm1440_vm6, %v1442_v37, %v1438_v17  ;;  %v6328_v20 = vpop.eup %4887  ;;  %v2259_v15 = vsel %vm2257_vm14, %v2258_v50, %v6187_v34  ;;  %v2271_v27 = vsel %vm2269_vm1, %v2270_v0, %v2268_v33  ;;  %v1691_v37 = vld [vmem:[%s9525_s3 + $0x98] sm:$0xff] }
 0x14d   :  { %v1846_v60 = vsub.f32 1.5, %v1845_v61  ;;  %v1444_v11 = vmul.f32 %v1443_v30, %v689_v63  ;;  %v1743_v62 = vpop.xlane.xlu2 %1742  ;;  %vm1848_vm10 = vweird.f32 %v6197_v58  ;;  %v1446_v32 = vmul.f32 %v6316_v3, %v6249_v42 }
 0x14e   :  { %v6322_v24 = vmax.f32 %v1743_v62, 1e-24  ;;  %v6324_v40 = vpop.f32.mrf.mxu2  ;;  %v6345_v5 = vpop.eup %4889  ;;  %v6355_v50 = vmul.f32 0.5, %v2286_v44  ;;  %vm6359_vm11 = vmor %vm1848_vm10, %vm1849_vm9  ;;  %v691_v34 = vadd.f32 %v690_v47, %v601_v38  ;;  %v2664_v4 = vmul.f32 %v2632_v36, %v2259_v15 }
 0x14f   :  { %v1847_v63 = vmul.f32 %v6254_v51, %v1846_v60  ;;  %v6340_v10 = vpop.f32.mrf.mxu3  ;;  %v6351_v8 = vsel %vm1114_vm7, %v1444_v11, 0.0  ;;  %v2298_v46 = vmul.f32 %v6277_v12, %v2297_v53  ;;  %v2171_v45 = vmul.f32 %v1691_v37, %v1691_v37  ;;  %v604_v60 = vpop.f32.mrf.mxu0 }
 0x150   :  { %4893 = vrsqrt.f32 %v6322_v24  ;;  %9602 = vst [vmem:[#allocation7_spill] sm:$0xff] %v6351_v8  ;;  %v1722_v58 = vmul.f32 %v6351_v8, %v6351_v8  ;;  %v2273_v61 = vmul.f32 %v6328_v20, %v6258_v1  ;;  %v1853_v17 = vmul.f32 %v6345_v5, %v6260_v28  ;;  %v693_v36 = vpop.f32.mrf.mxu1 }
 0x151   :  { %v1851_v41 = vsel %vm6359_vm11, %v6254_v51, %v1847_v63  ;;  %vm1465_vm7 = vweird.f32 %v6304_v35  ;;  %v1469_v38 = vand.u32 2147483647, %v6304_v35  ;;  %v1471_v33 = vand.u32 2147483648, %v6304_v35 }
 0x152   :  { %v4892_v39 = vpop.eup %4891  ;;  %2220 = vadd.xlane.f32.xlu2 %v2170_v7  ;;  %v1447_v51 = vsub.f32 1.0, %v1446_v32  ;;  %v2633_v30 = vmul.f32 %v1851_v41, %v5558_v54  ;;  %vm1450_vm14 = vweird.f32 %v6249_v42  ;;  %vm1451_vm15 = vweird.f32 %v6316_v3 }
 0x153   :  { %v1461_v6 = vmul.f32 %v4892_v39, %v6304_v35  ;;  %vm1466_vm12 = vweird.f32 %v4892_v39  ;;  %1772 = vadd.xlane.f32.xlu0 %v1722_v58  ;;  %v1454_v15 = vand.u32 2147483647, %v6249_v42  ;;  %v1456_v54 = vand.u32 2147483648, %v6249_v42  ;;  %vm6414_vm3 = vmor %vm1450_vm14, %vm1451_vm15 }
 0x154   :  { %v1448_v53 = vmul.f32 %v6316_v3, %v1447_v51  ;;  %v2274_v63 = vmul.f32 %v6328_v20, %v2273_v61  ;;  %v1854_v37 = vmul.f32 %v6345_v5, %v1853_v17  ;;  %vm6399_vm0 = vmor %vm1465_vm7, %vm1466_vm12  ;;  %vm6406_vm2 = vcmp.eq.f32.partialorder %v1469_v38, 8.507059e+37  ;;  %v5093_v51 = vld [vmem:[%s9525_s3] sm:$0xff] }
 0x155   :  { %v1462_v47 = vsub.f32 1.0, %v1461_v6  ;;  %v1745_v44 = vpop.xlane.xlu2 %1744  ;;  %v1472_v17 = vor.u32 1.1754944e-38, %v1471_v33  ;;  %v2665_v35 = vmul.f32 %v2633_v30, %v2271_v27  ;;  %v694_v38 = vadd.f32 %v693_v36, %v604_v60 }
 0x156   :  { %v6385_v11 = vpop.eup %4893  ;;  %v6387_v62 = vmax.f32 %v1745_v44, 1e-24  ;;  %v787_v7 = vpop.f32.mrf.mxu2  ;;  %vm1455_vm5 = vcmp.eq.f32.partialorder %v1454_v15, 8.507059e+37  ;;  %v1855_v33 = vmul.f32 0.5, %v1854_v37  ;;  %v2698_v36 = vmul.f32 %v6368_v56, %v2664_v4 }
 0x157   :  { %v1463_v32 = vmul.f32 %v4892_v39, %v1462_v47  ;;  %v1863_v0 = vmul.f32 %v6385_v11, %v6322_v24  ;;  %v876_v58 = vpop.f32.mrf.mxu3  ;;  %v2699_v37 = vmul.f32 %v6368_v56, %v2665_v35  ;;  %v6441_v41 = vmul.f32 0.5, %v2298_v46  ;;  %v6470_v35 = vpop.f32.mrf.mxu0 }
 0x158   :  { %4895 = vrsqrt.f32 %v6387_v62  ;;  %v6404_v6 = vadd.f32 %v876_v58, %v787_v7  ;;  %v1449_v7 = vadd.f32 %v6316_v3, %v1448_v53  ;;  %v1457_v58 = vor.u32 1.1754944e-38, %v1456_v54 }
 0x159   :  { %v1864_v47 = vmul.f32 %v6385_v11, %v1863_v0  ;;  %v1464_v44 = vadd.f32 %v4892_v39, %v1463_v32  ;;  %v2275_v53 = vmul.f32 0.5, %v2274_v63  ;;  %v1856_v4 = vsub.f32 1.5, %v1855_v33 }
 0x15a   :  { %vm1118_vm4 = vcmp.gt.f32.partialorder %v6404_v6, 0.0  ;;  %v1453_v27 = vsel %vm6414_vm3, %v6316_v3, %v1449_v7  ;;  %v2288_v3 = vsub.f32 1.5, %v6355_v50  ;;  %v1692_v50 = vld [vmem:[%s9525_s3 + $0xa0] sm:$0xff]  ;;  %vm1859_vm6 = vweird.f32 %v6345_v5 }
 0x15b   :  { %v6424_v42 = vsel %vm1118_vm4, %v6404_v6, 1.0  ;;  %v1468_v8 = vsel %vm6399_vm0, %v4892_v39, %v1464_v44  ;;  %v1458_v60 = vsel %vm1455_vm5, %v1457_v58, %v1453_v27  ;;  %v1865_v15 = vmul.f32 0.5, %v1864_v47  ;;  %2222 = vadd.xlane.f32.xlu0 %v2171_v45  ;;  %v695_v47 = vpop.f32.mrf.mxu1 }
 0x15c   :  { %4897 = vrcp.f32 %v6424_v42  ;;  %v1473_v30 = vsel %vm6406_vm2, %v1472_v17, %v1468_v8  ;;  %v1459_v54 = vmul.f32 %v1458_v60, %v691_v34  ;;  %v6450_v34 = vadd.f32 %v6340_v10, %v6324_v40 }
 0x15d   :  { %v1747_v32 = vpop.xlane.xlu0 %1746  ;;  %v6436_v39 = vpop.xlane.xlu2 %2194  ;;  %v1474_v45 = vmul.f32 %v1473_v30, %v694_v38  ;;  %v2730_v40 = vadd.f32 %v5093_v51, %v2698_v36  ;;  %v2731_v10 = vadd.f32 %v5094_v23, %v2699_v37  ;;  %v2276_v44 = vsub.f32 1.5, %v2275_v53 }
 0x15e   :  { %v6438_v0 = vpop.eup %4895  ;;  %v6443_v61 = vmax.f32 %v1747_v32, 1e-24  ;;  %4899 = vrsqrt.f32 %v6436_v39  ;;  %v6446_v8 = vpop.f32.mrf.mxu2  ;;  %v6454_v63 = vsel %vm1115_vm13, %v1459_v54, 0.0  ;;  %v1866_v7 = vsub.f32 1.5, %v1865_v15 }
 0x15f   :  { %9611 = vst [vmem:[#allocation8_spill] sm:$0xff] %v6454_v63  ;;  %v6456_v17 = vpop.f32.mrf.mxu3  ;;  %v1723_v46 = vmul.f32 %v6454_v63, %v6454_v63  ;;  %v1873_v38 = vmul.f32 %v6438_v0, %v6387_v62  ;;  %v2762_v33 = vpack.c.bf16 %v2731_v10, %v2730_v40  ;;  %v2172_v27 = vmul.f32 %v1692_v50, %v1692_v50 }
 0x160   :  { %4901 = vrsqrt.f32 %v6443_v61  ;;  %v2289_v30 = vmul.f32 %v6183_v19, %v2288_v3  ;;  %vm1858_vm13 = vweird.f32 %v6260_v28  ;;  %v6482_v36 = vsel %vm1116_vm8, %v1474_v45, 0.0 }
 0x161   :  { %1774 = vadd.xlane.f32.xlu1 %v1723_v46  ;;  %9612 = vst [vmem:[#allocation9_spill] sm:$0xff] %v6482_v36  ;;  %v1857_v15 = vmul.f32 %v6345_v5, %v1856_v4  ;;  %v2300_v54 = vsub.f32 1.5, %v6441_v41  ;;  %2888 = vmatmul.bf16.vlgmr.msrb.gmra.mxu0 %v2762_v33  ;;  %vm1117_vm1 = vcmp.gt.f32.partialorder %v6450_v34, 0.0  ;;  %v2277_v19 = vmul.f32 %v6328_v20, %v2276_v44  ;;  %vm6515_vm8 = vmor %vm1858_vm13, %vm1859_vm6 }
 0x162   :  { %v6474_v58 = vpop.eup %4897  ;;  %2977 = vmatmul.bf16.vlgmr.msrb.gmra.mxu1 %v2762_v33  ;;  %v1867_v37 = vmul.f32 %v6385_v11, %v1866_v7  ;;  %vm1869_vm9 = vweird.f32 %v6385_v11  ;;  %v1874_v21 = vmul.f32 %v6438_v0, %v1873_v38  ;;  %v1724_v41 = vmul.f32 %v6482_v36, %v6482_v36 }
 0x163   :  { %v1491_v60 = vmul.f32 %v6474_v58, %v6424_v42  ;;  %2224 = vadd.xlane.f32.xlu0 %v2172_v27  ;;  %v6506_v50 = vsel %vm1117_vm1, %v6450_v34, 1.0  ;;  %v6509_v46 = vmul.f32 %v2289_v30, %v6141_v13  ;;  %vm1868_vm10 = vweird.f32 %v6322_v24  ;;  %v609_v30 = vpop.f32.mrf.mxu0 }
 0x164   :  { %v6484_v53 = vpop.eup %4899  ;;  %v1861_v44 = vsel %vm6515_vm8, %v6345_v5, %v1857_v15  ;;  %vm6527_vm11 = vmor %vm1868_vm10, %vm1869_vm9  ;;  %v2278_v38 = vmul.f32 %v2277_v19, %v6258_v1  ;;  %v6541_v5 = vmul.f32 %v6277_v12, %v2300_v54  ;;  %v6544_v27 = vmul.f32 0.5, %v1874_v21  ;;  %v1693_v54 = vld [vmem:[%s9525_s3 + $0xa8] sm:$0xff] }
 0x165   :  { %v1749_v32 = vpop.xlane.xlu0 %1748  ;;  %v6494_v3 = vpop.xlane.xlu2 %2196  ;;  %v1492_v40 = vsub.f32 1.0, %v1491_v60  ;;  %v2309_v23 = vmul.f32 %v6484_v53, %v6436_v39  ;;  %v1871_v33 = vsel %vm6527_vm11, %v6385_v11, %v1867_v37  ;;  %v1499_v15 = vand.u32 2147483647, %v6424_v42 }
 0x166   :  { %v6496_v4 = vpop.eup %4901  ;;  %v6500_v45 = vmax.f32 %v1749_v32, 1e-24  ;;  %4903 = vrsqrt.f32 %v6494_v3  ;;  %v792_v20 = vpop.f32.mrf.mxu2  ;;  %v1501_v19 = vand.u32 2147483648, %v6424_v42  ;;  %v2634_v32 = vmul.f32 %v1861_v44, %v5604_v25 }
 0x167   :  { %v881_v10 = vpop.f32.mrf.mxu3  ;;  %v1883_v28 = vmul.f32 %v6496_v4, %v6443_v61  ;;  %v698_v60 = vpop.f32.mrf.mxu1  ;;  %v1493_v11 = vmul.f32 %v6474_v58, %v1492_v40  ;;  %vm1495_vm12 = vweird.f32 %v6424_v42  ;;  %v2310_v12 = vmul.f32 %v6484_v53, %v2309_v23 }
 0x168   :  { %4905 = vrsqrt.f32 %v6500_v45  ;;  %v6534_v24 = vadd.f32 %v881_v10, %v792_v20  ;;  %v6564_v25 = vadd.f32 %v695_v47, %v6470_v35  ;;  %v2635_v51 = vmul.f32 %v1871_v33, %v5642_v55 }
 0x169   :  { %4907 = vrcp.f32 %v6506_v50  ;;  %1776 = vadd.xlane.f32.xlu1 %v1724_v41  ;;  %v1884_v21 = vmul.f32 %v6496_v4, %v1883_v28  ;;  %v6561_v41 = vadd.f32 %v6456_v17, %v6446_v8  ;;  %v6574_v23 = vadd.f32 %v698_v60, %v609_v30 }
 0x16a   :  { %vm1120_vm7 = vcmp.gt.f32.partialorder %v6534_v24, 0.0  ;;  %vm1496_vm14 = vweird.f32 %v6474_v58  ;;  %v1876_v8 = vsub.f32 1.5, %v6544_v27  ;;  %vm6580_vm15 = vcmp.eq.f32.partialorder %v1499_v15, 8.507059e+37 }
 0x16b   :  { %v6569_v20 = vsel %vm1120_vm7, %v6534_v24, 1.0  ;;  %v1502_v35 = vor.u32 1.1754944e-38, %v1501_v19  ;;  %v2173_v47 = vmul.f32 %v1693_v54, %v1693_v54  ;;  %v6586_v28 = vmul.f32 0.5, %v2310_v12  ;;  %vm6603_vm3 = vmor %vm1495_vm12, %vm1496_vm14 }
 0x16c   :  { %v6556_v37 = vpop.eup %4903  ;;  %4909 = vrcp.f32 %v6569_v20  ;;  %v1494_v33 = vadd.f32 %v6474_v58, %v1493_v11  ;;  %v1484_v30 = vand.u32 2147483647, %v6506_v50  ;;  %vm1878_vm0 = vweird.f32 %v6387_v62 }
 0x16d   :  { %v2321_v40 = vmul.f32 %v6556_v37, %v6494_v3  ;;  %v1751_v44 = vpop.xlane.xlu1 %1750  ;;  %v6584_v7 = vpop.xlane.xlu0 %2198  ;;  %vm1879_vm2 = vweird.f32 %v6438_v0  ;;  %v6597_v15 = vmul.f32 0.5, %v1884_v21  ;;  %vm1480_vm5 = vweird.f32 %v6506_v50 }
 0x16e   :  { %v6577_v10 = vpop.eup %4905  ;;  %v6591_v60 = vpop.f32.mrf.mxu2  ;;  %vm2279_vm13 = vcmp.eq.f32.partialorder %v6258_v1, inf  ;;  %v1486_v21 = vand.u32 2147483648, %v6506_v50  ;;  %v2282_v63 = vand.u32 2147483648, %v6258_v1  ;;  %vm2291_vm9 = vcmp.eq.f32.partialorder %v6141_v13, inf }
 0x16f   :  { %v4908_v55 = vpop.eup %4907  ;;  %v6593_v27 = vpop.f32.mrf.mxu3  ;;  %v1893_v12 = vmul.f32 %v6577_v10, %v6500_v45  ;;  %v2322_v54 = vmul.f32 %v6556_v37, %v2321_v40  ;;  %v2280_v36 = vsel %vm2279_vm13, %v6258_v1, %v2278_v38  ;;  %v1498_v48 = vsel %vm6603_vm3, %v6474_v58, %v1494_v33 }
 0x170   :  { %v1476_v11 = vmul.f32 %v4908_v55, %v6506_v50  ;;  %vm1481_vm6 = vweird.f32 %v4908_v55  ;;  %vm6620_vm8 = vcmp.eq.f32.partialorder %v1484_v30, 8.507059e+37  ;;  %vm2281_vm10 = vcmp.eq.f32.partialorder %v6258_v1, 0.0 }
 0x171   :  { %2226 = vadd.xlane.f32.xlu1 %v2173_v47  ;;  %v2292_v38 = vsel %vm2291_vm9, %v6141_v13, %v6509_v46  ;;  %vm2293_vm11 = vcmp.eq.f32.partialorder %v6141_v13, 0.0  ;;  %v2294_v47 = vand.u32 2147483648, %v6141_v13  ;;  %vm1888_vm12 = vweird.f32 %v6443_v61  ;;  %vm6638_vm14 = vmor %vm1480_vm5, %vm1481_vm6 }
 0x172   :  { %v1477_v42 = vsub.f32 1.0, %v1476_v11  ;;  %v2283_v11 = vsel %vm2281_vm10, %v2282_v63, %v2280_v36  ;;  %v6629_v57 = vpop.eup %4909  ;;  %v1894_v58 = vmul.f32 %v6577_v10, %v1893_v12  ;;  %v6633_v33 = vmul.f32 0.5, %v2322_v54 }
 0x173   :  { %v1487_v63 = vor.u32 1.1754944e-38, %v1486_v21  ;;  %v2666_v36 = vmul.f32 %v2634_v32, %v2283_v11  ;;  %v2295_v30 = vsel %vm2293_vm11, %v2294_v47, %v2292_v38  ;;  %v6642_v13 = vmax.f32 %v1751_v44, 1e-24 }
 0x174   :  { %v1478_v40 = vmul.f32 %v4908_v55, %v1477_v42  ;;  %4911 = vrsqrt.f32 %v6584_v7  ;;  %v6646_v19 = vmul.f32 %v6438_v0, %v1876_v8  ;;  %vm1889_vm3 = vweird.f32 %v6496_v4  ;;  %v1694_v8 = vld [vmem:[%s9525_s3 + $0xb0] sm:$0xff] }
 0x175   :  { %v1503_v50 = vsel %vm6580_vm15, %v1502_v35, %v1498_v48  ;;  %v2667_v12 = vmul.f32 %v2635_v51, %v2295_v30  ;;  %v1521_v54 = vmul.f32 %v6629_v57, %v6569_v20  ;;  %v2700_v44 = vmul.f32 %v6368_v56, %v2666_v36  ;;  %v1753_v21 = vpop.xlane.xlu1 %1752  ;;  %v6660_v42 = vpop.xlane.xlu0 %2200  ;;  %vm6678_vm15 = vmor %vm1878_vm0, %vm1879_vm2 }
 0x176   :  { %v1479_v46 = vadd.f32 %v4908_v55, %v1478_v40  ;;  %4913 = vrsqrt.f32 %v6642_v13  ;;  %v1886_v48 = vsub.f32 1.5, %v6597_v15  ;;  %v2312_v51 = vsub.f32 1.5, %v6586_v28  ;;  %v6670_v36 = vpop.f32.mrf.mxu0  ;;  %v5095_v28 = vld [vmem:[%s9525_s3 + $0x10] sm:$0xff]  ;;  %vm6721_vm2 = vmor %vm1888_vm12, %vm1889_vm3 }
 0x177   :  { %v2701_v35 = vmul.f32 %v6368_v56, %v2667_v12  ;;  %v886_v38 = vpop.f32.mrf.mxu3  ;;  %v1895_v40 = vmul.f32 0.5, %v1894_v58  ;;  %v2324_v11 = vsub.f32 1.5, %v6633_v33  ;;  %v1504_v47 = vmul.f32 %v1503_v50, %v6574_v23 }
 0x178   :  { %v1483_v32 = vsel %vm6638_vm14, %v4908_v55, %v1479_v46  ;;  %v797_v55 = vpop.f32.mrf.mxu2  ;;  %v6672_v46 = vpop.f32.mrf.mxu1  ;;  %v2732_v15 = vadd.f32 %v5095_v28, %v2700_v44  ;;  %v2174_v58 = vmul.f32 %v1694_v8, %v1694_v8  ;;  %v6688_v33 = vmax.f32 %v1753_v21, 1e-24 }
 0x179   :  { %v1488_v17 = vsel %vm6620_vm8, %v1487_v63, %v1483_v32  ;;  %v1522_v62 = vsub.f32 1.0, %v1521_v54  ;;  %4915 = vrsqrt.f32 %v6660_v42  ;;  %v6697_v50 = vadd.f32 %v886_v38, %v797_v55 }
 0x17a   :  { %v1489_v1 = vmul.f32 %v1488_v17, %v6564_v25  ;;  %v5096_v25 = vld [vmem:[%s9525_s3 + $0x18] sm:$0xff]  ;;  %v6690_v63 = vpop.eup %4911  ;;  %2228 = vadd.xlane.f32.xlu1 %v2174_v58  ;;  %4917 = vrsqrt.f32 %v6688_v33  ;;  %v1881_v34 = vsel %vm6678_vm15, %v6438_v0, %v6646_v19  ;;  %v2302_v54 = vmul.f32 %v6541_v5, %v6217_v59 }
 0x17b   :  { %v2733_v23 = vadd.f32 %v5096_v25, %v2701_v35  ;;  %v2333_v44 = vmul.f32 %v6690_v63, %v6584_v7  ;;  %v1887_v21 = vmul.f32 %v6496_v4, %v1886_v48  ;;  %v1896_v17 = vsub.f32 1.5, %v1895_v40 }
 0x17c   :  { %v6694_v30 = vsel %vm1117_vm1, %v1489_v1, 0.0  ;;  %v6704_v8 = vpop.eup %4913  ;;  %vm1898_vm1 = vweird.f32 %v6500_v45  ;;  %vm1122_vm0 = vcmp.gt.f32.partialorder %v6697_v50, 0.0  ;;  %v2313_v5 = vmul.f32 %v6484_v53, %v2312_v51 }
 0x17d   :  { %v1725_v12 = vmul.f32 %v6694_v30, %v6694_v30  ;;  %v2763_v32 = vpack.c.bf16 %v2733_v23, %v2732_v15  ;;  %v1903_v35 = vmul.f32 %v6704_v8, %v6642_v13  ;;  %v1523_v19 = vmul.f32 %v6629_v57, %v1522_v62 }
 0x17e   :  { %vm1525_vm5 = vweird.f32 %v6569_v20  ;;  %v6730_v48 = vsel %vm1118_vm4, %v1504_v47, 0.0  ;;  %vm1899_vm13 = vweird.f32 %v6577_v10  ;;  %v2325_v55 = vmul.f32 %v6556_v37, %v2324_v11  ;;  %v614_v15 = vpop.f32.mrf.mxu0 }
 0x17f   :  { %1778 = vadd.xlane.f32.xlu2 %v1725_v12  ;;  %2893 = vmatmul.bf16.gmra.mxu0 %v2763_v32  ;;  %9629 = vst [vmem:[#allocation10_spill] sm:$0xff] %v6730_v48  ;;  %v2334_v61 = vmul.f32 %v6690_v63, %v2333_v44  ;;  %vm1119_vm6 = vcmp.gt.f32.partialorder %v6561_v41, 0.0  ;;  %v6736_v38 = vpop.eup %4915  ;;  %v1904_v53 = vmul.f32 %v6704_v8, %v1903_v35  ;;  %v6742_v51 = vsel %vm1122_vm0, %v6697_v50, 1.0  ;;  %vm6764_vm9 = vmor %vm1898_vm1, %vm1899_vm13  ;;  %v6794_v35 = vpop.xlane.xlu1 %2202 }
 0x180   :  { %2982 = vmatmul.bf16.gmra.mxu1 %v2763_v32  ;;  %vm1526_vm4 = vweird.f32 %v6629_v57  ;;  %v6748_v6 = vsel %vm1119_vm6, %v6561_v41, 1.0  ;;  %v6750_v37 = vpop.eup %4917  ;;  %v1891_v40 = vsel %vm6721_vm2, %v6496_v4, %v1887_v21  ;;  %v6756_v11 = vmul.f32 %v6577_v10, %v1896_v17  ;;  %v703_v4 = vpop.f32.mrf.mxu1  ;;  %v1695_v17 = vld [vmem:[%s9525_s3 + $0xb8] sm:$0xff] }
 0x181   :  { %v1726_v47 = vmul.f32 %v6730_v48, %v6730_v48  ;;  %v2345_v1 = vmul.f32 %v6736_v38, %v6660_v42  ;;  %v1913_v28 = vmul.f32 %v6750_v37, %v6688_v33  ;;  %v1524_v25 = vadd.f32 %v6629_v57, %v1523_v19  ;;  %vm6781_vm8 = vmor %vm1525_vm5, %vm1526_vm4  ;;  %v1755_v32 = vpop.xlane.xlu2 %1754 }
 0x182   :  { %v1529_v23 = vand.u32 2147483647, %v6569_v20  ;;  %4919 = vrcp.f32 %v6748_v6  ;;  %v2636_v58 = vmul.f32 %v1881_v34, %v5673_v16  ;;  %v6774_v62 = vmul.f32 0.5, %v2334_v61 }
 0x183   :  { %4921 = vrcp.f32 %v6742_v51  ;;  %v1531_v12 = vand.u32 2147483648, %v6569_v20  ;;  %v2637_v44 = vmul.f32 %v1891_v40, %v5717_v49  ;;  %v2314_v21 = vmul.f32 %v2313_v5, %v6436_v39 }
 0x184   :  { %v6789_v16 = vmul.f32 %v2325_v55, %v6494_v3  ;;  %v1905_v34 = vmul.f32 0.5, %v1904_v53  ;;  %v6802_v49 = vadd.f32 %v6672_v46, %v6670_v36  ;;  %v2346_v0 = vmul.f32 %v6736_v38, %v2345_v1  ;;  %v6822_v1 = vpop.f32.mrf.mxu3 }
 0x185   :  { %v6805_v5 = vadd.f32 %v703_v4, %v614_v15  ;;  %vm1908_vm10 = vweird.f32 %v6642_v13  ;;  %vm1909_vm11 = vweird.f32 %v6704_v8  ;;  %v1914_v19 = vmul.f32 %v6750_v37, %v1913_v28 }
 0x186   :  { %v1528_v55 = vsel %vm6781_vm8, %v6629_v57, %v1524_v25  ;;  %vm6813_vm12 = vcmp.eq.f32.partialorder %v1529_v23, 8.507059e+37  ;;  %vm2303_vm14 = vcmp.eq.f32.partialorder %v6217_v59, inf  ;;  %v1532_v46 = vor.u32 1.1754944e-38, %v1531_v12 }
 0x187   :  { %1780 = vadd.xlane.f32.xlu2 %v1726_v47  ;;  %v2175_v53 = vmul.f32 %v1695_v17, %v1695_v17  ;;  %v2304_v40 = vsel %vm2303_vm14, %v6217_v59, %v2302_v54  ;;  %v6820_v47 = vpop.f32.mrf.mxu2  ;;  %v1906_v15 = vsub.f32 1.5, %v1905_v34  ;;  %vm1510_vm3 = vweird.f32 %v6748_v6  ;;  %v6858_v61 = vpop.xlane.xlu1 %2204  ;;  %vm6877_vm14 = vmor %vm1908_vm10, %vm1909_vm11 }
 0x188   :  { %v4920_v28 = vpop.eup %4919  ;;  %vm2305_vm15 = vcmp.eq.f32.partialorder %v6217_v59, 0.0  ;;  %v2306_v57 = vand.u32 2147483648, %v6217_v59  ;;  %vm1918_vm1 = vweird.f32 %v6688_v33  ;;  %v6830_v25 = vmul.f32 0.5, %v2346_v0 }
 0x189   :  { %v6827_v4 = vpop.eup %4921  ;;  %v1506_v54 = vmul.f32 %v4920_v28, %v6748_v6  ;;  %v1514_v23 = vand.u32 2147483647, %v6748_v6  ;;  %v1516_v45 = vand.u32 2147483648, %v6748_v6  ;;  %v1915_v12 = vmul.f32 0.5, %v1914_v19 }
 0x18a   :  { %v2307_v34 = vsel %vm2305_vm15, %v2306_v57, %v2304_v40  ;;  %vm2315_vm2 = vcmp.eq.f32.partialorder %v6436_v39, inf  ;;  %vm2317_vm5 = vcmp.eq.f32.partialorder %v6436_v39, 0.0  ;;  %vm1511_vm13 = vweird.f32 %v4920_v28 }
 0x18b   :  { %v1507_v17 = vsub.f32 1.0, %v1506_v54  ;;  %v2316_v59 = vsel %vm2315_vm2, %v6436_v39, %v2314_v21  ;;  %v2318_v20 = vand.u32 2147483648, %v6436_v39  ;;  %v1551_v0 = vmul.f32 %v6827_v4, %v6742_v51  ;;  %v1757_v54 = vpop.xlane.xlu2 %1756  ;;  %vm6849_vm8 = vmor %vm1510_vm3, %vm1511_vm13  ;;  %v5098_v39 = vld [vmem:[%s9525_s3 + $0x28] sm:$0xff] }
 0x18c   :  { %v2668_v36 = vmul.f32 %v2636_v58, %v2307_v34  ;;  %v6841_v48 = vmax.f32 %v1755_v32, 1e-24  ;;  %4923 = vrsqrt.f32 %v6794_v35  ;;  %vm1919_vm4 = vweird.f32 %v6750_v37  ;;  %v6867_v34 = vpop.f32.mrf.mxu0 }
 0x18d   :  { %v1533_v19 = vsel %vm6813_vm12, %v1532_v46, %v1528_v55  ;;  %v1508_v40 = vmul.f32 %v4920_v28, %v1507_v17  ;;  %v2319_v57 = vsel %vm2317_vm5, %v2318_v20, %v2316_v59  ;;  %v1517_v58 = vor.u32 1.1754944e-38, %v1516_v45  ;;  %v1696_v55 = vld [vmem:[%s9525_s3 + $0xc0] sm:$0xff]  ;;  %v6869_v17 = vpop.f32.mrf.mxu1  ;;  %vm6917_vm10 = vmor %vm1918_vm1, %vm1919_vm4 }
 0x18e   :  { %v2669_v32 = vmul.f32 %v2637_v44, %v2319_v57  ;;  %v2702_v21 = vmul.f32 %v6368_v56, %v2668_v36  ;;  %4925 = vrsqrt.f32 %v6841_v48  ;;  %v1907_v20 = vmul.f32 %v6704_v8, %v1906_v15  ;;  %v891_v57 = vpop.f32.mrf.mxu3 }
 0x18f   :  { %2230 = vadd.xlane.f32.xlu2 %v2175_v53  ;;  %v1916_v46 = vsub.f32 1.5, %v1915_v12  ;;  %v1509_v6 = vadd.f32 %v4920_v28, %v1508_v40  ;;  %vm6861_vm12 = vcmp.eq.f32.partialorder %v1514_v23, 8.507059e+37  ;;  %v2348_v44 = vsub.f32 1.5, %v6830_v25  ;;  %v5097_v23 = vld [vmem:[%s9525_s3 + $0x20] sm:$0xff]  ;;  %v802_v40 = vpop.f32.mrf.mxu2 }
 0x190   :  { %v1552_v45 = vsub.f32 1.0, %v1551_v0  ;;  %v2703_v36 = vmul.f32 %v6368_v56, %v2669_v32  ;;  %v6871_v59 = vmax.f32 %v1757_v54, 1e-24  ;;  %v2734_v12 = vadd.f32 %v5097_v23, %v2702_v21 }
 0x191   :  { %v1513_v25 = vsel %vm6849_vm8, %v4920_v28, %v1509_v6  ;;  %v2176_v0 = vmul.f32 %v1696_v55, %v1696_v55  ;;  %4927 = vrsqrt.f32 %v6858_v61  ;;  %v6895_v32 = vadd.f32 %v891_v57, %v802_v40  ;;  %v1759_v57 = vpop.xlane.xlu0 %1758 }
 0x192   :  { %v6887_v54 = vpop.eup %4923  ;;  %v1518_v13 = vsel %vm6861_vm12, %v1517_v58, %v1513_v25  ;;  %v2735_v28 = vadd.f32 %v5098_v39, %v2703_v36  ;;  %4929 = vrsqrt.f32 %v6871_v59  ;;  %v9642_v21 = vsub.f32 1.5, %v6774_v62 }
 0x193   :  { %v1917_v6 = vmul.f32 %v6750_v37, %v1916_v46  ;;  %v1519_v23 = vmul.f32 %v1518_v13, %v6802_v49  ;;  %v2357_v58 = vmul.f32 %v6887_v54, %v6794_v35  ;;  %v1911_v36 = vsel %vm6877_vm14, %v6704_v8, %v1907_v20  ;;  %v6987_v13 = vpop.xlane.xlu2 %2206 }
 0x194   :  { %v2337_v55 = vmul.f32 %v6690_v63, %v9642_v21  ;;  %v6904_v53 = vpop.eup %4925  ;;  %v6911_v25 = vadd.f32 %v6593_v27, %v6591_v60  ;;  %v1534_v62 = vmul.f32 %v1533_v19, %v6805_v5  ;;  %v2764_v49 = vpack.c.bf16 %v2735_v28, %v2734_v12  ;;  %v619_v21 = vpop.f32.mrf.mxu0 }
 0x195   :  { %v9645_v8 = vsel %vm6764_vm9, %v6577_v10, %v6756_v11  ;;  %v2349_v60 = vmul.f32 %v6736_v38, %v2348_v44  ;;  %v6933_v27 = vsel %vm1119_vm6, %v1519_v23, 0.0  ;;  %v1923_v33 = vmul.f32 %v6904_v53, %v6841_v48 }
 0x196   :  { %v6928_v20 = vmul.f32 %v9645_v8, %v5775_v26  ;;  %v1553_v5 = vmul.f32 %v6827_v4, %v1552_v45  ;;  %vm1555_vm11 = vweird.f32 %v6742_v51  ;;  %v1727_v14 = vmul.f32 %v6933_v27, %v6933_v27  ;;  %2898 = vmatmul.bf16.gmra.mxu0 %v2764_v49  ;;  %2987 = vmatmul.bf16.gmra.mxu1 %v2764_v49 }
 0x197   :  { %2232 = vadd.xlane.f32.xlu2 %v2176_v0  ;;  %vm1124_vm9 = vcmp.gt.f32.partialorder %v6895_v32, 0.0  ;;  %v6942_v26 = vpop.eup %4927  ;;  %v6945_v41 = vmul.f32 %v1911_v36, %v5827_v31  ;;  %v6948_v10 = vmul.f32 %v2337_v55, %v6584_v7  ;;  %v1921_v38 = vsel %vm6917_vm10, %v6750_v37, %v1917_v6  ;;  %v708_v55 = vpop.f32.mrf.mxu1 }
 0x198   :  { %v2358_v11 = vmul.f32 %v6887_v54, %v2357_v58  ;;  %v6954_v19 = vpop.eup %4929  ;;  %1782 = vadd.xlane.f32.xlu0 %v1727_v14  ;;  %v1924_v46 = vmul.f32 %v6904_v53, %v1923_v33  ;;  %v6959_v44 = vsel %vm1120_vm7, %v1534_v62, 0.0  ;;  %vm1556_vm6 = vweird.f32 %v6827_v4  ;;  %v7028_v8 = vpop.f32.mrf.mxu2 }
 0x199   :  { %vm1121_vm3 = vcmp.gt.f32.partialorder %v6911_v25, 0.0  ;;  %v6964_v31 = vmul.f32 %v2349_v60, %v6660_v42  ;;  %v1933_v37 = vmul.f32 %v6954_v19, %v6871_v59  ;;  %v2369_v45 = vmul.f32 %v6942_v26, %v6858_v61  ;;  %vm6999_vm7 = vmor %vm1555_vm11, %vm1556_vm6  ;;  %v1761_v6 = vpop.xlane.xlu0 %1760 }
 0x19a   :  { %v6973_v15 = vsel %vm1124_vm9, %v6895_v32, 1.0  ;;  %v6976_v24 = vmul.f32 %v1921_v38, %v5865_v22  ;;  %v6979_v12 = vadd.f32 %v6827_v4, %v1553_v5  ;;  %v1559_v0 = vand.u32 2147483647, %v6742_v51 }
 0x19b   :  { %v6985_v40 = vsel %vm1121_vm3, %v6911_v25, 1.0  ;;  %v2359_v39 = vmul.f32 0.5, %v2358_v11  ;;  %v6991_v28 = vadd.f32 %v6822_v1, %v6820_v47  ;;  %v1728_v22 = vmul.f32 %v6959_v44, %v6959_v44  ;;  %v1697_v1 = vld [vmem:[%s9525_s3 + $0xc8] sm:$0xff] }
 0x19c   :  { %4931 = vrcp.f32 %v6985_v40  ;;  %v1925_v23 = vmul.f32 0.5, %v1924_v46  ;;  %v1561_v47 = vand.u32 2147483648, %v6742_v51  ;;  %vm2327_vm15 = vcmp.eq.f32.partialorder %v6494_v3, inf }
 0x19d   :  { %4933 = vrcp.f32 %v6973_v15  ;;  %vm1928_vm1 = vweird.f32 %v6841_v48  ;;  %v7013_v58 = vadd.f32 %v6869_v17, %v6867_v34  ;;  %v1934_v36 = vmul.f32 %v6954_v19, %v1933_v37  ;;  %v7030_v34 = vpop.f32.mrf.mxu3 }
 0x19e   :  { %v2370_v63 = vmul.f32 %v6942_v26, %v2369_v45  ;;  %vm1929_vm2 = vweird.f32 %v6904_v53  ;;  %v7018_v62 = vadd.f32 %v708_v55, %v619_v21  ;;  %v1558_v51 = vsel %vm6999_vm7, %v6827_v4, %v6979_v12 }
 0x19f   :  { %vm7024_vm5 = vcmp.eq.f32.partialorder %v1559_v0, 8.507059e+37  ;;  %v2360_v17 = vsub.f32 1.5, %v2359_v39  ;;  %v2177_v60 = vmul.f32 %v1697_v1, %v1697_v1  ;;  %v2328_v33 = vsel %vm2327_vm15, %v6494_v3, %v6789_v16  ;;  %vm7077_vm15 = vmor %vm1928_vm1, %vm1929_vm2 }
 0x1a0   :  { %vm2329_vm13 = vcmp.eq.f32.partialorder %v6494_v3, 0.0  ;;  %v1926_v5 = vsub.f32 1.5, %v1925_v23  ;;  %1784 = vadd.xlane.f32.xlu0 %v1728_v22  ;;  %vm1938_vm4 = vweird.f32 %v6871_v59  ;;  %vm1939_vm8 = vweird.f32 %v6954_v19  ;;  %v7053_v23 = vpop.xlane.xlu2 %2208  ;;  %v621_v59 = vpop.f32.mrf.mxu0 }
 0x1a1   :  { %v1562_v4 = vor.u32 1.1754944e-38, %v1561_v47  ;;  %v2330_v14 = vand.u32 2147483648, %v6494_v3  ;;  %v1935_v11 = vmul.f32 0.5, %v1934_v36  ;;  %v2371_v46 = vmul.f32 0.5, %v2370_v63  ;;  %vm7112_vm1 = vmor %vm1938_vm4, %vm1939_vm8 }
 0x1a2   :  { %v4932_v38 = vpop.eup %4931  ;;  %vm1540_vm12 = vweird.f32 %v6985_v40  ;;  %vm2339_vm14 = vcmp.eq.f32.partialorder %v6584_v7, inf  ;;  %v1544_v45 = vand.u32 2147483647, %v6985_v40  ;;  %vm2341_vm10 = vcmp.eq.f32.partialorder %v6584_v7, 0.0 }
 0x1a3   :  { %v7040_v37 = vpop.eup %4933  ;;  %v1536_v16 = vmul.f32 %v4932_v38, %v6985_v40  ;;  %v2331_v12 = vsel %vm2329_vm13, %v2330_v14, %v2328_v33  ;;  %v1546_v0 = vand.u32 2147483648, %v6985_v40  ;;  %v2340_v3 = vsel %vm2339_vm14, %v6584_v7, %v6948_v10 }
 0x1a4   :  { %v2342_v39 = vand.u32 2147483648, %v6584_v7  ;;  %v2670_v22 = vmul.f32 %v6928_v20, %v2331_v12  ;;  %vm1541_vm11 = vweird.f32 %v4932_v38  ;;  %v7050_v55 = vmax.f32 %v1759_v57, 1e-24 }
 0x1a5   :  { %v1537_v21 = vsub.f32 1.0, %v1536_v16  ;;  %4935 = vrsqrt.f32 %v6987_v13  ;;  %v2361_v47 = vmul.f32 %v6887_v54, %v2360_v17  ;;  %v1936_v1 = vsub.f32 1.5, %v1935_v11  ;;  %vm7066_vm7 = vmor %vm1540_vm12, %vm1541_vm11  ;;  %v807_v16 = vpop.f32.mrf.mxu2  ;;  %v896_v12 = vpop.f32.mrf.mxu3 }
 0x1a6   :  { %v1581_v36 = vmul.f32 %v7040_v37, %v6973_v15  ;;  %v2343_v10 = vsel %vm2341_vm10, %v2342_v39, %v2340_v3  ;;  %v2704_v20 = vmul.f32 %v6368_v56, %v2670_v22  ;;  %4937 = vrsqrt.f32 %v7050_v55 }
 0x1a7   :  { %v1538_v63 = vmul.f32 %v4932_v38, %v1537_v21  ;;  %v2671_v7 = vmul.f32 %v6945_v41, %v2343_v10  ;;  %v1927_v57 = vmul.f32 %v6904_v53, %v1926_v5  ;;  %vm1585_vm6 = vweird.f32 %v6973_v15 }
 0x1a8   :  { %v1547_v17 = vor.u32 1.1754944e-38, %v1546_v0  ;;  %v7070_v33 = vmax.f32 %v1761_v6, 1e-24  ;;  %4939 = vrsqrt.f32 %v7053_v23  ;;  %v2372_v5 = vsub.f32 1.5, %v2371_v46  ;;  %2234 = vadd.xlane.f32.xlu0 %v2177_v60  ;;  %v5099_v60 = vld [vmem:[%s9525_s3 + $0x30] sm:$0xff] }
 0x1a9   :  { %v1539_v14 = vadd.f32 %v4932_v38, %v1538_v63  ;;  %vm7081_vm13 = vcmp.eq.f32.partialorder %v1544_v45, 8.507059e+37  ;;  %v2705_v11 = vmul.f32 %v6368_v56, %v2671_v7  ;;  %v1582_v0 = vsub.f32 1.0, %v1581_v36  ;;  %v710_v7 = vpop.f32.mrf.mxu1 }
 0x1aa   :  { %v1563_v3 = vsel %vm7024_vm5, %v1562_v4, %v1558_v51  ;;  %4941 = vrsqrt.f32 %v7070_v33  ;;  %v7089_v48 = vadd.f32 %v896_v12, %v807_v16  ;;  %v1937_v46 = vmul.f32 %v6954_v19, %v1936_v1  ;;  %v5100_v51 = vld [vmem:[%s9525_s3 + $0x38] sm:$0xff] }
 0x1ab   :  { %v7091_v39 = vpop.eup %4935  ;;  %v1543_v45 = vsel %vm7066_vm7, %v4932_v38, %v1539_v14  ;;  %v2736_v22 = vadd.f32 %v5099_v60, %v2704_v20  ;;  %v2737_v49 = vadd.f32 %v5100_v51, %v2705_v11  ;;  %v1931_v4 = vsel %vm7077_vm15, %v6904_v53, %v1927_v57 }
 0x1ac   :  { %v7106_v21 = vmul.f32 %v2361_v47, %v6794_v35  ;;  %v1548_v6 = vsel %vm7081_vm13, %v1547_v17, %v1543_v45  ;;  %v2381_v1 = vmul.f32 %v7091_v39, %v6987_v13  ;;  %v7120_v36 = vpop.eup %4937  ;;  %v2373_v53 = vmul.f32 %v6942_v26, %v2372_v5  ;;  %v7176_v45 = vpop.xlane.xlu0 %2210 }
 0x1ad   :  { %v1564_v47 = vmul.f32 %v1563_v3, %v7018_v62  ;;  %v1549_v10 = vmul.f32 %v1548_v6, %v7013_v58  ;;  %v2765_v63 = vpack.c.bf16 %v2737_v49, %v2736_v22  ;;  %v1583_v57 = vmul.f32 %v7040_v37, %v1582_v0 }
 0x1ae   :  { %v7125_v20 = vpop.eup %4939  ;;  %v1943_v54 = vmul.f32 %v7120_v36, %v7050_v55  ;;  %v2382_v17 = vmul.f32 %v7091_v39, %v2381_v1  ;;  %vm1126_vm2 = vcmp.gt.f32.partialorder %v7089_v48, 0.0  ;;  %v7133_v26 = vmul.f32 %v1931_v4, %v5910_v9  ;;  %v624_v1 = vpop.f32.mrf.mxu0 }
 0x1af   :  { %v1941_v58 = vsel %vm7112_vm1, %v6954_v19, %v1937_v46  ;;  %v7140_v62 = vsel %vm1121_vm3, %v1549_v10, 0.0  ;;  %2903 = vmatmul.bf16.gmra.mxu0 %v2765_v63  ;;  %2992 = vmatmul.bf16.gmra.mxu1 %v2765_v63  ;;  %vm1586_vm5 = vweird.f32 %v7040_v37  ;;  %v2393_v14 = vmul.f32 %v7125_v20, %v7053_v23  ;;  %v1763_v46 = vpop.xlane.xlu1 %1762 }
 0x1b0   :  { %v7143_v41 = vpop.eup %4941  ;;  %v1729_v5 = vmul.f32 %v7140_v62, %v7140_v62  ;;  %v1944_v9 = vmul.f32 %v7120_v36, %v1943_v54  ;;  %vm1123_vm4 = vcmp.gt.f32.partialorder %v6991_v28, 0.0  ;;  %v7152_v25 = vmul.f32 %v2373_v53, %v6858_v61  ;;  %vm7183_vm3 = vmor %vm1585_vm6, %vm1586_vm5 }
 0x1b1   :  { %v2383_v19 = vmul.f32 0.5, %v2382_v17  ;;  %v1953_v40 = vmul.f32 %v7143_v41, %v7070_v33  ;;  %v7159_v11 = vsel %vm1126_vm2, %v7089_v48, 1.0  ;;  %v7162_v16 = vmul.f32 %v1941_v58, %v5968_v43  ;;  %v713_v53 = vpop.f32.mrf.mxu1 }
 0x1b2   :  { %1786 = vadd.xlane.f32.xlu1 %v1729_v5  ;;  %v7166_v12 = vsel %vm1122_vm0, %v1564_v47, 0.0  ;;  %v7169_v0 = vadd.f32 %v7040_v37, %v1583_v57  ;;  %v7174_v3 = vsel %vm1123_vm4, %v6991_v28, 1.0  ;;  %v1589_v50 = vand.u32 2147483647, %v6973_v15 }
 0x1b3   :  { %v1954_v60 = vmul.f32 %v7143_v41, %v1953_v40  ;;  %v1591_v22 = vand.u32 2147483648, %v6973_v15  ;;  %4943 = vrcp.f32 %v7174_v3  ;;  %v1945_v51 = vmul.f32 0.5, %v1944_v9 }
 0x1b4   :  { %v7192_v49 = vadd.f32 %v7030_v34, %v7028_v8  ;;  %v2394_v4 = vmul.f32 %v7125_v20, %v2393_v14  ;;  %4945 = vrcp.f32 %v7159_v11  ;;  %vm1948_vm0 = vweird.f32 %v7050_v55  ;;  %v7232_v43 = vpop.xlane.xlu0 %2212 }
 0x1b5   :  { %v2384_v38 = vsub.f32 1.5, %v2383_v19  ;;  %v7197_v6 = vadd.f32 %v710_v7, %v621_v59  ;;  %vm2351_vm8 = vcmp.eq.f32.partialorder %v6660_v42, inf  ;;  %vm1949_vm12 = vweird.f32 %v7120_v36 }
 0x1b6   :  { %v1730_v15 = vmul.f32 %v7166_v12, %v7166_v12  ;;  %vm1958_vm14 = vweird.f32 %v7070_v33  ;;  %v1588_v8 = vsel %vm7183_vm3, %v7040_v37, %v7169_v0  ;;  %v1955_v34 = vmul.f32 0.5, %v1954_v60  ;;  %vm7242_vm5 = vmor %vm1948_vm0, %vm1949_vm12 }
 0x1b7   :  { %vm1959_vm10 = vweird.f32 %v7143_v41  ;;  %vm7209_vm11 = vcmp.eq.f32.partialorder %v1589_v50, 8.507059e+37  ;;  %v1592_v10 = vor.u32 1.1754944e-38, %v1591_v22  ;;  %v1946_v63 = vsub.f32 1.5, %v1945_v51  ;;  %v1765_v60 = vpop.xlane.xlu1 %1764 }
 0x1b8   :  { %v2395_v59 = vmul.f32 0.5, %v2394_v4  ;;  %v2352_v7 = vsel %vm2351_vm8, %v6660_v42, %v6964_v31  ;;  %vm2353_vm6 = vcmp.eq.f32.partialorder %v6660_v42, 0.0  ;;  %v2385_v37 = vmul.f32 %v7091_v39, %v2384_v38  ;;  %vm7269_vm8 = vmor %vm1958_vm14, %vm1959_vm10 }
 0x1b9   :  { %v4944_v57 = vpop.eup %4943  ;;  %vm1570_vm7 = vweird.f32 %v7174_v3  ;;  %v1574_v54 = vand.u32 2147483647, %v7174_v3  ;;  %v2354_v17 = vand.u32 2147483648, %v6660_v42  ;;  %v1576_v9 = vand.u32 2147483648, %v7174_v3 }
 0x1ba   :  { %v7220_v58 = vpop.eup %4945  ;;  %1788 = vadd.xlane.f32.xlu1 %v1730_v15  ;;  %v1566_v5 = vmul.f32 %v4944_v57, %v7174_v3  ;;  %vm2363_vm15 = vcmp.eq.f32.partialorder %v6794_v35, inf  ;;  %vm2365_vm13 = vcmp.eq.f32.partialorder %v6794_v35, 0.0  ;;  %v1956_v31 = vsub.f32 1.5, %v1955_v34 }
 0x1bb   :  { %v2355_v14 = vsel %vm2353_vm6, %v2354_v17, %v2352_v7  ;;  %v2364_v39 = vsel %vm2363_vm15, %v6794_v35, %v7106_v21  ;;  %v2366_v19 = vand.u32 2147483648, %v6794_v35  ;;  %vm1571_vm1 = vweird.f32 %v4944_v57  ;;  %v898_v35 = vpop.f32.mrf.mxu3 }
 0x1bc   :  { %v1567_v40 = vsub.f32 1.0, %v1566_v5  ;;  %v2672_v42 = vmul.f32 %v6976_v24, %v2355_v14  ;;  %v7230_v0 = vmax.f32 %v1763_v46, 1e-24  ;;  %v1947_v50 = vmul.f32 %v7120_v36, %v1946_v63  ;;  %vm7252_vm3 = vmor %vm1570_vm7, %vm1571_vm1 }
 0x1bd   :  { %v1611_v22 = vmul.f32 %v7220_v58, %v7159_v11  ;;  %v2367_v51 = vsel %vm2365_vm13, %v2366_v19, %v2364_v39  ;;  %4947 = vrsqrt.f32 %v7176_v45  ;;  %v2396_v4 = vsub.f32 1.5, %v2395_v59 }
 0x1be   :  { %v1568_v24 = vmul.f32 %v4944_v57, %v1567_v40  ;;  %v2673_v21 = vmul.f32 %v7133_v26, %v2367_v51  ;;  %v2706_v46 = vmul.f32 %v6368_v56, %v2672_v42  ;;  %4949 = vrsqrt.f32 %v7230_v0 }
 0x1bf   :  { %v1577_v55 = vor.u32 1.1754944e-38, %v1576_v9  ;;  %v7256_v15 = vmax.f32 %v1765_v60, 1e-24  ;;  %4951 = vrsqrt.f32 %v7232_v43  ;;  %v1957_v34 = vmul.f32 %v7143_v41, %v1956_v31  ;;  %v715_v9 = vpop.f32.mrf.mxu1 }
 0x1c0   :  { %v1569_v26 = vadd.f32 %v4944_v57, %v1568_v24  ;;  %vm7260_vm0 = vcmp.eq.f32.partialorder %v1574_v54, 8.507059e+37  ;;  %v2707_v59 = vmul.f32 %v6368_v56, %v2673_v21  ;;  %v1612_v7 = vsub.f32 1.0, %v1611_v22  ;;  %v626_v54 = vpop.f32.mrf.mxu0 }
 0x1c1   :  { %v7273_v17 = vadd.f32 %v713_v53, %v624_v1  ;;  %v7277_v5 = vsel %vm7209_vm11, %v1592_v10, %v1588_v8  ;;  %4953 = vrsqrt.f32 %v7256_v15  ;;  %v1951_v31 = vsel %vm7242_vm5, %v7120_v36, %v1947_v50  ;;  %v5101_v1 = vld [vmem:[%s9525_s3 + $0x40] sm:$0xff]  ;;  %v5102_v8 = vld [vmem:[%s9525_s3 + $0x48] sm:$0xff] }
 0x1c2   :  { %v1573_v33 = vsel %vm7252_vm3, %v4944_v57, %v1569_v26  ;;  %v2738_v53 = vadd.f32 %v5101_v1, %v2706_v46  ;;  %v2739_v47 = vadd.f32 %v5102_v8, %v2707_v59  ;;  %v7292_v14 = vmul.f32 %v2385_v37, %v6987_v13  ;;  %v7345_v59 = vpop.xlane.xlu1 %2214 }
 0x1c3   :  { %v4948_v10 = vpop.eup %4947  ;;  %v2397_v39 = vmul.f32 %v7125_v20, %v2396_v4  ;;  %v1578_v36 = vsel %vm7260_vm0, %v1577_v55, %v1573_v33  ;;  %vm1125_vm12 = vcmp.gt.f32.partialorder %v7192_v49, 0.0  ;;  %v1961_v19 = vsel %vm7269_vm8, %v7143_v41, %v1957_v34  ;;  %v1698_v55 = vld [vmem:[%s9525_s3 + $0xd0] sm:$0xff]  ;;  %v1767_v34 = vpop.xlane.xlu2 %1766 }
 0x1c4   :  { %v7298_v57 = vpop.eup %4949  ;;  %v1579_v40 = vmul.f32 %v1578_v36, %v7197_v6  ;;  %v2766_v42 = vpack.c.bf16 %v2739_v47, %v2738_v53  ;;  %v2405_v60 = vmul.f32 %v4948_v10, %v7176_v45  ;;  %v7308_v20 = vmul.f32 %v1951_v31, %v6003_v2  ;;  %v809_v2 = vpop.f32.mrf.mxu2 }
 0x1c5   :  { %v7305_v37 = vpop.eup %4951  ;;  %v7311_v50 = vmul.f32 %v7220_v58, %v1612_v7  ;;  %v1963_v22 = vmul.f32 %v7298_v57, %v7230_v0  ;;  %v7318_v41 = vsel %vm1125_vm12, %v7192_v49, 1.0  ;;  %v7330_v46 = vmul.f32 %v1961_v19, %v6035_v29 }
 0x1c6   :  { %v7322_v6 = vsel %vm1123_vm4, %v1579_v40, 0.0  ;;  %2908 = vmatmul.bf16.gmra.mxu0 %v2766_v42  ;;  %2997 = vmatmul.bf16.gmra.mxu1 %v2766_v42  ;;  %v2406_v51 = vmul.f32 %v4948_v10, %v2405_v60  ;;  %v2417_v24 = vmul.f32 %v7305_v37, %v7232_v43  ;;  %4955 = vrcp.f32 %v7318_v41 }
 0x1c7   :  { %v7327_v21 = vpop.eup %4953  ;;  %v7333_v4 = vmul.f32 %v2397_v39, %v7053_v23  ;;  %v1731_v28 = vmul.f32 %v7322_v6, %v7322_v6  ;;  %v1964_v38 = vmul.f32 %v7298_v57, %v1963_v22  ;;  %vm2375_vm4 = vcmp.eq.f32.partialorder %v6858_v61, inf  ;;  %v7357_v39 = vpop.f32.mrf.mxu1 }
 0x1c8   :  { %v2407_v26 = vmul.f32 0.5, %v2406_v51  ;;  %v1973_v63 = vmul.f32 %v7327_v21, %v7256_v15  ;;  %v2418_v29 = vmul.f32 %v7305_v37, %v2417_v24  ;;  %vm1968_vm14 = vweird.f32 %v7230_v0  ;;  %v7355_v47 = vpop.f32.mrf.mxu0 }
 0x1c9   :  { %1790 = vadd.xlane.f32.xlu2 %v1731_v28  ;;  %v1965_v3 = vmul.f32 0.5, %v1964_v38  ;;  %v7348_v7 = vadd.f32 %v898_v35, %v809_v2  ;;  %v7350_v31 = vadd.f32 %v715_v9, %v626_v54  ;;  %v2178_v1 = vmul.f32 %v1698_v55, %v1698_v55 }
 0x1ca   :  { %v2408_v33 = vsub.f32 1.5, %v2407_v26  ;;  %v1974_v53 = vmul.f32 %v7327_v21, %v1973_v63  ;;  %vm1978_vm10 = vweird.f32 %v7256_v15  ;;  %vm1969_vm11 = vweird.f32 %v7298_v57 }
 0x1cb   :  { %v1966_v8 = vsub.f32 1.5, %v1965_v3  ;;  %v2376_v36 = vsel %vm2375_vm4, %v6858_v61, %v7152_v25  ;;  %vm2377_vm6 = vcmp.eq.f32.partialorder %v6858_v61, 0.0  ;;  %v2419_v19 = vmul.f32 0.5, %v2418_v29  ;;  %vm7373_vm13 = vmor %vm1968_vm14, %vm1969_vm11 }
 0x1cc   :  { %v4956_v54 = vpop.eup %4955  ;;  %v1975_v9 = vmul.f32 0.5, %v1974_v53  ;;  %v1604_v40 = vand.u32 2147483647, %v7318_v41  ;;  %v2378_v42 = vand.u32 2147483648, %v6858_v61  ;;  %vm1600_vm7 = vweird.f32 %v7318_v41 }
 0x1cd   :  { %v1596_v60 = vmul.f32 %v4956_v54, %v7318_v41  ;;  %v1606_v22 = vand.u32 2147483648, %v7318_v41  ;;  %vm2387_vm15 = vcmp.eq.f32.partialorder %v6987_v13, inf  ;;  %v1967_v51 = vmul.f32 %v7298_v57, %v1966_v8 }
 0x1ce   :  { %v2409_v25 = vmul.f32 %v4948_v10, %v2408_v33  ;;  %v1976_v2 = vsub.f32 1.5, %v1975_v9  ;;  %v2379_v35 = vsel %vm2377_vm6, %v2378_v42, %v2376_v36  ;;  %vm1601_vm1 = vweird.f32 %v4956_v54 }
 0x1cf   :  { %v1597_v61 = vsub.f32 1.0, %v1596_v60  ;;  %v2388_v28 = vsel %vm2387_vm15, %v6987_v13, %v7292_v14  ;;  %vm2389_vm5 = vcmp.eq.f32.partialorder %v6987_v13, 0.0  ;;  %vm1979_vm3 = vweird.f32 %v7327_v21  ;;  %v1769_v14 = vpop.xlane.xlu2 %1768  ;;  %vm7397_vm8 = vmor %vm1600_vm7, %vm1601_vm1 }
 0x1d0   :  { %v2420_v10 = vsub.f32 1.5, %v2419_v19  ;;  %vm7381_vm0 = vcmp.eq.f32.partialorder %v1604_v40, 8.507059e+37  ;;  %v2390_v0 = vand.u32 2147483648, %v6987_v13  ;;  %v2674_v26 = vmul.f32 %v7162_v16, %v2379_v35  ;;  %vm7410_vm4 = vmor %vm1978_vm10, %vm1979_vm3  ;;  %v631_v60 = vpop.f32.mrf.mxu0  ;;  %v5104_v35 = vld [vmem:[%s9525_s3 + $0x58] sm:$0xff] }
 0x1d1   :  { %2236 = vadd.xlane.f32.xlu2 %v2178_v1  ;;  %v1598_v55 = vmul.f32 %v4956_v54, %v1597_v61  ;;  %v7387_v63 = vmax.f32 %v1767_v34, 1e-24  ;;  %4957 = vrsqrt.f32 %v7345_v59  ;;  %v1971_v29 = vsel %vm7373_vm13, %v7298_v57, %v1967_v51  ;;  %v7401_v34 = vpop.xlane.xlu1 %2216  ;;  %v7403_v1 = vpop.xlane.xlu0 %1770 }
 0x1d2   :  { %v1977_v3 = vmul.f32 %v7327_v21, %v1976_v2  ;;  %v1607_v33 = vor.u32 1.1754944e-38, %v1606_v22  ;;  %v2391_v16 = vsel %vm2389_vm5, %v2390_v0, %v2388_v28  ;;  %v2410_v53 = vmul.f32 %v2409_v25, %v7176_v45 }
 0x1d3   :  { %v1599_v41 = vadd.f32 %v4956_v54, %v1598_v55  ;;  %v2675_v8 = vmul.f32 %v7308_v20, %v2391_v16  ;;  %v2708_v36 = vmul.f32 %v6368_v56, %v2674_v26  ;;  %v2421_v9 = vmul.f32 %v7305_v37, %v2420_v10  ;;  %v720_v20 = vpop.f32.mrf.mxu1 }
 0x1d4   :  { %4959 = vrsqrt.f32 %v7387_v63  ;;  %v7418_v19 = vmax.f32 %v1769_v14, 1e-24  ;;  %vm1127_vm14 = vcmp.gt.f32.partialorder %v7348_v7, 0.0  ;;  %v7422_v40 = vmul.f32 %v1971_v29, %v6078_v18  ;;  %v1700_v18 = vld [vmem:[%s9525_s3 + $0xe0] sm:$0xff] }
 0x1d5   :  { %v1603_v15 = vsel %vm7397_vm8, %v4956_v54, %v1599_v41  ;;  %v2709_v42 = vmul.f32 %v6368_v56, %v2675_v8  ;;  %4961 = vrsqrt.f32 %v7401_v34  ;;  %v1981_v37 = vsel %vm7410_vm4, %v7327_v21, %v1977_v3  ;;  %v5103_v21 = vld [vmem:[%s9525_s3 + $0x50] sm:$0xff] }
 0x1d6   :  { %v1608_v22 = vsel %vm7381_vm0, %v1607_v33, %v1603_v15  ;;  %4963 = vrsqrt.f32 %v7418_v19  ;;  %v7440_v54 = vsel %vm1127_vm14, %v7348_v7, 1.0  ;;  %v2740_v2 = vadd.f32 %v5103_v21, %v2708_v36 }
 0x1d7   :  { %v4958_v51 = vpop.eup %4957  ;;  %v1609_v25 = vmul.f32 %v1608_v22, %v7350_v31  ;;  %v2741_v24 = vadd.f32 %v5104_v35, %v2709_v42  ;;  %4965 = vrcp.f32 %v7440_v54  ;;  %v7451_v61 = vmul.f32 %v2421_v9, %v7232_v43  ;;  %v7478_v33 = vpop.xlane.xlu2 %2218 }
 0x1d8   :  { %v2429_v28 = vmul.f32 %v4958_v51, %v7345_v59  ;;  %v7454_v10 = vadd.f32 %v720_v20, %v631_v60  ;;  %vm2399_vm10 = vcmp.eq.f32.partialorder %v7053_v23, inf  ;;  %v7458_v31 = vmul.f32 %v1981_v37, %v6115_v52 }
 0x1d9   :  { %v7462_v38 = vsel %vm1125_vm12, %v1609_v25, 0.0  ;;  %v2767_v0 = vpack.c.bf16 %v2741_v24, %v2740_v2  ;;  %v2180_v55 = vmul.f32 %v1700_v18, %v1700_v18  ;;  %v2400_v3 = vsel %vm2399_vm10, %v7053_v23, %v7333_v4  ;;  %v1773_v36 = vpop.xlane.xlu0 %1772 }
 0x1da   :  { %v7464_v26 = vpop.eup %4959  ;;  %v1733_v14 = vmul.f32 %v7462_v38, %v7462_v38  ;;  %v2430_v29 = vmul.f32 %v4958_v51, %v2429_v28  ;;  %vm2401_vm11 = vcmp.eq.f32.partialorder %v7053_v23, 0.0  ;;  %vm1630_vm12 = vweird.f32 %v7440_v54 }
 0x1db   :  { %v7471_v13 = vpop.eup %4961  ;;  %2913 = vmatmul.bf16.gmra.mxu0 %v2767_v0  ;;  %3002 = vmatmul.bf16.gmra.mxu1 %v2767_v0  ;;  %v1983_v52 = vmul.f32 %v7464_v26, %v7387_v63  ;;  %v2402_v49 = vand.u32 2147483648, %v7053_v23  ;;  %vm2411_vm6 = vcmp.eq.f32.partialorder %v7176_v45, inf  ;;  %v1634_v41 = vand.u32 2147483647, %v7440_v54 }
 0x1dc   :  { %v7480_v16 = vpop.eup %4963  ;;  %1794 = vadd.xlane.f32.xlu2 %v1733_v14  ;;  %v2431_v4 = vmul.f32 0.5, %v2430_v29  ;;  %v2441_v57 = vmul.f32 %v7471_v13, %v7401_v34  ;;  %v1636_v8 = vand.u32 2147483648, %v7440_v54  ;;  %v2412_v20 = vsel %vm2411_vm6, %v7176_v45, %v2410_v53  ;;  %v7501_v53 = vpop.xlane.xlu1 %1774 }
 0x1dd   :  { %v4966_v9 = vpop.eup %4965  ;;  %v1984_v15 = vmul.f32 %v7464_v26, %v1983_v52  ;;  %v1993_v42 = vmul.f32 %v7480_v16, %v7418_v19  ;;  %v2403_v60 = vsel %vm2401_vm11, %v2402_v49, %v2400_v3  ;;  %vm2413_vm7 = vcmp.eq.f32.partialorder %v7176_v45, 0.0 }
 0x1de   :  { %v2432_v37 = vsub.f32 1.5, %v2431_v4  ;;  %v2442_v22 = vmul.f32 %v7471_v13, %v2441_v57  ;;  %v1626_v18 = vmul.f32 %v4966_v9, %v7440_v54  ;;  %v2414_v2 = vand.u32 2147483648, %v7176_v45 }
 0x1df   :  { %v1985_v25 = vmul.f32 0.5, %v1984_v15  ;;  %v1994_v21 = vmul.f32 %v7480_v16, %v1993_v42  ;;  %v2676_v35 = vmul.f32 %v7330_v46, %v2403_v60  ;;  %vm1631_vm15 = vweird.f32 %v4966_v9  ;;  %v7529_v15 = vpop.xlane.xlu2 %2220  ;;  %v5105_v42 = vld [vmem:[%s9525_s3 + $0x60] sm:$0xff] }
 0x1e0   :  { %v2443_v24 = vmul.f32 0.5, %v2442_v22  ;;  %v1627_v28 = vsub.f32 1.0, %v1626_v18  ;;  %v7499_v23 = vmax.f32 %v7403_v1, 1e-24  ;;  %vm1988_vm13 = vweird.f32 %v7387_v63  ;;  %vm7510_vm5 = vmor %vm1630_vm12, %vm1631_vm15  ;;  %v2889_v63 = vpop.f32.mrf.mxu0 }
 0x1e1   :  { %v1986_v0 = vsub.f32 1.5, %v1985_v25  ;;  %vm1989_vm1 = vweird.f32 %v7464_v26  ;;  %v2415_v14 = vsel %vm2413_vm7, %v2414_v2, %v2412_v20  ;;  %v2433_v29 = vmul.f32 %v4958_v51, %v2432_v37  ;;  %v5106_v20 = vld [vmem:[%s9525_s3 + $0x68] sm:$0xff]  ;;  %v7540_v22 = vpop.xlane.xlu0 %2222 }
 0x1e2   :  { %v1628_v3 = vmul.f32 %v4966_v9, %v1627_v28  ;;  %v2677_v45 = vmul.f32 %v7422_v40, %v2415_v14  ;;  %v2710_v46 = vmul.f32 %v6368_v56, %v2676_v35  ;;  %v1995_v49 = vmul.f32 0.5, %v1994_v21  ;;  %vm7515_vm3 = vmor %vm1988_vm13, %vm1989_vm1 }
 0x1e3   :  { %v1987_v52 = vmul.f32 %v7464_v26, %v1986_v0  ;;  %v1637_v4 = vor.u32 1.1754944e-38, %v1636_v8  ;;  %4967 = vrsqrt.f32 %v7499_v23  ;;  %v2444_v40 = vsub.f32 1.5, %v2443_v24  ;;  %v9684_v24 = vld [vmem:[#allocation4_spill] sm:$0xff] }
 0x1e4   :  { %2240 = vadd.xlane.f32.xlu2 %v2180_v55  ;;  %v1629_v51 = vadd.f32 %v4966_v9, %v1628_v3  ;;  %vm7519_vm0 = vcmp.eq.f32.partialorder %v1634_v41, 8.507059e+37  ;;  %v2711_v54 = vmul.f32 %v6368_v56, %v2677_v45  ;;  %vm1998_vm8 = vweird.f32 %v7418_v19  ;;  %v1777_v14 = vpop.xlane.xlu1 %1776  ;;  %v2794_v19 = vld [vmem:[%s9527_s6] sm:$0x3] }
 0x1e5   :  { %vm1999_vm4 = vweird.f32 %v7480_v16  ;;  %4969 = vrsqrt.f32 %v7478_v33  ;;  %v7527_v8 = vmax.f32 %v1773_v36, 1e-24  ;;  %v2434_v55 = vmul.f32 %v2433_v29, %v7345_v59 }
 0x1e6   :  { %v1633_v41 = vsel %vm7510_vm5, %v4966_v9, %v1629_v51  ;;  %v2742_v60 = vadd.f32 %v5105_v42, %v2710_v46  ;;  %v2743_v37 = vadd.f32 %v5106_v20, %v2711_v54  ;;  %v1991_v36 = vsel %vm7515_vm3, %v7464_v26, %v1987_v52  ;;  %vm7602_vm15 = vmor %vm1998_vm8, %vm1999_vm4 }
 0x1e7   :  { %v1996_v18 = vsub.f32 1.5, %v1995_v49  ;;  %v1638_v9 = vsel %vm7519_vm0, %v1637_v4, %v1633_v41  ;;  %4971 = vrsqrt.f32 %v7527_v8  ;;  %v7549_v25 = vmul.f32 %v7471_v13, %v2444_v40  ;;  %v7585_v40 = vpop.f32.mrf.mxu1 }
 0x1e8   :  { %v1639_v21 = vmul.f32 %v1638_v9, %v7454_v10  ;;  %v2768_v2 = vpack.c.bf16 %v2743_v37, %v2742_v60  ;;  %4973 = vrsqrt.f32 %v7529_v15  ;;  %vm2423_vm10 = vcmp.eq.f32.partialorder %v7232_v43, inf }
 0x1e9   :  { %v7553_v35 = vpop.eup %4967  ;;  %vm2425_vm11 = vcmp.eq.f32.partialorder %v7232_v43, 0.0  ;;  %v2426_v26 = vand.u32 2147483648, %v7232_v43  ;;  %vm2435_vm12 = vcmp.eq.f32.partialorder %v7345_v59, inf  ;;  %v2647_v28 = vmul.f32 %v1991_v36, %v9684_v24 }
 0x1ea   :  { %v7562_v13 = vsel %vm1127_vm14, %v1639_v21, 0.0  ;;  %v2003_v10 = vmul.f32 %v7553_v35, %v7499_v23  ;;  %v2424_v0 = vsel %vm2423_vm10, %v7232_v43, %v7451_v61  ;;  %vm2008_vm6 = vweird.f32 %v7499_v23 }
 0x1eb   :  { %v4970_v29 = vpop.eup %4969  ;;  %v1735_v3 = vmul.f32 %v7562_v13, %v7562_v13  ;;  %2918 = vmatmul.bf16.gmra.mxu0 %v2768_v2  ;;  %3007 = vmatmul.bf16.gmra.mxu1 %v2768_v2  ;;  %v2427_v45 = vsel %vm2425_vm11, %v2426_v26, %v2424_v0  ;;  %v2436_v7 = vsel %vm2435_vm12, %v7345_v59, %v2434_v55  ;;  %vm2437_vm14 = vcmp.eq.f32.partialorder %v7345_v59, 0.0 }
 0x1ec   :  { %v2004_v46 = vmul.f32 %v7553_v35, %v2003_v10  ;;  %v2453_v52 = vmul.f32 %v4970_v29, %v7478_v33  ;;  %v2438_v43 = vand.u32 2147483648, %v7345_v59  ;;  %v2678_v49 = vmul.f32 %v7458_v31, %v2427_v45  ;;  %v7662_v42 = vpop.xlane.xlu1 %2226 }
 0x1ed   :  { %v7576_v61 = vpop.eup %4971  ;;  %1798 = vadd.xlane.f32.xlu2 %v1735_v3  ;;  %v7580_v1 = vmax.f32 %v7501_v53, 1e-24  ;;  %4975 = vrsqrt.f32 %v7540_v22  ;;  %v7583_v4 = vmax.f32 %v1777_v14, 1e-24  ;;  %v1997_v57 = vmul.f32 %v7480_v16, %v1996_v18  ;;  %v7607_v18 = vpop.xlane.xlu0 %2224 }
 0x1ee   :  { %v7587_v51 = vpop.eup %4973  ;;  %v2005_v54 = vmul.f32 0.5, %v2004_v46  ;;  %v2454_v55 = vmul.f32 %v4970_v29, %v2453_v52  ;;  %v2013_v41 = vmul.f32 %v7576_v61, %v7527_v8  ;;  %vm2009_vm7 = vweird.f32 %v7553_v35  ;;  %v5107_v52 = vld [vmem:[%s9525_s3 + $0x78] sm:$0xff] }
 0x1ef   :  { %v2465_v31 = vmul.f32 %v7587_v51, %v7529_v15  ;;  %v2439_v53 = vsel %vm2437_vm14, %v2438_v43, %v2436_v7  ;;  %4977 = vrsqrt.f32 %v7580_v1  ;;  %v7611_v59 = vadd.f32 %v7220_v58, %v7311_v50  ;;  %vm7636_vm5 = vmor %vm2008_vm6, %vm2009_vm7 }
 0x1f0   :  { %v2006_v60 = vsub.f32 1.5, %v2005_v54  ;;  %v2455_v20 = vmul.f32 0.5, %v2454_v55  ;;  %v2014_v37 = vmul.f32 %v7576_v61, %v2013_v41  ;;  %v2679_v36 = vmul.f32 %v2647_v28, %v2439_v53 }
 0x1f1   :  { %v2466_v9 = vmul.f32 %v7587_v51, %v2465_v31  ;;  %v2712_v21 = vmul.f32 %v6368_v56, %v2678_v49  ;;  %4979 = vrsqrt.f32 %v7583_v4  ;;  %vm1615_vm13 = vweird.f32 %v7159_v11 }
 0x1f2   :  { %v7619_v2 = vpop.xlane.xlu2 %1778  ;;  %vm1616_vm1 = vweird.f32 %v7220_v58  ;;  %v2007_v26 = vmul.f32 %v7553_v35, %v2006_v60  ;;  %v2456_v50 = vsub.f32 1.5, %v2455_v20  ;;  %v2015_v24 = vmul.f32 0.5, %v2014_v37 }
 0x1f3   :  { %v2713_v28 = vmul.f32 %v6368_v56, %v2679_v36  ;;  %v7625_v10 = vpop.eup %4975  ;;  %v1619_v0 = vand.u32 2147483647, %v7159_v11  ;;  %v1621_v14 = vand.u32 2147483648, %v7159_v11  ;;  %v2001_v3 = vsel %vm7602_vm15, %v7480_v16, %v1997_v57  ;;  %v5108_v57 = vld [vmem:[%s9525_s3 + $0x70] sm:$0xff]  ;;  %v2891_v36 = vpop.f32.mrf.mxu0  ;;  %vm7704_vm14 = vmor %vm1615_vm13, %vm1616_vm1  ;;  %v5109_v11 = vld [vmem:[%s9525_s3 + $0x80] sm:$0xff] }
 0x1f4   :  { %4981 = vrsqrt.f32 %v7607_v18  ;;  %v2446_v7 = vmul.f32 %v7549_v25, %v7401_v34  ;;  %v2457_v46 = vmul.f32 %v4970_v29, %v2456_v50  ;;  %v7646_v16 = vperm.slane %v2794_v19, 0  ;;  %v9689_v29 = vld [vmem:[#allocation5_spill] sm:$0xff] }
 0x1f5   :  { %v2745_v43 = vadd.f32 %v5107_v52, %v2713_v28  ;;  %v7648_v49 = vpop.eup %4977  ;;  %vm2018_vm3 = vweird.f32 %v7527_v8  ;;  %v2467_v23 = vmul.f32 0.5, %v2466_v9  ;;  %v2744_v54 = vadd.f32 %v5108_v57, %v2712_v21  ;;  %v2980_v9 = vpop.f32.mrf.mxu1  ;;  %v9690_v28 = vld [vmem:[#allocation6_spill] sm:$0xff] }
 0x1f6   :  { %v2477_v25 = vmul.f32 %v7625_v10, %v7540_v22  ;;  %v2648_v55 = vmul.f32 %v2001_v3, %v9689_v29  ;;  %v2011_v41 = vsel %vm7636_vm5, %v7553_v35, %v2007_v26  ;;  %v2016_v31 = vsub.f32 1.5, %v2015_v24 }
 0x1f7   :  { %v2023_v53 = vmul.f32 %v7648_v49, %v7580_v1  ;;  %v7664_v60 = vpop.eup %4979  ;;  %vm2019_vm0 = vweird.f32 %v7576_v61  ;;  %v2769_v20 = vpack.c.bf16 %v2745_v43, %v2744_v54  ;;  %vm2028_vm8 = vweird.f32 %v7580_v1 }
 0x1f8   :  { %v2478_v37 = vmul.f32 %v7625_v10, %v2477_v25  ;;  %v2458_v21 = vmul.f32 %v2457_v46, %v7478_v33  ;;  %v2033_v26 = vmul.f32 %v7664_v60, %v7583_v4  ;;  %v7674_v50 = vadd.f32 %v2889_v63, %v7646_v16  ;;  %vm7688_vm10 = vmor %vm2018_vm3, %vm2019_vm0 }
 0x1f9   :  { %v2024_v35 = vmul.f32 %v7648_v49, %v2023_v53  ;;  %v2649_v3 = vmul.f32 %v2011_v41, %v9690_v28  ;;  %v2468_v45 = vsub.f32 1.5, %v2467_v23  ;;  %vm2447_vm4 = vcmp.eq.f32.partialorder %v7401_v34, inf }
 0x1fa   :  { %v7676_v24 = vpop.eup %4981  ;;  %v2479_v52 = vmul.f32 0.5, %v2478_v37  ;;  %v2017_v43 = vmul.f32 %v7576_v61, %v2016_v31  ;;  %v7681_v46 = vperm.slane %v2794_v19, 1  ;;  %v2448_v54 = vsel %vm2447_vm4, %v7401_v34, %v2446_v7  ;;  %v1781_v19 = vpop.xlane.xlu2 %1780 }
 0x1fb   :  { %v2025_v57 = vmul.f32 0.5, %v2024_v35  ;;  %2923 = vmatmul.bf16.gmra.mxu0 %v2769_v20  ;;  %3012 = vmatmul.bf16.gmra.mxu1 %v2769_v20  ;;  %vm2029_vm11 = vweird.f32 %v7648_v49  ;;  %vm2449_vm12 = vcmp.eq.f32.partialorder %v7401_v34, 0.0  ;;  %v2450_v23 = vand.u32 2147483648, %v7401_v34 }
 0x1fc   :  { %vm2459_vm6 = vcmp.eq.f32.partialorder %v7478_v33, inf  ;;  %v2034_v25 = vmul.f32 %v7664_v60, %v2033_v26  ;;  %v2489_v8 = vmul.f32 %v7676_v24, %v7607_v18  ;;  %v2480_v34 = vsub.f32 1.5, %v2479_v52  ;;  %vm7735_vm15 = vmor %vm2028_vm8, %vm2029_vm11 }
 0x1fd   :  { %v2026_v7 = vsub.f32 1.5, %v2025_v57  ;;  %v2460_v29 = vsel %vm2459_vm6, %v7478_v33, %v2458_v21  ;;  %v2451_v31 = vsel %vm2449_vm12, %v2450_v23, %v2448_v54  ;;  %vm2461_vm7 = vcmp.eq.f32.partialorder %v7478_v33, 0.0  ;;  %v2983_v57 = vpop.f32.mrf.mxu1  ;;  %v9697_v54 = vld [vmem:[#allocation7_spill] sm:$0xff] }
 0x1fe   :  { %v2462_v53 = vand.u32 2147483648, %v7478_v33  ;;  %v2021_v20 = vsel %vm7688_vm10, %v7576_v61, %v2017_v43  ;;  %v2469_v37 = vmul.f32 %v7587_v51, %v2468_v45  ;;  %v7716_v21 = vadd.f32 %v7585_v40, %v7681_v46  ;;  %v2894_v43 = vpop.f32.mrf.mxu0 }
 0x1ff   :  { %v2680_v35 = vmul.f32 %v2648_v55, %v2451_v31  ;;  %v2027_v26 = vmul.f32 %v7648_v49, %v2026_v7  ;;  %v7720_v52 = vmax.f32 %v7619_v2, 1e-24  ;;  %4983 = vrsqrt.f32 %v7662_v42  ;;  %v7739_v55 = vpop.xlane.xlu1 %2228 }
 0x200   :  { %v2463_v28 = vsel %vm2461_vm7, %v2462_v53, %v2460_v29  ;;  %v7725_v33 = vmul.f32 %v7277_v5, %v7273_v17  ;;  %v2035_v51 = vmul.f32 0.5, %v2034_v25  ;;  %v2481_v17 = vmul.f32 %v7625_v10, %v2480_v34  ;;  %v5110_v29 = vld [vmem:[%s9525_s3 + $0x88] sm:$0xff] }
 0x201   :  { %v2681_v2 = vmul.f32 %v2649_v3, %v2463_v28  ;;  %v2490_v5 = vmul.f32 %v7676_v24, %v2489_v8  ;;  %v2714_v45 = vmul.f32 %v6368_v56, %v2680_v35  ;;  %4985 = vrsqrt.f32 %v7720_v52 }
 0x202   :  { %v7747_v1 = vor.u32 1.1754944e-38, %v1621_v14  ;;  %v2650_v63 = vmul.f32 %v2021_v20, %v9697_v54  ;;  %v3058_v23 = vadd.f32 %v7716_v21, %v7674_v50  ;;  %vm7755_vm13 = vcmp.eq.f32.partialorder %v1619_v0, 8.507059e+37  ;;  %v7790_v35 = vpop.xlane.xlu2 %2230 }
 0x203   :  { %v2715_v3 = vmul.f32 %v6368_v56, %v2681_v2  ;;  %v2470_v7 = vmul.f32 %v2469_v37, %v7529_v15  ;;  %v2031_v14 = vsel %vm7735_vm15, %v7648_v49, %v2027_v26  ;;  %vm2038_vm1 = vweird.f32 %v7583_v4  ;;  %v7788_v37 = vld [vmem:[%s9525_s3 + $0xd8] sm:$0xff] }
 0x204   :  { %vm2039_vm5 = vweird.f32 %v7664_v60  ;;  %v7766_v25 = vadd.f32 %v2891_v36, %v7646_v16  ;;  %v7769_v8 = vadd.f32 %v2980_v9, %v7681_v46  ;;  %v2746_v0 = vadd.f32 %v5109_v11, %v2714_v45  ;;  %3059 = vadd.xlane.f32.xlu0 %v3058_v23 }
 0x205   :  { %v2747_v49 = vadd.f32 %v5110_v29, %v2715_v3  ;;  %v7777_v34 = vmax.f32 %v1781_v19, 1e-24  ;;  %4987 = vrsqrt.f32 %v7739_v55  ;;  %v7780_v36 = vpop.eup %4983  ;;  %v2482_v9 = vmul.f32 %v2481_v17, %v7540_v22  ;;  %v9700_v19 = vld [vmem:[#allocation8_spill] sm:$0xff]  ;;  %vm7849_vm10 = vmor %vm2038_vm1, %vm2039_vm5 }
 0x206   :  { %v2036_v31 = vsub.f32 1.5, %v2035_v51  ;;  %v2491_v53 = vmul.f32 0.5, %v2490_v5  ;;  %v3061_v20 = vadd.f32 %v7769_v8, %v7766_v25  ;;  %v2651_v26 = vmul.f32 %v2031_v14, %v9700_v19  ;;  %v2985_v19 = vpop.f32.mrf.mxu1 }
 0x207   :  { %v2770_v28 = vpack.c.bf16 %v2747_v49, %v2746_v0  ;;  %v2501_v40 = vmul.f32 %v7780_v36, %v7662_v42  ;;  %4989 = vrsqrt.f32 %v7777_v34  ;;  %v7796_v51 = vpop.eup %4985  ;;  %vm2471_vm3 = vcmp.eq.f32.partialorder %v7529_v15, inf }
 0x208   :  { %3062 = vadd.xlane.f32.xlu1 %v3061_v20  ;;  %vm2473_vm0 = vcmp.eq.f32.partialorder %v7529_v15, 0.0  ;;  %v2474_v2 = vand.u32 2147483648, %v7529_v15  ;;  %vm2483_vm8 = vcmp.eq.f32.partialorder %v7540_v22, inf  ;;  %v2043_v17 = vmul.f32 %v7796_v51, %v7720_v52 }
 0x209   :  { %v2502_v5 = vmul.f32 %v7780_v36, %v2501_v40  ;;  %v2179_v45 = vmul.f32 %v7788_v37, %v7788_v37  ;;  %v2472_v54 = vsel %vm2471_vm3, %v7529_v15, %v2470_v7  ;;  %v2484_v23 = vsel %vm2483_vm8, %v7540_v22, %v2482_v9 }
 0x20a   :  { %v2475_v3 = vsel %vm2473_vm0, %v2474_v2, %v2472_v54  ;;  %vm2485_vm4 = vcmp.eq.f32.partialorder %v7540_v22, 0.0  ;;  %v2486_v14 = vand.u32 2147483648, %v7540_v22  ;;  %v2037_v0 = vmul.f32 %v7664_v60, %v2036_v31  ;;  %v2896_v22 = vpop.f32.mrf.mxu0 }
 0x20b   :  { %v7811_v11 = vpop.eup %4987  ;;  %v2044_v29 = vmul.f32 %v7796_v51, %v2043_v17  ;;  %v2503_v49 = vmul.f32 0.5, %v2502_v5  ;;  %4991 = vrsqrt.f32 %v7790_v35  ;;  %v2492_v20 = vsub.f32 1.5, %v2491_v53  ;;  %2928 = vmatmul.bf16.gmra.mxu0 %v2770_v28  ;;  %3017 = vmatmul.bf16.gmra.mxu1 %v2770_v28  ;;  %v1783_v5 = vpop.xlane.xlu0 %1782 }
 0x20c   :  { %v2513_v15 = vmul.f32 %v7811_v11, %v7739_v55  ;;  %v7819_v7 = vadd.f32 %v2894_v43, %v7646_v16  ;;  %v2487_v9 = vsel %vm2485_vm4, %v2486_v14, %v2484_v23  ;;  %2238 = vadd.xlane.f32.xlu0 %v2179_v45  ;;  %v7824_v2 = vadd.f32 %v2983_v57, %v7681_v46 }
 0x20d   :  { %v7821_v40 = vpop.eup %4989  ;;  %v2045_v31 = vmul.f32 0.5, %v2044_v29  ;;  %v2682_v17 = vmul.f32 %v2650_v63, %v2475_v3  ;;  %v2683_v53 = vmul.f32 %v2651_v26, %v2487_v9  ;;  %v2504_v28 = vsub.f32 1.5, %v2503_v49 }
 0x20e   :  { %v2053_v54 = vmul.f32 %v7821_v40, %v7777_v34  ;;  %v7828_v61 = vmax.f32 %v1783_v5, 1e-24  ;;  %v7833_v43 = vsel %vm1124_vm9, %v7725_v33, 0.0  ;;  %v719_v45 = vadd.f32 %v7357_v39, %v7355_v47  ;;  %v7901_v5 = vld [vmem:[%s9525_s3 + $0xe8] sm:$0xff] }
 0x20f   :  { %v9701_v57 = vsel %vm7704_vm14, %v7220_v58, %v7611_v59  ;;  %v2046_v33 = vsub.f32 1.5, %v2045_v31  ;;  %vm2048_vm9 = vweird.f32 %v7720_v52  ;;  %v2493_v47 = vmul.f32 %v7676_v24, %v2492_v20  ;;  %v7858_v59 = vpop.xlane.xlu2 %2232  ;;  %v5112_v52 = vld [vmem:[%s9525_s3 + $0x90] sm:$0xff] }
 0x210   :  { %v1623_v63 = vsel %vm7755_vm13, %v7747_v1, %v9701_v57  ;;  %v2514_v39 = vmul.f32 %v7811_v11, %v2513_v15  ;;  %v2717_v58 = vmul.f32 %v6368_v56, %v2683_v53  ;;  %4993 = vrsqrt.f32 %v7828_v61 }
 0x211   :  { %v7860_v41 = vpop.eup %4991  ;;  %vm2049_vm11 = vweird.f32 %v7796_v51  ;;  %v2716_v4 = vmul.f32 %v6368_v56, %v2682_v17  ;;  %v1732_v1 = vmul.f32 %v7833_v43, %v7833_v43  ;;  %v3064_v24 = vadd.f32 %v7824_v2, %v7819_v7 }
 0x212   :  { %v2041_v10 = vsel %vm7849_vm10, %v7664_v60, %v2037_v0  ;;  %v2505_v26 = vmul.f32 %v7780_v36, %v2504_v28  ;;  %v2054_v3 = vmul.f32 %v7821_v40, %v2053_v54  ;;  %v2525_v23 = vmul.f32 %v7860_v41, %v7790_v35  ;;  %vm7885_vm12 = vmor %vm2048_vm9, %vm2049_vm11  ;;  %v5111_v0 = vld [vmem:[%s9525_s3 + $0x98] sm:$0xff] }
 0x213   :  { %v2047_v14 = vmul.f32 %v7796_v51, %v2046_v33  ;;  %1792 = vadd.xlane.f32.xlu1 %v1732_v1  ;;  %v7877_v29 = vadd.f32 %v2896_v22, %v7646_v16  ;;  %v7880_v49 = vadd.f32 %v2985_v19, %v7681_v46  ;;  %4995 = vrsqrt.f32 %v7858_v59  ;;  %v9706_v22 = vld [vmem:[#allocation9_spill] sm:$0xff]  ;;  %v1785_v53 = vpop.xlane.xlu0 %1784  ;;  %v2988_v32 = vpop.f32.mrf.mxu1 }
 0x214   :  { %v2515_v36 = vmul.f32 0.5, %v2514_v39  ;;  %v2749_v20 = vadd.f32 %v5111_v0, %v2717_v58  ;;  %v2526_v15 = vmul.f32 %v7860_v41, %v2525_v23  ;;  %v1624_v9 = vmul.f32 %v1623_v63, %v719_v45  ;;  %3065 = vadd.xlane.f32.xlu0 %v3064_v24  ;;  %v2899_v63 = vpop.f32.mrf.mxu0 }
 0x215   :  { %v2652_v19 = vmul.f32 %v2041_v10, %v9706_v22  ;;  %v2494_v31 = vmul.f32 %v2493_v47, %v7607_v18  ;;  %v2748_v17 = vadd.f32 %v5112_v52, %v2716_v4  ;;  %v2506_v54 = vmul.f32 %v2505_v26, %v7662_v42  ;;  %v7937_v22 = vld [vmem:[%s9525_s3 + $0xf0] sm:$0xff] }
 0x216   :  { %v7903_v28 = vpop.eup %4993  ;;  %vm2058_vm6 = vweird.f32 %v7777_v34  ;;  %v2527_v45 = vmul.f32 0.5, %v2526_v15  ;;  %v7907_v57 = vmax.f32 %v1785_v53, 1e-24  ;;  %vm2495_vm14 = vcmp.eq.f32.partialorder %v7607_v18, inf }
 0x217   :  { %v2051_v33 = vsel %vm7885_vm12, %v7796_v51, %v2047_v14  ;;  %v2055_v47 = vmul.f32 0.5, %v2054_v3  ;;  %v2063_v39 = vmul.f32 %v7903_v28, %v7828_v61  ;;  %v3067_v58 = vadd.f32 %v7880_v49, %v7877_v29 }
 0x218   :  { %v2516_v4 = vsub.f32 1.5, %v2515_v36  ;;  %v2771_v1 = vpack.c.bf16 %v2749_v20, %v2748_v17  ;;  %v2181_v24 = vmul.f32 %v7901_v5, %v7901_v5  ;;  %vm2497_vm7 = vcmp.eq.f32.partialorder %v7607_v18, 0.0 }
 0x219   :  { %v7920_v10 = vpop.eup %4995  ;;  %v2064_v26 = vmul.f32 %v7903_v28, %v2063_v39  ;;  %4997 = vrsqrt.f32 %v7907_v57  ;;  %v2496_v51 = vsel %vm2495_vm14, %v7607_v18, %v2494_v31  ;;  %v2498_v3 = vand.u32 2147483648, %v7607_v18 }
 0x21a   :  { %v2653_v23 = vmul.f32 %v2051_v33, %v6694_v30  ;;  %v2528_v14 = vsub.f32 1.5, %v2527_v45  ;;  %vm2507_vm15 = vcmp.eq.f32.partialorder %v7662_v42, inf  ;;  %vm2509_vm13 = vcmp.eq.f32.partialorder %v7662_v42, 0.0 }
 0x21b   :  { %v2065_v60 = vmul.f32 0.5, %v2064_v26  ;;  %3068 = vadd.xlane.f32.xlu1 %v3067_v58  ;;  %v2499_v36 = vsel %vm2497_vm7, %v2498_v3, %v2496_v51  ;;  %v2508_v0 = vsel %vm2507_vm15, %v7662_v42, %v2506_v54  ;;  %v2510_v20 = vand.u32 2147483648, %v7662_v42  ;;  %2933 = vmatmul.bf16.gmra.mxu0 %v2771_v1  ;;  %v7947_v54 = vpop.xlane.xlu0 %2234  ;;  %v2990_v58 = vpop.f32.mrf.mxu1 }
 0x21c   :  { %v2056_v15 = vsub.f32 1.5, %v2055_v47  ;;  %vm2059_vm1 = vweird.f32 %v7821_v40  ;;  %3022 = vmatmul.bf16.gmra.mxu1 %v2771_v1  ;;  %v2537_v30 = vmul.f32 %v7920_v10, %v7858_v59  ;;  %v2684_v18 = vmul.f32 %v2652_v19, %v2499_v36  ;;  %2242 = vadd.xlane.f32.xlu0 %v2181_v24 }
 0x21d   :  { %v2066_v31 = vsub.f32 1.5, %v2065_v60  ;;  %v7940_v52 = vadd.f32 %v2899_v63, %v7646_v16  ;;  %v7943_v17 = vadd.f32 %v2988_v32, %v7681_v46  ;;  %v2511_v53 = vsel %vm2509_vm13, %v2510_v20, %v2508_v0  ;;  %v5113_v0 = vld [vmem:[%s9525_s3 + $0xa0] sm:$0xff] }
 0x21e   :  { %v2529_v19 = vmul.f32 %v7860_v41, %v2528_v14  ;;  %v2685_v45 = vmul.f32 %v2653_v23, %v2511_v53  ;;  %4999 = vrsqrt.f32 %v7947_v54  ;;  %v7953_v33 = vsel %vm1126_vm2, %v1624_v9, 0.0  ;;  %v2901_v9 = vpop.f32.mrf.mxu0  ;;  %vm7970_vm2 = vmor %vm2058_vm6, %vm2059_vm1 }
 0x21f   :  { %v7955_v47 = vpop.eup %4997  ;;  %v2517_v63 = vmul.f32 %v7811_v11, %v2516_v4  ;;  %vm2068_vm5 = vweird.f32 %v7828_v61  ;;  %vm2069_vm3 = vweird.f32 %v7903_v28  ;;  %v2182_v42 = vmul.f32 %v7937_v22, %v7937_v22 }
 0x220   :  { %v2057_v41 = vmul.f32 %v7821_v40, %v2056_v15  ;;  %v2538_v32 = vmul.f32 %v7920_v10, %v2537_v30  ;;  %v2718_v39 = vmul.f32 %v6368_v56, %v2684_v18  ;;  %v2719_v48 = vmul.f32 %v6368_v56, %v2685_v45  ;;  %vm7979_vm0 = vmor %vm2068_vm5, %vm2069_vm3  ;;  %v5114_v15 = vld [vmem:[%s9525_s3 + $0xa8] sm:$0xff] }
 0x221   :  { %v2067_v11 = vmul.f32 %v7903_v28, %v2066_v31  ;;  %v1734_v4 = vmul.f32 %v7953_v33, %v7953_v33  ;;  %v3070_v1 = vadd.f32 %v7943_v17, %v7940_v52  ;;  %2244 = vadd.xlane.f32.xlu2 %v2182_v42  ;;  %v2530_v26 = vmul.f32 %v2529_v19, %v7790_v35  ;;  %v8012_v19 = vld [vmem:[%s9525_s3 + $0xf8] sm:$0xff] }
 0x222   :  { %v2073_v34 = vmul.f32 %v7955_v47, %v7907_v57  ;;  %v2518_v51 = vmul.f32 %v2517_v63, %v7739_v55  ;;  %v7988_v3 = vadd.f32 %v2901_v9, %v7646_v16  ;;  %v7991_v23 = vadd.f32 %v2990_v58, %v7681_v46 }
 0x223   :  { %1796 = vadd.xlane.f32.xlu1 %v1734_v4  ;;  %v2061_v60 = vsel %vm7970_vm2, %v7821_v40, %v2057_v41  ;;  %v2539_v36 = vmul.f32 0.5, %v2538_v32  ;;  %v2750_v20 = vadd.f32 %v5113_v0, %v2718_v39  ;;  %v2751_v30 = vadd.f32 %v5114_v15, %v2719_v48 }
 0x224   :  { %v5000_v14 = vpop.eup %4999  ;;  %v2071_v18 = vsel %vm7979_vm0, %v7903_v28, %v2067_v11  ;;  %3071 = vadd.xlane.f32.xlu0 %v3070_v1  ;;  %vm2519_vm8 = vcmp.eq.f32.partialorder %v7739_v55, inf  ;;  %vm2531_vm4 = vcmp.eq.f32.partialorder %v7790_v35, inf  ;;  %v2074_v40 = vmul.f32 %v7955_v47, %v2073_v34  ;;  %v9711_v11 = vld [vmem:[#allocation10_spill] sm:$0xff] }
 0x225   :  { %v2549_v31 = vmul.f32 %v5000_v14, %v7947_v54  ;;  %v1787_v53 = vpop.xlane.xlu1 %1786  ;;  %v2532_v45 = vsel %vm2531_vm4, %v7790_v35, %v2530_v26  ;;  %vm2533_vm10 = vcmp.eq.f32.partialorder %v7790_v35, 0.0  ;;  %v2534_v28 = vand.u32 2147483648, %v7790_v35 }
 0x226   :  { %v1825_v63 = vmax.f32 %v1787_v53, 1e-24  ;;  %v3073_v41 = vadd.f32 %v7991_v23, %v7988_v3  ;;  %v2522_v32 = vand.u32 2147483648, %v7739_v55  ;;  %v2655_v39 = vmul.f32 %v2071_v18, %v6933_v27 }
 0x227   :  { %v2550_v42 = vmul.f32 %v5000_v14, %v2549_v31  ;;  %v2772_v48 = vpack.c.bf16 %v2751_v30, %v2750_v20  ;;  %v2520_v9 = vsel %vm2519_vm8, %v7739_v55, %v2518_v51  ;;  %vm2521_vm9 = vcmp.eq.f32.partialorder %v7739_v55, 0.0 }
 0x228   :  { %5001 = vrsqrt.f32 %v1825_v63  ;;  %v2183_v61 = vmul.f32 %v8012_v19, %v8012_v19  ;;  %v2535_v35 = vsel %vm2533_vm10, %v2534_v28, %v2532_v45  ;;  %v2654_v4 = vmul.f32 %v2061_v60, %v9711_v11 }
 0x229   :  { %v2551_v58 = vmul.f32 0.5, %v2550_v42  ;;  %v2075_v1 = vmul.f32 0.5, %v2074_v40  ;;  %v2523_v24 = vsel %vm2521_vm9, %v2522_v32, %v2520_v9  ;;  %v2687_v26 = vmul.f32 %v2655_v39, %v2535_v35 }
 0x22a   :  { %v2540_v27 = vsub.f32 1.5, %v2539_v36  ;;  %v2686_v15 = vmul.f32 %v2654_v4, %v2523_v24  ;;  %vm2078_vm11 = vweird.f32 %v7907_v57  ;;  %vm2079_vm12 = vweird.f32 %v7955_v47  ;;  %v5115_v57 = vld [vmem:[%s9525_s3 + $0xb8] sm:$0xff] }
 0x22b   :  { %3074 = vadd.xlane.f32.xlu1 %v3073_v41  ;;  %2938 = vmatmul.bf16.gmra.mxu0 %v2772_v48  ;;  %v2552_v34 = vsub.f32 1.5, %v2551_v58  ;;  %v2076_v60 = vsub.f32 1.5, %v2075_v1  ;;  %v2721_v31 = vmul.f32 %v6368_v56, %v2687_v26  ;;  %vm8040_vm6 = vmor %vm2078_vm11, %vm2079_vm12  ;;  %vm2088_vm14 = vweird.f32 %v1825_v63 }
 0x22c   :  { %3027 = vmatmul.bf16.gmra.mxu1 %v2772_v48  ;;  %2246 = vadd.xlane.f32.xlu0 %v2183_v61  ;;  %v2904_v51 = vpop.f32.mrf.mxu0  ;;  %v2993_v0 = vpop.f32.mrf.mxu1  ;;  %v2541_v36 = vmul.f32 %v7920_v10, %v2540_v27  ;;  %v2720_v45 = vmul.f32 %v6368_v56, %v2686_v15  ;;  %v5116_v61 = vld [vmem:[%s9525_s3 + $0xb0] sm:$0xff]  ;;  %vm2543_vm13 = vcmp.eq.f32.partialorder %v7858_v59, inf  ;;  %v2546_v24 = vand.u32 2147483648, %v7858_v59 }
 0x22d   :  { %v8027_v55 = vadd.f32 %v2904_v51, %v7646_v16  ;;  %v8030_v20 = vadd.f32 %v2993_v0, %v7681_v46  ;;  %v2553_v40 = vmul.f32 %v5000_v14, %v2552_v34  ;;  %v2077_v42 = vmul.f32 %v7955_v47, %v2076_v60 }
 0x22e   :  { %v5002_v30 = vpop.eup %5001  ;;  %v2753_v10 = vadd.f32 %v5115_v57, %v2721_v31  ;;  %v2542_v14 = vmul.f32 %v2541_v36, %v7858_v59  ;;  %v2752_v35 = vadd.f32 %v5116_v61, %v2720_v45  ;;  %vm2555_vm1 = vcmp.eq.f32.partialorder %v7947_v54, inf }
 0x22f   :  { %v2083_v18 = vmul.f32 %v5002_v30, %v1825_v63  ;;  %v3076_v28 = vadd.f32 %v8030_v20, %v8027_v55  ;;  %vm2089_vm7 = vweird.f32 %v5002_v30  ;;  %v2554_v39 = vmul.f32 %v2553_v40, %v7947_v54 }
 0x230   :  { %v2081_v1 = vsel %vm8040_vm6, %v7955_v47, %v2077_v42  ;;  %vm2090_vm15 = vmor %vm2088_vm14, %vm2089_vm7  ;;  %v2773_v27 = vpack.c.bf16 %v2753_v10, %v2752_v35  ;;  %vm2545_vm5 = vcmp.eq.f32.partialorder %v7858_v59, 0.0  ;;  %v2544_v51 = vsel %vm2543_vm13, %v7858_v59, %v2542_v14  ;;  %v5118_v42 = vld [vmem:[%s9525_s3 + $0xc0] sm:$0xff]  ;;  %v1789_v14 = vpop.xlane.xlu1 %1788 }
 0x231   :  { %v2084_v53 = vmul.f32 %v5002_v30, %v2083_v18  ;;  %v2556_v0 = vsel %vm2555_vm1, %v7947_v54, %v2554_v39  ;;  %vm2557_vm3 = vcmp.eq.f32.partialorder %v7947_v54, 0.0  ;;  %v2558_v47 = vand.u32 2147483648, %v7947_v54 }
 0x232   :  { %v2656_v63 = vmul.f32 %v2081_v1, %v6959_v44  ;;  %v2547_v18 = vsel %vm2545_vm5, %v2546_v24, %v2544_v51  ;;  %v5117_v44 = vld [vmem:[%s9525_s3 + $0xc8] sm:$0xff] }
 0x233   :  { %v2085_v32 = vmul.f32 0.5, %v2084_v53  ;;  %3077 = vadd.xlane.f32.xlu1 %v3076_v28  ;;  %v2559_v31 = vsel %vm2557_vm3, %v2558_v47, %v2556_v0 }
 0x234   :  { %v2906_v48 = vpop.f32.mrf.mxu0  ;;  %v2995_v9 = vpop.f32.mrf.mxu1  ;;  %v2688_v40 = vmul.f32 %v2656_v63, %v2547_v18 }
 0x235   :  { %v2086_v58 = vsub.f32 1.5, %v2085_v32  ;;  %v8053_v11 = vadd.f32 %v2906_v48, %v7646_v16  ;;  %v8056_v4 = vadd.f32 %v2995_v9, %v7681_v46  ;;  %v1826_v48 = vmax.f32 %v1789_v14, 1e-24 }
 0x236   :  { %v2722_v53 = vmul.f32 %v6368_v56, %v2688_v40  ;;  %v5122_v9 = vmov 256.0  }
 0x237   :  { %v2087_v26 = vmul.f32 %v5002_v30, %v2086_v58  ;;  %v3079_v34 = vadd.f32 %v8056_v4, %v8053_v11  ;;  %vm2098_vm0 = vweird.f32 %v1826_v48 }
 0x238   :  { %v2754_v41 = vadd.f32 %v5118_v42, %v2722_v53 }
 0x239   :  { %v2091_v15 = vsel %vm2090_vm15, %v5002_v30, %v2087_v26  ;;  %3080 = vadd.xlane.f32.xlu2 %v3079_v34 }
 0x23a   :  { %v2657_v60 = vmul.f32 %v2091_v15, %v7140_v62 }
 0x23b   :  { %2943 = vmatmul.bf16.gmra.mxu0 %v2773_v27 }
 0x23c   :  { %3032 = vmatmul.bf16.gmra.mxu1 %v2773_v27  ;;  %v2689_v36 = vmul.f32 %v2657_v60, %v2559_v31  ;;  %v1791_v10 = vpop.xlane.xlu2 %1790 }
 0x23d   :  { %v8093_v58 = vmax.f32 %v1791_v10, 1e-24 }
 0x23e   :  { %v2723_v59 = vmul.f32 %v6368_v56, %v2689_v36 }
 0x23f   :  { %vm2108_vm9 = vweird.f32 %v8093_v58 }
 0x240   :  { %v2755_v54 = vadd.f32 %v5117_v44, %v2723_v59 }
 0x242   :  { %v2774_v57 = vpack.c.bf16 %v2755_v54, %v2754_v41 }
 0x243   :  { %v2909_v45 = vpop.f32.mrf.mxu0  ;;  %v2998_v28 = vpop.f32.mrf.mxu1 }
 0x244   :  { %v8080_v30 = vadd.f32 %v2909_v45, %v7646_v16  ;;  %v8083_v62 = vadd.f32 %v2998_v28, %v7681_v46  ;;  %v8090_v39 = vpop.xlane.xlu2 %2236 }
 0x245   :  { %5003 = vrsqrt.f32 %v8090_v39  ;;  %vm2567_vm10 = vcmp.eq.f32.partialorder %v8090_v39, inf  ;;  %vm2569_vm12 = vcmp.eq.f32.partialorder %v8090_v39, 0.0 }
 0x246   :  { %v3082_v32 = vadd.f32 %v8083_v62, %v8080_v30  ;;  %5005 = vrcp.f32 %v5122_v9 }
 0x247   :  { %5007 = vrsqrt.f32 %v1826_v48 }
 0x248   :  { %3083 = vadd.xlane.f32.xlu2 %v3082_v32  ;;  %5009 = vrsqrt.f32 %v8093_v58 }
 0x24b   :  { %2948 = vmatmul.bf16.gmra.mxu0 %v2774_v57  ;;  %v5004_v61 = vpop.eup %5003  ;;  %v2911_v47 = vpop.f32.mrf.mxu0 }
 0x24c   :  { %3037 = vmatmul.bf16.gmra.mxu1 %v2774_v57  ;;  %v5006_v35 = vpop.eup %5005  ;;  %v2561_v26 = vmul.f32 %v5004_v61, %v8090_v39  ;;  %v3000_v15 = vpop.f32.mrf.mxu1 }
 0x24d   :  { %v3155_v1 = vmul.f32 256.0, %v5006_v35  ;;  %v8096_v24 = vpop.eup %5007  ;;  %vm3159_vm2 = vweird.f32 %v5006_v35 }
 0x24e   :  { %v2093_v0 = vmul.f32 %v8096_v24, %v1826_v48  ;;  %v2562_v63 = vmul.f32 %v5004_v61, %v2561_v26  ;;  %v8100_v18 = vpop.eup %5009  ;;  %vm2099_vm8 = vweird.f32 %v8096_v24 }
 0x24f   :  { %v1795_v27 = vpop.xlane.xlu2 %1794  ;;  %v3156_v34 = vsub.f32 1.0, %v3155_v1  ;;  %v2103_v36 = vmul.f32 %v8100_v18, %v8093_v58  ;;  %vm8145_vm4 = vmor %vm2098_vm0, %vm2099_vm8  ;;  %vm2109_vm11 = vweird.f32 %v8100_v18 }
 0x250   :  { %v2094_v31 = vmul.f32 %v8096_v24, %v2093_v0  ;;  %v2563_v40 = vmul.f32 0.5, %v2562_v63  ;;  %v8105_v59 = vmax.f32 %v1795_v27, 1e-24  ;;  %vm8171_vm6 = vmor %vm2108_vm9, %vm2109_vm11 }
 0x251   :  { %v3157_v51 = vmul.f32 %v5006_v35, %v3156_v34  ;;  %v2104_v42 = vmul.f32 %v8100_v18, %v2103_v36 }
 0x252   :  { %v2095_v44 = vmul.f32 0.5, %v2094_v31  ;;  %v2564_v41 = vsub.f32 1.5, %v2563_v40  ;;  %vm2128_vm14 = vweird.f32 %v8105_v59 }
 0x253   :  { %v3158_v60 = vadd.f32 %v5006_v35, %v3157_v51  ;;  %v2105_v34 = vmul.f32 0.5, %v2104_v42  ;;  %v8155_v42 = vadd.f32 %v2911_v47, %v7646_v16 }
 0x254   :  { %v2096_v1 = vsub.f32 1.5, %v2095_v44  ;;  %v2565_v51 = vmul.f32 %v5004_v61, %v2564_v41  ;;  %v8158_v41 = vadd.f32 %v3000_v15, %v7681_v46 }
 0x255   :  { %v8107_v53 = vsel %vm3159_vm2, %v5006_v35, %v3158_v60  ;;  %v2106_v48 = vsub.f32 1.5, %v2105_v34 }
 0x256   :  { %v2097_v61 = vmul.f32 %v8096_v24, %v2096_v1  ;;  %v2566_v40 = vmul.f32 %v2565_v51, %v8090_v39  ;;  %v2570_v1 = vand.u32 2147483648, %v8090_v39 }
 0x257   :  { %v8109_v45 = vpop.xlane.xlu2 %2240  ;;  %v2107_v47 = vmul.f32 %v8100_v18, %v2106_v48 }
 0x258   :  { %5011 = vrsqrt.f32 %v8109_v45  ;;  %v2914_v32 = vpop.f32.mrf.mxu0  ;;  %v3003_v9 = vpop.f32.mrf.mxu1  ;;  %v2568_v34 = vsel %vm2567_vm10, %v8090_v39, %v2566_v40  ;;  %vm2591_vm5 = vcmp.eq.f32.partialorder %v8109_v45, inf  ;;  %vm2593_vm8 = vcmp.eq.f32.partialorder %v8109_v45, 0.0 }
 0x259   :  { %5013 = vrsqrt.f32 %v8105_v59  ;;  %v2571_v40 = vsel %vm2569_vm12, %v2570_v1, %v2568_v34 }
 0x260   :  { %v3005_v15 = vpop.f32.mrf.mxu1  ;;  %v1799_v48 = vpop.xlane.xlu2 %1798 }
 0x261   :  { %v8199_v1 = vmax.f32 %v1799_v48, 1e-24 }
 0x263   :  { %vm2148_vm9 = vweird.f32 %v8199_v1 }
 0x268   :  { %v3008_v48 = vpop.f32.mrf.mxu1 }
 0x277   :  { %v3060_v28 = vpop.xlane.xlu0 %3059 }
 0x278   :  { %v3161_v54 = vmul.f32 %v8107_v53, %v3060_v28 }
 0x27a   :  { %v8116_v57 = vsub.f32 %v7674_v50, %v3161_v54  ;;  %v8119_v10 = vsub.f32 %v7716_v21, %v3161_v54  ;;  %v8132_v21 = vpop.eup %5011 }
 0x27b   :  { %v3063_v14 = vpop.xlane.xlu1 %3062  ;;  %v8135_v60 = vpop.eup %5013  ;;  %v2585_v28 = vmul.f32 %v8132_v21, %v8109_v45 }
 0x27c   :  { %v3162_v35 = vmul.f32 %v8107_v53, %v3063_v14  ;;  %v3257_v26 = vmul.f32 %v8116_v57, %v8116_v57  ;;  %v3258_v27 = vmul.f32 %v8119_v10, %v8119_v10  ;;  %v2123_v54 = vmul.f32 %v8135_v60, %v8105_v59 }
 0x27d   :  { %v2101_v14 = vsel %vm8145_vm4, %v8096_v24, %v2097_v61  ;;  %vm2129_vm15 = vweird.f32 %v8135_v60 }
 0x27e   :  { %v8127_v0 = vsub.f32 %v7766_v25, %v3162_v35  ;;  %v8130_v50 = vsub.f32 %v7769_v8, %v3162_v35  ;;  %v3321_v63 = vadd.f32 %v3258_v27, %v3257_v26  ;;  %v2916_v35 = vpop.f32.mrf.mxu0  ;;  %v2586_v26 = vmul.f32 %v8132_v21, %v2585_v28  ;;  %vm8271_vm3 = vmor %vm2128_vm14, %vm2129_vm15 }
 0x27f   :  { %v8137_v31 = vpop.xlane.xlu0 %2238  ;;  %v2124_v24 = vmul.f32 %v8135_v60, %v2123_v54  ;;  %v2658_v8 = vmul.f32 %v2101_v14, %v7166_v12  ;;  %v2111_v28 = vsel %vm8171_vm6, %v8100_v18, %v2107_v47  ;;  %v8188_v54 = vadd.f32 %v2914_v32, %v7646_v16 }
 0x280   :  { %9714 = vst [vmem:[#allocation4_spill] sm:$0xff] %v8127_v0  ;;  %v3259_v36 = vmul.f32 %v8127_v0, %v8127_v0  ;;  %v3260_v25 = vmul.f32 %v8130_v50, %v8130_v50  ;;  %5015 = vrsqrt.f32 %v8137_v31  ;;  %3322 = vadd.xlane.f32.xlu0 %v3321_v63  ;;  %v8191_v0 = vadd.f32 %v3003_v9, %v7681_v46 }
 0x281   :  { %9715 = vst [vmem:[#allocation5_spill] sm:$0xff] %v8130_v50  ;;  %v2125_v50 = vmul.f32 0.5, %v2124_v24  ;;  %v2690_v51 = vmul.f32 %v2658_v8, %v2571_v40  ;;  %v2659_v47 = vmul.f32 %v2111_v28, %v7322_v6  ;;  %vm2579_vm7 = vcmp.eq.f32.partialorder %v8137_v31, inf }
 0x282   :  { %v3324_v44 = vadd.f32 %v3260_v25, %v3259_v36  ;;  %v3085_v36 = vadd.f32 %v8158_v41, %v8155_v42  ;;  %vm2581_vm13 = vcmp.eq.f32.partialorder %v8137_v31, 0.0 }
 0x283   :  { %v2724_v28 = vmul.f32 %v6368_v56, %v2690_v51 }
 0x284   :  { %3325 = vadd.xlane.f32.xlu1 %v3324_v44  ;;  %v2587_v44 = vmul.f32 0.5, %v2586_v26 }
 0x286   :  { %v1793_v27 = vpop.xlane.xlu1 %1792  ;;  %v5016_v58 = vpop.eup %5015  ;;  %v2588_v9 = vsub.f32 1.5, %v2587_v44 }
 0x287   :  { %v8176_v63 = vmax.f32 %v1793_v27, 1e-24  ;;  %v2573_v25 = vmul.f32 %v5016_v58, %v8137_v31  ;;  %v3066_v61 = vpop.xlane.xlu0 %3065 }
 0x288   :  { %v3163_v39 = vmul.f32 %v8107_v53, %v3066_v61  ;;  %3086 = vadd.xlane.f32.xlu0 %v3085_v36  ;;  %v2919_v36 = vpop.f32.mrf.mxu0  ;;  %v3088_v61 = vadd.f32 %v8191_v0, %v8188_v54 }
 0x289   :  { %5017 = vrsqrt.f32 %v8176_v63  ;;  %v2574_v27 = vmul.f32 %v5016_v58, %v2573_v25  ;;  %vm2118_vm2 = vweird.f32 %v8176_v63 }
 0x28a   :  { %v8194_v12 = vsub.f32 %v7819_v7, %v3163_v39  ;;  %v8197_v14 = vsub.f32 %v7824_v2, %v3163_v39  ;;  %v2126_v2 = vsub.f32 1.5, %v2125_v50  ;;  %5019 = vrsqrt.f32 %v8199_v1 }
 0x28b   :  { %v2575_v34 = vmul.f32 0.5, %v2574_v27  ;;  %v8219_v50 = vadd.f32 %v2916_v35, %v7646_v16 }
 0x28c   :  { %v3261_v18 = vmul.f32 %v8194_v12, %v8194_v12  ;;  %v3262_v32 = vmul.f32 %v8197_v14, %v8197_v14 }
 0x28d   :  { %v2576_v7 = vsub.f32 1.5, %v2575_v34  ;;  %v8230_v34 = vadd.f32 %v3005_v15, %v7681_v46 }
 0x28e   :  { %v3069_v26 = vpop.xlane.xlu1 %3068  ;;  %v3327_v8 = vadd.f32 %v3262_v32, %v3261_v18  ;;  %v2582_v18 = vand.u32 2147483648, %v8137_v31 }
 0x28f   :  { %v8207_v24 = vpop.eup %5017  ;;  %v3164_v25 = vmul.f32 %v8107_v53, %v3069_v26  ;;  %v2577_v39 = vmul.f32 %v5016_v58, %v2576_v7  ;;  %v8215_v40 = vpop.xlane.xlu0 %2242  ;;  %v2589_v58 = vmul.f32 %v8132_v21, %v2588_v9  ;;  %v8246_v9 = vmul.f32 %v8135_v60, %v2126_v2 }
 0x290   :  { %v2113_v6 = vmul.f32 %v8207_v24, %v8176_v63  ;;  %5021 = vrsqrt.f32 %v8215_v40  ;;  %3089 = vadd.xlane.f32.xlu0 %v3088_v61  ;;  %3328 = vadd.xlane.f32.xlu1 %v3327_v8  ;;  %vm2119_vm1 = vweird.f32 %v8207_v24  ;;  %vm2603_vm4 = vcmp.eq.f32.partialorder %v8215_v40, inf }
 0x291   :  { %v8222_v44 = vsub.f32 %v7877_v29, %v3164_v25  ;;  %v8225_v27 = vsub.f32 %v7880_v49, %v3164_v25  ;;  %v2578_v51 = vmul.f32 %v2577_v39, %v8137_v31  ;;  %v8249_v25 = vpop.eup %5019  ;;  %v2590_v61 = vmul.f32 %v2589_v58, %v8109_v45  ;;  %vm8285_vm0 = vmor %vm2118_vm2, %vm2119_vm1 }
 0x292   :  { %v2114_v35 = vmul.f32 %v8207_v24, %v2113_v6  ;;  %v8262_v58 = vadd.f32 %v2919_v36, %v7646_v16  ;;  %vm2605_vm10 = vcmp.eq.f32.partialorder %v8215_v40, 0.0  ;;  %vm2149_vm11 = vweird.f32 %v8249_v25 }
 0x293   :  { %9720 = vst [vmem:[#allocation6_spill] sm:$0xff] %v8225_v27  ;;  %v3263_v29 = vmul.f32 %v8222_v44, %v8222_v44  ;;  %v3264_v49 = vmul.f32 %v8225_v27, %v8225_v27  ;;  %v2580_v15 = vsel %vm2579_vm7, %v8137_v31, %v2578_v51  ;;  %v5119_v51 = vld [vmem:[%s9525_s3 + $0xd0] sm:$0xff]  ;;  %v2592_v63 = vsel %vm2591_vm5, %v8109_v45, %v2590_v61 }
 0x294   :  { %v2115_v21 = vmul.f32 0.5, %v2114_v35  ;;  %v8241_v32 = vpop.xlane.xlu2 %2244  ;;  %v2583_v26 = vsel %vm2581_vm13, %v2582_v18, %v2580_v15  ;;  %v2756_v35 = vadd.f32 %v5119_v51, %v2724_v28  ;;  %v2143_v15 = vmul.f32 %v8249_v25, %v8199_v1  ;;  %vm8402_vm13 = vmor %vm2148_vm9, %vm2149_vm11 }
 0x295   :  { %5023 = vrsqrt.f32 %v8241_v32  ;;  %v3330_v7 = vadd.f32 %v3264_v49, %v3263_v29  ;;  %v2691_v6 = vmul.f32 %v2659_v47, %v2583_v26  ;;  %v3091_v29 = vadd.f32 %v8230_v34, %v8219_v50  ;;  %v2921_v26 = vpop.f32.mrf.mxu0 }
 0x296   :  { %v2116_v8 = vsub.f32 1.5, %v2115_v21  ;;  %v1797_v39 = vpop.xlane.xlu1 %1796  ;;  %v5022_v31 = vpop.eup %5021  ;;  %v2594_v27 = vand.u32 2147483648, %v8109_v45  ;;  %v2131_v61 = vsel %vm8271_vm3, %v8135_v60, %v8246_v9  ;;  %vm2615_vm14 = vcmp.eq.f32.partialorder %v8241_v32, inf }
 0x297   :  { %v8256_v2 = vmax.f32 %v1797_v39, 1e-24  ;;  %3331 = vadd.xlane.f32.xlu2 %v3330_v7  ;;  %v2597_v49 = vmul.f32 %v5022_v31, %v8215_v40  ;;  %v3072_v18 = vpop.xlane.xlu0 %3071  ;;  %v2725_v28 = vmul.f32 %v6368_v56, %v2691_v6  ;;  %v8281_v7 = vadd.f32 %v3008_v48, %v7681_v46 }
 0x298   :  { %v2117_v47 = vmul.f32 %v8207_v24, %v2116_v8  ;;  %v3165_v36 = vmul.f32 %v8107_v53, %v3072_v18  ;;  %3092 = vadd.xlane.f32.xlu1 %v3091_v29  ;;  %v3010_v8 = vpop.f32.mrf.mxu1  ;;  %vm2617_vm15 = vcmp.eq.f32.partialorder %v8241_v32, 0.0 }
 0x299   :  { %5025 = vrsqrt.f32 %v8256_v2  ;;  %v2598_v39 = vmul.f32 %v5022_v31, %v2597_v49  ;;  %v2757_v6 = vadd.f32 %v2725_v28, %v7788_v37  ;;  %vm2138_vm6 = vweird.f32 %v8256_v2 }
 0x29a   :  { %v2121_v48 = vsel %vm8285_vm0, %v8207_v24, %v2117_v47  ;;  %v8297_v29 = vsub.f32 %v7940_v52, %v3165_v36  ;;  %v8300_v18 = vsub.f32 %v7943_v17, %v3165_v36  ;;  %v2144_v24 = vmul.f32 %v8249_v25, %v2143_v15 }
 0x29b   :  { %v5024_v51 = vpop.eup %5023  ;;  %v2599_v49 = vmul.f32 0.5, %v2598_v39  ;;  %v2775_v28 = vpack.c.bf16 %v2757_v6, %v2756_v35  ;;  %v2660_v47 = vmul.f32 %v2121_v48, %v7833_v43  ;;  %v3094_v35 = vadd.f32 %v8281_v7, %v8262_v58 }
 0x29c   :  { %v2609_v37 = vmul.f32 %v5024_v51, %v8241_v32  ;;  %v3265_v52 = vmul.f32 %v8297_v29, %v8297_v29  ;;  %v3266_v17 = vmul.f32 %v8300_v18, %v8300_v18  ;;  %v2595_v15 = vsel %vm2593_vm8, %v2594_v27, %v2592_v63 }
 0x29d   :  { %v2600_v36 = vsub.f32 1.5, %v2599_v49  ;;  %2953 = vmatmul.bf16.gmra.mxu0 %v2775_v28  ;;  %3042 = vmatmul.bf16.gmra.mxu1 %v2775_v28  ;;  %v2606_v27 = vand.u32 2147483648, %v8215_v40 }
 0x29e   :  { %v2610_v59 = vmul.f32 %v5024_v51, %v2609_v37  ;;  %v3075_v45 = vpop.xlane.xlu1 %3074  ;;  %v3333_v9 = vadd.f32 %v3266_v17, %v3265_v52  ;;  %v2692_v52 = vmul.f32 %v2660_v47, %v2595_v15  ;;  %v8337_v17 = vadd.f32 %v2921_v26, %v7646_v16 }
 0x29f   :  { %v8317_v21 = vpop.eup %5025  ;;  %v3166_v60 = vmul.f32 %v8107_v53, %v3075_v45  ;;  %v2601_v39 = vmul.f32 %v5022_v31, %v2600_v36  ;;  %v8323_v48 = vpop.xlane.xlu0 %2246  ;;  %v2145_v47 = vmul.f32 0.5, %v2144_v24 }
 0x2a0   :  { %v2133_v43 = vmul.f32 %v8317_v21, %v8256_v2  ;;  %v2611_v6 = vmul.f32 0.5, %v2610_v59  ;;  %5027 = vrsqrt.f32 %v8323_v48  ;;  %3095 = vadd.xlane.f32.xlu1 %v3094_v35  ;;  %3334 = vadd.xlane.f32.xlu2 %v3333_v9  ;;  %v2661_v59 = vmul.f32 %v2131_v61, %v7462_v38  ;;  %v2924_v45 = vpop.f32.mrf.mxu0  ;;  %v3013_v35 = vpop.f32.mrf.mxu1  ;;  %v5120_v2 = vld [vmem:[%s9525_s3 + $0xe0] sm:$0xff] }
 0x2a1   :  { %v8327_v49 = vsub.f32 %v7988_v3, %v3166_v60  ;;  %v8330_v37 = vsub.f32 %v7991_v23, %v3166_v60  ;;  %v2602_v31 = vmul.f32 %v2601_v39, %v8215_v40  ;;  %v8340_v3 = vadd.f32 %v3010_v8, %v7681_v46 }
 0x2a2   :  { %v2134_v63 = vmul.f32 %v8317_v21, %v2133_v43  ;;  %v2612_v28 = vsub.f32 1.5, %v2611_v6  ;;  %v2726_v6 = vmul.f32 %v6368_v56, %v2692_v52  ;;  %vm2139_vm12 = vweird.f32 %v8317_v21 }
 0x2a3   :  { %v3267_v23 = vmul.f32 %v8327_v49, %v8327_v49  ;;  %v3268_v36 = vmul.f32 %v8330_v37, %v8330_v37  ;;  %v2604_v26 = vsel %vm2603_vm4, %v8215_v40, %v2602_v31  ;;  %v3097_v24 = vadd.f32 %v8340_v3, %v8337_v17  ;;  %vm8373_vm7 = vmor %vm2138_vm6, %vm2139_vm12 }
 0x2a4   :  { %v2135_v60 = vmul.f32 0.5, %v2134_v63  ;;  %v2613_v9 = vmul.f32 %v5024_v51, %v2612_v28  ;;  %v2607_v8 = vsel %vm2605_vm10, %v2606_v27, %v2604_v26  ;;  %v2146_v28 = vsub.f32 1.5, %v2145_v47 }
 0x2a5   :  { %v3336_v15 = vadd.f32 %v3268_v36, %v3267_v23  ;;  %v2693_v43 = vmul.f32 %v2661_v59, %v2607_v8  ;;  %v8364_v52 = vadd.f32 %v2924_v45, %v7646_v16  ;;  %v8369_v23 = vadd.f32 %v3013_v35, %v7681_v46 }
 0x2a6   :  { %v2136_v39 = vsub.f32 1.5, %v2135_v60  ;;  %v5028_v38 = vpop.eup %5027  ;;  %v2614_v51 = vmul.f32 %v2613_v9, %v8241_v32  ;;  %v3078_v61 = vpop.xlane.xlu1 %3077  ;;  %v2758_v45 = vadd.f32 %v5120_v2, %v2726_v6  ;;  %v2618_v47 = vand.u32 2147483648, %v8241_v32 }
 0x2a7   :  { %3337 = vadd.xlane.f32.xlu0 %v3336_v15  ;;  %v2621_v27 = vmul.f32 %v5028_v38, %v8323_v48  ;;  %v3167_v31 = vmul.f32 %v8107_v53, %v3078_v61  ;;  %v2727_v63 = vmul.f32 %v6368_v56, %v2693_v43  ;;  %vm2627_vm1 = vcmp.eq.f32.partialorder %v8323_v48, inf }
 0x2a8   :  { %v2137_v40 = vmul.f32 %v8317_v21, %v2136_v39  ;;  %3098 = vadd.xlane.f32.xlu2 %v3097_v24  ;;  %v2616_v8 = vsel %vm2615_vm14, %v8241_v32, %v2614_v51  ;;  %v2147_v39 = vmul.f32 %v8249_v25, %v2146_v28  ;;  %v3015_v61 = vpop.f32.mrf.mxu1  ;;  %vm2629_vm5 = vcmp.eq.f32.partialorder %v8323_v48, 0.0 }
 0x2a9   :  { %v2622_v59 = vmul.f32 %v5028_v38, %v2621_v27  ;;  %v8378_v60 = vsub.f32 %v8027_v55, %v3167_v31  ;;  %v8387_v9 = vsub.f32 %v8030_v20, %v3167_v31  ;;  %v2759_v26 = vadd.f32 %v2727_v63, %v7901_v5 }
 0x2aa   :  { %v2141_v35 = vsel %vm8373_vm7, %v8317_v21, %v2137_v40  ;;  %v2926_v21 = vpop.f32.mrf.mxu0  ;;  %v3100_v27 = vadd.f32 %v8369_v23, %v8364_v52  ;;  %v2619_v31 = vsel %vm2617_vm15, %v2618_v47, %v2616_v8  ;;  %v2630_v36 = vand.u32 2147483648, %v8323_v48  ;;  %v4823_v8 = vld [vmem:[%s9528_s9 + $0x30] sm:$0xff] }
 0x2ab   :  { %v2623_v15 = vmul.f32 0.5, %v2622_v59  ;;  %v3269_v55 = vmul.f32 %v8378_v60, %v8378_v60  ;;  %v2776_v43 = vpack.c.bf16 %v2759_v26, %v2758_v45  ;;  %v3270_v20 = vmul.f32 %v8387_v9, %v8387_v9  ;;  %v4824_v45 = vld [vmem:[%s9528_s9 + $0x38] sm:$0xff] }
 0x2ac   :  { %v3081_v6 = vpop.xlane.xlu2 %3080  ;;  %v2662_v51 = vmul.f32 %v2141_v35, %v7953_v33  ;;  %v2151_v33 = vsel %vm8402_vm13, %v8249_v25, %v2147_v39  ;;  %v8428_v2 = vadd.f32 %v2926_v21, %v7646_v16  ;;  %v8431_v25 = vadd.f32 %v3015_v61, %v7681_v46  ;;  %4233 = vmatpush.bf16.msrb.mxu2 %v4824_v45 }
 0x2ad   :  { %v2624_v32 = vsub.f32 1.5, %v2623_v15  ;;  %v3168_v24 = vmul.f32 %v8107_v53, %v3081_v6  ;;  %2958 = vmatmul.bf16.gmra.mxu0 %v2776_v43  ;;  %3047 = vmatmul.bf16.gmra.mxu1 %v2776_v43  ;;  %v3339_v40 = vadd.f32 %v3270_v20, %v3269_v55  ;;  %v2663_v35 = vmul.f32 %v2151_v33, %v7562_v13  ;;  %v4832_v55 = vld [vmem:[%s9528_s9 + $0x78] sm:$0xff] }
 0x2ae   :  { %v2694_v59 = vmul.f32 %v2662_v51, %v2619_v31  ;;  %v3103_v13 = vadd.f32 %v8431_v25, %v8428_v2  ;;  %4322 = vmatpush.bf16.msrb.mxu3 %v4832_v55 }
 0x2af   :  { %v2625_v63 = vmul.f32 %v5028_v38, %v2624_v32  ;;  %v8411_v1 = vsub.f32 %v8053_v11, %v3168_v24  ;;  %v8414_v28 = vsub.f32 %v8056_v4, %v3168_v24  ;;  %3340 = vadd.xlane.f32.xlu0 %v3339_v40 }
 0x2b0   :  { %3101 = vadd.xlane.f32.xlu2 %v3100_v27  ;;  %v2728_v43 = vmul.f32 %v6368_v56, %v2694_v59  ;;  %v3018_v20 = vpop.f32.mrf.mxu1  ;;  %4234 = vmatpush.bf16.msrb.mxu2 %v4823_v8 }
 0x2b1   :  { %v2626_v38 = vmul.f32 %v2625_v63, %v8323_v48  ;;  %v3271_v11 = vmul.f32 %v8411_v1, %v8411_v1  ;;  %v3272_v4 = vmul.f32 %v8414_v28, %v8414_v28  ;;  %v8457_v32 = vadd.f32 %v3018_v20, %v7681_v46 }
 0x2b2   :  { %v2929_v6 = vpop.f32.mrf.mxu0  ;;  %v2760_v21 = vadd.f32 %v2728_v43, %v7937_v22 }
 0x2b3   :  { %v3342_v26 = vadd.f32 %v3272_v4, %v3271_v11  ;;  %v2628_v47 = vsel %vm2627_vm1, %v8323_v48, %v2626_v38  ;;  %v4831_v48 = vld [vmem:[%s9528_s9 + $0x70] sm:$0xff]  ;;  %v8454_v51 = vadd.f32 %v2929_v6, %v7646_v16 }
 0x2b4   :  { %v2631_v15 = vsel %vm2629_vm5, %v2630_v36, %v2628_v47  ;;  %4323 = vmatpush.bf16.msrb.mxu3 %v4831_v48  ;;  %v4830_v48 = vld [vmem:[%s9528_s9 + $0x68] sm:$0xff] }
 0x2b5   :  { %3343 = vadd.xlane.f32.xlu1 %v3342_v26  ;;  %v2695_v39 = vmul.f32 %v2663_v35, %v2631_v15  ;;  %v3106_v22 = vadd.f32 %v8457_v32, %v8454_v51 }
 0x2b7   :  { %v2729_v5 = vmul.f32 %v6368_v56, %v2695_v39  ;;  %3104 = vadd.xlane.f32.xlu0 %v3103_v13  ;;  %v4822_v13 = vld [vmem:[%s9528_s9 + $0x28] sm:$0xff] }
 0x2b8   :  { %v3020_v36 = vpop.f32.mrf.mxu1  ;;  %4235 = vmatpush.bf16.msrb.mxu2 %v4822_v13  ;;  %4324 = vmatpush.bf16.msrb.mxu3 %v4830_v48  ;;  %v4819_v13 = vld [vmem:[%s9528_s9 + $0x10] sm:$0xff] }
 0x2b9   :  { %v2761_v61 = vadd.f32 %v2729_v5, %v8012_v19  ;;  %v4821_v5 = vld [vmem:[%s9528_s9 + $0x20] sm:$0xff] }
 0x2ba   :  { %v2931_v33 = vpop.f32.mrf.mxu0 }
 0x2bb   :  { %v3084_v24 = vpop.xlane.xlu2 %3083  ;;  %v2777_v40 = vpack.c.bf16 %v2761_v61, %v2760_v21  ;;  %v4829_v21 = vld [vmem:[%s9528_s9 + $0x60] sm:$0xff] }
 0x2bc   :  { %v3169_v27 = vmul.f32 %v8107_v53, %v3084_v24  ;;  %4236 = vmatpush.bf16.msrb.mxu2 %v4821_v5  ;;  %4325 = vmatpush.bf16.msrb.mxu3 %v4829_v21 }
 0x2bd   :  { %2963 = vmatmul.bf16.gmra.mxu0 %v2777_v40  ;;  %3052 = vmatmul.bf16.gmra.mxu1 %v2777_v40 }
 0x2be   :  { %v8461_v31 = vsub.f32 %v8080_v30, %v3169_v27  ;;  %v8464_v56 = vsub.f32 %v8083_v62, %v3169_v27  ;;  %v8473_v30 = vadd.f32 %v2931_v33, %v7646_v16  ;;  %v8476_v62 = vadd.f32 %v3020_v36, %v7681_v46  ;;  %v4820_v36 = vld [vmem:[%s9528_s9 + $0x18] sm:$0xff] }
 0x2bf   :  { %3107 = vadd.xlane.f32.xlu0 %v3106_v22 }
 0x2c0   :  { %v3273_v19 = vmul.f32 %v8461_v31, %v8461_v31  ;;  %v3274_v63 = vmul.f32 %v8464_v56, %v8464_v56  ;;  %v3109_v11 = vadd.f32 %v8476_v62, %v8473_v30  ;;  %v3023_v59 = vpop.f32.mrf.mxu1  ;;  %4237 = vmatpush.bf16.msrb.mxu2 %v4820_v36 }
 0x2c1   :  { %v8484_v35 = vadd.f32 %v3023_v59, %v7681_v46 }
 0x2c2   :  { %v3345_v38 = vadd.f32 %v3274_v63, %v3273_v19  ;;  %v2934_v4 = vpop.f32.mrf.mxu0 }
 0x2c3   :  { %v8481_v45 = vadd.f32 %v2934_v4, %v7646_v16 }
 0x2c4   :  { %3346 = vadd.xlane.f32.xlu1 %v3345_v38  ;;  %4238 = vmatpush.bf16.msrb.mxu2 %v4819_v13 }
 0x2c5   :  { %v3112_v26 = vadd.f32 %v8484_v35, %v8481_v45 }
 0x2c8   :  { %v3025_v40 = vpop.f32.mrf.mxu1 }
 0x2ca   :  { %v2936_v24 = vpop.f32.mrf.mxu0 }
 0x2cc   :  { %3110 = vadd.xlane.f32.xlu1 %v3109_v11 }
 0x2d2   :  { %v2939_v36 = vpop.f32.mrf.mxu0 }
 0x2d4   :  { %3113 = vadd.xlane.f32.xlu1 %v3112_v26 }
 0x2f3   :  { %v3323_v47 = vpop.xlane.xlu0 %3322 }
 0x2f4   :  { %v3417_v15 = vmul.f32 %v3323_v47, %v8107_v53 }
 0x2f6   :  { %v3449_v55 = vadd.f32 1e-05, %v3417_v15 }
 0x2f7   :  { %v3326_v8 = vpop.xlane.xlu1 %3325 }
 0x2f8   :  { %v3418_v39 = vmul.f32 %v3326_v8, %v8107_v53  ;;  %5029 = vrsqrt.f32 %v3449_v55  ;;  %vm3487_vm2 = vweird.f32 %v3449_v55 }
 0x2fa   :  { %v8490_v43 = vadd.f32 1e-05, %v3418_v39 }
 0x2fb   :  { %v3087_v6 = vpop.xlane.xlu0 %3086 }
 0x2fc   :  { %5031 = vrsqrt.f32 %v8490_v43  ;;  %v3170_v20 = vmul.f32 %v8107_v53, %v3087_v6  ;;  %v4827_v6 = vld [vmem:[%s9528_s9 + $0x50] sm:$0xff]  ;;  %vm3497_vm4 = vweird.f32 %v8490_v43 }
 0x2fe   :  { %v5030_v61 = vpop.eup %5029  ;;  %v8507_v27 = vsub.f32 %v8155_v42, %v3170_v20  ;;  %v8510_v22 = vsub.f32 %v8158_v41, %v3170_v20  ;;  %v4828_v42 = vld [vmem:[%s9528_s9 + $0x58] sm:$0xff] }
 0x2ff   :  { %v3482_v19 = vmul.f32 %v5030_v61, %v3449_v55  ;;  %vm3488_vm3 = vweird.f32 %v5030_v61  ;;  %4326 = vmatpush.bf16.msrb.mxu3 %v4828_v42 }
 0x300   :  { %9729 = vst [vmem:[#allocation7_spill] sm:$0xff] %v8507_v27  ;;  %v3275_v63 = vmul.f32 %v8507_v27, %v8507_v27  ;;  %v3276_v33 = vmul.f32 %v8510_v22, %v8510_v22  ;;  %vm3489_vm0 = vmor %vm3487_vm2, %vm3488_vm3 }
 0x301   :  { %9730 = vst [vmem:[#allocation8_spill] sm:$0xff] %v8510_v22  ;;  %v3483_v11 = vmul.f32 %v5030_v61, %v3482_v19 }
 0x302   :  { %v5032_v38 = vpop.eup %5031  ;;  %v3348_v4 = vadd.f32 %v3276_v33, %v3275_v63  ;;  %v3865_v63 = vld [vmem:[%s9529_s7] sm:$0x3] }
 0x303   :  { %v3492_v41 = vmul.f32 %v5032_v38, %v8490_v43  ;;  %v3484_v59 = vmul.f32 0.5, %v3483_v11  ;;  %v3329_v26 = vpop.xlane.xlu1 %3328  ;;  %v3090_v47 = vpop.xlane.xlu0 %3089  ;;  %vm3498_vm8 = vweird.f32 %v5032_v38  ;;  %4327 = vmatpush.bf16.msrb.mxu3 %v4827_v6  ;;  %v8566_v6 = vadd.f32 %v3025_v40, %v7681_v46 }
 0x304   :  { %v3419_v8 = vmul.f32 %v3329_v26, %v8107_v53  ;;  %v3171_v39 = vmul.f32 %v8107_v53, %v3090_v47  ;;  %3349 = vadd.xlane.f32.xlu2 %v3348_v4  ;;  %v3028_v11 = vpop.f32.mrf.mxu1  ;;  %v4818_v47 = vld [vmem:[%s9528_s9 + $0x8] sm:$0xff]  ;;  %vm3499_vm10 = vmor %vm3497_vm4, %vm3498_vm8 }
 0x305   :  { %v3493_v15 = vmul.f32 %v5032_v38, %v3492_v41  ;;  %v3485_v48 = vsub.f32 1.5, %v3484_v59  ;;  %v8547_v59 = vperm.slane %v3865_v63, 0  ;;  %4239 = vmatpush.bf16.msrb.mxu2 %v4818_v47 }
 0x306   :  { %v8531_v5 = vadd.f32 1e-05, %v3419_v8  ;;  %v8534_v21 = vsub.f32 %v8188_v54, %v3171_v39  ;;  %v8537_v19 = vsub.f32 %v8191_v0, %v3171_v39 }
 0x307   :  { %v3494_v20 = vmul.f32 0.5, %v3493_v15  ;;  %v3486_v33 = vmul.f32 %v5030_v61, %v3485_v48  ;;  %v8557_v15 = vperm.slane %v3865_v63, 1  ;;  %v8563_v48 = vadd.f32 %v2936_v24, %v7646_v16  ;;  %v9733_v63 = vld [vmem:[#allocation4_spill] sm:$0xff] }
 0x308   :  { %9731 = vst [vmem:[#allocation9_spill] sm:$0xff] %v8534_v21  ;;  %5033 = vrsqrt.f32 %v8531_v5  ;;  %v3277_v54 = vmul.f32 %v8534_v21, %v8534_v21  ;;  %v3278_v4 = vmul.f32 %v8537_v19, %v8537_v19  ;;  %v4825_v24 = vld [vmem:[%s9528_s9 + $0x40] sm:$0xff]  ;;  %vm3507_vm9 = vweird.f32 %v8531_v5 }
 0x309   :  { %9732 = vst [vmem:[#allocation10_spill] sm:$0xff] %v8537_v19  ;;  %v3495_v42 = vsub.f32 1.5, %v3494_v20  ;;  %v3490_v41 = vsel %vm3489_vm0, %v5030_v61, %v3486_v33  ;;  %v4826_v61 = vld [vmem:[%s9528_s9 + $0x48] sm:$0xff] }
 0x30a   :  { %v3332_v0 = vpop.xlane.xlu2 %3331  ;;  %v3801_v8 = vmul.f32 %v3490_v41, %v8116_v57  ;;  %v3802_v39 = vmul.f32 %v3490_v41, %v8119_v10  ;;  %v3351_v43 = vadd.f32 %v3278_v4, %v3277_v54  ;;  %v4817_v57 = vld [vmem:[%s9528_s9] sm:$0xff]  ;;  %4328 = vmatpush.bf16.msrb.mxu3 %v4826_v61 }
 0x30b   :  { %v3496_v55 = vmul.f32 %v5032_v38, %v3495_v42  ;;  %v3420_v26 = vmul.f32 %v3332_v0, %v8107_v53  ;;  %v3093_v13 = vpop.xlane.xlu1 %3092  ;;  %v9734_v42 = vld [vmem:[#allocation5_spill] sm:$0xff]  ;;  %4240 = vmatpush.bf16.msrb.mxu2 %v4817_v57 }
 0x30c   :  { %v3172_v54 = vmul.f32 %v8107_v53, %v3093_v13  ;;  %3352 = vadd.xlane.f32.xlu2 %v3351_v43  ;;  %v3872_v0 = vmul.f32 %v8557_v15, %v3802_v39  ;;  %v3115_v13 = vadd.f32 %v8566_v6, %v8563_v48  ;;  %v8597_v39 = vadd.f32 %v2939_v36, %v7646_v16 }
 0x30d   :  { %v3500_v20 = vsel %vm3499_vm10, %v5032_v38, %v3496_v55  ;;  %v8568_v33 = vadd.f32 1e-05, %v3420_v26  ;;  %v3871_v38 = vmul.f32 %v8547_v59, %v3801_v8  ;;  %v3935_v8 = vld [vmem:[%s9530_s8] sm:$0x3] }
 0x30e   :  { %v3803_v10 = vmul.f32 %v3500_v20, %v9733_v63  ;;  %v3804_v41 = vmul.f32 %v3500_v20, %v9734_v42  ;;  %v5034_v40 = vpop.eup %5033  ;;  %v8586_v47 = vsub.f32 %v8219_v50, %v3172_v54  ;;  %v8589_v61 = vsub.f32 %v8230_v34, %v3172_v54  ;;  %4329 = vmatpush.bf16.msrb.mxu3 %v4825_v24  ;;  %v2941_v63 = vpop.f32.mrf.mxu0 }
 0x30f   :  { %5035 = vrsqrt.f32 %v8568_v33  ;;  %v3502_v55 = vmul.f32 %v5034_v40, %v8531_v5  ;;  %v8599_v20 = vperm.slane %v3935_v8, 0  ;;  %v8601_v50 = vperm.slane %v3935_v8, 1 }
 0x310   :  { %v3873_v4 = vmul.f32 %v8547_v59, %v3803_v10  ;;  %v3874_v26 = vmul.f32 %v8557_v15, %v3804_v41  ;;  %9735 = vst [vmem:[#allocation4_spill] sm:$0xff] %v8586_v47  ;;  %v8604_v34 = vadd.f32 %v3028_v11, %v7681_v46  ;;  %v3030_v10 = vpop.f32.mrf.mxu1  ;;  %v3279_v57 = vmul.f32 %v8586_v47, %v8586_v47 }
 0x311   :  { %9736 = vst [vmem:[#allocation5_spill] sm:$0xff] %v8589_v61  ;;  %v3503_v43 = vmul.f32 %v5034_v40, %v3502_v55  ;;  %v3280_v36 = vmul.f32 %v8589_v61, %v8589_v61  ;;  %v3941_v24 = vadd.f32 %v8599_v20, %v3871_v38  ;;  %v3942_v11 = vadd.f32 %v8601_v50, %v3872_v0 }
 0x312   :  { %v3943_v55 = vadd.f32 %v8599_v20, %v3873_v4  ;;  %v3944_v47 = vadd.f32 %v8601_v50, %v3874_v26  ;;  %vm3508_vm11 = vweird.f32 %v5034_v40  ;;  %vm3517_vm14 = vweird.f32 %v8568_v33 }
 0x313   :  { %v3504_v42 = vmul.f32 0.5, %v3503_v43  ;;  %v3096_v41 = vpop.xlane.xlu1 %3095  ;;  %v3335_v54 = vpop.xlane.xlu2 %3334  ;;  %v3354_v22 = vadd.f32 %v3280_v36, %v3279_v57  ;;  %v4005_v61 = vmax.f32 %v3941_v24, 0.0  ;;  %v4006_v36 = vmax.f32 %v3942_v11, 0.0  ;;  %vm3509_vm12 = vmor %vm3507_vm9, %vm3508_vm11 }
 0x314   :  { %v3173_v19 = vmul.f32 %v8107_v53, %v3096_v41  ;;  %v3421_v21 = vmul.f32 %v3335_v54, %v8107_v53  ;;  %3116 = vadd.xlane.f32.xlu2 %v3115_v13  ;;  %v4007_v41 = vmax.f32 %v3943_v55, 0.0  ;;  %v4008_v26 = vmax.f32 %v3944_v47, 0.0 }
 0x315   :  { %v5036_v8 = vpop.eup %5035  ;;  %v3505_v27 = vsub.f32 1.5, %v3504_v42  ;;  %3355 = vadd.xlane.f32.xlu0 %v3354_v22  ;;  %v3118_v11 = vadd.f32 %v8604_v34, %v8597_v39 }
 0x316   :  { %v3512_v43 = vmul.f32 %v5036_v8, %v8568_v33  ;;  %v8619_v38 = vsub.f32 %v8262_v58, %v3173_v19  ;;  %v8622_v4 = vsub.f32 %v8281_v7, %v3173_v19  ;;  %v8624_v0 = vadd.f32 1e-05, %v3421_v21 }
 0x317   :  { %v3506_v54 = vmul.f32 %v5034_v40, %v3505_v27  ;;  %v4069_v22 = vpack.c.bf16 %v4007_v41, %v4005_v61  ;;  %v4070_v42 = vpack.c.bf16 %v4008_v26, %v4006_v36  ;;  %vm3518_vm6 = vweird.f32 %v5036_v8 }
 0x318   :  { %v3513_v57 = vmul.f32 %v5036_v8, %v3512_v43  ;;  %5037 = vrsqrt.f32 %v8624_v0  ;;  %v3281_v58 = vmul.f32 %v8619_v38, %v8619_v38  ;;  %v3282_v7 = vmul.f32 %v8622_v4, %v8622_v4  ;;  %vm3519_vm7 = vmor %vm3517_vm14, %vm3518_vm6 }
 0x319   :  { %v3510_v19 = vsel %vm3509_vm12, %v5034_v40, %v3506_v54  ;;  %4241 = vmatmul.bf16.vlgmr.msrb.gmra.mxu2 %v4069_v22  ;;  %4330 = vmatmul.bf16.vlgmr.msrb.gmra.mxu3 %v4070_v42  ;;  %v8638_v43 = vadd.f32 %v2941_v63, %v7646_v16  ;;  %v2944_v40 = vpop.f32.mrf.mxu0  ;;  %v8644_v54 = vadd.f32 %v3030_v10, %v7681_v46  ;;  %vm3527_vm15 = vweird.f32 %v8624_v0 }
 0x31a   :  { %v3514_v21 = vmul.f32 0.5, %v3513_v57  ;;  %v3338_v13 = vpop.xlane.xlu0 %3337  ;;  %v3357_v24 = vadd.f32 %v3282_v7, %v3281_v58  ;;  %v3805_v47 = vmul.f32 %v3510_v19, %v8194_v12  ;;  %v3033_v12 = vpop.f32.mrf.mxu1  ;;  %v3806_v57 = vmul.f32 %v3510_v19, %v8197_v14  ;;  %v9737_v19 = vld [vmem:[#allocation6_spill] sm:$0xff] }
 0x31b   :  { %v3422_v27 = vmul.f32 %v3338_v13, %v8107_v53  ;;  %v3099_v55 = vpop.xlane.xlu2 %3098  ;;  %v3121_v22 = vadd.f32 %v8644_v54, %v8638_v43  ;;  %v8668_v42 = vadd.f32 %v2944_v40, %v7646_v16 }
 0x31c   :  { %v3515_v5 = vsub.f32 1.5, %v3514_v21  ;;  %v3174_v61 = vmul.f32 %v8107_v53, %v3099_v55  ;;  %3119 = vadd.xlane.f32.xlu2 %v3118_v11  ;;  %v3875_v14 = vmul.f32 %v8547_v59, %v3805_v47  ;;  %v8673_v47 = vadd.f32 %v3033_v12, %v7681_v46 }
 0x31d   :  { %v8641_v41 = vadd.f32 1e-05, %v3422_v27  ;;  %3358 = vadd.xlane.f32.xlu0 %v3357_v24 }
 0x31e   :  { %v3516_v36 = vmul.f32 %v5036_v8, %v3515_v5  ;;  %v5038_v26 = vpop.eup %5037  ;;  %v8650_v63 = vsub.f32 %v8337_v17, %v3174_v61  ;;  %v8653_v58 = vsub.f32 %v8340_v3, %v3174_v61  ;;  %v3945_v61 = vadd.f32 %v8599_v20, %v3875_v14 }
 0x31f   :  { %5039 = vrsqrt.f32 %v8641_v41  ;;  %v3522_v7 = vmul.f32 %v5038_v26, %v8624_v0  ;;  %vm3528_vm13 = vweird.f32 %v5038_v26  ;;  %vm3537_vm3 = vweird.f32 %v8641_v41 }
 0x320   :  { %v3520_v10 = vsel %vm3519_vm7, %v5036_v8, %v3516_v36  ;;  %v3283_v13 = vmul.f32 %v8650_v63, %v8650_v63  ;;  %v3284_v17 = vmul.f32 %v8653_v58, %v8653_v58  ;;  %v3876_v8 = vmul.f32 %v8557_v15, %v3806_v57  ;;  %vm3529_vm1 = vmor %vm3527_vm15, %vm3528_vm13 }
 0x321   :  { %v3807_v33 = vmul.f32 %v3520_v10, %v8222_v44  ;;  %v3808_v21 = vmul.f32 %v3520_v10, %v9737_v19  ;;  %v3523_v3 = vmul.f32 %v5038_v26, %v3522_v7 }
 0x322   :  { %v3360_v27 = vadd.f32 %v3284_v17, %v3283_v13  ;;  %v3341_v11 = vpop.xlane.xlu0 %3340  ;;  %v3946_v7 = vadd.f32 %v8601_v50, %v3876_v8 }
 0x323   :  { %v3877_v44 = vmul.f32 %v8547_v59, %v3807_v33  ;;  %v3878_v24 = vmul.f32 %v8557_v15, %v3808_v21  ;;  %v3524_v5 = vmul.f32 0.5, %v3523_v3  ;;  %v3102_v55 = vpop.xlane.xlu2 %3101  ;;  %v3423_v40 = vmul.f32 %v3341_v11, %v8107_v53  ;;  %v2946_v21 = vpop.f32.mrf.mxu0 }
 0x324   :  { %v3175_v57 = vmul.f32 %v8107_v53, %v3102_v55  ;;  %3361 = vadd.xlane.f32.xlu1 %v3360_v27  ;;  %v3035_v27 = vpop.f32.mrf.mxu1  ;;  %v4010_v11 = vmax.f32 %v3946_v7, 0.0 }
 0x325   :  { %v5040_v36 = vpop.eup %5039  ;;  %v3947_v10 = vadd.f32 %v8599_v20, %v3877_v44  ;;  %v3525_v33 = vsub.f32 1.5, %v3524_v5  ;;  %v3948_v19 = vadd.f32 %v8601_v50, %v3878_v24  ;;  %v8689_v17 = vadd.f32 1e-05, %v3423_v40  ;;  %3122 = vadd.xlane.f32.xlu0 %v3121_v22 }
 0x326   :  { %v3532_v12 = vmul.f32 %v5040_v36, %v8641_v41  ;;  %v8684_v13 = vsub.f32 %v8364_v52, %v3175_v57  ;;  %v8687_v14 = vsub.f32 %v8369_v23, %v3175_v57  ;;  %v4009_v5 = vmax.f32 %v3945_v61, 0.0 }
 0x327   :  { %v4011_v3 = vmax.f32 %v3947_v10, 0.0  ;;  %v3526_v44 = vmul.f32 %v5038_v26, %v3525_v33  ;;  %v4012_v55 = vmax.f32 %v3948_v19, 0.0  ;;  %5041 = vrsqrt.f32 %v8689_v17 }
 0x328   :  { %9738 = vst [vmem:[#allocation6_spill] sm:$0xff] %v8684_v13  ;;  %v3533_v8 = vmul.f32 %v5040_v36, %v3532_v12  ;;  %v3344_v24 = vpop.xlane.xlu1 %3343  ;;  %v3285_v52 = vmul.f32 %v8684_v13, %v8684_v13  ;;  %v3286_v23 = vmul.f32 %v8687_v14, %v8687_v14  ;;  %vm3538_vm5 = vweird.f32 %v5040_v36 }
 0x329   :  { %9739 = vst [vmem:[#allocation11_spill] sm:$0xff] %v8687_v14  ;;  %v3530_v22 = vsel %vm3529_vm1, %v5038_v26, %v3526_v44  ;;  %v3424_v40 = vmul.f32 %v3344_v24, %v8107_v53  ;;  %v4071_v10 = vpack.c.bf16 %v4011_v3, %v4009_v5  ;;  %v4072_v0 = vpack.c.bf16 %v4012_v55, %v4010_v11  ;;  %vm3539_vm2 = vmor %vm3537_vm3, %vm3538_vm5 }
 0x32a   :  { %v3534_v57 = vmul.f32 0.5, %v3533_v8  ;;  %v3809_v61 = vmul.f32 %v3530_v22, %v8297_v29  ;;  %v3363_v33 = vadd.f32 %v3286_v23, %v3285_v52  ;;  %v3124_v13 = vadd.f32 %v8673_v47, %v8668_v42  ;;  %v3105_v3 = vpop.xlane.xlu0 %3104 }
 0x32b   :  { %v8700_v19 = vadd.f32 1e-05, %v3424_v40  ;;  %4246 = vmatmul.bf16.gmra.mxu2 %v4071_v10  ;;  %v8705_v14 = vadd.f32 %v2946_v21, %v7646_v16  ;;  %v8708_v26 = vadd.f32 %v3035_v27, %v7681_v46  ;;  %v3810_v7 = vmul.f32 %v3530_v22, %v8300_v18  ;;  %4335 = vmatmul.bf16.gmra.mxu3 %v4072_v0  ;;  %v2949_v55 = vpop.f32.mrf.mxu0 }
 0x32c   :  { %v3535_v12 = vsub.f32 1.5, %v3534_v57  ;;  %3364 = vadd.xlane.f32.xlu1 %v3363_v33  ;;  %v3176_v44 = vmul.f32 %v8107_v53, %v3105_v3  ;;  %v3879_v21 = vmul.f32 %v8547_v59, %v3809_v61  ;;  %v3038_v11 = vpop.f32.mrf.mxu1  ;;  %v8736_v40 = vadd.f32 %v2949_v55, %v7646_v16 }
 0x32d   :  { %5043 = vrsqrt.f32 %v8700_v19  ;;  %v5042_v8 = vpop.eup %5041  ;;  %3125 = vadd.xlane.f32.xlu0 %v3124_v13  ;;  %v3880_v23 = vmul.f32 %v8557_v15, %v3810_v7  ;;  %v8739_v61 = vadd.f32 %v3038_v11, %v7681_v46  ;;  %vm3547_vm8 = vweird.f32 %v8689_v17 }
 0x32e   :  { %v3536_v29 = vmul.f32 %v5040_v36, %v3535_v12  ;;  %v3542_v5 = vmul.f32 %v5042_v8, %v8689_v17  ;;  %v8718_v18 = vsub.f32 %v8428_v2, %v3176_v44  ;;  %v8723_v52 = vsub.f32 %v8431_v25, %v3176_v44 }
 0x32f   :  { %vm3548_vm0 = vweird.f32 %v5042_v8  ;;  %v3950_v12 = vadd.f32 %v8601_v50, %v3880_v23  ;;  %vm3557_vm9 = vweird.f32 %v8700_v19 }
 0x330   :  { %v3540_v27 = vsel %vm3539_vm2, %v5040_v36, %v3536_v29  ;;  %v3543_v13 = vmul.f32 %v5042_v8, %v3542_v5  ;;  %v3127_v36 = vadd.f32 %v8708_v26, %v8705_v14  ;;  %v3287_v22 = vmul.f32 %v8718_v18, %v8718_v18  ;;  %vm3549_vm4 = vmor %vm3547_vm8, %vm3548_vm0 }
 0x331   :  { %v3811_v24 = vmul.f32 %v3540_v27, %v8327_v49  ;;  %v3812_v41 = vmul.f32 %v3540_v27, %v8330_v37  ;;  %v3288_v2 = vmul.f32 %v8723_v52, %v8723_v52  ;;  %v3949_v37 = vadd.f32 %v8599_v20, %v3879_v21 }
 0x332   :  { %v3544_v10 = vmul.f32 0.5, %v3543_v13  ;;  %v3108_v0 = vpop.xlane.xlu0 %3107 }
 0x333   :  { %v3881_v49 = vmul.f32 %v8547_v59, %v3811_v24  ;;  %v3882_v25 = vmul.f32 %v8557_v15, %v3812_v41  ;;  %v5044_v57 = vpop.eup %5043  ;;  %v3177_v3 = vmul.f32 %v8107_v53, %v3108_v0  ;;  %v3366_v29 = vadd.f32 %v3288_v2, %v3287_v22 }
 0x334   :  { %v3552_v33 = vmul.f32 %v5044_v57, %v8700_v19  ;;  %3128 = vadd.xlane.f32.xlu1 %v3127_v36  ;;  %v3545_v7 = vsub.f32 1.5, %v3544_v10  ;;  %v4013_v27 = vmax.f32 %v3949_v37, 0.0  ;;  %v4014_v36 = vmax.f32 %v3950_v12, 0.0  ;;  %v2951_v10 = vpop.f32.mrf.mxu0 }
 0x335   :  { %v3951_v44 = vadd.f32 %v8599_v20, %v3881_v49  ;;  %v3952_v5 = vadd.f32 %v8601_v50, %v3882_v25  ;;  %v8750_v41 = vsub.f32 %v8454_v51, %v3177_v3  ;;  %v8753_v23 = vsub.f32 %v8457_v32, %v3177_v3  ;;  %3367 = vadd.xlane.f32.xlu2 %v3366_v29 }
 0x336   :  { %v3553_v21 = vmul.f32 %v5044_v57, %v3552_v33  ;;  %v3546_v55 = vmul.f32 %v5042_v8, %v3545_v7  ;;  %vm3558_vm10 = vweird.f32 %v5044_v57  ;;  %v3130_v32 = vadd.f32 %v8739_v61, %v8736_v40  ;;  %v3040_v33 = vpop.f32.mrf.mxu1 }
 0x337   :  { %v8747_v24 = vpop.xlane.xlu1 %3346  ;;  %v4015_v11 = vmax.f32 %v3951_v44, 0.0  ;;  %v4016_v17 = vmax.f32 %v3952_v5, 0.0  ;;  %v3289_v49 = vmul.f32 %v8750_v41, %v8750_v41  ;;  %v3290_v37 = vmul.f32 %v8753_v23, %v8753_v23  ;;  %vm3559_vm11 = vmor %vm3557_vm9, %vm3558_vm10 }
 0x338   :  { %v3554_v13 = vmul.f32 0.5, %v3553_v21  ;;  %v3550_v22 = vsel %vm3549_vm4, %v5042_v8, %v3546_v55  ;;  %v8774_v19 = vadd.f32 %v3040_v33, %v7681_v46 }
 0x339   :  { %v4073_v2 = vpack.c.bf16 %v4015_v11, %v4013_v27  ;;  %v3813_v51 = vmul.f32 %v3550_v22, %v8378_v60  ;;  %v3814_v0 = vmul.f32 %v3550_v22, %v8387_v9  ;;  %v4074_v8 = vpack.c.bf16 %v4016_v17, %v4014_v36 }
 0x33a   :  { %v3555_v25 = vsub.f32 1.5, %v3554_v13  ;;  %v3369_v12 = vadd.f32 %v3290_v37, %v3289_v49  ;;  %v8770_v27 = vadd.f32 %v2951_v10, %v7646_v16 }
 0x33b   :  { %4251 = vmatmul.bf16.gmra.mxu2 %v4073_v2  ;;  %4340 = vmatmul.bf16.gmra.mxu3 %v4074_v8  ;;  %v3883_v60 = vmul.f32 %v8547_v59, %v3813_v51  ;;  %v3884_v9 = vmul.f32 %v8557_v15, %v3814_v0 }
 0x33c   :  { %v3556_v7 = vmul.f32 %v5044_v57, %v3555_v25  ;;  %3131 = vadd.xlane.f32.xlu1 %v3130_v32  ;;  %v2954_v13 = vpop.f32.mrf.mxu0 }
 0x33d   :  { %3370 = vadd.xlane.f32.xlu2 %v3369_v12  ;;  %v3954_v22 = vadd.f32 %v8601_v50, %v3884_v9  ;;  %v8796_v12 = vadd.f32 %v2954_v13, %v7646_v16 }
 0x33e   :  { %v3560_v3 = vsel %vm3559_vm11, %v5044_v57, %v3556_v7  ;;  %v3953_v57 = vadd.f32 %v8599_v20, %v3883_v60  ;;  %v3043_v36 = vpop.f32.mrf.mxu1 }
 0x33f   :  { %v3815_v29 = vmul.f32 %v3560_v3, %v8411_v1  ;;  %v3816_v44 = vmul.f32 %v3560_v3, %v8414_v28  ;;  %v3111_v21 = vpop.xlane.xlu1 %3110  ;;  %v4018_v0 = vmax.f32 %v3954_v22, 0.0  ;;  %v8799_v7 = vadd.f32 %v3043_v36, %v7681_v46 }
 0x340   :  { %v3178_v5 = vmul.f32 %v8107_v53, %v3111_v21  ;;  %v4017_v51 = vmax.f32 %v3953_v57, 0.0 }
 0x341   :  { %v3885_v55 = vmul.f32 %v8547_v59, %v3815_v29  ;;  %v3886_v1 = vmul.f32 %v8557_v15, %v3816_v44 }
 0x342   :  { %v8780_v28 = vsub.f32 %v8473_v30, %v3178_v5  ;;  %v8783_v11 = vsub.f32 %v8476_v62, %v3178_v5  ;;  %v3133_v30 = vadd.f32 %v8774_v19, %v8770_v27 }
 0x343   :  { %v3955_v17 = vadd.f32 %v8599_v20, %v3885_v55  ;;  %v3956_v2 = vadd.f32 %v8601_v50, %v3886_v1  ;;  %v3136_v55 = vadd.f32 %v8799_v7, %v8796_v12 }
 0x344   :  { %v3291_v49 = vmul.f32 %v8780_v28, %v8780_v28  ;;  %v3292_v37 = vmul.f32 %v8783_v11, %v8783_v11  ;;  %v2956_v9 = vpop.f32.mrf.mxu0 }
 0x345   :  { %v4019_v62 = vmax.f32 %v3955_v17, 0.0  ;;  %v4020_v25 = vmax.f32 %v3956_v2, 0.0  ;;  %3134 = vadd.xlane.f32.xlu2 %v3133_v30 }
 0x346   :  { %v3372_v32 = vadd.f32 %v3292_v37, %v3291_v49  ;;  %v3045_v5 = vpop.f32.mrf.mxu1  ;;  %v3425_v49 = vmul.f32 %v8747_v24, %v8107_v53 }
 0x347   :  { %v3114_v10 = vpop.xlane.xlu1 %3113  ;;  %v4075_v33 = vpack.c.bf16 %v4019_v62, %v4017_v51  ;;  %v4076_v60 = vpack.c.bf16 %v4020_v25, %v4018_v0 }
 0x348   :  { %v3179_v8 = vmul.f32 %v8107_v53, %v3114_v10  ;;  %3373 = vadd.xlane.f32.xlu0 %v3372_v32  ;;  %v3457_v37 = vadd.f32 1e-05, %v3425_v49 }
 0x34a   :  { %v8802_v3 = vsub.f32 %v8481_v45, %v3179_v8  ;;  %v8805_v29 = vsub.f32 %v8484_v35, %v3179_v8  ;;  %v8814_v45 = vadd.f32 %v2956_v9, %v7646_v16  ;;  %v8817_v35 = vadd.f32 %v3045_v5, %v7681_v46 }
 0x34b   :  { %4256 = vmatmul.bf16.gmra.mxu2 %v4075_v33  ;;  %4345 = vmatmul.bf16.gmra.mxu3 %v4076_v60  ;;  %5045 = vrsqrt.f32 %v3457_v37  ;;  %vm3567_vm6 = vweird.f32 %v3457_v37 }
 0x34c   :  { %9740 = vst [vmem:[#allocation12_spill] sm:$0xff] %v8805_v29  ;;  %v3293_v44 = vmul.f32 %v8802_v3, %v8802_v3  ;;  %v3294_v21 = vmul.f32 %v8805_v29, %v8805_v29  ;;  %v3139_v1 = vadd.f32 %v8817_v35, %v8814_v45  ;;  %v2959_v13 = vpop.f32.mrf.mxu0 }
 0x34d   :  { %3137 = vadd.xlane.f32.xlu2 %v3136_v55  ;;  %v8822_v17 = vadd.f32 %v2959_v13, %v7646_v16 }
 0x34e   :  { %v3375_v57 = vadd.f32 %v3294_v21, %v3293_v44  ;;  %v3048_v36 = vpop.f32.mrf.mxu1 }
 0x34f   :  { %v8825_v22 = vadd.f32 %v3048_v36, %v7681_v46 }
 0x350   :  { %3376 = vadd.xlane.f32.xlu0 %v3375_v57 }
 0x351   :  { %v3142_v2 = vadd.f32 %v8825_v22, %v8822_v17  ;;  %v5046_v30 = vpop.eup %5045 }
 0x352   :  { %v3562_v51 = vmul.f32 %v5046_v30, %v3457_v37  ;;  %vm3568_vm12 = vweird.f32 %v5046_v30 }
 0x353   :  { %vm3569_vm14 = vmor %vm3567_vm6, %vm3568_vm12 }
 0x354   :  { %v3563_v62 = vmul.f32 %v5046_v30, %v3562_v51 }
 0x356   :  { %v3564_v10 = vmul.f32 0.5, %v3563_v62 }
 0x358   :  { %3140 = vadd.xlane.f32.xlu0 %v3139_v1  ;;  %v3565_v0 = vsub.f32 1.5, %v3564_v10  ;;  %v8836_v1 = vpop.f32.mrf.mxu0 }
 0x35a   :  { %v3566_v60 = vmul.f32 %v5046_v30, %v3565_v0 }
 0x35c   :  { %v3570_v5 = vsel %vm3569_vm14, %v5046_v30, %v3566_v60 }
 0x35d   :  { %v3817_v13 = vmul.f32 %v3570_v5, %v8461_v31  ;;  %v3818_v49 = vmul.f32 %v3570_v5, %v8464_v56  ;;  %v9744_v5 = vld [vmem:[#allocation8_spill] sm:$0xff] }
 0x360   :  { %3143 = vadd.xlane.f32.xlu0 %v3142_v2  ;;  %v8839_v2 = vpop.f32.mrf.mxu1 }
 0x377   :  { %v3350_v25 = vpop.xlane.xlu2 %3349 }
 0x378   :  { %v3426_v32 = vmul.f32 %v3350_v25, %v8107_v53 }
 0x37a   :  { %v3458_v33 = vadd.f32 1e-05, %v3426_v32 }
 0x37c   :  { %5047 = vrsqrt.f32 %v3458_v33  ;;  %vm3577_vm15 = vweird.f32 %v3458_v33 }
 0x37f   :  { %v3353_v8 = vpop.xlane.xlu2 %3352 }
 0x380   :  { %v3427_v44 = vmul.f32 %v3353_v8, %v8107_v53  ;;  %v3887_v8 = vmul.f32 %v8547_v59, %v3817_v13 }
 0x382   :  { %v5048_v21 = vpop.eup %5047  ;;  %v8833_v9 = vadd.f32 1e-05, %v3427_v44 }
 0x383   :  { %v3572_v24 = vmul.f32 %v5048_v21, %v3458_v33  ;;  %vm3578_vm7 = vweird.f32 %v5048_v21 }
 0x384   :  { %5049 = vrsqrt.f32 %v8833_v9  ;;  %vm3579_vm13 = vmor %vm3577_vm15, %vm3578_vm7  ;;  %vm3587_vm5 = vweird.f32 %v8833_v9 }
 0x385   :  { %v3573_v55 = vmul.f32 %v5048_v21, %v3572_v24  ;;  %v9743_v24 = vld [vmem:[#allocation7_spill] sm:$0xff] }
 0x387   :  { %v3574_v57 = vmul.f32 0.5, %v3573_v55  ;;  %v3117_v36 = vpop.xlane.xlu2 %3116 }
 0x388   :  { %v3180_v37 = vmul.f32 %v8107_v53, %v3117_v36  ;;  %v3356_v62 = vpop.xlane.xlu0 %3355 }
 0x389   :  { %v3575_v51 = vsub.f32 1.5, %v3574_v57  ;;  %v3428_v30 = vmul.f32 %v3356_v62, %v8107_v53 }
 0x38a   :  { %v8844_v25 = vpop.eup %5049  ;;  %v8847_v10 = vsub.f32 %v8563_v48, %v3180_v37  ;;  %v8850_v31 = vsub.f32 %v8566_v6, %v3180_v37  ;;  %v3888_v48 = vmul.f32 %v8557_v15, %v3818_v49  ;;  %v3957_v37 = vadd.f32 %v8599_v20, %v3887_v8 }
 0x38b   :  { %v3576_v32 = vmul.f32 %v5048_v21, %v3575_v51  ;;  %v3582_v56 = vmul.f32 %v8844_v25, %v8833_v9  ;;  %v8854_v0 = vadd.f32 1e-05, %v3428_v30  ;;  %vm3588_vm1 = vweird.f32 %v8844_v25 }
 0x38c   :  { %9741 = vst [vmem:[#allocation13_spill] sm:$0xff] %v8847_v10  ;;  %v3295_v44 = vmul.f32 %v8847_v10, %v8847_v10  ;;  %v3296_v33 = vmul.f32 %v8850_v31, %v8850_v31  ;;  %vm3589_vm3 = vmor %vm3587_vm5, %vm3588_vm1 }
 0x38d   :  { %9742 = vst [vmem:[#allocation14_spill] sm:$0xff] %v8850_v31  ;;  %v3580_v60 = vsel %vm3579_vm13, %v5048_v21, %v3576_v32  ;;  %v3583_v57 = vmul.f32 %v8844_v25, %v3582_v56  ;;  %5051 = vrsqrt.f32 %v8854_v0  ;;  %v2964_v32 = vpop.f32.mrf.mxu0  ;;  %vm3597_vm0 = vweird.f32 %v8854_v0 }
 0x38e   :  { %v3819_v6 = vmul.f32 %v3580_v60, %v9743_v24  ;;  %v3820_v55 = vmul.f32 %v3580_v60, %v9744_v5  ;;  %v3378_v36 = vadd.f32 %v3296_v33, %v3295_v44  ;;  %v3958_v24 = vadd.f32 %v8601_v50, %v3888_v48  ;;  %v3053_v33 = vpop.f32.mrf.mxu1 }
 0x38f   :  { %v3584_v51 = vmul.f32 0.5, %v3583_v57  ;;  %v3120_v13 = vpop.xlane.xlu2 %3119 }
 0x390   :  { %v3889_v21 = vmul.f32 %v8547_v59, %v3819_v6  ;;  %v3890_v62 = vmul.f32 %v8557_v15, %v3820_v55  ;;  %v3181_v30 = vmul.f32 %v8107_v53, %v3120_v13  ;;  %v3359_v49 = vpop.xlane.xlu0 %3358  ;;  %3379 = vadd.xlane.f32.xlu1 %v3378_v36  ;;  %v4021_v36 = vmax.f32 %v3957_v37, 0.0 }
 0x391   :  { %v3429_v60 = vmul.f32 %v3359_v49, %v8107_v53  ;;  %v3585_v5 = vsub.f32 1.5, %v3584_v51 }
 0x392   :  { %v3959_v56 = vadd.f32 %v8599_v20, %v3889_v21  ;;  %v3960_v44 = vadd.f32 %v8601_v50, %v3890_v62  ;;  %v8875_v6 = vsub.f32 %v8597_v39, %v3181_v30  ;;  %v8878_v8 = vsub.f32 %v8604_v34, %v3181_v30 }
 0x393   :  { %v5052_v55 = vpop.eup %5051  ;;  %v8880_v57 = vadd.f32 1e-05, %v3429_v60  ;;  %v4022_v62 = vmax.f32 %v3958_v24, 0.0  ;;  %v3586_v34 = vmul.f32 %v8844_v25, %v3585_v5  ;;  %v8898_v24 = vadd.f32 %v8839_v2, %v7681_v46 }
 0x394   :  { %9745 = vst [vmem:[#allocation7_spill] sm:$0xff] %v8875_v6  ;;  %v4023_v13 = vmax.f32 %v3959_v56, 0.0  ;;  %v4024_v49 = vmax.f32 %v3960_v44, 0.0  ;;  %v3592_v21 = vmul.f32 %v5052_v55, %v8854_v0  ;;  %v3297_v48 = vmul.f32 %v8875_v6, %v8875_v6 }
 0x395   :  { %9746 = vst [vmem:[#allocation8_spill] sm:$0xff] %v8878_v8  ;;  %v3298_v51 = vmul.f32 %v8878_v8, %v8878_v8  ;;  %5053 = vrsqrt.f32 %v8880_v57  ;;  %vm3598_vm2 = vweird.f32 %v5052_v55  ;;  %v8912_v2 = vadd.f32 %v2964_v32, %v7646_v16 }
 0x396   :  { %v4077_v39 = vpack.c.bf16 %v4023_v13, %v4021_v36  ;;  %v3593_v30 = vmul.f32 %v5052_v55, %v3592_v21  ;;  %v4078_v44 = vpack.c.bf16 %v4024_v49, %v4022_v62  ;;  %v8894_v36 = vadd.f32 %v8836_v1, %v7646_v16  ;;  %9748 = vst [vmem:[#allocation16_spill] sm:$0xff] %v8898_v24  ;;  %v8907_v21 = vld [vmem:[%s9531_s10] ss:$0 sm:$0xff]  ;;  %v9751_v62 = vld [vmem:[#allocation9_spill] sm:$0xff]  ;;  %vm3599_vm8 = vmor %vm3597_vm0, %vm3598_vm2 }
 0x397   :  { %v3362_v37 = vpop.xlane.xlu1 %3361  ;;  %v3381_v60 = vadd.f32 %v3298_v51, %v3297_v48  ;;  %v3590_v49 = vsel %vm3589_vm3, %v8844_v25, %v3586_v34  ;;  %v2966_v48 = vpop.f32.mrf.mxu0  ;;  %vm3607_vm4 = vweird.f32 %v8880_v57 }
 0x398   :  { %v3430_v56 = vmul.f32 %v3362_v37, %v8107_v53  ;;  %4261 = vmatmul.bf16.gmra.mxu2 %v4077_v39  ;;  %v3594_v6 = vmul.f32 0.5, %v3593_v30  ;;  %v3123_v31 = vpop.xlane.xlu0 %3122  ;;  %9747 = vst [vmem:[#allocation15_spill] sm:$0xff] %v8894_v36  ;;  %4350 = vmatmul.bf16.gmra.mxu3 %v4078_v44  ;;  %v3055_v51 = vpop.f32.mrf.mxu1  ;;  %v3821_v34 = vmul.f32 %v3590_v49, %v9751_v62  ;;  %v9752_v62 = vld [vmem:[#allocation4_spill] sm:$0xff] }
 0x399   :  { %3382 = vadd.xlane.f32.xlu1 %v3381_v60  ;;  %v3182_v13 = vmul.f32 %v8107_v53, %v3123_v31  ;;  %v8936_v0 = vadd.f32 %v2966_v48, %v7646_v16  ;;  %v9753_v16 = vld [vmem:[#allocation10_spill] sm:$0xff] }
 0x39a   :  { %v8900_v5 = vadd.f32 1e-05, %v3430_v56  ;;  %v3595_v9 = vsub.f32 1.5, %v3594_v6  ;;  %v8922_v6 = vadd.f32 %v3053_v33, %v7681_v46  ;;  %v3822_v48 = vmul.f32 %v3590_v49, %v9753_v16 }
 0x39b   :  { %v8909_v1 = vpop.eup %5053  ;;  %v8916_v31 = vsub.f32 %v8638_v43, %v3182_v13  ;;  %v8919_v25 = vsub.f32 %v8644_v54, %v3182_v13  ;;  %v3145_v54 = vadd.f32 %v8898_v24, %v8894_v36 }
 0x39c   :  { %5055 = vrsqrt.f32 %v8900_v5  ;;  %v3596_v39 = vmul.f32 %v5052_v55, %v3595_v9  ;;  %v3602_v32 = vmul.f32 %v8909_v1, %v8880_v57  ;;  %v4242_v30 = vpop.f32.mrf.mxu2  ;;  %v4331_v43 = vpop.f32.mrf.mxu3  ;;  %v8941_v9 = vadd.f32 %v3055_v51, %v7681_v46 }
 0x39d   :  { %9749 = vst [vmem:[#allocation17_spill] sm:$0xff] %v8916_v31  ;;  %v3299_v33 = vmul.f32 %v8916_v31, %v8916_v31  ;;  %v3300_v37 = vmul.f32 %v8919_v25, %v8919_v25  ;;  %v4243_v13 = vadd.f32 %v8907_v21, %v4242_v30  ;;  %vm3617_vm10 = vweird.f32 %v8900_v5 }
 0x39e   :  { %9750 = vst [vmem:[#allocation18_spill] sm:$0xff] %v8919_v25  ;;  %v3600_v60 = vsel %vm3599_vm8, %v5052_v55, %v3596_v39  ;;  %v3603_v56 = vmul.f32 %v8909_v1, %v3602_v32  ;;  %v4411_v25 = vld [vmem:[%s9532_s4] sm:$0xff]  ;;  %v9754_v55 = vld [vmem:[#allocation5_spill] sm:$0xff]  ;;  %vm3608_vm9 = vweird.f32 %v8909_v1 }
 0x39f   :  { %v3365_v44 = vpop.xlane.xlu1 %3364  ;;  %v3823_v8 = vmul.f32 %v3600_v60, %v9752_v62  ;;  %v3384_v31 = vadd.f32 %v3300_v37, %v3299_v33  ;;  %v3824_v39 = vmul.f32 %v3600_v60, %v9754_v55  ;;  %v4332_v24 = vadd.f32 %v4331_v43, %v4243_v13  ;;  %vm3609_vm12 = vmor %vm3607_vm4, %vm3608_vm9 }
 0x3a0   :  { %v3431_v10 = vmul.f32 %v3365_v44, %v8107_v53  ;;  %v3604_v32 = vmul.f32 0.5, %v3603_v56  ;;  %v3126_v36 = vpop.xlane.xlu0 %3125  ;;  %v3891_v44 = vmul.f32 %v8547_v59, %v3821_v34  ;;  %v3148_v37 = vadd.f32 %v8922_v6, %v8912_v2 }
 0x3a1   :  { %3146 = vadd.xlane.f32.xlu1 %v3145_v54  ;;  %v3183_v51 = vmul.f32 %v8107_v53, %v3126_v36  ;;  %3385 = vadd.xlane.f32.xlu2 %v3384_v31  ;;  %v3893_v62 = vmul.f32 %v8547_v59, %v3823_v8  ;;  %v4443_v49 = vadd.f32 %v4411_v25, %v4332_v24 }
 0x3a2   :  { %v5056_v30 = vpop.eup %5055  ;;  %v8950_v46 = vadd.f32 1e-05, %v3431_v10  ;;  %v3605_v29 = vsub.f32 1.5, %v3604_v32  ;;  %v3961_v8 = vadd.f32 %v8599_v20, %v3891_v44  ;;  %v3892_v43 = vmul.f32 %v8557_v15, %v3822_v48  ;;  %v4412_v48 = vld [vmem:[%s9532_s4 + $0x8] sm:$0xff] }
 0x3a3   :  { %v3612_v33 = vmul.f32 %v5056_v30, %v8900_v5  ;;  %v8961_v10 = vsub.f32 %v8668_v42, %v3183_v51  ;;  %v8964_v36 = vsub.f32 %v8673_v47, %v3183_v51  ;;  %4475 = vst [vmem:[%s9533_s11] sm:$0xff] %v4443_v49  ;;  %v3963_v24 = vadd.f32 %v8599_v20, %v3893_v62 }
 0x3a4   :  { %5057 = vrsqrt.f32 %v8950_v46  ;;  %v4244_v25 = vpop.f32.mrf.mxu2  ;;  %v4333_v34 = vpop.f32.mrf.mxu3  ;;  %v3894_v42 = vmul.f32 %v8557_v15, %v3824_v39  ;;  %v3606_v60 = vmul.f32 %v8909_v1, %v3605_v29  ;;  %vm3618_vm11 = vweird.f32 %v5056_v30 }
 0x3a5   :  { %v3613_v31 = vmul.f32 %v5056_v30, %v3612_v33  ;;  %v3301_v47 = vmul.f32 %v8961_v10, %v8961_v10  ;;  %v3302_v54 = vmul.f32 %v8964_v36, %v8964_v36  ;;  %v4245_v16 = vadd.f32 %v8907_v21, %v4244_v25  ;;  %vm3619_vm6 = vmor %vm3617_vm10, %vm3618_vm11 }
 0x3a6   :  { %v4025_v39 = vmax.f32 %v3961_v8, 0.0  ;;  %v4027_v32 = vmax.f32 %v3963_v24, 0.0  ;;  %v3962_v29 = vadd.f32 %v8601_v50, %v3892_v43  ;;  %v3964_v62 = vadd.f32 %v8601_v50, %v3894_v42 }
 0x3a7   :  { %v3614_v56 = vmul.f32 0.5, %v3613_v31  ;;  %v3129_v13 = vpop.xlane.xlu1 %3128  ;;  %v4334_v44 = vadd.f32 %v4333_v34, %v4245_v16  ;;  %v3610_v25 = vsel %vm3609_vm12, %v8909_v1, %v3606_v60  ;;  %vm3627_vm14 = vweird.f32 %v8950_v46 }
 0x3a8   :  { %v3184_v55 = vmul.f32 %v8107_v53, %v3129_v13  ;;  %v3368_v8 = vpop.xlane.xlu2 %3367  ;;  %v4079_v24 = vpack.c.bf16 %v4027_v32, %v4025_v39  ;;  %v4026_v57 = vmax.f32 %v3962_v29, 0.0  ;;  %v3825_v60 = vmul.f32 %v3610_v25, %v8619_v38 }
 0x3a9   :  { %v3615_v51 = vsub.f32 1.5, %v3614_v56  ;;  %3149 = vadd.xlane.f32.xlu1 %v3148_v37  ;;  %v3387_v37 = vadd.f32 %v3302_v54, %v3301_v47  ;;  %v4444_v42 = vadd.f32 %v4412_v48, %v4334_v44  ;;  %v3826_v48 = vmul.f32 %v3610_v25, %v8622_v4 }
 0x3aa   :  { %v8987_v33 = vpop.eup %5057  ;;  %v8994_v49 = vsub.f32 %v8705_v14, %v3184_v55  ;;  %v8997_v31 = vsub.f32 %v8708_v26, %v3184_v55  ;;  %v3432_v14 = vmul.f32 %v3368_v8, %v8107_v53  ;;  %4266 = vmatmul.bf16.gmra.mxu2 %v4079_v24  ;;  %v4028_v26 = vmax.f32 %v3964_v62, 0.0 }
 0x3ab   :  { %v3616_v34 = vmul.f32 %v5056_v30, %v3615_v51  ;;  %v3622_v43 = vmul.f32 %v8987_v33, %v8950_v46  ;;  %3388 = vadd.xlane.f32.xlu2 %v3387_v37  ;;  %4476 = vst [vmem:[%s9533_s11 + $0x8] sm:$0xff] %v4444_v42  ;;  %v3151_v4 = vadd.f32 %v8941_v9, %v8936_v0  ;;  %vm3628_vm7 = vweird.f32 %v8987_v33 }
 0x3ac   :  { %v3303_v47 = vmul.f32 %v8994_v49, %v8994_v49  ;;  %v3304_v5 = vmul.f32 %v8997_v31, %v8997_v31  ;;  %v9016_v13 = vadd.f32 1e-05, %v3432_v14  ;;  %v4080_v16 = vpack.c.bf16 %v4028_v26, %v4026_v57  ;;  %vm3629_vm15 = vmor %vm3627_vm14, %vm3628_vm7 }
 0x3ad   :  { %v3620_v54 = vsel %vm3619_vm6, %v5056_v30, %v3616_v34  ;;  %v3623_v1 = vmul.f32 %v8987_v33, %v3622_v43  ;;  %v3895_v34 = vmul.f32 %v8547_v59, %v3825_v60  ;;  %v3896_v57 = vmul.f32 %v8557_v15, %v3826_v48 }
 0x3ae   :  { %v3827_v56 = vmul.f32 %v3620_v54, %v8650_v63  ;;  %v4247_v55 = vpop.f32.mrf.mxu2  ;;  %v4336_v51 = vpop.f32.mrf.mxu3  ;;  %v3390_v44 = vadd.f32 %v3304_v5, %v3303_v47  ;;  %5059 = vrsqrt.f32 %v9016_v13  ;;  %4355 = vmatmul.bf16.gmra.mxu3 %v4080_v16  ;;  %v4413_v63 = vld [vmem:[%s9532_s4 + $0x10] sm:$0xff]  ;;  %v3828_v29 = vmul.f32 %v3620_v54, %v8653_v58 }
 0x3af   :  { %v3624_v30 = vmul.f32 0.5, %v3623_v1  ;;  %v3132_v39 = vpop.xlane.xlu1 %3131  ;;  %v4248_v32 = vadd.f32 %v8907_v21, %v4247_v55  ;;  %v3965_v26 = vadd.f32 %v8599_v20, %v3895_v34  ;;  %v3966_v55 = vadd.f32 %v8601_v50, %v3896_v57 }
 0x3b0   :  { %v3185_v38 = vmul.f32 %v8107_v53, %v3132_v39  ;;  %3391 = vadd.xlane.f32.xlu0 %v3390_v44  ;;  %v3371_v25 = vpop.xlane.xlu2 %3370  ;;  %v3897_v43 = vmul.f32 %v8547_v59, %v3827_v56  ;;  %v3898_v1 = vmul.f32 %v8557_v15, %v3828_v29  ;;  %v9755_v44 = vld [vmem:[#allocation6_spill] sm:$0xff]  ;;  %vm3637_vm1 = vweird.f32 %v9016_v13 }
 0x3b1   :  { %v3625_v62 = vsub.f32 1.5, %v3624_v30  ;;  %v4337_v8 = vadd.f32 %v4336_v51, %v4248_v32  ;;  %v3433_v58 = vmul.f32 %v3371_v25, %v8107_v53  ;;  %v4029_v39 = vmax.f32 %v3965_v26, 0.0 }
 0x3b2   :  { %v9031_v24 = vsub.f32 %v8736_v40, %v3185_v38  ;;  %v9034_v37 = vsub.f32 %v8739_v61, %v3185_v38  ;;  %v3967_v47 = vadd.f32 %v8599_v20, %v3897_v43  ;;  %v3968_v51 = vadd.f32 %v8601_v50, %v3898_v1 }
 0x3b3   :  { %v3626_v42 = vmul.f32 %v8987_v33, %v3625_v62  ;;  %v4445_v14 = vadd.f32 %v4413_v63, %v4337_v8  ;;  %3152 = vadd.xlane.f32.xlu2 %v3151_v4  ;;  %v9054_v54 = vadd.f32 1e-05, %v3433_v58  ;;  %v4030_v8 = vmax.f32 %v3966_v55, 0.0 }
 0x3b4   :  { %v3305_v40 = vmul.f32 %v9031_v24, %v9031_v24  ;;  %v3306_v61 = vmul.f32 %v9034_v37, %v9034_v37  ;;  %v5060_v5 = vpop.eup %5059  ;;  %v4031_v32 = vmax.f32 %v3967_v47, 0.0  ;;  %v4032_v25 = vmax.f32 %v3968_v51, 0.0 }
 0x3b5   :  { %4477 = vst [vmem:[%s9533_s11 + $0x10] sm:$0xff] %v4445_v14  ;;  %v3630_v60 = vsel %vm3629_vm15, %v8987_v33, %v3626_v42  ;;  %v3632_v48 = vmul.f32 %v5060_v5, %v9016_v13  ;;  %5061 = vrsqrt.f32 %v9054_v54  ;;  %v4414_v33 = vld [vmem:[%s9532_s4 + $0x18] sm:$0xff]  ;;  %vm3638_vm13 = vweird.f32 %v5060_v5 }
 0x3b6   :  { %v4249_v56 = vpop.f32.mrf.mxu2  ;;  %v3393_v16 = vadd.f32 %v3306_v61, %v3305_v40  ;;  %v4338_v46 = vpop.f32.mrf.mxu3  ;;  %v3829_v38 = vmul.f32 %v3630_v60, %v9755_v44  ;;  %v4081_v62 = vpack.c.bf16 %v4031_v32, %v4029_v39  ;;  %v9756_v14 = vld [vmem:[#allocation11_spill] sm:$0xff]  ;;  %v4082_v61 = vpack.c.bf16 %v4032_v25, %v4030_v8  ;;  %vm3639_vm5 = vmor %vm3637_vm1, %vm3638_vm13  ;;  %v4415_v32 = vld [vmem:[%s9532_s4 + $0x20] sm:$0xff] }
 0x3b7   :  { %v4250_v30 = vadd.f32 %v8907_v21, %v4249_v56  ;;  %v3633_v63 = vmul.f32 %v5060_v5, %v3632_v48  ;;  %v3830_v58 = vmul.f32 %v3630_v60, %v9756_v14  ;;  %vm3647_vm2 = vweird.f32 %v9054_v54 }
 0x3b8   :  { %3394 = vadd.xlane.f32.xlu0 %v3393_v16  ;;  %v3135_v29 = vpop.xlane.xlu2 %3134  ;;  %v3899_v48 = vmul.f32 %v8547_v59, %v3829_v38 }
 0x3b9   :  { %v4339_v4 = vadd.f32 %v4338_v46, %v4250_v30  ;;  %v3634_v34 = vmul.f32 0.5, %v3633_v63  ;;  %v3186_v43 = vmul.f32 %v8107_v53, %v3135_v29  ;;  %v3900_v63 = vmul.f32 %v8557_v15, %v3830_v58 }
 0x3ba   :  { %4271 = vmatmul.bf16.gmra.mxu2 %v4081_v62 }
 0x3bb   :  { %v3374_v42 = vpop.xlane.xlu0 %3373  ;;  %v4446_v57 = vadd.f32 %v4414_v33, %v4339_v4  ;;  %v5062_v26 = vpop.eup %5061  ;;  %v3635_v47 = vsub.f32 1.5, %v3634_v34  ;;  %v9071_v1 = vsub.f32 %v8770_v27, %v3186_v43  ;;  %v9074_v56 = vsub.f32 %v8774_v19, %v3186_v43 }
 0x3bc   :  { %v3434_v40 = vmul.f32 %v3374_v42, %v8107_v53  ;;  %v3642_v16 = vmul.f32 %v5062_v26, %v9054_v54  ;;  %v3969_v43 = vadd.f32 %v8599_v20, %v3899_v48  ;;  %vm3648_vm3 = vweird.f32 %v5062_v26 }
 0x3bd   :  { %4478 = vst [vmem:[%s9533_s11 + $0x18] sm:$0xff] %v4446_v57  ;;  %v3636_v46 = vmul.f32 %v5060_v5, %v3635_v47  ;;  %v3307_v19 = vmul.f32 %v9071_v1, %v9071_v1  ;;  %v3308_v13 = vmul.f32 %v9074_v56, %v9074_v56  ;;  %vm3649_vm0 = vmor %vm3647_vm2, %vm3648_vm3 }
 0x3be   :  { %v9081_v60 = vadd.f32 1e-05, %v3434_v40  ;;  %v4252_v55 = vpop.f32.mrf.mxu2  ;;  %v3643_v30 = vmul.f32 %v5062_v26, %v3642_v16  ;;  %4360 = vmatmul.bf16.gmra.mxu3 %v4082_v61  ;;  %v4341_v39 = vpop.f32.mrf.mxu3 }
 0x3bf   :  { %v4253_v27 = vadd.f32 %v8907_v21, %v4252_v55  ;;  %v3640_v51 = vsel %vm3639_vm5, %v5060_v5, %v3636_v46  ;;  %v3396_v38 = vadd.f32 %v3308_v13, %v3307_v19  ;;  %v4416_v46 = vld [vmem:[%s9532_s4 + $0x28] sm:$0xff] }
 0x3c0   :  { %5063 = vrsqrt.f32 %v9081_v60  ;;  %v3831_v33 = vmul.f32 %v3640_v51, %v8718_v18  ;;  %v3832_v4 = vmul.f32 %v3640_v51, %v8723_v52  ;;  %v3644_v29 = vmul.f32 0.5, %v3643_v30  ;;  %v3138_v62 = vpop.xlane.xlu2 %3137 }
 0x3c1   :  { %v4342_v44 = vadd.f32 %v4341_v39, %v4253_v27  ;;  %v3187_v25 = vmul.f32 %v8107_v53, %v3138_v62  ;;  %3397 = vadd.xlane.f32.xlu1 %v3396_v38  ;;  %v3970_v52 = vadd.f32 %v8601_v50, %v3900_v63  ;;  %v4033_v27 = vmax.f32 %v3969_v43, 0.0 }
 0x3c2   :  { %v3645_v42 = vsub.f32 1.5, %v3644_v29  ;;  %v3901_v5 = vmul.f32 %v8547_v59, %v3831_v33  ;;  %v3902_v14 = vmul.f32 %v8557_v15, %v3832_v4  ;;  %vm3657_vm4 = vweird.f32 %v9081_v60 }
 0x3c3   :  { %v4447_v8 = vadd.f32 %v4415_v32, %v4342_v44  ;;  %v9097_v34 = vpop.xlane.xlu0 %3376  ;;  %v9107_v18 = vsub.f32 %v8796_v12, %v3187_v25  ;;  %v9111_v40 = vsub.f32 %v8799_v7, %v3187_v25  ;;  %v4034_v32 = vmax.f32 %v3970_v52, 0.0 }
 0x3c4   :  { %v3646_v57 = vmul.f32 %v5062_v26, %v3645_v42  ;;  %v3971_v47 = vadd.f32 %v8599_v20, %v3901_v5  ;;  %v3972_v16 = vadd.f32 %v8601_v50, %v3902_v14 }
 0x3c5   :  { %4479 = vst [vmem:[%s9533_s11 + $0x20] sm:$0xff] %v4447_v8  ;;  %v3309_v7 = vmul.f32 %v9107_v18, %v9107_v18  ;;  %v3310_v44 = vmul.f32 %v9111_v40, %v9111_v40 }
 0x3c6   :  { %v5064_v58 = vpop.eup %5063  ;;  %v4254_v61 = vpop.f32.mrf.mxu2  ;;  %v3650_v48 = vsel %vm3649_vm0, %v5062_v26, %v3646_v57  ;;  %v4035_v19 = vmax.f32 %v3971_v47, 0.0  ;;  %v4036_v51 = vmax.f32 %v3972_v16, 0.0 }
 0x3c7   :  { %v3652_v54 = vmul.f32 %v5064_v58, %v9081_v60  ;;  %v4255_v55 = vadd.f32 %v8907_v21, %v4254_v61  ;;  %v4343_v12 = vpop.f32.mrf.mxu3  ;;  %v3833_v26 = vmul.f32 %v3650_v48, %v8750_v41  ;;  %v3399_v62 = vadd.f32 %v3310_v44, %v3309_v7 }
 0x3c8   :  { %v4083_v39 = vpack.c.bf16 %v4035_v19, %v4033_v27  ;;  %v4084_v29 = vpack.c.bf16 %v4036_v51, %v4034_v32  ;;  %v3834_v8 = vmul.f32 %v3650_v48, %v8753_v23  ;;  %vm3658_vm8 = vweird.f32 %v5064_v58 }
 0x3c9   :  { %v3653_v13 = vmul.f32 %v5064_v58, %v3652_v54  ;;  %v4344_v30 = vadd.f32 %v4343_v12, %v4255_v55  ;;  %3400 = vadd.xlane.f32.xlu2 %v3399_v62  ;;  %v3903_v23 = vmul.f32 %v8547_v59, %v3833_v26  ;;  %vm3659_vm10 = vmor %vm3657_vm4, %vm3658_vm8  ;;  %v4418_v26 = vld [vmem:[%s9532_s4 + $0x38] sm:$0xff] }
 0x3ca   :  { %4276 = vmatmul.bf16.gmra.mxu2 %v4083_v39  ;;  %v3904_v60 = vmul.f32 %v8557_v15, %v3834_v8 }
 0x3cb   :  { %v3654_v38 = vmul.f32 0.5, %v3653_v13  ;;  %v4448_v63 = vadd.f32 %v4416_v46, %v4344_v30  ;;  %v3141_v33 = vpop.xlane.xlu0 %3140  ;;  %v3973_v46 = vadd.f32 %v8599_v20, %v3903_v23 }
 0x3cc   :  { %v3188_v4 = vmul.f32 %v8107_v53, %v3141_v33 }
 0x3cd   :  { %v3655_v25 = vsub.f32 1.5, %v3654_v38  ;;  %4480 = vst [vmem:[%s9533_s11 + $0x28] sm:$0xff] %v4448_v63  ;;  %v4037_v51 = vmax.f32 %v3973_v46, 0.0 }
 0x3ce   :  { %v9131_v43 = vsub.f32 %v8814_v45, %v3188_v4  ;;  %v9134_v41 = vsub.f32 %v8817_v35, %v3188_v4  ;;  %v4257_v42 = vpop.f32.mrf.mxu2  ;;  %4365 = vmatmul.bf16.gmra.mxu3 %v4084_v29  ;;  %v4417_v45 = vld [vmem:[%s9532_s4 + $0x30] sm:$0xff] }
 0x3cf   :  { %v3656_v5 = vmul.f32 %v5064_v58, %v3655_v25  ;;  %v4258_v14 = vadd.f32 %v8907_v21, %v4257_v42  ;;  %v4346_v52 = vpop.f32.mrf.mxu3  ;;  %v3435_v42 = vmul.f32 %v9097_v34, %v8107_v53 }
 0x3d0   :  { %v3311_v35 = vmul.f32 %v9131_v43, %v9131_v43  ;;  %v3312_v57 = vmul.f32 %v9134_v41, %v9134_v41 }
 0x3d1   :  { %v3660_v61 = vsel %vm3659_vm10, %v5064_v58, %v3656_v5  ;;  %v4347_v47 = vadd.f32 %v4346_v52, %v4258_v14  ;;  %v3467_v5 = vadd.f32 1e-05, %v3435_v42 }
 0x3d2   :  { %v3835_v16 = vmul.f32 %v3660_v61, %v8780_v28  ;;  %v3836_v54 = vmul.f32 %v3660_v61, %v8783_v11  ;;  %v3402_v55 = vadd.f32 %v3312_v57, %v3311_v35  ;;  %v3974_v28 = vadd.f32 %v8601_v50, %v3904_v60 }
 0x3d3   :  { %v4449_v48 = vadd.f32 %v4417_v45, %v4347_v47  ;;  %v3144_v12 = vpop.xlane.xlu0 %3143  ;;  %5065 = vrsqrt.f32 %v3467_v5  ;;  %vm3667_vm11 = vweird.f32 %v3467_v5 }
 0x3d4   :  { %v3189_v27 = vmul.f32 %v8107_v53, %v3144_v12  ;;  %3403 = vadd.xlane.f32.xlu0 %v3402_v55  ;;  %v3905_v19 = vmul.f32 %v8547_v59, %v3835_v16  ;;  %v3906_v7 = vmul.f32 %v8557_v15, %v3836_v54  ;;  %v4038_v29 = vmax.f32 %v3974_v28, 0.0 }
 0x3d5   :  { %4481 = vst [vmem:[%s9533_s11 + $0x30] sm:$0xff] %v4449_v48 }
 0x3d6   :  { %v9158_v11 = vsub.f32 %v8822_v17, %v3189_v27  ;;  %v9161_v58 = vsub.f32 %v8825_v22, %v3189_v27  ;;  %v4259_v13 = vpop.f32.mrf.mxu2  ;;  %v3975_v30 = vadd.f32 %v8599_v20, %v3905_v19  ;;  %v3976_v39 = vadd.f32 %v8601_v50, %v3906_v7  ;;  %v9757_v19 = vld [vmem:[#allocation12_spill] sm:$0xff] }
 0x3d7   :  { %v4260_v32 = vadd.f32 %v8907_v21, %v4259_v13  ;;  %v4348_v44 = vpop.f32.mrf.mxu3 }
 0x3d8   :  { %v4039_v38 = vmax.f32 %v3975_v30, 0.0  ;;  %v4040_v63 = vmax.f32 %v3976_v39, 0.0  ;;  %v3313_v17 = vmul.f32 %v9158_v11, %v9158_v11  ;;  %v3314_v22 = vmul.f32 %v9161_v58, %v9161_v58 }
 0x3d9   :  { %v4349_v33 = vadd.f32 %v4348_v44, %v4260_v32  ;;  %v5066_v14 = vpop.eup %5065 }
 0x3da   :  { %v4085_v4 = vpack.c.bf16 %v4039_v38, %v4037_v51  ;;  %v3405_v8 = vadd.f32 %v3314_v22, %v3313_v17  ;;  %v4086_v25 = vpack.c.bf16 %v4040_v63, %v4038_v29  ;;  %v3662_v23 = vmul.f32 %v5066_v14, %v3467_v5  ;;  %v9759_v63 = vld [vmem:[#allocation16_spill] sm:$0xff]  ;;  %v9760_v5 = vld [vmem:[#allocation13_spill] sm:$0xff] }
 0x3db   :  { %v4450_v62 = vadd.f32 %v4418_v26, %v4349_v33  ;;  %vm3668_vm9 = vweird.f32 %v5066_v14  ;;  %v9758_v26 = vld [vmem:[#allocation15_spill] sm:$0xff] }
 0x3dc   :  { %4281 = vmatmul.bf16.gmra.mxu2 %v4085_v4  ;;  %3406 = vadd.xlane.f32.xlu1 %v3405_v8  ;;  %v3663_v52 = vmul.f32 %v5066_v14, %v3662_v23  ;;  %vm3669_vm12 = vmor %vm3667_vm11, %vm3668_vm9  ;;  %v9761_v23 = vld [vmem:[#allocation14_spill] sm:$0xff] }
 0x3dd   :  { %4482 = vst [vmem:[%s9533_s11 + $0x38] sm:$0xff] %v4450_v62 }
 0x3de   :  { %4370 = vmatmul.bf16.gmra.mxu3 %v4086_v25  ;;  %v3664_v45 = vmul.f32 0.5, %v3663_v52 }
 0x3e0   :  { %v3665_v47 = vsub.f32 1.5, %v3664_v45 }
 0x3e2   :  { %v3666_v60 = vmul.f32 %v5066_v14, %v3665_v47 }
 0x3e4   :  { %v3670_v48 = vsel %vm3669_vm12, %v5066_v14, %v3666_v60 }
 0x3e5   :  { %v3837_v27 = vmul.f32 %v3670_v48, %v8802_v3  ;;  %v3838_v7 = vmul.f32 %v3670_v48, %v9757_v19  ;;  %v4419_v48 = vld [vmem:[%s9532_s4 + $0x40] sm:$0xff] }
 0x3e7   :  { %v3907_v3 = vmul.f32 %v8547_v59, %v3837_v27  ;;  %v3908_v22 = vmul.f32 %v8557_v15, %v3838_v7 }
 0x3e9   :  { %v3977_v60 = vadd.f32 %v8599_v20, %v3907_v3 }
 0x403   :  { %v3380_v35 = vpop.xlane.xlu1 %3379 }
 0x404   :  { %v3436_v57 = vmul.f32 %v3380_v35, %v8107_v53 }
 0x406   :  { %v3468_v61 = vadd.f32 1e-05, %v3436_v57 }
 0x408   :  { %5067 = vrsqrt.f32 %v3468_v61  ;;  %vm3677_vm14 = vweird.f32 %v3468_v61 }
 0x40c   :  { %v3383_v16 = vpop.xlane.xlu1 %3382 }
 0x40d   :  { %v3437_v54 = vmul.f32 %v3383_v16, %v8107_v53  ;;  %v3978_v16 = vadd.f32 %v8601_v50, %v3908_v22 }
 0x40e   :  { %v5068_v55 = vpop.eup %5067 }
 0x40f   :  { %v9180_v34 = vadd.f32 1e-05, %v3437_v54  ;;  %v3672_v12 = vmul.f32 %v5068_v55, %v3468_v61  ;;  %vm3678_vm6 = vweird.f32 %v5068_v55  ;;  %v4042_v3 = vmax.f32 %v3978_v16, 0.0 }
 0x410   :  { %vm3679_vm7 = vmor %vm3677_vm14, %vm3678_vm6 }
 0x411   :  { %5069 = vrsqrt.f32 %v9180_v34  ;;  %v3673_v46 = vmul.f32 %v5068_v55, %v3672_v12  ;;  %vm3687_vm13 = vweird.f32 %v9180_v34 }
 0x413   :  { %v3674_v28 = vmul.f32 0.5, %v3673_v46 }
 0x414   :  { %v3147_v13 = vpop.xlane.xlu1 %3146  ;;  %v3386_v39 = vpop.xlane.xlu2 %3385 }
 0x415   :  { %v3190_v30 = vmul.f32 %v8107_v53, %v3147_v13  ;;  %v3675_v32 = vsub.f32 1.5, %v3674_v28  ;;  %v3438_v51 = vmul.f32 %v3386_v39, %v8107_v53 }
 0x417   :  { %v9187_v44 = vpop.eup %5069  ;;  %v9190_v38 = vsub.f32 %v9758_v26, %v3190_v30  ;;  %v9193_v17 = vsub.f32 %v9759_v63, %v3190_v30  ;;  %v3676_v33 = vmul.f32 %v5068_v55, %v3675_v32  ;;  %v9199_v29 = vadd.f32 1e-05, %v3438_v51 }
 0x418   :  { %v3682_v4 = vmul.f32 %v9187_v44, %v9180_v34  ;;  %v4041_v63 = vmax.f32 %v3977_v60, 0.0  ;;  %vm3688_vm15 = vweird.f32 %v9187_v44 }
 0x419   :  { %v3315_v62 = vmul.f32 %v9190_v38, %v9190_v38  ;;  %v3316_v8 = vmul.f32 %v9193_v17, %v9193_v17  ;;  %v3680_v25 = vsel %vm3679_vm7, %v5068_v55, %v3676_v33  ;;  %5071 = vrsqrt.f32 %v9199_v29  ;;  %vm3689_vm1 = vmor %vm3687_vm13, %vm3688_vm15 }
 0x41a   :  { %v3683_v42 = vmul.f32 %v9187_v44, %v3682_v4  ;;  %v3839_v14 = vmul.f32 %v3680_v25, %v9760_v5  ;;  %v3840_v52 = vmul.f32 %v3680_v25, %v9761_v23  ;;  %vm3697_vm3 = vweird.f32 %v9199_v29 }
 0x41b   :  { %v4262_v45 = vpop.f32.mrf.mxu2  ;;  %v3408_v35 = vadd.f32 %v3316_v8, %v3315_v62  ;;  %v4351_v55 = vpop.f32.mrf.mxu3 }
 0x41c   :  { %v3684_v57 = vmul.f32 0.5, %v3683_v42  ;;  %v3150_v61 = vpop.xlane.xlu1 %3149  ;;  %v4263_v47 = vadd.f32 %v8907_v21, %v4262_v45  ;;  %v3909_v12 = vmul.f32 %v8547_v59, %v3839_v14  ;;  %v3910_v46 = vmul.f32 %v8557_v15, %v3840_v52 }
 0x41d   :  { %v3191_v54 = vmul.f32 %v8107_v53, %v3150_v61  ;;  %3409 = vadd.xlane.f32.xlu2 %v3408_v35 }
 0x41e   :  { %v3685_v27 = vsub.f32 1.5, %v3684_v57  ;;  %v4352_v19 = vadd.f32 %v4351_v55, %v4263_v47  ;;  %v3389_v13 = vpop.xlane.xlu2 %3388  ;;  %v3979_v30 = vadd.f32 %v8599_v20, %v3909_v12  ;;  %v3980_v39 = vadd.f32 %v8601_v50, %v3910_v46  ;;  %v4420_v57 = vld [vmem:[%s9532_s4 + $0x48] sm:$0xff]  ;;  %v9762_v46 = vld [vmem:[#allocation7_spill] sm:$0xff] }
 0x41f   :  { %v9219_v7 = vsub.f32 %v8912_v2, %v3191_v54  ;;  %v9222_v28 = vsub.f32 %v8922_v6, %v3191_v54  ;;  %v5072_v32 = vpop.eup %5071  ;;  %v3439_v26 = vmul.f32 %v3389_v13, %v8107_v53 }
 0x420   :  { %v4451_v51 = vadd.f32 %v4419_v48, %v4352_v19  ;;  %v3692_v22 = vmul.f32 %v5072_v32, %v9199_v29  ;;  %v4043_v2 = vmax.f32 %v3979_v30, 0.0  ;;  %v4044_v33 = vmax.f32 %v3980_v39, 0.0  ;;  %v9763_v19 = vld [vmem:[#allocation8_spill] sm:$0xff] }
 0x421   :  { %v3686_v6 = vmul.f32 %v9187_v44, %v3685_v27  ;;  %v9233_v4 = vadd.f32 1e-05, %v3439_v26  ;;  %v3317_v62 = vmul.f32 %v9219_v7, %v9219_v7  ;;  %v3318_v8 = vmul.f32 %v9222_v28, %v9222_v28 }
 0x422   :  { %4483 = vst [vmem:[%s9533_s11 + $0x40] sm:$0xff] %v4451_v51  ;;  %v3693_v25 = vmul.f32 %v5072_v32, %v3692_v22  ;;  %v4087_v5 = vpack.c.bf16 %v4043_v2, %v4041_v63  ;;  %v4088_v52 = vpack.c.bf16 %v4044_v33, %v4042_v3  ;;  %vm3698_vm5 = vweird.f32 %v5072_v32  ;;  %v9764_v63 = vld [vmem:[#allocation17_spill] sm:$0xff]  ;;  %v9765_v22 = vld [vmem:[#allocation18_spill] sm:$0xff] }
 0x423   :  { %v4264_v42 = vpop.f32.mrf.mxu2  ;;  %5073 = vrsqrt.f32 %v9233_v4  ;;  %v3392_v23 = vpop.xlane.xlu0 %3391  ;;  %v3411_v47 = vadd.f32 %v3318_v8, %v3317_v62  ;;  %v3690_v34 = vsel %vm3689_vm1, %v9187_v44, %v3686_v6  ;;  %vm3699_vm2 = vmor %vm3697_vm3, %vm3698_vm5  ;;  %vm3707_vm8 = vweird.f32 %v9233_v4 }
 0x424   :  { %v4265_v14 = vadd.f32 %v8907_v21, %v4264_v42  ;;  %v3694_v45 = vmul.f32 0.5, %v3693_v25  ;;  %v4353_v35 = vpop.f32.mrf.mxu3  ;;  %v3440_v61 = vmul.f32 %v3392_v23, %v8107_v53  ;;  %4286 = vmatmul.bf16.gmra.mxu2 %v4087_v5  ;;  %4375 = vmatmul.bf16.gmra.mxu3 %v4088_v52  ;;  %v3841_v27 = vmul.f32 %v3690_v34, %v9762_v46 }
 0x425   :  { %3412 = vadd.xlane.f32.xlu0 %v3411_v47  ;;  %v3842_v13 = vmul.f32 %v3690_v34, %v9763_v19  ;;  %v4421_v19 = vld [vmem:[%s9532_s4 + $0x50] sm:$0xff] }
 0x426   :  { %v4354_v60 = vadd.f32 %v4353_v35, %v4265_v14  ;;  %v3695_v16 = vsub.f32 1.5, %v3694_v45  ;;  %v3153_v54 = vpop.xlane.xlu2 %3152  ;;  %v9249_v55 = vadd.f32 1e-05, %v3440_v61 }
 0x427   :  { %v3192_v12 = vmul.f32 %v8107_v53, %v3153_v54 }
 0x428   :  { %v4452_v48 = vadd.f32 %v4420_v57, %v4354_v60  ;;  %v3696_v30 = vmul.f32 %v5072_v32, %v3695_v16  ;;  %5075 = vrsqrt.f32 %v9249_v55  ;;  %vm3717_vm9 = vweird.f32 %v9249_v55 }
 0x429   :  { %v5074_v44 = vpop.eup %5073  ;;  %v9260_v39 = vsub.f32 %v8936_v0, %v3192_v12  ;;  %v9263_v29 = vsub.f32 %v8941_v9, %v3192_v12  ;;  %v3911_v9 = vmul.f32 %v8547_v59, %v3841_v27 }
 0x42a   :  { %4484 = vst [vmem:[%s9533_s11 + $0x48] sm:$0xff] %v4452_v48  ;;  %v3700_v51 = vsel %vm3699_vm2, %v5072_v32, %v3696_v30  ;;  %v3702_v26 = vmul.f32 %v5074_v44, %v9233_v4  ;;  %v3912_v32 = vmul.f32 %v8557_v15, %v3842_v13  ;;  %vm3708_vm0 = vweird.f32 %v5074_v44 }
 0x42b   :  { %v3843_v3 = vmul.f32 %v3700_v51, %v9764_v63  ;;  %v3844_v2 = vmul.f32 %v3700_v51, %v9765_v22  ;;  %v3395_v33 = vpop.xlane.xlu0 %3394  ;;  %v3319_v6 = vmul.f32 %v9260_v39, %v9260_v39  ;;  %v3320_v62 = vmul.f32 %v9263_v29, %v9263_v29  ;;  %vm3709_vm4 = vmor %vm3707_vm8, %vm3708_vm0 }
 0x42c   :  { %v3703_v8 = vmul.f32 %v5074_v44, %v3702_v26  ;;  %v3441_v0 = vmul.f32 %v3395_v33, %v8107_v53  ;;  %v3981_v35 = vadd.f32 %v8599_v20, %v3911_v9  ;;  %v3982_v60 = vadd.f32 %v8601_v50, %v3912_v32 }
 0x42d   :  { %v3414_v25 = vadd.f32 %v3320_v62, %v3319_v6  ;;  %v3913_v42 = vmul.f32 %v8547_v59, %v3843_v3  ;;  %v3914_v5 = vmul.f32 %v8557_v15, %v3844_v2  ;;  %v4267_v52 = vpop.f32.mrf.mxu2 }
 0x42e   :  { %v5076_v14 = vpop.eup %5075  ;;  %v3704_v23 = vmul.f32 0.5, %v3703_v8  ;;  %v9277_v45 = vadd.f32 1e-05, %v3441_v0  ;;  %v4268_v61 = vadd.f32 %v8907_v21, %v4267_v52  ;;  %v4045_v54 = vmax.f32 %v3981_v35, 0.0 }
 0x42f   :  { %v3712_v57 = vmul.f32 %v5076_v14, %v9249_v55  ;;  %3415 = vadd.xlane.f32.xlu1 %v3414_v25  ;;  %v3983_v47 = vadd.f32 %v8599_v20, %v3913_v42  ;;  %v3984_v12 = vadd.f32 %v8601_v50, %v3914_v5  ;;  %v4046_v63 = vmax.f32 %v3982_v60, 0.0 }
 0x430   :  { %v3705_v34 = vsub.f32 1.5, %v3704_v23  ;;  %5077 = vrsqrt.f32 %v9277_v45  ;;  %vm3718_vm10 = vweird.f32 %v5076_v14  ;;  %vm3727_vm6 = vweird.f32 %v9277_v45 }
 0x431   :  { %v3713_v16 = vmul.f32 %v5076_v14, %v3712_v57  ;;  %v4047_v48 = vmax.f32 %v3983_v47, 0.0  ;;  %v4356_v27 = vpop.f32.mrf.mxu3  ;;  %v4048_v26 = vmax.f32 %v3984_v12, 0.0  ;;  %vm3719_vm11 = vmor %vm3717_vm9, %vm3718_vm10  ;;  %v4422_v57 = vld [vmem:[%s9532_s4 + $0x58] sm:$0xff] }
 0x432   :  { %v3706_v46 = vmul.f32 %v5074_v44, %v3705_v34  ;;  %v4357_v30 = vadd.f32 %v4356_v27, %v4268_v61 }
 0x433   :  { %v3714_v13 = vmul.f32 0.5, %v3713_v16  ;;  %v4089_v51 = vpack.c.bf16 %v4047_v48, %v4045_v54  ;;  %v4090_v0 = vpack.c.bf16 %v4048_v26, %v4046_v63 }
 0x434   :  { %v4453_v22 = vadd.f32 %v4421_v19, %v4357_v30  ;;  %v3398_v2 = vpop.xlane.xlu1 %3397  ;;  %v3710_v6 = vsel %vm3709_vm4, %v5074_v44, %v3706_v46 }
 0x435   :  { %v3715_v3 = vsub.f32 1.5, %v3714_v13  ;;  %4291 = vmatmul.bf16.gmra.mxu2 %v4089_v51  ;;  %v3442_v62 = vmul.f32 %v3398_v2, %v8107_v53  ;;  %v4269_v8 = vpop.f32.mrf.mxu2  ;;  %4380 = vmatmul.bf16.gmra.mxu3 %v4090_v0  ;;  %v3845_v44 = vmul.f32 %v3710_v6, %v8961_v10  ;;  %v3846_v23 = vmul.f32 %v3710_v6, %v8964_v36 }
 0x436   :  { %v5078_v33 = vpop.eup %5077  ;;  %4485 = vst [vmem:[%s9533_s11 + $0x50] sm:$0xff] %v4453_v22  ;;  %v4270_v32 = vadd.f32 %v8907_v21, %v4269_v8 }
 0x437   :  { %v3716_v9 = vmul.f32 %v5076_v14, %v3715_v3  ;;  %v3722_v4 = vmul.f32 %v5078_v33, %v9277_v45  ;;  %v9297_v25 = vadd.f32 1e-05, %v3442_v62  ;;  %v3915_v10 = vmul.f32 %v8547_v59, %v3845_v44 }
 0x438   :  { %vm3728_vm12 = vweird.f32 %v5078_v33 }
 0x439   :  { %v3720_v42 = vsel %vm3719_vm11, %v5076_v14, %v3716_v9  ;;  %v3723_v5 = vmul.f32 %v5078_v33, %v3722_v4  ;;  %5079 = vrsqrt.f32 %v9297_v25  ;;  %v4358_v35 = vpop.f32.mrf.mxu3  ;;  %v3985_v48 = vadd.f32 %v8599_v20, %v3915_v10  ;;  %vm3729_vm14 = vmor %vm3727_vm6, %vm3728_vm12 }
 0x43a   :  { %v3847_v55 = vmul.f32 %v3720_v42, %v8994_v49  ;;  %v3848_v52 = vmul.f32 %v3720_v42, %v8997_v31  ;;  %v4359_v47 = vadd.f32 %v4358_v35, %v4270_v32  ;;  %v3916_v49 = vmul.f32 %v8557_v15, %v3846_v23 }
 0x43b   :  { %v3724_v61 = vmul.f32 0.5, %v3723_v5  ;;  %v4049_v63 = vmax.f32 %v3985_v48, 0.0  ;;  %vm3737_vm15 = vweird.f32 %v9297_v25 }
 0x43c   :  { %v4454_v60 = vadd.f32 %v4422_v57, %v4359_v47  ;;  %v3917_v14 = vmul.f32 %v8547_v59, %v3847_v55  ;;  %v3918_v31 = vmul.f32 %v8557_v15, %v3848_v52  ;;  %v3401_v27 = vpop.xlane.xlu2 %3400  ;;  %v3986_v19 = vadd.f32 %v8601_v50, %v3916_v49 }
 0x43d   :  { %v3725_v34 = vsub.f32 1.5, %v3724_v61  ;;  %v4272_v36 = vpop.f32.mrf.mxu2  ;;  %v3443_v51 = vmul.f32 %v3401_v27, %v8107_v53  ;;  %v4424_v61 = vld [vmem:[%s9532_s4 + $0x68] sm:$0xff] }
 0x43e   :  { %4486 = vst [vmem:[%s9533_s11 + $0x58] sm:$0xff] %v4454_v60  ;;  %v4273_v54 = vadd.f32 %v8907_v21, %v4272_v36  ;;  %v3987_v12 = vadd.f32 %v8599_v20, %v3917_v14  ;;  %v3988_v13 = vadd.f32 %v8601_v50, %v3918_v31  ;;  %v4423_v21 = vld [vmem:[%s9532_s4 + $0x60] sm:$0xff]  ;;  %v4050_v0 = vmax.f32 %v3986_v19, 0.0 }
 0x43f   :  { %v3726_v16 = vmul.f32 %v5078_v33, %v3725_v34  ;;  %v5080_v46 = vpop.eup %5079  ;;  %v3475_v62 = vadd.f32 1e-05, %v3443_v51 }
 0x440   :  { %v3732_v30 = vmul.f32 %v5080_v46, %v9297_v25  ;;  %v4051_v3 = vmax.f32 %v3987_v12, 0.0  ;;  %v4052_v45 = vmax.f32 %v3988_v13, 0.0  ;;  %vm3738_vm7 = vweird.f32 %v5080_v46 }
 0x441   :  { %v4361_v26 = vpop.f32.mrf.mxu3  ;;  %v3730_v22 = vsel %vm3729_vm14, %v5078_v33, %v3726_v16  ;;  %5081 = vrsqrt.f32 %v3475_v62  ;;  %v9334_v33 = vld [vmem:[%s9531_s10] ss:$0 sm:$0xff]  ;;  %vm3739_vm13 = vmor %vm3737_vm15, %vm3738_vm7  ;;  %vm3747_vm5 = vweird.f32 %v3475_v62 }
 0x442   :  { %v3733_v2 = vmul.f32 %v5080_v46, %v3732_v30  ;;  %v4362_v6 = vadd.f32 %v4361_v26, %v4273_v54  ;;  %v4091_v8 = vpack.c.bf16 %v4051_v3, %v4049_v63  ;;  %v3849_v32 = vmul.f32 %v3730_v22, %v9031_v24  ;;  %v4425_v63 = vld [vmem:[%s9532_s4 + $0x70] sm:$0xff] }
 0x443   :  { %v4092_v5 = vpack.c.bf16 %v4052_v45, %v4050_v0  ;;  %v3850_v23 = vmul.f32 %v3730_v22, %v9034_v37 }
 0x444   :  { %v3734_v9 = vmul.f32 0.5, %v3733_v2  ;;  %v4455_v4 = vadd.f32 %v4423_v21, %v4362_v6  ;;  %v3919_v47 = vmul.f32 %v8547_v59, %v3849_v32 }
 0x445   :  { %v4274_v44 = vpop.f32.mrf.mxu2  ;;  %4296 = vmatmul.bf16.gmra.mxu2 %v4091_v8  ;;  %4385 = vmatmul.bf16.gmra.mxu3 %v4092_v5  ;;  %v3920_v14 = vmul.f32 %v8557_v15, %v3850_v23 }
 0x446   :  { %v3735_v55 = vsub.f32 1.5, %v3734_v9  ;;  %4487 = vst [vmem:[%s9533_s11 + $0x60] sm:$0xff] %v4455_v4  ;;  %v4275_v52 = vadd.f32 %v9334_v33, %v4274_v44  ;;  %v3989_v12 = vadd.f32 %v8599_v20, %v3919_v47 }
 0x447   :  { %v3404_v42 = vpop.xlane.xlu0 %3403  ;;  %v5082_v34 = vpop.eup %5081 }
 0x448   :  { %v3444_v24 = vmul.f32 %v3404_v42, %v8107_v53  ;;  %v3736_v35 = vmul.f32 %v5080_v46, %v3735_v55  ;;  %v3742_v49 = vmul.f32 %v5082_v34, %v3475_v62  ;;  %vm3748_vm1 = vweird.f32 %v5082_v34 }
 0x449   :  { %v4363_v37 = vpop.f32.mrf.mxu3  ;;  %v4053_v3 = vmax.f32 %v3989_v12, 0.0  ;;  %vm3749_vm3 = vmor %vm3747_vm5, %vm3748_vm1 }
 0x44a   :  { %v3476_v57 = vadd.f32 1e-05, %v3444_v24  ;;  %v3740_v60 = vsel %vm3739_vm13, %v5080_v46, %v3736_v35  ;;  %v4364_v10 = vadd.f32 %v4363_v37, %v4275_v52  ;;  %v3743_v16 = vmul.f32 %v5082_v34, %v3742_v49  ;;  %v4426_v37 = vld [vmem:[%s9532_s4 + $0x78] sm:$0xff] }
 0x44b   :  { %v3851_v36 = vmul.f32 %v3740_v60, %v9071_v1  ;;  %v3852_v25 = vmul.f32 %v3740_v60, %v9074_v56  ;;  %v3990_v1 = vadd.f32 %v8601_v50, %v3920_v14 }
 0x44c   :  { %5083 = vrsqrt.f32 %v3476_v57  ;;  %v4456_v31 = vadd.f32 %v4424_v61, %v4364_v10  ;;  %v3744_v19 = vmul.f32 0.5, %v3743_v16  ;;  %vm3757_vm0 = vweird.f32 %v3476_v57 }
 0x44d   :  { %v4277_v54 = vpop.f32.mrf.mxu2  ;;  %v3921_v48 = vmul.f32 %v8547_v59, %v3851_v36  ;;  %v3922_v27 = vmul.f32 %v8557_v15, %v3852_v25  ;;  %v4054_v6 = vmax.f32 %v3990_v1, 0.0 }
 0x44e   :  { %4488 = vst [vmem:[%s9533_s11 + $0x68] sm:$0xff] %v4456_v31  ;;  %v4278_v46 = vadd.f32 %v9334_v33, %v4277_v54  ;;  %v3745_v51 = vsub.f32 1.5, %v3744_v19  ;;  %v4427_v54 = vld [vmem:[%s9532_s4 + $0x80] sm:$0xff] }
 0x44f   :  { %v3991_v56 = vadd.f32 %v8599_v20, %v3921_v48  ;;  %v3992_v13 = vadd.f32 %v8601_v50, %v3922_v27 }
 0x450   :  { %v3746_v0 = vmul.f32 %v5082_v34, %v3745_v51 }
 0x451   :  { %v4366_v21 = vpop.f32.mrf.mxu3  ;;  %v4055_v2 = vmax.f32 %v3991_v56, 0.0  ;;  %v4056_v8 = vmax.f32 %v3992_v13, 0.0 }
 0x452   :  { %v5084_v30 = vpop.eup %5083  ;;  %v4367_v22 = vadd.f32 %v4366_v21, %v4278_v46  ;;  %v3750_v44 = vsel %vm3749_vm3, %v5082_v34, %v3746_v0  ;;  %v4428_v21 = vld [vmem:[%s9532_s4 + $0x88] sm:$0xff] }
 0x453   :  { %v3752_v26 = vmul.f32 %v5084_v30, %v3476_v57  ;;  %v4093_v4 = vpack.c.bf16 %v4055_v2, %v4053_v3  ;;  %v4094_v32 = vpack.c.bf16 %v4056_v8, %v4054_v6  ;;  %v3853_v23 = vmul.f32 %v3750_v44, %v9107_v18 }
 0x454   :  { %v4457_v9 = vadd.f32 %v4425_v63, %v4367_v22  ;;  %v3854_v55 = vmul.f32 %v3750_v44, %v9111_v40  ;;  %vm3758_vm2 = vweird.f32 %v5084_v30  ;;  %v3407_v22 = vpop.xlane.xlu1 %3406 }
 0x455   :  { %v3753_v45 = vmul.f32 %v5084_v30, %v3752_v26  ;;  %v4279_v5 = vpop.f32.mrf.mxu2  ;;  %4301 = vmatmul.bf16.gmra.mxu2 %v4093_v4  ;;  %4390 = vmatmul.bf16.gmra.mxu3 %v4094_v32  ;;  %v3923_v18 = vmul.f32 %v8547_v59, %v3853_v23  ;;  %vm3759_vm8 = vmor %vm3757_vm0, %vm3758_vm2  ;;  %v3445_v2 = vmul.f32 %v3407_v22, %v8107_v53 }
 0x456   :  { %4489 = vst [vmem:[%s9533_s11 + $0x70] sm:$0xff] %v4457_v9  ;;  %v4280_v52 = vadd.f32 %v9334_v33, %v4279_v5  ;;  %v3924_v61 = vmul.f32 %v8557_v15, %v3854_v55 }
 0x457   :  { %v3754_v42 = vmul.f32 0.5, %v3753_v45  ;;  %v3993_v57 = vadd.f32 %v8599_v20, %v3923_v18  ;;  %v3477_v6 = vadd.f32 1e-05, %v3445_v2 }
 0x458   :  { %v3994_v31 = vadd.f32 %v8601_v50, %v3924_v61 }
 0x459   :  { %v3755_v62 = vsub.f32 1.5, %v3754_v42  ;;  %v4368_v35 = vpop.f32.mrf.mxu3  ;;  %v4057_v48 = vmax.f32 %v3993_v57, 0.0  ;;  %5085 = vrsqrt.f32 %v3477_v6  ;;  %vm3767_vm10 = vweird.f32 %v3477_v6 }
 0x45a   :  { %v4369_v40 = vadd.f32 %v4368_v35, %v4280_v52  ;;  %v4058_v46 = vmax.f32 %v3994_v31, 0.0 }
 0x45b   :  { %v3756_v24 = vmul.f32 %v5084_v30, %v3755_v62 }
 0x45c   :  { %v4458_v10 = vadd.f32 %v4426_v37, %v4369_v40 }
 0x45d   :  { %v3760_v47 = vsel %vm3759_vm8, %v5084_v30, %v3756_v24 }
 0x45e   :  { %v3855_v34 = vmul.f32 %v3760_v47, %v9131_v43  ;;  %v3856_v60 = vmul.f32 %v3760_v47, %v9134_v41  ;;  %4490 = vst [vmem:[%s9533_s11 + $0x78] sm:$0xff] %v4458_v10 }
 0x45f   :  { %v4282_v14 = vpop.f32.mrf.mxu2  ;;  %v5086_v8 = vpop.eup %5085 }
 0x460   :  { %v4283_v36 = vadd.f32 %v9334_v33, %v4282_v14  ;;  %v3925_v25 = vmul.f32 %v8547_v59, %v3855_v34  ;;  %v3926_v49 = vmul.f32 %v8557_v15, %v3856_v60  ;;  %v3762_v0 = vmul.f32 %v5086_v8, %v3477_v6 }
 0x461   :  { %v4371_v16 = vpop.f32.mrf.mxu3  ;;  %vm3768_vm4 = vweird.f32 %v5086_v8 }
 0x462   :  { %v3995_v43 = vadd.f32 %v8599_v20, %v3925_v25  ;;  %v3996_v41 = vadd.f32 %v8601_v50, %v3926_v49  ;;  %v4372_v12 = vadd.f32 %v4371_v16, %v4283_v36  ;;  %v3763_v45 = vmul.f32 %v5086_v8, %v3762_v0  ;;  %vm3769_vm9 = vmor %vm3767_vm10, %vm3768_vm4 }
 0x464   :  { %v4059_v27 = vmax.f32 %v3995_v43, 0.0  ;;  %v4060_v1 = vmax.f32 %v3996_v41, 0.0  ;;  %v4459_v19 = vadd.f32 %v4427_v54, %v4372_v12  ;;  %v3764_v9 = vmul.f32 0.5, %v3763_v45 }
 0x466   :  { %v4095_v56 = vpack.c.bf16 %v4059_v27, %v4057_v48  ;;  %v4096_v13 = vpack.c.bf16 %v4060_v1, %v4058_v46  ;;  %4491 = vst [vmem:[%s9533_s11 + $0x80] sm:$0xff] %v4459_v19  ;;  %v3765_v42 = vsub.f32 1.5, %v3764_v9 }
 0x467   :  { %v4284_v30 = vpop.f32.mrf.mxu2 }
 0x468   :  { %v4285_v51 = vadd.f32 %v9334_v33, %v4284_v30  ;;  %4306 = vmatmul.bf16.gmra.mxu2 %v4095_v56  ;;  %4395 = vmatmul.bf16.gmra.mxu3 %v4096_v13  ;;  %v3766_v5 = vmul.f32 %v5086_v8, %v3765_v42 }
 0x469   :  { %v4373_v26 = vpop.f32.mrf.mxu3 }
 0x46a   :  { %v4374_v63 = vadd.f32 %v4373_v26, %v4285_v51  ;;  %v3770_v62 = vsel %vm3769_vm9, %v5086_v8, %v3766_v5 }
 0x46b   :  { %v3857_v18 = vmul.f32 %v3770_v62, %v9158_v11  ;;  %v3858_v40 = vmul.f32 %v3770_v62, %v9161_v58 }
 0x46c   :  { %v4460_v3 = vadd.f32 %v4428_v21, %v4374_v63 }
 0x46d   :  { %v3927_v60 = vmul.f32 %v8547_v59, %v3857_v18  ;;  %v3928_v57 = vmul.f32 %v8557_v15, %v3858_v40 }
 0x46e   :  { %4492 = vst [vmem:[%s9533_s11 + $0x88] sm:$0xff] %v4460_v3 }
 0x46f   :  { %v3997_v16 = vadd.f32 %v8599_v20, %v3927_v60  ;;  %v3998_v54 = vadd.f32 %v8601_v50, %v3928_v57 }
 0x471   :  { %v4061_v13 = vmax.f32 %v3997_v16, 0.0  ;;  %v4062_v30 = vmax.f32 %v3998_v54, 0.0 }
 0x490   :  { %v3410_v4 = vpop.xlane.xlu2 %3409 }
 0x491   :  { %v3446_v32 = vmul.f32 %v3410_v4, %v8107_v53 }
 0x493   :  { %v3478_v44 = vadd.f32 1e-05, %v3446_v32  ;;  %v4430_v32 = vld [vmem:[%s9532_s4 + $0x98] sm:$0xff] }
 0x495   :  { %5087 = vrsqrt.f32 %v3478_v44  ;;  %vm3777_vm12 = vweird.f32 %v3478_v44 }
 0x498   :  { %v3413_v23 = vpop.xlane.xlu0 %3412 }
 0x499   :  { %v3447_v52 = vmul.f32 %v3413_v23, %v8107_v53 }
 0x49b   :  { %v5088_v55 = vpop.eup %5087  ;;  %v3479_v35 = vadd.f32 1e-05, %v3447_v52 }
 0x49c   :  { %v3772_v24 = vmul.f32 %v5088_v55, %v3478_v44  ;;  %vm3778_vm11 = vweird.f32 %v5088_v55 }
 0x49d   :  { %5089 = vrsqrt.f32 %v3479_v35  ;;  %vm3779_vm6 = vmor %vm3777_vm12, %vm3778_vm11  ;;  %vm3787_vm7 = vweird.f32 %v3479_v35 }
 0x49e   :  { %v3773_v37 = vmul.f32 %v5088_v55, %v3772_v24 }
 0x4a0   :  { %v3774_v61 = vmul.f32 0.5, %v3773_v37 }
 0x4a2   :  { %v3775_v47 = vsub.f32 1.5, %v3774_v61  ;;  %v3416_v34 = vpop.xlane.xlu1 %3415 }
 0x4a3   :  { %v3448_v14 = vmul.f32 %v3416_v34, %v8107_v53  ;;  %v5090_v36 = vpop.eup %5089 }
 0x4a4   :  { %v3776_v10 = vmul.f32 %v5088_v55, %v3775_v47  ;;  %v3782_v49 = vmul.f32 %v5090_v36, %v3479_v35  ;;  %vm3788_vm14 = vweird.f32 %v5090_v36  ;;  %v4431_v47 = vld [vmem:[%s9532_s4 + $0xa0] sm:$0xff] }
 0x4a5   :  { %v3480_v11 = vadd.f32 1e-05, %v3448_v14  ;;  %vm3789_vm15 = vmor %vm3787_vm7, %vm3788_vm14 }
 0x4a6   :  { %v3780_v25 = vsel %vm3779_vm6, %v5088_v55, %v3776_v10  ;;  %v3783_v43 = vmul.f32 %v5090_v36, %v3782_v49 }
 0x4a7   :  { %v3859_v31 = vmul.f32 %v3780_v25, %v9190_v38  ;;  %v3860_v58 = vmul.f32 %v3780_v25, %v9193_v17  ;;  %5091 = vrsqrt.f32 %v3480_v11  ;;  %v4287_v41 = vpop.f32.mrf.mxu2  ;;  %v4376_v48 = vpop.f32.mrf.mxu3  ;;  %v4429_v38 = vld [vmem:[%s9532_s4 + $0x90] sm:$0xff]  ;;  %vm3797_vm1 = vweird.f32 %v3480_v11 }
 0x4a8   :  { %v4288_v53 = vadd.f32 %v9334_v33, %v4287_v41  ;;  %v3784_v46 = vmul.f32 0.5, %v3783_v43 }
 0x4a9   :  { %v3929_v12 = vmul.f32 %v8547_v59, %v3859_v31  ;;  %v3930_v27 = vmul.f32 %v8557_v15, %v3860_v58 }
 0x4aa   :  { %v4377_v17 = vadd.f32 %v4376_v48, %v4288_v53  ;;  %v3785_v56 = vsub.f32 1.5, %v3784_v46 }
 0x4ab   :  { %v3999_v1 = vadd.f32 %v8599_v20, %v3929_v12  ;;  %v4000_v19 = vadd.f32 %v8601_v50, %v3930_v27  ;;  %v4433_v12 = vld [vmem:[%s9532_s4 + $0xb0] sm:$0xff] }
 0x4ac   :  { %v4461_v51 = vadd.f32 %v4429_v38, %v4377_v17  ;;  %v3786_v3 = vmul.f32 %v5090_v36, %v3785_v56 }
 0x4ad   :  { %v4063_v26 = vmax.f32 %v3999_v1, 0.0  ;;  %v4064_v21 = vmax.f32 %v4000_v19, 0.0  ;;  %v5092_v63 = vpop.eup %5091  ;;  %v4434_v19 = vld [vmem:[%s9532_s4 + $0xb8] sm:$0xff] }
 0x4ae   :  { %v3792_v22 = vmul.f32 %v5092_v63, %v3480_v11  ;;  %4493 = vst [vmem:[%s9533_s11 + $0x90] sm:$0xff] %v4461_v51  ;;  %v3790_v0 = vsel %vm3789_vm15, %v5090_v36, %v3786_v3  ;;  %vm3798_vm13 = vweird.f32 %v5092_v63 }
 0x4af   :  { %v4097_v2 = vpack.c.bf16 %v4063_v26, %v4061_v13  ;;  %v4098_v6 = vpack.c.bf16 %v4064_v21, %v4062_v30  ;;  %v4289_v8 = vpop.f32.mrf.mxu2  ;;  %v4378_v4 = vpop.f32.mrf.mxu3  ;;  %v3861_v5 = vmul.f32 %v3790_v0, %v9219_v7  ;;  %v3862_v23 = vmul.f32 %v3790_v0, %v9222_v28  ;;  %vm3799_vm5 = vmor %vm3797_vm1, %vm3798_vm13  ;;  %v4435_v21 = vld [vmem:[%s9532_s4 + $0xc0] sm:$0xff] }
 0x4b0   :  { %v3793_v45 = vmul.f32 %v5092_v63, %v3792_v22  ;;  %v4290_v9 = vadd.f32 %v9334_v33, %v4289_v8  ;;  %v4436_v8 = vld [vmem:[%s9532_s4 + $0xc8] sm:$0xff] }
 0x4b1   :  { %4311 = vmatmul.bf16.gmra.mxu2 %v4097_v2  ;;  %4400 = vmatmul.bf16.gmra.mxu3 %v4098_v6  ;;  %v3931_v24 = vmul.f32 %v8547_v59, %v3861_v5  ;;  %v3932_v35 = vmul.f32 %v8557_v15, %v3862_v23 }
 0x4b2   :  { %v3794_v44 = vmul.f32 0.5, %v3793_v45  ;;  %v4379_v42 = vadd.f32 %v4378_v4, %v4290_v9 }
 0x4b3   :  { %v4001_v60 = vadd.f32 %v8599_v20, %v3931_v24  ;;  %v4002_v14 = vadd.f32 %v8601_v50, %v3932_v35 }
 0x4b4   :  { %v3795_v55 = vsub.f32 1.5, %v3794_v44  ;;  %v4462_v52 = vadd.f32 %v4430_v32, %v4379_v42  ;;  %v4437_v44 = vld [vmem:[%s9532_s4 + $0xd0] sm:$0xff] }
 0x4b5   :  { %v4065_v25 = vmax.f32 %v4001_v60, 0.0  ;;  %v4066_v11 = vmax.f32 %v4002_v14, 0.0 }
 0x4b6   :  { %v3796_v62 = vmul.f32 %v5092_v63, %v3795_v55  ;;  %4494 = vst [vmem:[%s9533_s11 + $0x98] sm:$0xff] %v4462_v52 }
 0x4b8   :  { %v3800_v37 = vsel %vm3799_vm5, %v5092_v63, %v3796_v62  ;;  %v4292_v18 = vpop.f32.mrf.mxu2  ;;  %v4381_v61 = vpop.f32.mrf.mxu3  ;;  %v4438_v62 = vld [vmem:[%s9532_s4 + $0xd8] sm:$0xff] }
 0x4b9   :  { %v3863_v7 = vmul.f32 %v3800_v37, %v9260_v39  ;;  %v3864_v28 = vmul.f32 %v3800_v37, %v9263_v29  ;;  %v4293_v40 = vadd.f32 %v9334_v33, %v4292_v18 }
 0x4bb   :  { %v3933_v34 = vmul.f32 %v8547_v59, %v3863_v7  ;;  %v3934_v10 = vmul.f32 %v8557_v15, %v3864_v28  ;;  %v4382_v57 = vadd.f32 %v4381_v61, %v4293_v40  ;;  %v4439_v28 = vld [vmem:[%s9532_s4 + $0xe0] sm:$0xff] }
 0x4bd   :  { %v4003_v39 = vadd.f32 %v8599_v20, %v3933_v34  ;;  %v4004_v29 = vadd.f32 %v8601_v50, %v3934_v10  ;;  %v4463_v36 = vadd.f32 %v4431_v47, %v4382_v57  ;;  %v4432_v20 = vld [vmem:[%s9532_s4 + $0xa8] sm:$0xff] }
 0x4be   :  { %v4440_v10 = vld [vmem:[%s9532_s4 + $0xe8] sm:$0xff] }
 0x4bf   :  { %v4067_v49 = vmax.f32 %v4003_v39, 0.0  ;;  %v4068_v31 = vmax.f32 %v4004_v29, 0.0  ;;  %4495 = vst [vmem:[%s9533_s11 + $0xa0] sm:$0xff] %v4463_v36 }
 0x4c0   :  { %v4294_v59 = vpop.f32.mrf.mxu2  ;;  %v4383_v41 = vpop.f32.mrf.mxu3 }
 0x4c1   :  { %v4295_v58 = vadd.f32 %v9334_v33, %v4294_v59  ;;  %v4099_v15 = vpack.c.bf16 %v4067_v49, %v4065_v25  ;;  %v4100_v43 = vpack.c.bf16 %v4068_v31, %v4066_v11  ;;  %v4441_v25 = vld [vmem:[%s9532_s4 + $0xf0] sm:$0xff] }
 0x4c3   :  { %4316 = vmatmul.bf16.gmra.mxu2 %v4099_v15  ;;  %4405 = vmatmul.bf16.gmra.mxu3 %v4100_v43  ;;  %v4384_v50 = vadd.f32 %v4383_v41, %v4295_v58  ;;  %v4442_v15 = vld [vmem:[%s9532_s4 + $0xf8] sm:$0xff] }
 0x4c5   :  { %v4464_v16 = vadd.f32 %v4432_v20, %v4384_v50 }
 0x4c7   :  { %4496 = vst [vmem:[%s9533_s11 + $0xa8] sm:$0xff] %v4464_v16 }
 0x4c8   :  { %v4297_v54 = vpop.f32.mrf.mxu2  ;;  %v4386_v48 = vpop.f32.mrf.mxu3 }
 0x4c9   :  { %v4298_v53 = vadd.f32 %v9334_v33, %v4297_v54 }
 0x4cb   :  { %v4387_v27 = vadd.f32 %v4386_v48, %v4298_v53 }
 0x4cd   :  { %v4465_v46 = vadd.f32 %v4433_v12, %v4387_v27 }
 0x4cf   :  { %4497 = vst [vmem:[%s9533_s11 + $0xb0] sm:$0xff] %v4465_v46 }
 0x4d0   :  { %v4299_v38 = vpop.f32.mrf.mxu2  ;;  %v4388_v1 = vpop.f32.mrf.mxu3 }
 0x4d1   :  { %v4300_v17 = vadd.f32 %v9334_v33, %v4299_v38 }
 0x4d3   :  { %v4389_v56 = vadd.f32 %v4388_v1, %v4300_v17 }
 0x4d5   :  { %v4466_v13 = vadd.f32 %v4434_v19, %v4389_v56 }
 0x4d7   :  { %4498 = vst [vmem:[%s9533_s11 + $0xb8] sm:$0xff] %v4466_v13 }
 0x4d8   :  { %v4302_v30 = vpop.f32.mrf.mxu2  ;;  %v4391_v26 = vpop.f32.mrf.mxu3 }
 0x4d9   :  { %v4303_v51 = vadd.f32 %v9334_v33, %v4302_v30 }
 0x4db   :  { %v4392_v63 = vadd.f32 %v4391_v26, %v4303_v51 }
 0x4dd   :  { %v4467_v3 = vadd.f32 %v4435_v21, %v4392_v63 }
 0x4df   :  { %4499 = vst [vmem:[%s9533_s11 + $0xc0] sm:$0xff] %v4467_v3 }
 0x4e0   :  { %v4304_v22 = vpop.f32.mrf.mxu2  ;;  %v4393_v6 = vpop.f32.mrf.mxu3 }
 0x4e1   :  { %v4305_v2 = vadd.f32 %v9334_v33, %v4304_v22 }
 0x4e3   :  { %v4394_v0 = vadd.f32 %v4393_v6, %v4305_v2 }
 0x4e5   :  { %v4468_v45 = vadd.f32 %v4436_v8, %v4394_v0 }
 0x4e7   :  { %4500 = vst [vmem:[%s9533_s11 + $0xc8] sm:$0xff] %v4468_v45 }
 0x4eb   :  { %v4307_v9 = vpop.f32.mrf.mxu2  ;;  %v4396_v32 = vpop.f32.mrf.mxu3 }
 0x4ec   :  { %v4308_v4 = vadd.f32 %v9334_v33, %v4307_v9 }
 0x4ee   :  { %v4397_v42 = vadd.f32 %v4396_v32, %v4308_v4 }
 0x4f0   :  { %v4469_v5 = vadd.f32 %v4437_v44, %v4397_v42 }
 0x4f2   :  { %4501 = vst [vmem:[%s9533_s11 + $0xd0] sm:$0xff] %v4469_v5 }
 0x4f3   :  { %v4309_v23 = vpop.f32.mrf.mxu2  ;;  %v4398_v52 = vpop.f32.mrf.mxu3 }
 0x4f4   :  { %v4310_v55 = vadd.f32 %v9334_v33, %v4309_v23 }
 0x4f6   :  { %v4399_v24 = vadd.f32 %v4398_v52, %v4310_v55 }
 0x4f8   :  { %v4470_v35 = vadd.f32 %v4438_v62, %v4399_v24 }
 0x4fa   :  { %4502 = vst [vmem:[%s9533_s11 + $0xd8] sm:$0xff] %v4470_v35 }
 0x534   :  { %v4312_v37 = vpop.f32.mrf.mxu2  ;;  %v4401_v7 = vpop.f32.mrf.mxu3 }
 0x535   :  { %v4313_v18 = vadd.f32 %v9334_v33, %v4312_v37 }
 0x537   :  { %v4402_v40 = vadd.f32 %v4401_v7, %v4313_v18 }
 0x539   :  { %v4471_v61 = vadd.f32 %v4439_v28, %v4402_v40 }
 0x53b   :  { %4503 = vst [vmem:[%s9533_s11 + $0xe0] sm:$0xff] %v4471_v61 }
 0x53c   :  { %v4314_v47 = vpop.f32.mrf.mxu2  ;;  %v4403_v60 = vpop.f32.mrf.mxu3 }
 0x53d   :  { %v4315_v34 = vadd.f32 %v9334_v33, %v4314_v47 }
 0x53f   :  { %v4404_v14 = vadd.f32 %v4403_v60, %v4315_v34 }
 0x541   :  { %v4472_v57 = vadd.f32 %v4440_v10, %v4404_v14 }
 0x543   :  { %4504 = vst [vmem:[%s9533_s11 + $0xe8] sm:$0xff] %v4472_v57 }
 0x546   :  { %v4317_v39 = vpop.f32.mrf.mxu2  ;;  %v4406_v29 = vpop.f32.mrf.mxu3 }
 0x547   :  { %v4318_v36 = vadd.f32 %v9334_v33, %v4317_v39 }
 0x549   :  { %v4407_v49 = vadd.f32 %v4406_v29, %v4318_v36 }
 0x54b   :  { %v4473_v11 = vadd.f32 %v4441_v25, %v4407_v49 }
 0x54d   :  { %4505 = vst [vmem:[%s9533_s11 + $0xf0] sm:$0xff] %v4473_v11 }
 0x54e   :  { %v4319_v31 = vpop.f32.mrf.mxu2  ;;  %v4408_v58 = vpop.f32.mrf.mxu3 }
 0x54f   :  { %v4320_v59 = vadd.f32 %v9334_v33, %v4319_v31 }
 0x551   :  { %v4409_v43 = vadd.f32 %v4408_v58, %v4320_v59 }
 0x553   :  { %v4474_v41 = vadd.f32 %v4442_v15, %v4409_v43 }
 0x555   :  { %4506 = vst [vmem:[%s9533_s11 + $0xf8] sm:$0xff] %v4474_v41 }

</bundles_post_ra>
